<compile_context>
chip_gen: v7x
topology: tpu7x:2x2x1
jax: 0.10.0
libtpu: 0.0.40
codegen_flags: <defaults>
</compile_context>

<pallas_src>
import functools

import jax
import jax.numpy as jnp
from jax.experimental import pallas as pl
from jax.experimental.pallas import tpu as pltpu


# ----------------------------- Pallas kernels ------------------------------ #

def _conv_gn_stats_kernel(*refs, k, stride, ho, wo, cin, cout, cp):
    """Full 3D-conv output plane for one (n, d_out) tile + fused GN statistics.

    refs = (x_0..x_{k-1},  # k padded input planes, (1,1,Hp,Wp,Cin), compute dtype
            w_ref,         # (k^3*Cin, CP) weight slab (Cout zero-padded to CP)
            b_ref,         # (1, CP) bias (zero-padded), f32
            y_ref,         # (1, 1, Ho*Wo, Cout) conv output tile (compute dtype)
            st_ref,        # (1, 1, 2, 128) [tile_sum, tile_M2]
            patch_ref)     # (Ho*Wo, k^3*Cin) VMEM im2col scratch (compute dtype)
    """
    x_refs = refs[:k]
    w_ref, b_ref, y_ref, st_ref, patch_ref = refs[k:]
    howo = ho * wo
    step = stride if stride > 1 else None

    # im2col directly into the VMEM scratch: no f32 casts, no concatenate copies.
    for kd in range(k):
        plane = x_refs[kd][0, 0]                              # (Hp, Wp, Cin)
        for kh in range(k):
            hs = slice(kh, kh + (ho - 1) * stride + 1, step)
            for kw in range(k):
                ws = slice(kw, kw + (wo - 1) * stride + 1, step)
                col = ((kd * k + kh) * k + kw) * cin
                patch_ref[:, col:col + cin] = plane[hs, ws, :].reshape(howo, cin)

    # One long-K matmul per tile (K = k^3*Cin), f32 accumulation on the MXU.
    acc = jnp.dot(patch_ref[...], w_ref[...], preferred_element_type=jnp.float32)
    vals = acc + b_ref[...]                                   # (Ho*Wo, CP); pad lanes == 0
    y_ref[0, 0] = vals[:, :cout].astype(y_ref.dtype)          # channel-dense store

    # Fused GroupNorm statistics from the f32 accumulator (single pass).
    lane = jax.lax.broadcasted_iota(jnp.int32, (1, cp), 1)
    valid = (lane < cout).astype(jnp.float32)
    cnt = jnp.float32(howo * cout)
    tsum = jnp.sum(vals * valid)
    tmean = tsum / cnt
    m2 = jnp.sum(jnp.square(vals - tmean) * valid)
    ones = jnp.ones((1, 128), jnp.float32)
    st_ref[0, 0] = jnp.concatenate([tsum * ones, m2 * ones], axis=0)


def _gn_apply_kernel(y_ref, sc_ref, sh_ref, o_ref, *, ho, wo, pad, n_do, do_act):
    """Normalize/affine/ReLU one depth plane and write it (with zero spatial
    borders) directly into the next layer's padded input buffer.

    y_ref : (1, 1, Ho*Wo, Cout)         conv output plane (compute dtype)
    sc/sh : (1, 1, 1, Cout)             per-sample, per-channel scale / shift (f32)
    o_ref : (1, 1, Ho+2p, Wo+2p, Cout)  one depth plane of the next layer's input
    """
    def write_plane():
        v = y_ref[0, 0].astype(jnp.float32) * sc_ref[0, 0] + sh_ref[0, 0]
        if do_act:
            v = jnp.maximum(v, 0.0)
        v = v.astype(o_ref.dtype)
        for h in range(ho):                                   # (Wo, Cout) row stores
            o_ref[0, 0, pad + h, pad:pad + wo, :] = v[h * wo:(h + 1) * wo, :]

    if pad > 0:
        # Zero the whole padded plane, then overwrite the interior when this
        # grid step corresponds to a real (non depth-padding) output plane.
        o_ref[0, 0] = jnp.zeros(o_ref.shape[2:], o_ref.dtype)
        di = pl.program_id(1)
        pl.when(jnp.logical_and(di >= pad, di < pad + n_do))(write_plane)
    else:
        write_plane()


# ------------------------------ layer wrappers ------------------------------ #

def _conv3d_gn_stats(xp, w, b, stride, compute_dtype):
    """Conv3d (with bias) on an already spatially padded NDHWC input + GN stats.

    xp: (N, Dp, Hp, Wp, Cin) compute_dtype; w: (Cout, Cin, k, k, k); b: (Cout,)
    Returns y: (N, Do, Ho*Wo, Cout) compute_dtype (channel-dense),
            stats: (N, Do, 2, 128) f32 per-tile [sum, M2], and (Do, Ho, Wo).
    """
    n, dp, hp, wp, cin = xp.shape
    cout, _, k, _, _ = w.shape
    s = stride
    do = (dp - k) // s + 1
    ho = (hp - k) // s + 1
    wo = (wp - k) // s + 1
    cp = ((cout + 127) // 128) * 128
    kk = k * k * k * cin
    howo = ho * wo

    # (Cout, Cin, kd, kh, kw) -> ((kd, kh, kw, cin), Cout) padded to CP lanes.
    wt = jnp.transpose(w, (2, 3, 4, 1, 0)).reshape(kk, cout)
    wt = jnp.pad(wt, ((0, 0), (0, cp - cout))).astype(compute_dtype)
    bp = jnp.pad(b, (0, cp - cout)).reshape(1, cp).astype(jnp.float32)

    kern = functools.partial(_conv_gn_stats_kernel, k=k, stride=s, ho=ho, wo=wo,
                             cin=cin, cout=cout, cp=cp)

    def make_x_map(kd):
        return lambda ni, di: (ni, di * s + kd, 0, 0, 0)

    in_specs = [pl.BlockSpec((1, 1, hp, wp, cin), make_x_map(kd)) for kd in range(k)]
    in_specs += [pl.BlockSpec((kk, cp), lambda ni, di: (0, 0)),     # resident weights
                 pl.BlockSpec((1, cp), lambda ni, di: (0, 0))]      # resident bias

    itemsize = jnp.dtype(compute_dtype).itemsize
    flops = 2 * n * do * howo * kk * cp
    bytes_accessed = int(k * xp.size * itemsize + wt.size * itemsize
                         + n * do * howo * cout * itemsize + n * do * 2 * 128 * 4)

    # TODO(synk): for large Ho*Wo / Cin (v7x 64 MiB VMEM) add an Ho-slab tile
    # axis via memory_space=pl.ANY + manual make_async_copy of overlapping rows.
    y, stats = pl.pallas_call(
        kern,
        out_shape=(jax.ShapeDtypeStruct((n, do, howo, cout), compute_dtype),
                   jax.ShapeDtypeStruct((n, do, 2, 128), jnp.float32)),
        grid=(n, do),
        in_specs=in_specs,
        out_specs=(pl.BlockSpec((1, 1, howo, cout), lambda ni, di: (ni, di, 0, 0)),
                   pl.BlockSpec((1, 1, 2, 128), lambda ni, di: (ni, di, 0, 0))),
        scratch_shapes=[pltpu.VMEM((howo, kk), compute_dtype)],
        compiler_params=pltpu.CompilerParams(
            dimension_semantics=("parallel", "parallel")),
        cost_estimate=pl.CostEstimate(flops=flops, transcendentals=0,
                                      bytes_accessed=bytes_accessed),
    )(*([xp] * k), wt, bp)
    return y, stats, (do, ho, wo)


def _groupnorm1_relu_apply(y, stats, gamma, beta, cout, do_act, *, ho, wo,
                           next_pad, out_dtype, eps=1e-5):
    """Chan's-formula combine of per-tile stats + tiled normalize/affine/ReLU,
    writing into the (optionally spatially padded) next-layer input buffer."""
    n, do_, howo, _ = y.shape
    tile_cnt = float(howo * cout)
    total_cnt = float(do_ * howo * cout)

    tsum = stats[:, :, 0, 0]                                  # (N, Do)
    tm2 = stats[:, :, 1, 0]                                   # (N, Do)
    tmean = tsum / tile_cnt
    mean = jnp.sum(tsum, axis=1) / total_cnt                  # (N,)
    m2 = jnp.sum(tm2, axis=1) + tile_cnt * jnp.sum(
        jnp.square(tmean - mean[:, None]), axis=1)
    var = m2 / total_cnt                                      # population variance
    inv = jax.lax.rsqrt(var + eps)                            # (N,)

    scale = (gamma[None, :] * inv[:, None]).reshape(n, 1, 1, cout)
    shift = (beta[None, :] - mean[:, None] * gamma[None, :] * inv[:, None]
             ).reshape(n, 1, 1, cout)

    p = next_pad
    dp2, hp2, wp2 = do_ + 2 * p, ho + 2 * p, wo + 2 * p
    kern = functools.partial(_gn_apply_kernel, ho=ho, wo=wo, pad=p, n_do=do_,
                             do_act=do_act)
    return pl.pallas_call(
        kern,
        out_shape=jax.ShapeDtypeStruct((n, dp2, hp2, wp2, cout), out_dtype),
        grid=(n, dp2),
        in_specs=[
            pl.BlockSpec((1, 1, howo, cout),
                         lambda ni, di: (ni, jnp.clip(di - p, 0, do_ - 1), 0, 0)),
            pl.BlockSpec((1, 1, 1, cout), lambda ni, di: (ni, 0, 0, 0)),
            pl.BlockSpec((1, 1, 1, cout), lambda ni, di: (ni, 0, 0, 0)),
        ],
        out_specs=pl.BlockSpec((1, 1, hp2, wp2, cout),
                               lambda ni, di: (ni, di, 0, 0, 0)),
        compiler_params=pltpu.CompilerParams(
            dimension_semantics=("parallel", "parallel")),
        cost_estimate=pl.CostEstimate(
            flops=2 * n * do_ * howo * cout, transcendentals=0,
            bytes_accessed=int(y.size * y.dtype.itemsize
                               + n * dp2 * hp2 * wp2 * cout
                               * jnp.dtype(out_dtype).itemsize)),
    )(y, scale, shift)


# ------------------------------- module glue -------------------------------- #

def init_bott_conv_gn_relu3(key, in_channels, out_channels, ksize, ratio):
    """Deterministic parameter init (shapes follow the PyTorch module)."""
    mid = in_channels // ratio
    dims = [(in_channels, mid), (mid, mid), (mid, out_channels)]
    params = []
    for ci, co in dims:
        key, k1, k2 = jax.random.split(key, 3)
        fan_in = ci * ksize ** 3
        bound = 1.0 / float(fan_in) ** 0.5
        w = jax.random.uniform(k1, (co, ci, ksize, ksize, ksize),
                               jnp.float32, -bound, bound)
        b = jax.random.uniform(k2, (co,), jnp.float32, -bound, bound)
        gamma = jnp.ones((co,), jnp.float32)
        beta = jnp.zeros((co,), jnp.float32)
        params.append(dict(w=w, b=b, gamma=gamma, beta=beta))
    return params


def bott_conv_gn_relu3(x_ncdhw, params, *, ksize, stride, padding, do_act=True,
                       compute_dtype=jnp.float32):
    """Forward pass; input/output in NCDHW like the PyTorch module.

    compute_dtype=jnp.bfloat16 halves conv-operand and intermediate HBM traffic
    (recommended on v6e/v7x); accumulation and GroupNorm math stay in f32.
    """
    del ksize  # encoded in the weight shapes
    p = padding
    x = jnp.transpose(x_ncdhw, (0, 2, 3, 4, 1))               # NCDHW -> NDHWC
    # The only XLA-side pad/cast: the very first layer's input.
    xp = jnp.pad(x, ((0, 0), (p, p), (p, p), (p, p), (0, 0))).astype(compute_dtype)
    acts = [True, True, do_act]
    n_layers = len(params)
    for li, (prm, act) in enumerate(zip(params, acts)):
        cout = prm["w"].shape[0]
        y, stats, (do_, ho, wo) = _conv3d_gn_stats(xp, prm["w"], prm["b"],
                                                   stride, compute_dtype)
        last = li == n_layers - 1
        xp = _groupnorm1_relu_apply(
            y, stats, prm["gamma"], prm["beta"], cout, act, ho=ho, wo=wo,
            next_pad=0 if last else p,
            out_dtype=jnp.float32 if last else compute_dtype)
    # xp is the (unpadded) final activation (N, Do, Ho, Wo, Cout) in f32.
    return jnp.transpose(xp, (0, 4, 1, 2, 3))                 # NDHWC -> NCDHW


def _ref_forward(x_ncdhw, params, *, stride, padding, do_act=True):
    """Pure-JAX reference for validation."""
    x = x_ncdhw
    acts = [True, True, do_act]
    for p, a in zip(params, acts):
        y = jax.lax.conv_general_dilated(
            x, p["w"], window_strides=(stride,) * 3,
            padding=[(padding, padding)] * 3,
            dimension_numbers=("NCDHW", "OIDHW", "NCDHW"))
        y = y + p["b"].reshape(1, -1, 1, 1, 1)
        mean = jnp.mean(y, axis=(1, 2, 3, 4), keepdims=True)
        var = jnp.mean((y - mean) ** 2, axis=(1, 2, 3, 4), keepdims=True)
        y = (y - mean) * jax.lax.rsqrt(var + 1e-5)
        y = y * p["gamma"].reshape(1, -1, 1, 1, 1) + p["beta"].reshape(1, -1, 1, 1, 1)
        if a:
            y = jnp.maximum(y, 0.0)
        x = y
    return x


# ---------------------------------- main ------------------------------------ #

if __name__ == "__main__":
    N, Cin, Cout, ratio = 2, 8, 8, 2
    D = H = W = 8
    ksize, stride, padding = 3, 1, 1

    key = jax.random.PRNGKey(0)
    kx, kp = jax.random.split(key)
    x = jax.random.normal(kx, (N, Cin, D, H, W), jnp.float32)
    params = init_bott_conv_gn_relu3(kp, Cin, Cout, ksize, ratio)

    ref = jax.block_until_ready(
        _ref_forward(x, params, stride=stride, padding=padding, do_act=True))

    # f32 path: exact-semantics check against the pure-JAX reference.
    fwd_f32 = jax.jit(functools.partial(
        bott_conv_gn_relu3, ksize=ksize, stride=stride, padding=padding,
        do_act=True, compute_dtype=jnp.float32))
    out = jax.block_until_ready(fwd_f32(x, params))
    assert out.shape == (N, Cout, D, H, W), out.shape
    err = float(jnp.max(jnp.abs(out - ref)))
    assert err < 2e-2, err

    # bf16 matmul operands + bf16 intermediates (v6e/v7x): looser numeric check.
    fwd_bf16 = jax.jit(functools.partial(
        bott_conv_gn_relu3, ksize=ksize, stride=stride, padding=padding,
        do_act=True, compute_dtype=jnp.bfloat16))
    out_bf16 = jax.block_until_ready(fwd_bf16(x, params))
    err_bf16 = float(jnp.max(jnp.abs(out_bf16 - ref)))
    assert err_bf16 < 2e-1, err_bf16

    print("KERNEL_OK")
</pallas_src>

<mosaic_0001>
module attributes {stable_mosaic.version = 11 : i64} {
  func.func @_conv_gn_stats_kernel(%arg0: i32, %arg1: i32, %arg2: memref<1x1x10x10x8xf32, #tpu.memory_space<vmem>>, %arg3: memref<1x1x10x10x8xf32, #tpu.memory_space<vmem>>, %arg4: memref<1x1x10x10x8xf32, #tpu.memory_space<vmem>>, %arg5: memref<216x128xf32, #tpu.memory_space<vmem>>, %arg6: memref<1x128xf32, #tpu.memory_space<vmem>>, %arg7: memref<1x1x64x4xf32, #tpu.memory_space<vmem>>, %arg8: memref<1x1x2x128xf32, #tpu.memory_space<vmem>>, %arg9: memref<64x216xf32, #tpu.memory_space<vmem>>) attributes {dimension_semantics = [#tpu.dimension_semantics<parallel>, #tpu.dimension_semantics<parallel>], iteration_bounds = array<i64: 2, 8>, scalar_prefetch = 0 : i64, scratch_operands = 1 : i64, tpu.core_type = #tpu.core_type<tc>, window_params = [{transform_indices = @transform_0, window_bounds = array<i64: 1, 1, 10, 10, 8>}, {transform_indices = @transform_1, window_bounds = array<i64: 1, 1, 10, 10, 8>}, {transform_indices = @transform_2, window_bounds = array<i64: 1, 1, 10, 10, 8>}, {pipeline_mode = #tpu.pipeline_mode<synchronous>, transform_indices = @transform_3, window_bounds = array<i64: 216, 128>}, {pipeline_mode = #tpu.pipeline_mode<synchronous>, transform_indices = @transform_4, window_bounds = array<i64: 1, 128>}, {transform_indices = @transform_5, window_bounds = array<i64: 1, 1, 64, 4>}, {transform_indices = @transform_6, window_bounds = array<i64: 1, 1, 2, 128>}]} {
    %c0 = arith.constant 0 : index
    %c0_0 = arith.constant 0 : index
    %c0_1 = arith.constant 0 : index
    %c0_2 = arith.constant 0 : index
    %c0_3 = arith.constant 0 : index
    %0 = vector.load %arg2[%c0, %c0_0, %c0_1, %c0_2, %c0_3] : memref<1x1x10x10x8xf32, #tpu.memory_space<vmem>>, vector<1x1x10x10x8xf32>
    %1 = vector.shape_cast %0 : vector<1x1x10x10x8xf32> to vector<10x10x8xf32>
    %2 = vector.extract_strided_slice %1 {offsets = [0, 0, 0], sizes = [8, 8, 8], strides = [1, 1, 1]} : vector<10x10x8xf32> to vector<8x8x8xf32>
    %3 = vector.shape_cast %2 : vector<8x8x8xf32> to vector<64x8xf32>
    %c0_4 = arith.constant 0 : index
    %c0_5 = arith.constant 0 : index
    %4 = vector.load %arg9[%c0_4, %c0_5] : memref<64x216xf32, #tpu.memory_space<vmem>>, vector<64x8xf32>
    tpu.vector_store %arg9[%c0_4, %c0_5], %3 {strides = array<i32>} : memref<64x216xf32, #tpu.memory_space<vmem>>, vector<64x8xf32>,
    %5 = vector.extract_strided_slice %1 {offsets = [0, 1, 0], sizes = [8, 8, 8], strides = [1, 1, 1]} : vector<10x10x8xf32> to vector<8x8x8xf32>
    %6 = vector.shape_cast %5 : vector<8x8x8xf32> to vector<64x8xf32>
    %c0_6 = arith.constant 0 : index
    %c8 = arith.constant 8 : index
    %7 = vector.load %arg9[%c0_6, %c8] : memref<64x216xf32, #tpu.memory_space<vmem>>, vector<64x8xf32>
    tpu.vector_store %arg9[%c0_6, %c8], %6 {strides = array<i32>} : memref<64x216xf32, #tpu.memory_space<vmem>>, vector<64x8xf32>,
    %8 = vector.extract_strided_slice %1 {offsets = [0, 2, 0], sizes = [8, 8, 8], strides = [1, 1, 1]} : vector<10x10x8xf32> to vector<8x8x8xf32>
    %9 = vector.shape_cast %8 : vector<8x8x8xf32> to vector<64x8xf32>
    %c0_7 = arith.constant 0 : index
    %c16 = arith.constant 16 : index
    %10 = vector.load %arg9[%c0_7, %c16] : memref<64x216xf32, #tpu.memory_space<vmem>>, vector<64x8xf32>
    tpu.vector_store %arg9[%c0_7, %c16], %9 {strides = array<i32>} : memref<64x216xf32, #tpu.memory_space<vmem>>, vector<64x8xf32>,
    %11 = vector.extract_strided_slice %1 {offsets = [1, 0, 0], sizes = [8, 8, 8], strides = [1, 1, 1]} : vector<10x10x8xf32> to vector<8x8x8xf32>
    %12 = vector.shape_cast %11 : vector<8x8x8xf32> to vector<64x8xf32>
    %c0_8 = arith.constant 0 : index
    %c24 = arith.constant 24 : index
    %13 = vector.load %arg9[%c0_8, %c24] : memref<64x216xf32, #tpu.memory_space<vmem>>, vector<64x8xf32>
    tpu.vector_store %arg9[%c0_8, %c24], %12 {strides = array<i32>} : memref<64x216xf32, #tpu.memory_space<vmem>>, vector<64x8xf32>,
    %14 = vector.extract_strided_slice %1 {offsets = [1, 1, 0], sizes = [8, 8, 8], strides = [1, 1, 1]} : vector<10x10x8xf32> to vector<8x8x8xf32>
    %15 = vector.shape_cast %14 : vector<8x8x8xf32> to vector<64x8xf32>
    %c0_9 = arith.constant 0 : index
    %c32 = arith.constant 32 : index
    %16 = vector.load %arg9[%c0_9, %c32] : memref<64x216xf32, #tpu.memory_space<vmem>>, vector<64x8xf32>
    tpu.vector_store %arg9[%c0_9, %c32], %15 {strides = array<i32>} : memref<64x216xf32, #tpu.memory_space<vmem>>, vector<64x8xf32>,
    %17 = vector.extract_strided_slice %1 {offsets = [1, 2, 0], sizes = [8, 8, 8], strides = [1, 1, 1]} : vector<10x10x8xf32> to vector<8x8x8xf32>
    %18 = vector.shape_cast %17 : vector<8x8x8xf32> to vector<64x8xf32>
    %c0_10 = arith.constant 0 : index
    %c40 = arith.constant 40 : index
    %19 = vector.load %arg9[%c0_10, %c40] : memref<64x216xf32, #tpu.memory_space<vmem>>, vector<64x8xf32>
    tpu.vector_store %arg9[%c0_10, %c40], %18 {strides = array<i32>} : memref<64x216xf32, #tpu.memory_space<vmem>>, vector<64x8xf32>,
    %20 = vector.extract_strided_slice %1 {offsets = [2, 0, 0], sizes = [8, 8, 8], strides = [1, 1, 1]} : vector<10x10x8xf32> to vector<8x8x8xf32>
    %21 = vector.shape_cast %20 : vector<8x8x8xf32> to vector<64x8xf32>
    %c0_11 = arith.constant 0 : index
    %c48 = arith.constant 48 : index
    %22 = vector.load %arg9[%c0_11, %c48] : memref<64x216xf32, #tpu.memory_space<vmem>>, vector<64x8xf32>
    tpu.vector_store %arg9[%c0_11, %c48], %21 {strides = array<i32>} : memref<64x216xf32, #tpu.memory_space<vmem>>, vector<64x8xf32>,
    %23 = vector.extract_strided_slice %1 {offsets = [2, 1, 0], sizes = [8, 8, 8], strides = [1, 1, 1]} : vector<10x10x8xf32> to vector<8x8x8xf32>
    %24 = vector.shape_cast %23 : vector<8x8x8xf32> to vector<64x8xf32>
    %c0_12 = arith.constant 0 : index
    %c56 = arith.constant 56 : index
    %25 = vector.load %arg9[%c0_12, %c56] : memref<64x216xf32, #tpu.memory_space<vmem>>, vector<64x8xf32>
    tpu.vector_store %arg9[%c0_12, %c56], %24 {strides = array<i32>} : memref<64x216xf32, #tpu.memory_space<vmem>>, vector<64x8xf32>,
    %26 = vector.extract_strided_slice %1 {offsets = [2, 2, 0], sizes = [8, 8, 8], strides = [1, 1, 1]} : vector<10x10x8xf32> to vector<8x8x8xf32>
    %27 = vector.shape_cast %26 : vector<8x8x8xf32> to vector<64x8xf32>
    %c0_13 = arith.constant 0 : index
    %c64 = arith.constant 64 : index
    %28 = vector.load %arg9[%c0_13, %c64] : memref<64x216xf32, #tpu.memory_space<vmem>>, vector<64x8xf32>
    tpu.vector_store %arg9[%c0_13, %c64], %27 {strides = array<i32>} : memref<64x216xf32, #tpu.memory_space<vmem>>, vector<64x8xf32>,
    %c0_14 = arith.constant 0 : index
    %c0_15 = arith.constant 0 : index
    %c0_16 = arith.constant 0 : index
    %c0_17 = arith.constant 0 : index
    %c0_18 = arith.constant 0 : index
    %29 = vector.load %arg3[%c0_14, %c0_15, %c0_16, %c0_17, %c0_18] : memref<1x1x10x10x8xf32, #tpu.memory_space<vmem>>, vector<1x1x10x10x8xf32>
    %30 = vector.shape_cast %29 : vector<1x1x10x10x8xf32> to vector<10x10x8xf32>
    %31 = vector.extract_strided_slice %30 {offsets = [0, 0, 0], sizes = [8, 8, 8], strides = [1, 1, 1]} : vector<10x10x8xf32> to vector<8x8x8xf32>
    %32 = vector.shape_cast %31 : vector<8x8x8xf32> to vector<64x8xf32>
    %c0_19 = arith.constant 0 : index
    %c72 = arith.constant 72 : index
    %33 = vector.load %arg9[%c0_19, %c72] : memref<64x216xf32, #tpu.memory_space<vmem>>, vector<64x8xf32>
    tpu.vector_store %arg9[%c0_19, %c72], %32 {strides = array<i32>} : memref<64x216xf32, #tpu.memory_space<vmem>>, vector<64x8xf32>,
    %34 = vector.extract_strided_slice %30 {offsets = [0, 1, 0], sizes = [8, 8, 8], strides = [1, 1, 1]} : vector<10x10x8xf32> to vector<8x8x8xf32>
    %35 = vector.shape_cast %34 : vector<8x8x8xf32> to vector<64x8xf32>
    %c0_20 = arith.constant 0 : index
    %c80 = arith.constant 80 : index
    %36 = vector.load %arg9[%c0_20, %c80] : memref<64x216xf32, #tpu.memory_space<vmem>>, vector<64x8xf32>
    tpu.vector_store %arg9[%c0_20, %c80], %35 {strides = array<i32>} : memref<64x216xf32, #tpu.memory_space<vmem>>, vector<64x8xf32>,
    %37 = vector.extract_strided_slice %30 {offsets = [0, 2, 0], sizes = [8, 8, 8], strides = [1, 1, 1]} : vector<10x10x8xf32> to vector<8x8x8xf32>
    %38 = vector.shape_cast %37 : vector<8x8x8xf32> to vector<64x8xf32>
    %c0_21 = arith.constant 0 : index
    %c88 = arith.constant 88 : index
    %39 = vector.load %arg9[%c0_21, %c88] : memref<64x216xf32, #tpu.memory_space<vmem>>, vector<64x8xf32>
    tpu.vector_store %arg9[%c0_21, %c88], %38 {strides = array<i32>} : memref<64x216xf32, #tpu.memory_space<vmem>>, vector<64x8xf32>,
    %40 = vector.extract_strided_slice %30 {offsets = [1, 0, 0], sizes = [8, 8, 8], strides = [1, 1, 1]} : vector<10x10x8xf32> to vector<8x8x8xf32>
    %41 = vector.shape_cast %40 : vector<8x8x8xf32> to vector<64x8xf32>
    %c0_22 = arith.constant 0 : index
    %c96 = arith.constant 96 : index
    %42 = vector.load %arg9[%c0_22, %c96] : memref<64x216xf32, #tpu.memory_space<vmem>>, vector<64x8xf32>
    tpu.vector_store %arg9[%c0_22, %c96], %41 {strides = array<i32>} : memref<64x216xf32, #tpu.memory_space<vmem>>, vector<64x8xf32>,
    %43 = vector.extract_strided_slice %30 {offsets = [1, 1, 0], sizes = [8, 8, 8], strides = [1, 1, 1]} : vector<10x10x8xf32> to vector<8x8x8xf32>
    %44 = vector.shape_cast %43 : vector<8x8x8xf32> to vector<64x8xf32>
    %c0_23 = arith.constant 0 : index
    %c104 = arith.constant 104 : index
    %45 = vector.load %arg9[%c0_23, %c104] : memref<64x216xf32, #tpu.memory_space<vmem>>, vector<64x8xf32>
    tpu.vector_store %arg9[%c0_23, %c104], %44 {strides = array<i32>} : memref<64x216xf32, #tpu.memory_space<vmem>>, vector<64x8xf32>,
    %46 = vector.extract_strided_slice %30 {offsets = [1, 2, 0], sizes = [8, 8, 8], strides = [1, 1, 1]} : vector<10x10x8xf32> to vector<8x8x8xf32>
    %47 = vector.shape_cast %46 : vector<8x8x8xf32> to vector<64x8xf32>
    %c0_24 = arith.constant 0 : index
    %c112 = arith.constant 112 : index
    %48 = vector.load %arg9[%c0_24, %c112] : memref<64x216xf32, #tpu.memory_space<vmem>>, vector<64x8xf32>
    tpu.vector_store %arg9[%c0_24, %c112], %47 {strides = array<i32>} : memref<64x216xf32, #tpu.memory_space<vmem>>, vector<64x8xf32>,
    %49 = vector.extract_strided_slice %30 {offsets = [2, 0, 0], sizes = [8, 8, 8], strides = [1, 1, 1]} : vector<10x10x8xf32> to vector<8x8x8xf32>
    %50 = vector.shape_cast %49 : vector<8x8x8xf32> to vector<64x8xf32>
    %c0_25 = arith.constant 0 : index
    %c120 = arith.constant 120 : index
    %51 = vector.load %arg9[%c0_25, %c120] : memref<64x216xf32, #tpu.memory_space<vmem>>, vector<64x8xf32>
    tpu.vector_store %arg9[%c0_25, %c120], %50 {strides = array<i32>} : memref<64x216xf32, #tpu.memory_space<vmem>>, vector<64x8xf32>,
    %52 = vector.extract_strided_slice %30 {offsets = [2, 1, 0], sizes = [8, 8, 8], strides = [1, 1, 1]} : vector<10x10x8xf32> to vector<8x8x8xf32>
    %53 = vector.shape_cast %52 : vector<8x8x8xf32> to vector<64x8xf32>
    %c0_26 = arith.constant 0 : index
    %c128 = arith.constant 128 : index
    %54 = vector.load %arg9[%c0_26, %c128] : memref<64x216xf32, #tpu.memory_space<vmem>>, vector<64x8xf32>
    tpu.vector_store %arg9[%c0_26, %c128], %53 {strides = array<i32>} : memref<64x216xf32, #tpu.memory_space<vmem>>, vector<64x8xf32>,
    %55 = vector.extract_strided_slice %30 {offsets = [2, 2, 0], sizes = [8, 8, 8], strides = [1, 1, 1]} : vector<10x10x8xf32> to vector<8x8x8xf32>
    %56 = vector.shape_cast %55 : vector<8x8x8xf32> to vector<64x8xf32>
    %c0_27 = arith.constant 0 : index
    %c136 = arith.constant 136 : index
    %57 = vector.load %arg9[%c0_27, %c136] : memref<64x216xf32, #tpu.memory_space<vmem>>, vector<64x8xf32>
    tpu.vector_store %arg9[%c0_27, %c136], %56 {strides = array<i32>} : memref<64x216xf32, #tpu.memory_space<vmem>>, vector<64x8xf32>,
    %c0_28 = arith.constant 0 : index
    %c0_29 = arith.constant 0 : index
    %c0_30 = arith.constant 0 : index
    %c0_31 = arith.constant 0 : index
    %c0_32 = arith.constant 0 : index
    %58 = vector.load %arg4[%c0_28, %c0_29, %c0_30, %c0_31, %c0_32] : memref<1x1x10x10x8xf32, #tpu.memory_space<vmem>>, vector<1x1x10x10x8xf32>
    %59 = vector.shape_cast %58 : vector<1x1x10x10x8xf32> to vector<10x10x8xf32>
    %60 = vector.extract_strided_slice %59 {offsets = [0, 0, 0], sizes = [8, 8, 8], strides = [1, 1, 1]} : vector<10x10x8xf32> to vector<8x8x8xf32>
    %61 = vector.shape_cast %60 : vector<8x8x8xf32> to vector<64x8xf32>
    %c0_33 = arith.constant 0 : index
    %c144 = arith.constant 144 : index
    %62 = vector.load %arg9[%c0_33, %c144] : memref<64x216xf32, #tpu.memory_space<vmem>>, vector<64x8xf32>
    tpu.vector_store %arg9[%c0_33, %c144], %61 {strides = array<i32>} : memref<64x216xf32, #tpu.memory_space<vmem>>, vector<64x8xf32>,
    %63 = vector.extract_strided_slice %59 {offsets = [0, 1, 0], sizes = [8, 8, 8], strides = [1, 1, 1]} : vector<10x10x8xf32> to vector<8x8x8xf32>
    %64 = vector.shape_cast %63 : vector<8x8x8xf32> to vector<64x8xf32>
    %c0_34 = arith.constant 0 : index
    %c152 = arith.constant 152 : index
    %65 = vector.load %arg9[%c0_34, %c152] : memref<64x216xf32, #tpu.memory_space<vmem>>, vector<64x8xf32>
    tpu.vector_store %arg9[%c0_34, %c152], %64 {strides = array<i32>} : memref<64x216xf32, #tpu.memory_space<vmem>>, vector<64x8xf32>,
    %66 = vector.extract_strided_slice %59 {offsets = [0, 2, 0], sizes = [8, 8, 8], strides = [1, 1, 1]} : vector<10x10x8xf32> to vector<8x8x8xf32>
    %67 = vector.shape_cast %66 : vector<8x8x8xf32> to vector<64x8xf32>
    %c0_35 = arith.constant 0 : index
    %c160 = arith.constant 160 : index
    %68 = vector.load %arg9[%c0_35, %c160] : memref<64x216xf32, #tpu.memory_space<vmem>>, vector<64x8xf32>
    tpu.vector_store %arg9[%c0_35, %c160], %67 {strides = array<i32>} : memref<64x216xf32, #tpu.memory_space<vmem>>, vector<64x8xf32>,
    %69 = vector.extract_strided_slice %59 {offsets = [1, 0, 0], sizes = [8, 8, 8], strides = [1, 1, 1]} : vector<10x10x8xf32> to vector<8x8x8xf32>
    %70 = vector.shape_cast %69 : vector<8x8x8xf32> to vector<64x8xf32>
    %c0_36 = arith.constant 0 : index
    %c168 = arith.constant 168 : index
    %71 = vector.load %arg9[%c0_36, %c168] : memref<64x216xf32, #tpu.memory_space<vmem>>, vector<64x8xf32>
    tpu.vector_store %arg9[%c0_36, %c168], %70 {strides = array<i32>} : memref<64x216xf32, #tpu.memory_space<vmem>>, vector<64x8xf32>,
    %72 = vector.extract_strided_slice %59 {offsets = [1, 1, 0], sizes = [8, 8, 8], strides = [1, 1, 1]} : vector<10x10x8xf32> to vector<8x8x8xf32>
    %73 = vector.shape_cast %72 : vector<8x8x8xf32> to vector<64x8xf32>
    %c0_37 = arith.constant 0 : index
    %c176 = arith.constant 176 : index
    %74 = vector.load %arg9[%c0_37, %c176] : memref<64x216xf32, #tpu.memory_space<vmem>>, vector<64x8xf32>
    tpu.vector_store %arg9[%c0_37, %c176], %73 {strides = array<i32>} : memref<64x216xf32, #tpu.memory_space<vmem>>, vector<64x8xf32>,
    %75 = vector.extract_strided_slice %59 {offsets = [1, 2, 0], sizes = [8, 8, 8], strides = [1, 1, 1]} : vector<10x10x8xf32> to vector<8x8x8xf32>
    %76 = vector.shape_cast %75 : vector<8x8x8xf32> to vector<64x8xf32>
    %c0_38 = arith.constant 0 : index
    %c184 = arith.constant 184 : index
    %77 = vector.load %arg9[%c0_38, %c184] : memref<64x216xf32, #tpu.memory_space<vmem>>, vector<64x8xf32>
    tpu.vector_store %arg9[%c0_38, %c184], %76 {strides = array<i32>} : memref<64x216xf32, #tpu.memory_space<vmem>>, vector<64x8xf32>,
    %78 = vector.extract_strided_slice %59 {offsets = [2, 0, 0], sizes = [8, 8, 8], strides = [1, 1, 1]} : vector<10x10x8xf32> to vector<8x8x8xf32>
    %79 = vector.shape_cast %78 : vector<8x8x8xf32> to vector<64x8xf32>
    %c0_39 = arith.constant 0 : index
    %c192 = arith.constant 192 : index
    %80 = vector.load %arg9[%c0_39, %c192] : memref<64x216xf32, #tpu.memory_space<vmem>>, vector<64x8xf32>
    tpu.vector_store %arg9[%c0_39, %c192], %79 {strides = array<i32>} : memref<64x216xf32, #tpu.memory_space<vmem>>, vector<64x8xf32>,
    %81 = vector.extract_strided_slice %59 {offsets = [2, 1, 0], sizes = [8, 8, 8], strides = [1, 1, 1]} : vector<10x10x8xf32> to vector<8x8x8xf32>
    %82 = vector.shape_cast %81 : vector<8x8x8xf32> to vector<64x8xf32>
    %c0_40 = arith.constant 0 : index
    %c200 = arith.constant 200 : index
    %83 = vector.load %arg9[%c0_40, %c200] : memref<64x216xf32, #tpu.memory_space<vmem>>, vector<64x8xf32>
    tpu.vector_store %arg9[%c0_40, %c200], %82 {strides = array<i32>} : memref<64x216xf32, #tpu.memory_space<vmem>>, vector<64x8xf32>,
    %84 = vector.extract_strided_slice %59 {offsets = [2, 2, 0], sizes = [8, 8, 8], strides = [1, 1, 1]} : vector<10x10x8xf32> to vector<8x8x8xf32>
    %85 = vector.shape_cast %84 : vector<8x8x8xf32> to vector<64x8xf32>
    %c0_41 = arith.constant 0 : index
    %c208 = arith.constant 208 : index
    %86 = vector.load %arg9[%c0_41, %c208] : memref<64x216xf32, #tpu.memory_space<vmem>>, vector<64x8xf32>
    tpu.vector_store %arg9[%c0_41, %c208], %85 {strides = array<i32>} : memref<64x216xf32, #tpu.memory_space<vmem>>, vector<64x8xf32>,
    %c0_42 = arith.constant 0 : index
    %c0_43 = arith.constant 0 : index
    %87 = vector.load %arg9[%c0_42, %c0_43] : memref<64x216xf32, #tpu.memory_space<vmem>>, vector<64x216xf32>
    %c0_44 = arith.constant 0 : index
    %c0_45 = arith.constant 0 : index
    %88 = vector.load %arg5[%c0_44, %c0_45] : memref<216x128xf32, #tpu.memory_space<vmem>>, vector<216x128xf32>
    %cst = arith.constant dense<0.000000e+00> : vector<64x128xf32>
    %89 = tpu.matmul %87, %88, %cst {dimension_numbers = #tpu.dot_dimension_numbers<[1], [0], [0], [1], [0, 0, 1, 1], [], []>} : vector<64x216xf32>, vector<216x128xf32>, vector<64x128xf32> -> vector<64x128xf32>
    %c0_46 = arith.constant 0 : index
    %c0_47 = arith.constant 0 : index
    %90 = vector.load %arg6[%c0_46, %c0_47] : memref<1x128xf32, #tpu.memory_space<vmem>>, vector<1x128xf32>
    %91 = vector.broadcast %90 : vector<1x128xf32> to vector<64x128xf32>
    %92 = arith.addf %89, %91 : vector<64x128xf32>
    %93 = vector.extract_strided_slice %92 {offsets = [0, 0], sizes = [64, 4], strides = [1, 1]} : vector<64x128xf32> to vector<64x4xf32>
    %c0_48 = arith.constant 0 : index
    %c0_49 = arith.constant 0 : index
    %c0_50 = arith.constant 0 : index
    %c0_51 = arith.constant 0 : index
    %94 = vector.load %arg7[%c0_48, %c0_49, %c0_50, %c0_51] : memref<1x1x64x4xf32, #tpu.memory_space<vmem>>, vector<1x1x64x4xf32>
    %95 = vector.shape_cast %94 : vector<1x1x64x4xf32> to vector<64x4xf32>
    %96 = vector.shape_cast %93 : vector<64x4xf32> to vector<1x1x64x4xf32>
    tpu.vector_store %arg7[%c0_48, %c0_49, %c0_50, %c0_51], %96 {strides = array<i32>} : memref<1x1x64x4xf32, #tpu.memory_space<vmem>>, vector<1x1x64x4xf32>,
    %97 = tpu.iota {dimensions = array<i32: 1>} : vector<1x128xi32>
    %c4_i32 = arith.constant 4 : i32
    %98 = vector.broadcast %c4_i32 : i32 to vector<1x128xi32>
    %99 = arith.cmpi slt, %97, %98 : vector<1x128xi32>
    %100 = arith.extui %99 : vector<1x128xi1> to vector<1x128xi32>
    %101 = arith.sitofp %100 : vector<1x128xi32> to vector<1x128xf32>
    %102 = vector.broadcast %101 : vector<1x128xf32> to vector<64x128xf32>
    %103 = arith.mulf %92, %102 : vector<64x128xf32>
    %104 = vector.shape_cast %103 : vector<64x128xf32> to vector<1x64x128xf32>
    %cst_52 = arith.constant dense<0.000000e+00> : vector<1xf32>
    %105 = vector.multi_reduction <add>, %104, %cst_52 [1, 2] : vector<1x64x128xf32> to vector<1xf32>
    %106 = vector.shape_cast %105 : vector<1xf32> to vector<1x1x1xf32>
    %107 = vector.extract %106[0, 0, 0] : f32 from vector<1x1x1xf32>
    %cst_53 = arith.constant 2.560000e+02 : f32
    %108 = arith.divf %107, %cst_53 : f32
    %109 = vector.broadcast %108 : f32 to vector<64x128xf32>
    %110 = arith.subf %92, %109 : vector<64x128xf32>
    %111 = arith.mulf %110, %110 : vector<64x128xf32>
    %112 = vector.broadcast %101 : vector<1x128xf32> to vector<64x128xf32>
    %113 = arith.mulf %111, %112 : vector<64x128xf32>
    %114 = vector.shape_cast %113 : vector<64x128xf32> to vector<1x64x128xf32>
    %cst_54 = arith.constant dense<0.000000e+00> : vector<1xf32>
    %115 = vector.multi_reduction <add>, %114, %cst_54 [1, 2] : vector<1x64x128xf32> to vector<1xf32>
    %116 = vector.shape_cast %115 : vector<1xf32> to vector<1x1x1xf32>
    %117 = vector.extract %116[0, 0, 0] : f32 from vector<1x1x1xf32>
    %cst_55 = arith.constant 1.000000e+00 : f32
    %118 = vector.broadcast %cst_55 : f32 to vector<1x128xf32>
    %119 = vector.broadcast %107 : f32 to vector<1x128xf32>
    %120 = arith.mulf %119, %118 : vector<1x128xf32>
    %121 = vector.broadcast %117 : f32 to vector<1x128xf32>
    %122 = arith.mulf %121, %118 : vector<1x128xf32>
    %123 = tpu.concatenate %120, %122 in 0 : vector<1x128xf32>, vector<1x128xf32> -> vector<2x128xf32>
    %c0_56 = arith.constant 0 : index
    %c0_57 = arith.constant 0 : index
    %c0_58 = arith.constant 0 : index
    %c0_59 = arith.constant 0 : index
    %124 = vector.load %arg8[%c0_56, %c0_57, %c0_58, %c0_59] : memref<1x1x2x128xf32, #tpu.memory_space<vmem>>, vector<1x1x2x128xf32>
    %125 = vector.shape_cast %124 : vector<1x1x2x128xf32> to vector<2x128xf32>
    %126 = vector.shape_cast %123 : vector<2x128xf32> to vector<1x1x2x128xf32>
    tpu.vector_store %arg8[%c0_56, %c0_57, %c0_58, %c0_59], %126 {strides = array<i32>} : memref<1x1x2x128xf32, #tpu.memory_space<vmem>>, vector<1x1x2x128xf32>,
    return
  }
  func.func @transform_0(%arg0: i32, %arg1: i32) -> (i32, i32, i32, i32, i32) {
    %c1_i32 = arith.constant 1 : i32
    %0 = arith.muli %arg1, %c1_i32 : i32
    %c0_i32 = arith.constant 0 : i32
    %1 = arith.addi %0, %c0_i32 : i32
    %c0_i32_0 = arith.constant 0 : i32
    %c0_i32_1 = arith.constant 0 : i32
    %c0_i32_2 = arith.constant 0 : i32
    %c0_i32_3 = arith.constant 0 : i32
    return %arg0, %1, %c0_i32_0, %c0_i32_1, %c0_i32_2 : i32, i32, i32, i32, i32
  }
  func.func @transform_1(%arg0: i32, %arg1: i32) -> (i32, i32, i32, i32, i32) {
    %c1_i32 = arith.constant 1 : i32
    %0 = arith.muli %arg1, %c1_i32 : i32
    %c1_i32_0 = arith.constant 1 : i32
    %1 = arith.addi %0, %c1_i32_0 : i32
    %c0_i32 = arith.constant 0 : i32
    %c0_i32_1 = arith.constant 0 : i32
    %c0_i32_2 = arith.constant 0 : i32
    %c0_i32_3 = arith.constant 0 : i32
    return %arg0, %1, %c0_i32, %c0_i32_1, %c0_i32_2 : i32, i32, i32, i32, i32
  }
  func.func @transform_2(%arg0: i32, %arg1: i32) -> (i32, i32, i32, i32, i32) {
    %c1_i32 = arith.constant 1 : i32
    %0 = arith.muli %arg1, %c1_i32 : i32
    %c2_i32 = arith.constant 2 : i32
    %1 = arith.addi %0, %c2_i32 : i32
    %c0_i32 = arith.constant 0 : i32
    %c0_i32_0 = arith.constant 0 : i32
    %c0_i32_1 = arith.constant 0 : i32
    %c0_i32_2 = arith.constant 0 : i32
    return %arg0, %1, %c0_i32, %c0_i32_0, %c0_i32_1 : i32, i32, i32, i32, i32
  }
  func.func @transform_3(%arg0: i32, %arg1: i32) -> (i32, i32) {
    %c0_i32 = arith.constant 0 : i32
    %c0_i32_0 = arith.constant 0 : i32
    %c0_i32_1 = arith.constant 0 : i32
    return %c0_i32, %c0_i32_0 : i32, i32
  }
  func.func @transform_4(%arg0: i32, %arg1: i32) -> (i32, i32) {
    %c0_i32 = arith.constant 0 : i32
    %c0_i32_0 = arith.constant 0 : i32
    %c0_i32_1 = arith.constant 0 : i32
    return %c0_i32, %c0_i32_0 : i32, i32
  }
  func.func @transform_5(%arg0: i32, %arg1: i32) -> (i32, i32, i32, i32) {
    %c0_i32 = arith.constant 0 : i32
    %c0_i32_0 = arith.constant 0 : i32
    %c0_i32_1 = arith.constant 0 : i32
    return %arg0, %arg1, %c0_i32, %c0_i32_0 : i32, i32, i32, i32
  }
  func.func @transform_6(%arg0: i32, %arg1: i32) -> (i32, i32, i32, i32) {
    %c0_i32 = arith.constant 0 : i32
    %c0_i32_0 = arith.constant 0 : i32
    %c0_i32_1 = arith.constant 0 : i32
    return %arg0, %arg1, %c0_i32, %c0_i32_0 : i32, i32, i32, i32
  }
}

module attributes {stable_mosaic.version = 11 : i64} {
  func.func @_gn_apply_kernel(%arg0: i32, %arg1: i32, %arg2: memref<1x1x64x4xf32, #tpu.memory_space<vmem>>, %arg3: memref<1x1x1x4xf32, #tpu.memory_space<vmem>>, %arg4: memref<1x1x1x4xf32, #tpu.memory_space<vmem>>, %arg5: memref<1x1x10x10x4xf32, #tpu.memory_space<vmem>>) attributes {dimension_semantics = [#tpu.dimension_semantics<parallel>, #tpu.dimension_semantics<parallel>], iteration_bounds = array<i64: 2, 10>, scalar_prefetch = 0 : i64, scratch_operands = 0 : i64, tpu.core_type = #tpu.core_type<tc>, window_params = [{transform_indices = @transform_0, window_bounds = array<i64: 1, 1, 64, 4>}, {transform_indices = @transform_1, window_bounds = array<i64: 1, 1, 1, 4>}, {transform_indices = @transform_2, window_bounds = array<i64: 1, 1, 1, 4>}, {transform_indices = @transform_3, window_bounds = array<i64: 1, 1, 10, 10, 4>}]} {
    %cst = arith.constant 0.000000e+00 : f32
    %0 = vector.broadcast %cst : f32 to vector<10x10x4xf32>
    %c0 = arith.constant 0 : index
    %c0_0 = arith.constant 0 : index
    %c0_1 = arith.constant 0 : index
    %c0_2 = arith.constant 0 : index
    %c0_3 = arith.constant 0 : index
    %1 = vector.load %arg5[%c0, %c0_0, %c0_1, %c0_2, %c0_3] : memref<1x1x10x10x4xf32, #tpu.memory_space<vmem>>, vector<1x1x10x10x4xf32>
    %2 = vector.shape_cast %1 : vector<1x1x10x10x4xf32> to vector<10x10x4xf32>
    %3 = vector.shape_cast %0 : vector<10x10x4xf32> to vector<1x1x10x10x4xf32>
    tpu.vector_store %arg5[%c0, %c0_0, %c0_1, %c0_2, %c0_3], %3 {strides = array<i32>} : memref<1x1x10x10x4xf32, #tpu.memory_space<vmem>>, vector<1x1x10x10x4xf32>,
    %c1_i32 = arith.constant 1 : i32
    %4 = arith.cmpi sge, %arg1, %c1_i32 : i32
    %c9_i32 = arith.constant 9 : i32
    %5 = arith.cmpi slt, %arg1, %c9_i32 : i32
    %6 = arith.andi %4, %5 : i1
    %7 = arith.extui %6 : i1 to i32
    %c0_i32 = arith.constant 0 : i32
    %8 = arith.cmpi ne, %7, %c0_i32 : i32
    scf.if %8 {
      %c0_4 = arith.constant 0 : index
      %c0_5 = arith.constant 0 : index
      %c0_6 = arith.constant 0 : index
      %c0_7 = arith.constant 0 : index
      %9 = vector.load %arg2[%c0_4, %c0_5, %c0_6, %c0_7] : memref<1x1x64x4xf32, #tpu.memory_space<vmem>>, vector<1x1x64x4xf32>
      %10 = vector.shape_cast %9 : vector<1x1x64x4xf32> to vector<64x4xf32>
      %c0_8 = arith.constant 0 : index
      %c0_9 = arith.constant 0 : index
      %c0_10 = arith.constant 0 : index
      %c0_11 = arith.constant 0 : index
      %11 = vector.load %arg3[%c0_8, %c0_9, %c0_10, %c0_11] : memref<1x1x1x4xf32, #tpu.memory_space<vmem>>, vector<1x1x1x4xf32>
      %12 = vector.shape_cast %11 : vector<1x1x1x4xf32> to vector<1x4xf32>
      %13 = vector.broadcast %12 : vector<1x4xf32> to vector<64x4xf32>
      %14 = arith.mulf %10, %13 : vector<64x4xf32>
      %c0_12 = arith.constant 0 : index
      %c0_13 = arith.constant 0 : index
      %c0_14 = arith.constant 0 : index
      %c0_15 = arith.constant 0 : index
      %15 = vector.load %arg4[%c0_12, %c0_13, %c0_14, %c0_15] : memref<1x1x1x4xf32, #tpu.memory_space<vmem>>, vector<1x1x1x4xf32>
      %16 = vector.shape_cast %15 : vector<1x1x1x4xf32> to vector<1x4xf32>
      %17 = vector.broadcast %16 : vector<1x4xf32> to vector<64x4xf32>
      %18 = arith.addf %14, %17 : vector<64x4xf32>
      %cst_16 = arith.constant 0.000000e+00 : f32
      %19 = vector.broadcast %cst_16 : f32 to vector<64x4xf32>
      %20 = arith.maximumf %18, %19 : vector<64x4xf32>
      %21 = vector.extract_strided_slice %20 {offsets = [0, 0], sizes = [8, 4], strides = [1, 1]} : vector<64x4xf32> to vector<8x4xf32>
      %c0_17 = arith.constant 0 : index
      %c0_18 = arith.constant 0 : index
      %c1 = arith.constant 1 : index
      %c1_19 = arith.constant 1 : index
      %c0_20 = arith.constant 0 : index
      %22 = vector.load %arg5[%c0_17, %c0_18, %c1, %c1_19, %c0_20] : memref<1x1x10x10x4xf32, #tpu.memory_space<vmem>>, vector<1x1x1x8x4xf32>
      %23 = vector.shape_cast %22 : vector<1x1x1x8x4xf32> to vector<8x4xf32>
      %24 = vector.shape_cast %21 : vector<8x4xf32> to vector<1x1x1x8x4xf32>
      tpu.vector_store %arg5[%c0_17, %c0_18, %c1, %c1_19, %c0_20], %24 {strides = array<i32>} : memref<1x1x10x10x4xf32, #tpu.memory_space<vmem>>, vector<1x1x1x8x4xf32>,
      %25 = vector.extract_strided_slice %20 {offsets = [8, 0], sizes = [8, 4], strides = [1, 1]} : vector<64x4xf32> to vector<8x4xf32>
      %c0_21 = arith.constant 0 : index
      %c0_22 = arith.constant 0 : index
      %c2 = arith.constant 2 : index
      %c1_23 = arith.constant 1 : index
      %c0_24 = arith.constant 0 : index
      %26 = vector.load %arg5[%c0_21, %c0_22, %c2, %c1_23, %c0_24] : memref<1x1x10x10x4xf32, #tpu.memory_space<vmem>>, vector<1x1x1x8x4xf32>
      %27 = vector.shape_cast %26 : vector<1x1x1x8x4xf32> to vector<8x4xf32>
      %28 = vector.shape_cast %25 : vector<8x4xf32> to vector<1x1x1x8x4xf32>
      tpu.vector_store %arg5[%c0_21, %c0_22, %c2, %c1_23, %c0_24], %28 {strides = array<i32>} : memref<1x1x10x10x4xf32, #tpu.memory_space<vmem>>, vector<1x1x1x8x4xf32>,
      %29 = vector.extract_strided_slice %20 {offsets = [16, 0], sizes = [8, 4], strides = [1, 1]} : vector<64x4xf32> to vector<8x4xf32>
      %c0_25 = arith.constant 0 : index
      %c0_26 = arith.constant 0 : index
      %c3 = arith.constant 3 : index
      %c1_27 = arith.constant 1 : index
      %c0_28 = arith.constant 0 : index
      %30 = vector.load %arg5[%c0_25, %c0_26, %c3, %c1_27, %c0_28] : memref<1x1x10x10x4xf32, #tpu.memory_space<vmem>>, vector<1x1x1x8x4xf32>
      %31 = vector.shape_cast %30 : vector<1x1x1x8x4xf32> to vector<8x4xf32>
      %32 = vector.shape_cast %29 : vector<8x4xf32> to vector<1x1x1x8x4xf32>
      tpu.vector_store %arg5[%c0_25, %c0_26, %c3, %c1_27, %c0_28], %32 {strides = array<i32>} : memref<1x1x10x10x4xf32, #tpu.memory_space<vmem>>, vector<1x1x1x8x4xf32>,
      %33 = vector.extract_strided_slice %20 {offsets = [24, 0], sizes = [8, 4], strides = [1, 1]} : vector<64x4xf32> to vector<8x4xf32>
      %c0_29 = arith.constant 0 : index
      %c0_30 = arith.constant 0 : index
      %c4 = arith.constant 4 : index
      %c1_31 = arith.constant 1 : index
      %c0_32 = arith.constant 0 : index
      %34 = vector.load %arg5[%c0_29, %c0_30, %c4, %c1_31, %c0_32] : memref<1x1x10x10x4xf32, #tpu.memory_space<vmem>>, vector<1x1x1x8x4xf32>
      %35 = vector.shape_cast %34 : vector<1x1x1x8x4xf32> to vector<8x4xf32>
      %36 = vector.shape_cast %33 : vector<8x4xf32> to vector<1x1x1x8x4xf32>
      tpu.vector_store %arg5[%c0_29, %c0_30, %c4, %c1_31, %c0_32], %36 {strides = array<i32>} : memref<1x1x10x10x4xf32, #tpu.memory_space<vmem>>, vector<1x1x1x8x4xf32>,
      %37 = vector.extract_strided_slice %20 {offsets = [32, 0], sizes = [8, 4], strides = [1, 1]} : vector<64x4xf32> to vector<8x4xf32>
      %c0_33 = arith.constant 0 : index
      %c0_34 = arith.constant 0 : index
      %c5 = arith.constant 5 : index
      %c1_35 = arith.constant 1 : index
      %c0_36 = arith.constant 0 : index
      %38 = vector.load %arg5[%c0_33, %c0_34, %c5, %c1_35, %c0_36] : memref<1x1x10x10x4xf32, #tpu.memory_space<vmem>>, vector<1x1x1x8x4xf32>
      %39 = vector.shape_cast %38 : vector<1x1x1x8x4xf32> to vector<8x4xf32>
      %40 = vector.shape_cast %37 : vector<8x4xf32> to vector<1x1x1x8x4xf32>
      tpu.vector_store %arg5[%c0_33, %c0_34, %c5, %c1_35, %c0_36], %40 {strides = array<i32>} : memref<1x1x10x10x4xf32, #tpu.memory_space<vmem>>, vector<1x1x1x8x4xf32>,
      %41 = vector.extract_strided_slice %20 {offsets = [40, 0], sizes = [8, 4], strides = [1, 1]} : vector<64x4xf32> to vector<8x4xf32>
      %c0_37 = arith.constant 0 : index
      %c0_38 = arith.constant 0 : index
      %c6 = arith.constant 6 : index
      %c1_39 = arith.constant 1 : index
      %c0_40 = arith.constant 0 : index
      %42 = vector.load %arg5[%c0_37, %c0_38, %c6, %c1_39, %c0_40] : memref<1x1x10x10x4xf32, #tpu.memory_space<vmem>>, vector<1x1x1x8x4xf32>
      %43 = vector.shape_cast %42 : vector<1x1x1x8x4xf32> to vector<8x4xf32>
      %44 = vector.shape_cast %41 : vector<8x4xf32> to vector<1x1x1x8x4xf32>
      tpu.vector_store %arg5[%c0_37, %c0_38, %c6, %c1_39, %c0_40], %44 {strides = array<i32>} : memref<1x1x10x10x4xf32, #tpu.memory_space<vmem>>, vector<1x1x1x8x4xf32>,
      %45 = vector.extract_strided_slice %20 {offsets = [48, 0], sizes = [8, 4], strides = [1, 1]} : vector<64x4xf32> to vector<8x4xf32>
      %c0_41 = arith.constant 0 : index
      %c0_42 = arith.constant 0 : index
      %c7 = arith.constant 7 : index
      %c1_43 = arith.constant 1 : index
      %c0_44 = arith.constant 0 : index
      %46 = vector.load %arg5[%c0_41, %c0_42, %c7, %c1_43, %c0_44] : memref<1x1x10x10x4xf32, #tpu.memory_space<vmem>>, vector<1x1x1x8x4xf32>
      %47 = vector.shape_cast %46 : vector<1x1x1x8x4xf32> to vector<8x4xf32>
      %48 = vector.shape_cast %45 : vector<8x4xf32> to vector<1x1x1x8x4xf32>
      tpu.vector_store %arg5[%c0_41, %c0_42, %c7, %c1_43, %c0_44], %48 {strides = array<i32>} : memref<1x1x10x10x4xf32, #tpu.memory_space<vmem>>, vector<1x1x1x8x4xf32>,
      %49 = vector.extract_strided_slice %20 {offsets = [56, 0], sizes = [8, 4], strides = [1, 1]} : vector<64x4xf32> to vector<8x4xf32>
      %c0_45 = arith.constant 0 : index
      %c0_46 = arith.constant 0 : index
      %c8 = arith.constant 8 : index
      %c1_47 = arith.constant 1 : index
      %c0_48 = arith.constant 0 : index
      %50 = vector.load %arg5[%c0_45, %c0_46, %c8, %c1_47, %c0_48] : memref<1x1x10x10x4xf32, #tpu.memory_space<vmem>>, vector<1x1x1x8x4xf32>
      %51 = vector.shape_cast %50 : vector<1x1x1x8x4xf32> to vector<8x4xf32>
      %52 = vector.shape_cast %49 : vector<8x4xf32> to vector<1x1x1x8x4xf32>
      tpu.vector_store %arg5[%c0_45, %c0_46, %c8, %c1_47, %c0_48], %52 {strides = array<i32>} : memref<1x1x10x10x4xf32, #tpu.memory_space<vmem>>, vector<1x1x1x8x4xf32>,
    } else {
    }
    return
  }
  func.func @transform_0(%arg0: i32, %arg1: i32) -> (i32, i32, i32, i32) {
    %c1_i32 = arith.constant 1 : i32
    %0 = arith.subi %arg1, %c1_i32 : i32
    %c0_i32 = arith.constant 0 : i32
    %c7_i32 = arith.constant 7 : i32
    %1 = arith.maxsi %c0_i32, %0 : i32
    %2 = arith.minsi %c7_i32, %1 : i32
    %c0_i32_0 = arith.constant 0 : i32
    %c0_i32_1 = arith.constant 0 : i32
    %c0_i32_2 = arith.constant 0 : i32
    return %arg0, %2, %c0_i32_0, %c0_i32_1 : i32, i32, i32, i32
  }
  func.func @transform_1(%arg0: i32, %arg1: i32) -> (i32, i32, i32, i32) {
    %c0_i32 = arith.constant 0 : i32
    %c0_i32_0 = arith.constant 0 : i32
    %c0_i32_1 = arith.constant 0 : i32
    %c0_i32_2 = arith.constant 0 : i32
    return %arg0, %c0_i32, %c0_i32_0, %c0_i32_1 : i32, i32, i32, i32
  }
  func.func @transform_2(%arg0: i32, %arg1: i32) -> (i32, i32, i32, i32) {
    %c0_i32 = arith.constant 0 : i32
    %c0_i32_0 = arith.constant 0 : i32
    %c0_i32_1 = arith.constant 0 : i32
    %c0_i32_2 = arith.constant 0 : i32
    return %arg0, %c0_i32, %c0_i32_0, %c0_i32_1 : i32, i32, i32, i32
  }
  func.func @transform_3(%arg0: i32, %arg1: i32) -> (i32, i32, i32, i32, i32) {
    %c0_i32 = arith.constant 0 : i32
    %c0_i32_0 = arith.constant 0 : i32
    %c0_i32_1 = arith.constant 0 : i32
    %c0_i32_2 = arith.constant 0 : i32
    return %arg0, %arg1, %c0_i32, %c0_i32_0, %c0_i32_1 : i32, i32, i32, i32, i32
  }
}

module attributes {stable_mosaic.version = 11 : i64} {
  func.func @_conv_gn_stats_kernel(%arg0: i32, %arg1: i32, %arg2: memref<1x1x10x10x4xf32, #tpu.memory_space<vmem>>, %arg3: memref<1x1x10x10x4xf32, #tpu.memory_space<vmem>>, %arg4: memref<1x1x10x10x4xf32, #tpu.memory_space<vmem>>, %arg5: memref<108x128xf32, #tpu.memory_space<vmem>>, %arg6: memref<1x128xf32, #tpu.memory_space<vmem>>, %arg7: memref<1x1x64x4xf32, #tpu.memory_space<vmem>>, %arg8: memref<1x1x2x128xf32, #tpu.memory_space<vmem>>, %arg9: memref<64x108xf32, #tpu.memory_space<vmem>>) attributes {dimension_semantics = [#tpu.dimension_semantics<parallel>, #tpu.dimension_semantics<parallel>], iteration_bounds = array<i64: 2, 8>, scalar_prefetch = 0 : i64, scratch_operands = 1 : i64, tpu.core_type = #tpu.core_type<tc>, window_params = [{transform_indices = @transform_0, window_bounds = array<i64: 1, 1, 10, 10, 4>}, {transform_indices = @transform_1, window_bounds = array<i64: 1, 1, 10, 10, 4>}, {transform_indices = @transform_2, window_bounds = array<i64: 1, 1, 10, 10, 4>}, {pipeline_mode = #tpu.pipeline_mode<synchronous>, transform_indices = @transform_3, window_bounds = array<i64: 108, 128>}, {pipeline_mode = #tpu.pipeline_mode<synchronous>, transform_indices = @transform_4, window_bounds = array<i64: 1, 128>}, {transform_indices = @transform_5, window_bounds = array<i64: 1, 1, 64, 4>}, {transform_indices = @transform_6, window_bounds = array<i64: 1, 1, 2, 128>}]} {
    %c0 = arith.constant 0 : index
    %c0_0 = arith.constant 0 : index
    %c0_1 = arith.constant 0 : index
    %c0_2 = arith.constant 0 : index
    %c0_3 = arith.constant 0 : index
    %0 = vector.load %arg2[%c0, %c0_0, %c0_1, %c0_2, %c0_3] : memref<1x1x10x10x4xf32, #tpu.memory_space<vmem>>, vector<1x1x10x10x4xf32>
    %1 = vector.shape_cast %0 : vector<1x1x10x10x4xf32> to vector<10x10x4xf32>
    %2 = vector.extract_strided_slice %1 {offsets = [0, 0, 0], sizes = [8, 8, 4], strides = [1, 1, 1]} : vector<10x10x4xf32> to vector<8x8x4xf32>
    %3 = vector.shape_cast %2 : vector<8x8x4xf32> to vector<64x4xf32>
    %c0_4 = arith.constant 0 : index
    %c0_5 = arith.constant 0 : index
    %4 = vector.load %arg9[%c0_4, %c0_5] : memref<64x108xf32, #tpu.memory_space<vmem>>, vector<64x4xf32>
    tpu.vector_store %arg9[%c0_4, %c0_5], %3 {strides = array<i32>} : memref<64x108xf32, #tpu.memory_space<vmem>>, vector<64x4xf32>,
    %5 = vector.extract_strided_slice %1 {offsets = [0, 1, 0], sizes = [8, 8, 4], strides = [1, 1, 1]} : vector<10x10x4xf32> to vector<8x8x4xf32>
    %6 = vector.shape_cast %5 : vector<8x8x4xf32> to vector<64x4xf32>
    %c0_6 = arith.constant 0 : index
    %c4 = arith.constant 4 : index
    %7 = vector.load %arg9[%c0_6, %c4] : memref<64x108xf32, #tpu.memory_space<vmem>>, vector<64x4xf32>
    tpu.vector_store %arg9[%c0_6, %c4], %6 {strides = array<i32>} : memref<64x108xf32, #tpu.memory_space<vmem>>, vector<64x4xf32>,
    %8 = vector.extract_strided_slice %1 {offsets = [0, 2, 0], sizes = [8, 8, 4], strides = [1, 1, 1]} : vector<10x10x4xf32> to vector<8x8x4xf32>
    %9 = vector.shape_cast %8 : vector<8x8x4xf32> to vector<64x4xf32>
    %c0_7 = arith.constant 0 : index
    %c8 = arith.constant 8 : index
    %10 = vector.load %arg9[%c0_7, %c8] : memref<64x108xf32, #tpu.memory_space<vmem>>, vector<64x4xf32>
    tpu.vector_store %arg9[%c0_7, %c8], %9 {strides = array<i32>} : memref<64x108xf32, #tpu.memory_space<vmem>>, vector<64x4xf32>,
    %11 = vector.extract_strided_slice %1 {offsets = [1, 0, 0], sizes = [8, 8, 4], strides = [1, 1, 1]} : vector<10x10x4xf32> to vector<8x8x4xf32>
    %12 = vector.shape_cast %11 : vector<8x8x4xf32> to vector<64x4xf32>
    %c0_8 = arith.constant 0 : index
    %c12 = arith.constant 12 : index
    %13 = vector.load %arg9[%c0_8, %c12] : memref<64x108xf32, #tpu.memory_space<vmem>>, vector<64x4xf32>
    tpu.vector_store %arg9[%c0_8, %c12], %12 {strides = array<i32>} : memref<64x108xf32, #tpu.memory_space<vmem>>, vector<64x4xf32>,
    %14 = vector.extract_strided_slice %1 {offsets = [1, 1, 0], sizes = [8, 8, 4], strides = [1, 1, 1]} : vector<10x10x4xf32> to vector<8x8x4xf32>
    %15 = vector.shape_cast %14 : vector<8x8x4xf32> to vector<64x4xf32>
    %c0_9 = arith.constant 0 : index
    %c16 = arith.constant 16 : index
    %16 = vector.load %arg9[%c0_9, %c16] : memref<64x108xf32, #tpu.memory_space<vmem>>, vector<64x4xf32>
    tpu.vector_store %arg9[%c0_9, %c16], %15 {strides = array<i32>} : memref<64x108xf32, #tpu.memory_space<vmem>>, vector<64x4xf32>,
    %17 = vector.extract_strided_slice %1 {offsets = [1, 2, 0], sizes = [8, 8, 4], strides = [1, 1, 1]} : vector<10x10x4xf32> to vector<8x8x4xf32>
    %18 = vector.shape_cast %17 : vector<8x8x4xf32> to vector<64x4xf32>
    %c0_10 = arith.constant 0 : index
    %c20 = arith.constant 20 : index
    %19 = vector.load %arg9[%c0_10, %c20] : memref<64x108xf32, #tpu.memory_space<vmem>>, vector<64x4xf32>
    tpu.vector_store %arg9[%c0_10, %c20], %18 {strides = array<i32>} : memref<64x108xf32, #tpu.memory_space<vmem>>, vector<64x4xf32>,
    %20 = vector.extract_strided_slice %1 {offsets = [2, 0, 0], sizes = [8, 8, 4], strides = [1, 1, 1]} : vector<10x10x4xf32> to vector<8x8x4xf32>
    %21 = vector.shape_cast %20 : vector<8x8x4xf32> to vector<64x4xf32>
    %c0_11 = arith.constant 0 : index
    %c24 = arith.constant 24 : index
    %22 = vector.load %arg9[%c0_11, %c24] : memref<64x108xf32, #tpu.memory_space<vmem>>, vector<64x4xf32>
    tpu.vector_store %arg9[%c0_11, %c24], %21 {strides = array<i32>} : memref<64x108xf32, #tpu.memory_space<vmem>>, vector<64x4xf32>,
    %23 = vector.extract_strided_slice %1 {offsets = [2, 1, 0], sizes = [8, 8, 4], strides = [1, 1, 1]} : vector<10x10x4xf32> to vector<8x8x4xf32>
    %24 = vector.shape_cast %23 : vector<8x8x4xf32> to vector<64x4xf32>
    %c0_12 = arith.constant 0 : index
    %c28 = arith.constant 28 : index
    %25 = vector.load %arg9[%c0_12, %c28] : memref<64x108xf32, #tpu.memory_space<vmem>>, vector<64x4xf32>
    tpu.vector_store %arg9[%c0_12, %c28], %24 {strides = array<i32>} : memref<64x108xf32, #tpu.memory_space<vmem>>, vector<64x4xf32>,
    %26 = vector.extract_strided_slice %1 {offsets = [2, 2, 0], sizes = [8, 8, 4], strides = [1, 1, 1]} : vector<10x10x4xf32> to vector<8x8x4xf32>
    %27 = vector.shape_cast %26 : vector<8x8x4xf32> to vector<64x4xf32>
    %c0_13 = arith.constant 0 : index
    %c32 = arith.constant 32 : index
    %28 = vector.load %arg9[%c0_13, %c32] : memref<64x108xf32, #tpu.memory_space<vmem>>, vector<64x4xf32>
    tpu.vector_store %arg9[%c0_13, %c32], %27 {strides = array<i32>} : memref<64x108xf32, #tpu.memory_space<vmem>>, vector<64x4xf32>,
    %c0_14 = arith.constant 0 : index
    %c0_15 = arith.constant 0 : index
    %c0_16 = arith.constant 0 : index
    %c0_17 = arith.constant 0 : index
    %c0_18 = arith.constant 0 : index
    %29 = vector.load %arg3[%c0_14, %c0_15, %c0_16, %c0_17, %c0_18] : memref<1x1x10x10x4xf32, #tpu.memory_space<vmem>>, vector<1x1x10x10x4xf32>
    %30 = vector.shape_cast %29 : vector<1x1x10x10x4xf32> to vector<10x10x4xf32>
    %31 = vector.extract_strided_slice %30 {offsets = [0, 0, 0], sizes = [8, 8, 4], strides = [1, 1, 1]} : vector<10x10x4xf32> to vector<8x8x4xf32>
    %32 = vector.shape_cast %31 : vector<8x8x4xf32> to vector<64x4xf32>
    %c0_19 = arith.constant 0 : index
    %c36 = arith.constant 36 : index
    %33 = vector.load %arg9[%c0_19, %c36] : memref<64x108xf32, #tpu.memory_space<vmem>>, vector<64x4xf32>
    tpu.vector_store %arg9[%c0_19, %c36], %32 {strides = array<i32>} : memref<64x108xf32, #tpu.memory_space<vmem>>, vector<64x4xf32>,
    %34 = vector.extract_strided_slice %30 {offsets = [0, 1, 0], sizes = [8, 8, 4], strides = [1, 1, 1]} : vector<10x10x4xf32> to vector<8x8x4xf32>
    %35 = vector.shape_cast %34 : vector<8x8x4xf32> to vector<64x4xf32>
    %c0_20 = arith.constant 0 : index
    %c40 = arith.constant 40 : index
    %36 = vector.load %arg9[%c0_20, %c40] : memref<64x108xf32, #tpu.memory_space<vmem>>, vector<64x4xf32>
    tpu.vector_store %arg9[%c0_20, %c40], %35 {strides = array<i32>} : memref<64x108xf32, #tpu.memory_space<vmem>>, vector<64x4xf32>,
    %37 = vector.extract_strided_slice %30 {offsets = [0, 2, 0], sizes = [8, 8, 4], strides = [1, 1, 1]} : vector<10x10x4xf32> to vector<8x8x4xf32>
    %38 = vector.shape_cast %37 : vector<8x8x4xf32> to vector<64x4xf32>
    %c0_21 = arith.constant 0 : index
    %c44 = arith.constant 44 : index
    %39 = vector.load %arg9[%c0_21, %c44] : memref<64x108xf32, #tpu.memory_space<vmem>>, vector<64x4xf32>
    tpu.vector_store %arg9[%c0_21, %c44], %38 {strides = array<i32>} : memref<64x108xf32, #tpu.memory_space<vmem>>, vector<64x4xf32>,
    %40 = vector.extract_strided_slice %30 {offsets = [1, 0, 0], sizes = [8, 8, 4], strides = [1, 1, 1]} : vector<10x10x4xf32> to vector<8x8x4xf32>
    %41 = vector.shape_cast %40 : vector<8x8x4xf32> to vector<64x4xf32>
    %c0_22 = arith.constant 0 : index
    %c48 = arith.constant 48 : index
    %42 = vector.load %arg9[%c0_22, %c48] : memref<64x108xf32, #tpu.memory_space<vmem>>, vector<64x4xf32>
    tpu.vector_store %arg9[%c0_22, %c48], %41 {strides = array<i32>} : memref<64x108xf32, #tpu.memory_space<vmem>>, vector<64x4xf32>,
    %43 = vector.extract_strided_slice %30 {offsets = [1, 1, 0], sizes = [8, 8, 4], strides = [1, 1, 1]} : vector<10x10x4xf32> to vector<8x8x4xf32>
    %44 = vector.shape_cast %43 : vector<8x8x4xf32> to vector<64x4xf32>
    %c0_23 = arith.constant 0 : index
    %c52 = arith.constant 52 : index
    %45 = vector.load %arg9[%c0_23, %c52] : memref<64x108xf32, #tpu.memory_space<vmem>>, vector<64x4xf32>
    tpu.vector_store %arg9[%c0_23, %c52], %44 {strides = array<i32>} : memref<64x108xf32, #tpu.memory_space<vmem>>, vector<64x4xf32>,
    %46 = vector.extract_strided_slice %30 {offsets = [1, 2, 0], sizes = [8, 8, 4], strides = [1, 1, 1]} : vector<10x10x4xf32> to vector<8x8x4xf32>
    %47 = vector.shape_cast %46 : vector<8x8x4xf32> to vector<64x4xf32>
    %c0_24 = arith.constant 0 : index
    %c56 = arith.constant 56 : index
    %48 = vector.load %arg9[%c0_24, %c56] : memref<64x108xf32, #tpu.memory_space<vmem>>, vector<64x4xf32>
    tpu.vector_store %arg9[%c0_24, %c56], %47 {strides = array<i32>} : memref<64x108xf32, #tpu.memory_space<vmem>>, vector<64x4xf32>,
    %49 = vector.extract_strided_slice %30 {offsets = [2, 0, 0], sizes = [8, 8, 4], strides = [1, 1, 1]} : vector<10x10x4xf32> to vector<8x8x4xf32>
    %50 = vector.shape_cast %49 : vector<8x8x4xf32> to vector<64x4xf32>
    %c0_25 = arith.constant 0 : index
    %c60 = arith.constant 60 : index
    %51 = vector.load %arg9[%c0_25, %c60] : memref<64x108xf32, #tpu.memory_space<vmem>>, vector<64x4xf32>
    tpu.vector_store %arg9[%c0_25, %c60], %50 {strides = array<i32>} : memref<64x108xf32, #tpu.memory_space<vmem>>, vector<64x4xf32>,
    %52 = vector.extract_strided_slice %30 {offsets = [2, 1, 0], sizes = [8, 8, 4], strides = [1, 1, 1]} : vector<10x10x4xf32> to vector<8x8x4xf32>
    %53 = vector.shape_cast %52 : vector<8x8x4xf32> to vector<64x4xf32>
    %c0_26 = arith.constant 0 : index
    %c64 = arith.constant 64 : index
    %54 = vector.load %arg9[%c0_26, %c64] : memref<64x108xf32, #tpu.memory_space<vmem>>, vector<64x4xf32>
    tpu.vector_store %arg9[%c0_26, %c64], %53 {strides = array<i32>} : memref<64x108xf32, #tpu.memory_space<vmem>>, vector<64x4xf32>,
    %55 = vector.extract_strided_slice %30 {offsets = [2, 2, 0], sizes = [8, 8, 4], strides = [1, 1, 1]} : vector<10x10x4xf32> to vector<8x8x4xf32>
    %56 = vector.shape_cast %55 : vector<8x8x4xf32> to vector<64x4xf32>
    %c0_27 = arith.constant 0 : index
    %c68 = arith.constant 68 : index
    %57 = vector.load %arg9[%c0_27, %c68] : memref<64x108xf32, #tpu.memory_space<vmem>>, vector<64x4xf32>
    tpu.vector_store %arg9[%c0_27, %c68], %56 {strides = array<i32>} : memref<64x108xf32, #tpu.memory_space<vmem>>, vector<64x4xf32>,
    %c0_28 = arith.constant 0 : index
    %c0_29 = arith.constant 0 : index
    %c0_30 = arith.constant 0 : index
    %c0_31 = arith.constant 0 : index
    %c0_32 = arith.constant 0 : index
    %58 = vector.load %arg4[%c0_28, %c0_29, %c0_30, %c0_31, %c0_32] : memref<1x1x10x10x4xf32, #tpu.memory_space<vmem>>, vector<1x1x10x10x4xf32>
    %59 = vector.shape_cast %58 : vector<1x1x10x10x4xf32> to vector<10x10x4xf32>
    %60 = vector.extract_strided_slice %59 {offsets = [0, 0, 0], sizes = [8, 8, 4], strides = [1, 1, 1]} : vector<10x10x4xf32> to vector<8x8x4xf32>
    %61 = vector.shape_cast %60 : vector<8x8x4xf32> to vector<64x4xf32>
    %c0_33 = arith.constant 0 : index
    %c72 = arith.constant 72 : index
    %62 = vector.load %arg9[%c0_33, %c72] : memref<64x108xf32, #tpu.memory_space<vmem>>, vector<64x4xf32>
    tpu.vector_store %arg9[%c0_33, %c72], %61 {strides = array<i32>} : memref<64x108xf32, #tpu.memory_space<vmem>>, vector<64x4xf32>,
    %63 = vector.extract_strided_slice %59 {offsets = [0, 1, 0], sizes = [8, 8, 4], strides = [1, 1, 1]} : vector<10x10x4xf32> to vector<8x8x4xf32>
    %64 = vector.shape_cast %63 : vector<8x8x4xf32> to vector<64x4xf32>
    %c0_34 = arith.constant 0 : index
    %c76 = arith.constant 76 : index
    %65 = vector.load %arg9[%c0_34, %c76] : memref<64x108xf32, #tpu.memory_space<vmem>>, vector<64x4xf32>
    tpu.vector_store %arg9[%c0_34, %c76], %64 {strides = array<i32>} : memref<64x108xf32, #tpu.memory_space<vmem>>, vector<64x4xf32>,
    %66 = vector.extract_strided_slice %59 {offsets = [0, 2, 0], sizes = [8, 8, 4], strides = [1, 1, 1]} : vector<10x10x4xf32> to vector<8x8x4xf32>
    %67 = vector.shape_cast %66 : vector<8x8x4xf32> to vector<64x4xf32>
    %c0_35 = arith.constant 0 : index
    %c80 = arith.constant 80 : index
    %68 = vector.load %arg9[%c0_35, %c80] : memref<64x108xf32, #tpu.memory_space<vmem>>, vector<64x4xf32>
    tpu.vector_store %arg9[%c0_35, %c80], %67 {strides = array<i32>} : memref<64x108xf32, #tpu.memory_space<vmem>>, vector<64x4xf32>,
    %69 = vector.extract_strided_slice %59 {offsets = [1, 0, 0], sizes = [8, 8, 4], strides = [1, 1, 1]} : vector<10x10x4xf32> to vector<8x8x4xf32>
    %70 = vector.shape_cast %69 : vector<8x8x4xf32> to vector<64x4xf32>
    %c0_36 = arith.constant 0 : index
    %c84 = arith.constant 84 : index
    %71 = vector.load %arg9[%c0_36, %c84] : memref<64x108xf32, #tpu.memory_space<vmem>>, vector<64x4xf32>
    tpu.vector_store %arg9[%c0_36, %c84], %70 {strides = array<i32>} : memref<64x108xf32, #tpu.memory_space<vmem>>, vector<64x4xf32>,
    %72 = vector.extract_strided_slice %59 {offsets = [1, 1, 0], sizes = [8, 8, 4], strides = [1, 1, 1]} : vector<10x10x4xf32> to vector<8x8x4xf32>
    %73 = vector.shape_cast %72 : vector<8x8x4xf32> to vector<64x4xf32>
    %c0_37 = arith.constant 0 : index
    %c88 = arith.constant 88 : index
    %74 = vector.load %arg9[%c0_37, %c88] : memref<64x108xf32, #tpu.memory_space<vmem>>, vector<64x4xf32>
    tpu.vector_store %arg9[%c0_37, %c88], %73 {strides = array<i32>} : memref<64x108xf32, #tpu.memory_space<vmem>>, vector<64x4xf32>,
    %75 = vector.extract_strided_slice %59 {offsets = [1, 2, 0], sizes = [8, 8, 4], strides = [1, 1, 1]} : vector<10x10x4xf32> to vector<8x8x4xf32>
    %76 = vector.shape_cast %75 : vector<8x8x4xf32> to vector<64x4xf32>
    %c0_38 = arith.constant 0 : index
    %c92 = arith.constant 92 : index
    %77 = vector.load %arg9[%c0_38, %c92] : memref<64x108xf32, #tpu.memory_space<vmem>>, vector<64x4xf32>
    tpu.vector_store %arg9[%c0_38, %c92], %76 {strides = array<i32>} : memref<64x108xf32, #tpu.memory_space<vmem>>, vector<64x4xf32>,
    %78 = vector.extract_strided_slice %59 {offsets = [2, 0, 0], sizes = [8, 8, 4], strides = [1, 1, 1]} : vector<10x10x4xf32> to vector<8x8x4xf32>
    %79 = vector.shape_cast %78 : vector<8x8x4xf32> to vector<64x4xf32>
    %c0_39 = arith.constant 0 : index
    %c96 = arith.constant 96 : index
    %80 = vector.load %arg9[%c0_39, %c96] : memref<64x108xf32, #tpu.memory_space<vmem>>, vector<64x4xf32>
    tpu.vector_store %arg9[%c0_39, %c96], %79 {strides = array<i32>} : memref<64x108xf32, #tpu.memory_space<vmem>>, vector<64x4xf32>,
    %81 = vector.extract_strided_slice %59 {offsets = [2, 1, 0], sizes = [8, 8, 4], strides = [1, 1, 1]} : vector<10x10x4xf32> to vector<8x8x4xf32>
    %82 = vector.shape_cast %81 : vector<8x8x4xf32> to vector<64x4xf32>
    %c0_40 = arith.constant 0 : index
    %c100 = arith.constant 100 : index
    %83 = vector.load %arg9[%c0_40, %c100] : memref<64x108xf32, #tpu.memory_space<vmem>>, vector<64x4xf32>
    tpu.vector_store %arg9[%c0_40, %c100], %82 {strides = array<i32>} : memref<64x108xf32, #tpu.memory_space<vmem>>, vector<64x4xf32>,
    %84 = vector.extract_strided_slice %59 {offsets = [2, 2, 0], sizes = [8, 8, 4], strides = [1, 1, 1]} : vector<10x10x4xf32> to vector<8x8x4xf32>
    %85 = vector.shape_cast %84 : vector<8x8x4xf32> to vector<64x4xf32>
    %c0_41 = arith.constant 0 : index
    %c104 = arith.constant 104 : index
    %86 = vector.load %arg9[%c0_41, %c104] : memref<64x108xf32, #tpu.memory_space<vmem>>, vector<64x4xf32>
    tpu.vector_store %arg9[%c0_41, %c104], %85 {strides = array<i32>} : memref<64x108xf32, #tpu.memory_space<vmem>>, vector<64x4xf32>,
    %c0_42 = arith.constant 0 : index
    %c0_43 = arith.constant 0 : index
    %87 = vector.load %arg9[%c0_42, %c0_43] : memref<64x108xf32, #tpu.memory_space<vmem>>, vector<64x108xf32>
    %c0_44 = arith.constant 0 : index
    %c0_45 = arith.constant 0 : index
    %88 = vector.load %arg5[%c0_44, %c0_45] : memref<108x128xf32, #tpu.memory_space<vmem>>, vector<108x128xf32>
    %cst = arith.constant dense<0.000000e+00> : vector<64x128xf32>
    %89 = tpu.matmul %87, %88, %cst {dimension_numbers = #tpu.dot_dimension_numbers<[1], [0], [0], [1], [0, 0, 1, 1], [], []>} : vector<64x108xf32>, vector<108x128xf32>, vector<64x128xf32> -> vector<64x128xf32>
    %c0_46 = arith.constant 0 : index
    %c0_47 = arith.constant 0 : index
    %90 = vector.load %arg6[%c0_46, %c0_47] : memref<1x128xf32, #tpu.memory_space<vmem>>, vector<1x128xf32>
    %91 = vector.broadcast %90 : vector<1x128xf32> to vector<64x128xf32>
    %92 = arith.addf %89, %91 : vector<64x128xf32>
    %93 = vector.extract_strided_slice %92 {offsets = [0, 0], sizes = [64, 4], strides = [1, 1]} : vector<64x128xf32> to vector<64x4xf32>
    %c0_48 = arith.constant 0 : index
    %c0_49 = arith.constant 0 : index
    %c0_50 = arith.constant 0 : index
    %c0_51 = arith.constant 0 : index
    %94 = vector.load %arg7[%c0_48, %c0_49, %c0_50, %c0_51] : memref<1x1x64x4xf32, #tpu.memory_space<vmem>>, vector<1x1x64x4xf32>
    %95 = vector.shape_cast %94 : vector<1x1x64x4xf32> to vector<64x4xf32>
    %96 = vector.shape_cast %93 : vector<64x4xf32> to vector<1x1x64x4xf32>
    tpu.vector_store %arg7[%c0_48, %c0_49, %c0_50, %c0_51], %96 {strides = array<i32>} : memref<1x1x64x4xf32, #tpu.memory_space<vmem>>, vector<1x1x64x4xf32>,
    %97 = tpu.iota {dimensions = array<i32: 1>} : vector<1x128xi32>
    %c4_i32 = arith.constant 4 : i32
    %98 = vector.broadcast %c4_i32 : i32 to vector<1x128xi32>
    %99 = arith.cmpi slt, %97, %98 : vector<1x128xi32>
    %100 = arith.extui %99 : vector<1x128xi1> to vector<1x128xi32>
    %101 = arith.sitofp %100 : vector<1x128xi32> to vector<1x128xf32>
    %102 = vector.broadcast %101 : vector<1x128xf32> to vector<64x128xf32>
    %103 = arith.mulf %92, %102 : vector<64x128xf32>
    %104 = vector.shape_cast %103 : vector<64x128xf32> to vector<1x64x128xf32>
    %cst_52 = arith.constant dense<0.000000e+00> : vector<1xf32>
    %105 = vector.multi_reduction <add>, %104, %cst_52 [1, 2] : vector<1x64x128xf32> to vector<1xf32>
    %106 = vector.shape_cast %105 : vector<1xf32> to vector<1x1x1xf32>
    %107 = vector.extract %106[0, 0, 0] : f32 from vector<1x1x1xf32>
    %cst_53 = arith.constant 2.560000e+02 : f32
    %108 = arith.divf %107, %cst_53 : f32
    %109 = vector.broadcast %108 : f32 to vector<64x128xf32>
    %110 = arith.subf %92, %109 : vector<64x128xf32>
    %111 = arith.mulf %110, %110 : vector<64x128xf32>
    %112 = vector.broadcast %101 : vector<1x128xf32> to vector<64x128xf32>
    %113 = arith.mulf %111, %112 : vector<64x128xf32>
    %114 = vector.shape_cast %113 : vector<64x128xf32> to vector<1x64x128xf32>
    %cst_54 = arith.constant dense<0.000000e+00> : vector<1xf32>
    %115 = vector.multi_reduction <add>, %114, %cst_54 [1, 2] : vector<1x64x128xf32> to vector<1xf32>
    %116 = vector.shape_cast %115 : vector<1xf32> to vector<1x1x1xf32>
    %117 = vector.extract %116[0, 0, 0] : f32 from vector<1x1x1xf32>
    %cst_55 = arith.constant 1.000000e+00 : f32
    %118 = vector.broadcast %cst_55 : f32 to vector<1x128xf32>
    %119 = vector.broadcast %107 : f32 to vector<1x128xf32>
    %120 = arith.mulf %119, %118 : vector<1x128xf32>
    %121 = vector.broadcast %117 : f32 to vector<1x128xf32>
    %122 = arith.mulf %121, %118 : vector<1x128xf32>
    %123 = tpu.concatenate %120, %122 in 0 : vector<1x128xf32>, vector<1x128xf32> -> vector<2x128xf32>
    %c0_56 = arith.constant 0 : index
    %c0_57 = arith.constant 0 : index
    %c0_58 = arith.constant 0 : index
    %c0_59 = arith.constant 0 : index
    %124 = vector.load %arg8[%c0_56, %c0_57, %c0_58, %c0_59] : memref<1x1x2x128xf32, #tpu.memory_space<vmem>>, vector<1x1x2x128xf32>
    %125 = vector.shape_cast %124 : vector<1x1x2x128xf32> to vector<2x128xf32>
    %126 = vector.shape_cast %123 : vector<2x128xf32> to vector<1x1x2x128xf32>
    tpu.vector_store %arg8[%c0_56, %c0_57, %c0_58, %c0_59], %126 {strides = array<i32>} : memref<1x1x2x128xf32, #tpu.memory_space<vmem>>, vector<1x1x2x128xf32>,
    return
  }
  func.func @transform_0(%arg0: i32, %arg1: i32) -> (i32, i32, i32, i32, i32) {
    %c1_i32 = arith.constant 1 : i32
    %0 = arith.muli %arg1, %c1_i32 : i32
    %c0_i32 = arith.constant 0 : i32
    %1 = arith.addi %0, %c0_i32 : i32
    %c0_i32_0 = arith.constant 0 : i32
    %c0_i32_1 = arith.constant 0 : i32
    %c0_i32_2 = arith.constant 0 : i32
    %c0_i32_3 = arith.constant 0 : i32
    return %arg0, %1, %c0_i32_0, %c0_i32_1, %c0_i32_2 : i32, i32, i32, i32, i32
  }
  func.func @transform_1(%arg0: i32, %arg1: i32) -> (i32, i32, i32, i32, i32) {
    %c1_i32 = arith.constant 1 : i32
    %0 = arith.muli %arg1, %c1_i32 : i32
    %c1_i32_0 = arith.constant 1 : i32
    %1 = arith.addi %0, %c1_i32_0 : i32
    %c0_i32 = arith.constant 0 : i32
    %c0_i32_1 = arith.constant 0 : i32
    %c0_i32_2 = arith.constant 0 : i32
    %c0_i32_3 = arith.constant 0 : i32
    return %arg0, %1, %c0_i32, %c0_i32_1, %c0_i32_2 : i32, i32, i32, i32, i32
  }
  func.func @transform_2(%arg0: i32, %arg1: i32) -> (i32, i32, i32, i32, i32) {
    %c1_i32 = arith.constant 1 : i32
    %0 = arith.muli %arg1, %c1_i32 : i32
    %c2_i32 = arith.constant 2 : i32
    %1 = arith.addi %0, %c2_i32 : i32
    %c0_i32 = arith.constant 0 : i32
    %c0_i32_0 = arith.constant 0 : i32
    %c0_i32_1 = arith.constant 0 : i32
    %c0_i32_2 = arith.constant 0 : i32
    return %arg0, %1, %c0_i32, %c0_i32_0, %c0_i32_1 : i32, i32, i32, i32, i32
  }
  func.func @transform_3(%arg0: i32, %arg1: i32) -> (i32, i32) {
    %c0_i32 = arith.constant 0 : i32
    %c0_i32_0 = arith.constant 0 : i32
    %c0_i32_1 = arith.constant 0 : i32
    return %c0_i32, %c0_i32_0 : i32, i32
  }
  func.func @transform_4(%arg0: i32, %arg1: i32) -> (i32, i32) {
    %c0_i32 = arith.constant 0 : i32
    %c0_i32_0 = arith.constant 0 : i32
    %c0_i32_1 = arith.constant 0 : i32
    return %c0_i32, %c0_i32_0 : i32, i32
  }
  func.func @transform_5(%arg0: i32, %arg1: i32) -> (i32, i32, i32, i32) {
    %c0_i32 = arith.constant 0 : i32
    %c0_i32_0 = arith.constant 0 : i32
    %c0_i32_1 = arith.constant 0 : i32
    return %arg0, %arg1, %c0_i32, %c0_i32_0 : i32, i32, i32, i32
  }
  func.func @transform_6(%arg0: i32, %arg1: i32) -> (i32, i32, i32, i32) {
    %c0_i32 = arith.constant 0 : i32
    %c0_i32_0 = arith.constant 0 : i32
    %c0_i32_1 = arith.constant 0 : i32
    return %arg0, %arg1, %c0_i32, %c0_i32_0 : i32, i32, i32, i32
  }
}

module attributes {stable_mosaic.version = 11 : i64} {
  func.func @_conv_gn_stats_kernel(%arg0: i32, %arg1: i32, %arg2: memref<1x1x10x10x4xf32, #tpu.memory_space<vmem>>, %arg3: memref<1x1x10x10x4xf32, #tpu.memory_space<vmem>>, %arg4: memref<1x1x10x10x4xf32, #tpu.memory_space<vmem>>, %arg5: memref<108x128xf32, #tpu.memory_space<vmem>>, %arg6: memref<1x128xf32, #tpu.memory_space<vmem>>, %arg7: memref<1x1x64x8xf32, #tpu.memory_space<vmem>>, %arg8: memref<1x1x2x128xf32, #tpu.memory_space<vmem>>, %arg9: memref<64x108xf32, #tpu.memory_space<vmem>>) attributes {dimension_semantics = [#tpu.dimension_semantics<parallel>, #tpu.dimension_semantics<parallel>], iteration_bounds = array<i64: 2, 8>, scalar_prefetch = 0 : i64, scratch_operands = 1 : i64, tpu.core_type = #tpu.core_type<tc>, window_params = [{transform_indices = @transform_0, window_bounds = array<i64: 1, 1, 10, 10, 4>}, {transform_indices = @transform_1, window_bounds = array<i64: 1, 1, 10, 10, 4>}, {transform_indices = @transform_2, window_bounds = array<i64: 1, 1, 10, 10, 4>}, {pipeline_mode = #tpu.pipeline_mode<synchronous>, transform_indices = @transform_3, window_bounds = array<i64: 108, 128>}, {pipeline_mode = #tpu.pipeline_mode<synchronous>, transform_indices = @transform_4, window_bounds = array<i64: 1, 128>}, {transform_indices = @transform_5, window_bounds = array<i64: 1, 1, 64, 8>}, {transform_indices = @transform_6, window_bounds = array<i64: 1, 1, 2, 128>}]} {
    %c0 = arith.constant 0 : index
    %c0_0 = arith.constant 0 : index
    %c0_1 = arith.constant 0 : index
    %c0_2 = arith.constant 0 : index
    %c0_3 = arith.constant 0 : index
    %0 = vector.load %arg2[%c0, %c0_0, %c0_1, %c0_2, %c0_3] : memref<1x1x10x10x4xf32, #tpu.memory_space<vmem>>, vector<1x1x10x10x4xf32>
    %1 = vector.shape_cast %0 : vector<1x1x10x10x4xf32> to vector<10x10x4xf32>
    %2 = vector.extract_strided_slice %1 {offsets = [0, 0, 0], sizes = [8, 8, 4], strides = [1, 1, 1]} : vector<10x10x4xf32> to vector<8x8x4xf32>
    %3 = vector.shape_cast %2 : vector<8x8x4xf32> to vector<64x4xf32>
    %c0_4 = arith.constant 0 : index
    %c0_5 = arith.constant 0 : index
    %4 = vector.load %arg9[%c0_4, %c0_5] : memref<64x108xf32, #tpu.memory_space<vmem>>, vector<64x4xf32>
    tpu.vector_store %arg9[%c0_4, %c0_5], %3 {strides = array<i32>} : memref<64x108xf32, #tpu.memory_space<vmem>>, vector<64x4xf32>,
    %5 = vector.extract_strided_slice %1 {offsets = [0, 1, 0], sizes = [8, 8, 4], strides = [1, 1, 1]} : vector<10x10x4xf32> to vector<8x8x4xf32>
    %6 = vector.shape_cast %5 : vector<8x8x4xf32> to vector<64x4xf32>
    %c0_6 = arith.constant 0 : index
    %c4 = arith.constant 4 : index
    %7 = vector.load %arg9[%c0_6, %c4] : memref<64x108xf32, #tpu.memory_space<vmem>>, vector<64x4xf32>
    tpu.vector_store %arg9[%c0_6, %c4], %6 {strides = array<i32>} : memref<64x108xf32, #tpu.memory_space<vmem>>, vector<64x4xf32>,
    %8 = vector.extract_strided_slice %1 {offsets = [0, 2, 0], sizes = [8, 8, 4], strides = [1, 1, 1]} : vector<10x10x4xf32> to vector<8x8x4xf32>
    %9 = vector.shape_cast %8 : vector<8x8x4xf32> to vector<64x4xf32>
    %c0_7 = arith.constant 0 : index
    %c8 = arith.constant 8 : index
    %10 = vector.load %arg9[%c0_7, %c8] : memref<64x108xf32, #tpu.memory_space<vmem>>, vector<64x4xf32>
    tpu.vector_store %arg9[%c0_7, %c8], %9 {strides = array<i32>} : memref<64x108xf32, #tpu.memory_space<vmem>>, vector<64x4xf32>,
    %11 = vector.extract_strided_slice %1 {offsets = [1, 0, 0], sizes = [8, 8, 4], strides = [1, 1, 1]} : vector<10x10x4xf32> to vector<8x8x4xf32>
    %12 = vector.shape_cast %11 : vector<8x8x4xf32> to vector<64x4xf32>
    %c0_8 = arith.constant 0 : index
    %c12 = arith.constant 12 : index
    %13 = vector.load %arg9[%c0_8, %c12] : memref<64x108xf32, #tpu.memory_space<vmem>>, vector<64x4xf32>
    tpu.vector_store %arg9[%c0_8, %c12], %12 {strides = array<i32>} : memref<64x108xf32, #tpu.memory_space<vmem>>, vector<64x4xf32>,
    %14 = vector.extract_strided_slice %1 {offsets = [1, 1, 0], sizes = [8, 8, 4], strides = [1, 1, 1]} : vector<10x10x4xf32> to vector<8x8x4xf32>
    %15 = vector.shape_cast %14 : vector<8x8x4xf32> to vector<64x4xf32>
    %c0_9 = arith.constant 0 : index
    %c16 = arith.constant 16 : index
    %16 = vector.load %arg9[%c0_9, %c16] : memref<64x108xf32, #tpu.memory_space<vmem>>, vector<64x4xf32>
    tpu.vector_store %arg9[%c0_9, %c16], %15 {strides = array<i32>} : memref<64x108xf32, #tpu.memory_space<vmem>>, vector<64x4xf32>,
    %17 = vector.extract_strided_slice %1 {offsets = [1, 2, 0], sizes = [8, 8, 4], strides = [1, 1, 1]} : vector<10x10x4xf32> to vector<8x8x4xf32>
    %18 = vector.shape_cast %17 : vector<8x8x4xf32> to vector<64x4xf32>
    %c0_10 = arith.constant 0 : index
    %c20 = arith.constant 20 : index
    %19 = vector.load %arg9[%c0_10, %c20] : memref<64x108xf32, #tpu.memory_space<vmem>>, vector<64x4xf32>
    tpu.vector_store %arg9[%c0_10, %c20], %18 {strides = array<i32>} : memref<64x108xf32, #tpu.memory_space<vmem>>, vector<64x4xf32>,
    %20 = vector.extract_strided_slice %1 {offsets = [2, 0, 0], sizes = [8, 8, 4], strides = [1, 1, 1]} : vector<10x10x4xf32> to vector<8x8x4xf32>
    %21 = vector.shape_cast %20 : vector<8x8x4xf32> to vector<64x4xf32>
    %c0_11 = arith.constant 0 : index
    %c24 = arith.constant 24 : index
    %22 = vector.load %arg9[%c0_11, %c24] : memref<64x108xf32, #tpu.memory_space<vmem>>, vector<64x4xf32>
    tpu.vector_store %arg9[%c0_11, %c24], %21 {strides = array<i32>} : memref<64x108xf32, #tpu.memory_space<vmem>>, vector<64x4xf32>,
    %23 = vector.extract_strided_slice %1 {offsets = [2, 1, 0], sizes = [8, 8, 4], strides = [1, 1, 1]} : vector<10x10x4xf32> to vector<8x8x4xf32>
    %24 = vector.shape_cast %23 : vector<8x8x4xf32> to vector<64x4xf32>
    %c0_12 = arith.constant 0 : index
    %c28 = arith.constant 28 : index
    %25 = vector.load %arg9[%c0_12, %c28] : memref<64x108xf32, #tpu.memory_space<vmem>>, vector<64x4xf32>
    tpu.vector_store %arg9[%c0_12, %c28], %24 {strides = array<i32>} : memref<64x108xf32, #tpu.memory_space<vmem>>, vector<64x4xf32>,
    %26 = vector.extract_strided_slice %1 {offsets = [2, 2, 0], sizes = [8, 8, 4], strides = [1, 1, 1]} : vector<10x10x4xf32> to vector<8x8x4xf32>
    %27 = vector.shape_cast %26 : vector<8x8x4xf32> to vector<64x4xf32>
    %c0_13 = arith.constant 0 : index
    %c32 = arith.constant 32 : index
    %28 = vector.load %arg9[%c0_13, %c32] : memref<64x108xf32, #tpu.memory_space<vmem>>, vector<64x4xf32>
    tpu.vector_store %arg9[%c0_13, %c32], %27 {strides = array<i32>} : memref<64x108xf32, #tpu.memory_space<vmem>>, vector<64x4xf32>,
    %c0_14 = arith.constant 0 : index
    %c0_15 = arith.constant 0 : index
    %c0_16 = arith.constant 0 : index
    %c0_17 = arith.constant 0 : index
    %c0_18 = arith.constant 0 : index
    %29 = vector.load %arg3[%c0_14, %c0_15, %c0_16, %c0_17, %c0_18] : memref<1x1x10x10x4xf32, #tpu.memory_space<vmem>>, vector<1x1x10x10x4xf32>
    %30 = vector.shape_cast %29 : vector<1x1x10x10x4xf32> to vector<10x10x4xf32>
    %31 = vector.extract_strided_slice %30 {offsets = [0, 0, 0], sizes = [8, 8, 4], strides = [1, 1, 1]} : vector<10x10x4xf32> to vector<8x8x4xf32>
    %32 = vector.shape_cast %31 : vector<8x8x4xf32> to vector<64x4xf32>
    %c0_19 = arith.constant 0 : index
    %c36 = arith.constant 36 : index
    %33 = vector.load %arg9[%c0_19, %c36] : memref<64x108xf32, #tpu.memory_space<vmem>>, vector<64x4xf32>
    tpu.vector_store %arg9[%c0_19, %c36], %32 {strides = array<i32>} : memref<64x108xf32, #tpu.memory_space<vmem>>, vector<64x4xf32>,
    %34 = vector.extract_strided_slice %30 {offsets = [0, 1, 0], sizes = [8, 8, 4], strides = [1, 1, 1]} : vector<10x10x4xf32> to vector<8x8x4xf32>
    %35 = vector.shape_cast %34 : vector<8x8x4xf32> to vector<64x4xf32>
    %c0_20 = arith.constant 0 : index
    %c40 = arith.constant 40 : index
    %36 = vector.load %arg9[%c0_20, %c40] : memref<64x108xf32, #tpu.memory_space<vmem>>, vector<64x4xf32>
    tpu.vector_store %arg9[%c0_20, %c40], %35 {strides = array<i32>} : memref<64x108xf32, #tpu.memory_space<vmem>>, vector<64x4xf32>,
    %37 = vector.extract_strided_slice %30 {offsets = [0, 2, 0], sizes = [8, 8, 4], strides = [1, 1, 1]} : vector<10x10x4xf32> to vector<8x8x4xf32>
    %38 = vector.shape_cast %37 : vector<8x8x4xf32> to vector<64x4xf32>
    %c0_21 = arith.constant 0 : index
    %c44 = arith.constant 44 : index
    %39 = vector.load %arg9[%c0_21, %c44] : memref<64x108xf32, #tpu.memory_space<vmem>>, vector<64x4xf32>
    tpu.vector_store %arg9[%c0_21, %c44], %38 {strides = array<i32>} : memref<64x108xf32, #tpu.memory_space<vmem>>, vector<64x4xf32>,
    %40 = vector.extract_strided_slice %30 {offsets = [1, 0, 0], sizes = [8, 8, 4], strides = [1, 1, 1]} : vector<10x10x4xf32> to vector<8x8x4xf32>
    %41 = vector.shape_cast %40 : vector<8x8x4xf32> to vector<64x4xf32>
    %c0_22 = arith.constant 0 : index
    %c48 = arith.constant 48 : index
    %42 = vector.load %arg9[%c0_22, %c48] : memref<64x108xf32, #tpu.memory_space<vmem>>, vector<64x4xf32>
    tpu.vector_store %arg9[%c0_22, %c48], %41 {strides = array<i32>} : memref<64x108xf32, #tpu.memory_space<vmem>>, vector<64x4xf32>,
    %43 = vector.extract_strided_slice %30 {offsets = [1, 1, 0], sizes = [8, 8, 4], strides = [1, 1, 1]} : vector<10x10x4xf32> to vector<8x8x4xf32>
    %44 = vector.shape_cast %43 : vector<8x8x4xf32> to vector<64x4xf32>
    %c0_23 = arith.constant 0 : index
    %c52 = arith.constant 52 : index
    %45 = vector.load %arg9[%c0_23, %c52] : memref<64x108xf32, #tpu.memory_space<vmem>>, vector<64x4xf32>
    tpu.vector_store %arg9[%c0_23, %c52], %44 {strides = array<i32>} : memref<64x108xf32, #tpu.memory_space<vmem>>, vector<64x4xf32>,
    %46 = vector.extract_strided_slice %30 {offsets = [1, 2, 0], sizes = [8, 8, 4], strides = [1, 1, 1]} : vector<10x10x4xf32> to vector<8x8x4xf32>
    %47 = vector.shape_cast %46 : vector<8x8x4xf32> to vector<64x4xf32>
    %c0_24 = arith.constant 0 : index
    %c56 = arith.constant 56 : index
    %48 = vector.load %arg9[%c0_24, %c56] : memref<64x108xf32, #tpu.memory_space<vmem>>, vector<64x4xf32>
    tpu.vector_store %arg9[%c0_24, %c56], %47 {strides = array<i32>} : memref<64x108xf32, #tpu.memory_space<vmem>>, vector<64x4xf32>,
    %49 = vector.extract_strided_slice %30 {offsets = [2, 0, 0], sizes = [8, 8, 4], strides = [1, 1, 1]} : vector<10x10x4xf32> to vector<8x8x4xf32>
    %50 = vector.shape_cast %49 : vector<8x8x4xf32> to vector<64x4xf32>
    %c0_25 = arith.constant 0 : index
    %c60 = arith.constant 60 : index
    %51 = vector.load %arg9[%c0_25, %c60] : memref<64x108xf32, #tpu.memory_space<vmem>>, vector<64x4xf32>
    tpu.vector_store %arg9[%c0_25, %c60], %50 {strides = array<i32>} : memref<64x108xf32, #tpu.memory_space<vmem>>, vector<64x4xf32>,
    %52 = vector.extract_strided_slice %30 {offsets = [2, 1, 0], sizes = [8, 8, 4], strides = [1, 1, 1]} : vector<10x10x4xf32> to vector<8x8x4xf32>
    %53 = vector.shape_cast %52 : vector<8x8x4xf32> to vector<64x4xf32>
    %c0_26 = arith.constant 0 : index
    %c64 = arith.constant 64 : index
    %54 = vector.load %arg9[%c0_26, %c64] : memref<64x108xf32, #tpu.memory_space<vmem>>, vector<64x4xf32>
    tpu.vector_store %arg9[%c0_26, %c64], %53 {strides = array<i32>} : memref<64x108xf32, #tpu.memory_space<vmem>>, vector<64x4xf32>,
    %55 = vector.extract_strided_slice %30 {offsets = [2, 2, 0], sizes = [8, 8, 4], strides = [1, 1, 1]} : vector<10x10x4xf32> to vector<8x8x4xf32>
    %56 = vector.shape_cast %55 : vector<8x8x4xf32> to vector<64x4xf32>
    %c0_27 = arith.constant 0 : index
    %c68 = arith.constant 68 : index
    %57 = vector.load %arg9[%c0_27, %c68] : memref<64x108xf32, #tpu.memory_space<vmem>>, vector<64x4xf32>
    tpu.vector_store %arg9[%c0_27, %c68], %56 {strides = array<i32>} : memref<64x108xf32, #tpu.memory_space<vmem>>, vector<64x4xf32>,
    %c0_28 = arith.constant 0 : index
    %c0_29 = arith.constant 0 : index
    %c0_30 = arith.constant 0 : index
    %c0_31 = arith.constant 0 : index
    %c0_32 = arith.constant 0 : index
    %58 = vector.load %arg4[%c0_28, %c0_29, %c0_30, %c0_31, %c0_32] : memref<1x1x10x10x4xf32, #tpu.memory_space<vmem>>, vector<1x1x10x10x4xf32>
    %59 = vector.shape_cast %58 : vector<1x1x10x10x4xf32> to vector<10x10x4xf32>
    %60 = vector.extract_strided_slice %59 {offsets = [0, 0, 0], sizes = [8, 8, 4], strides = [1, 1, 1]} : vector<10x10x4xf32> to vector<8x8x4xf32>
    %61 = vector.shape_cast %60 : vector<8x8x4xf32> to vector<64x4xf32>
    %c0_33 = arith.constant 0 : index
    %c72 = arith.constant 72 : index
    %62 = vector.load %arg9[%c0_33, %c72] : memref<64x108xf32, #tpu.memory_space<vmem>>, vector<64x4xf32>
    tpu.vector_store %arg9[%c0_33, %c72], %61 {strides = array<i32>} : memref<64x108xf32, #tpu.memory_space<vmem>>, vector<64x4xf32>,
    %63 = vector.extract_strided_slice %59 {offsets = [0, 1, 0], sizes = [8, 8, 4], strides = [1, 1, 1]} : vector<10x10x4xf32> to vector<8x8x4xf32>
    %64 = vector.shape_cast %63 : vector<8x8x4xf32> to vector<64x4xf32>
    %c0_34 = arith.constant 0 : index
    %c76 = arith.constant 76 : index
    %65 = vector.load %arg9[%c0_34, %c76] : memref<64x108xf32, #tpu.memory_space<vmem>>, vector<64x4xf32>
    tpu.vector_store %arg9[%c0_34, %c76], %64 {strides = array<i32>} : memref<64x108xf32, #tpu.memory_space<vmem>>, vector<64x4xf32>,
    %66 = vector.extract_strided_slice %59 {offsets = [0, 2, 0], sizes = [8, 8, 4], strides = [1, 1, 1]} : vector<10x10x4xf32> to vector<8x8x4xf32>
    %67 = vector.shape_cast %66 : vector<8x8x4xf32> to vector<64x4xf32>
    %c0_35 = arith.constant 0 : index
    %c80 = arith.constant 80 : index
    %68 = vector.load %arg9[%c0_35, %c80] : memref<64x108xf32, #tpu.memory_space<vmem>>, vector<64x4xf32>
    tpu.vector_store %arg9[%c0_35, %c80], %67 {strides = array<i32>} : memref<64x108xf32, #tpu.memory_space<vmem>>, vector<64x4xf32>,
    %69 = vector.extract_strided_slice %59 {offsets = [1, 0, 0], sizes = [8, 8, 4], strides = [1, 1, 1]} : vector<10x10x4xf32> to vector<8x8x4xf32>
    %70 = vector.shape_cast %69 : vector<8x8x4xf32> to vector<64x4xf32>
    %c0_36 = arith.constant 0 : index
    %c84 = arith.constant 84 : index
    %71 = vector.load %arg9[%c0_36, %c84] : memref<64x108xf32, #tpu.memory_space<vmem>>, vector<64x4xf32>
    tpu.vector_store %arg9[%c0_36, %c84], %70 {strides = array<i32>} : memref<64x108xf32, #tpu.memory_space<vmem>>, vector<64x4xf32>,
    %72 = vector.extract_strided_slice %59 {offsets = [1, 1, 0], sizes = [8, 8, 4], strides = [1, 1, 1]} : vector<10x10x4xf32> to vector<8x8x4xf32>
    %73 = vector.shape_cast %72 : vector<8x8x4xf32> to vector<64x4xf32>
    %c0_37 = arith.constant 0 : index
    %c88 = arith.constant 88 : index
    %74 = vector.load %arg9[%c0_37, %c88] : memref<64x108xf32, #tpu.memory_space<vmem>>, vector<64x4xf32>
    tpu.vector_store %arg9[%c0_37, %c88], %73 {strides = array<i32>} : memref<64x108xf32, #tpu.memory_space<vmem>>, vector<64x4xf32>,
    %75 = vector.extract_strided_slice %59 {offsets = [1, 2, 0], sizes = [8, 8, 4], strides = [1, 1, 1]} : vector<10x10x4xf32> to vector<8x8x4xf32>
    %76 = vector.shape_cast %75 : vector<8x8x4xf32> to vector<64x4xf32>
    %c0_38 = arith.constant 0 : index
    %c92 = arith.constant 92 : index
    %77 = vector.load %arg9[%c0_38, %c92] : memref<64x108xf32, #tpu.memory_space<vmem>>, vector<64x4xf32>
    tpu.vector_store %arg9[%c0_38, %c92], %76 {strides = array<i32>} : memref<64x108xf32, #tpu.memory_space<vmem>>, vector<64x4xf32>,
    %78 = vector.extract_strided_slice %59 {offsets = [2, 0, 0], sizes = [8, 8, 4], strides = [1, 1, 1]} : vector<10x10x4xf32> to vector<8x8x4xf32>
    %79 = vector.shape_cast %78 : vector<8x8x4xf32> to vector<64x4xf32>
    %c0_39 = arith.constant 0 : index
    %c96 = arith.constant 96 : index
    %80 = vector.load %arg9[%c0_39, %c96] : memref<64x108xf32, #tpu.memory_space<vmem>>, vector<64x4xf32>
    tpu.vector_store %arg9[%c0_39, %c96], %79 {strides = array<i32>} : memref<64x108xf32, #tpu.memory_space<vmem>>, vector<64x4xf32>,
    %81 = vector.extract_strided_slice %59 {offsets = [2, 1, 0], sizes = [8, 8, 4], strides = [1, 1, 1]} : vector<10x10x4xf32> to vector<8x8x4xf32>
    %82 = vector.shape_cast %81 : vector<8x8x4xf32> to vector<64x4xf32>
    %c0_40 = arith.constant 0 : index
    %c100 = arith.constant 100 : index
    %83 = vector.load %arg9[%c0_40, %c100] : memref<64x108xf32, #tpu.memory_space<vmem>>, vector<64x4xf32>
    tpu.vector_store %arg9[%c0_40, %c100], %82 {strides = array<i32>} : memref<64x108xf32, #tpu.memory_space<vmem>>, vector<64x4xf32>,
    %84 = vector.extract_strided_slice %59 {offsets = [2, 2, 0], sizes = [8, 8, 4], strides = [1, 1, 1]} : vector<10x10x4xf32> to vector<8x8x4xf32>
    %85 = vector.shape_cast %84 : vector<8x8x4xf32> to vector<64x4xf32>
    %c0_41 = arith.constant 0 : index
    %c104 = arith.constant 104 : index
    %86 = vector.load %arg9[%c0_41, %c104] : memref<64x108xf32, #tpu.memory_space<vmem>>, vector<64x4xf32>
    tpu.vector_store %arg9[%c0_41, %c104], %85 {strides = array<i32>} : memref<64x108xf32, #tpu.memory_space<vmem>>, vector<64x4xf32>,
    %c0_42 = arith.constant 0 : index
    %c0_43 = arith.constant 0 : index
    %87 = vector.load %arg9[%c0_42, %c0_43] : memref<64x108xf32, #tpu.memory_space<vmem>>, vector<64x108xf32>
    %c0_44 = arith.constant 0 : index
    %c0_45 = arith.constant 0 : index
    %88 = vector.load %arg5[%c0_44, %c0_45] : memref<108x128xf32, #tpu.memory_space<vmem>>, vector<108x128xf32>
    %cst = arith.constant dense<0.000000e+00> : vector<64x128xf32>
    %89 = tpu.matmul %87, %88, %cst {dimension_numbers = #tpu.dot_dimension_numbers<[1], [0], [0], [1], [0, 0, 1, 1], [], []>} : vector<64x108xf32>, vector<108x128xf32>, vector<64x128xf32> -> vector<64x128xf32>
    %c0_46 = arith.constant 0 : index
    %c0_47 = arith.constant 0 : index
    %90 = vector.load %arg6[%c0_46, %c0_47] : memref<1x128xf32, #tpu.memory_space<vmem>>, vector<1x128xf32>
    %91 = vector.broadcast %90 : vector<1x128xf32> to vector<64x128xf32>
    %92 = arith.addf %89, %91 : vector<64x128xf32>
    %93 = vector.extract_strided_slice %92 {offsets = [0, 0], sizes = [64, 8], strides = [1, 1]} : vector<64x128xf32> to vector<64x8xf32>
    %c0_48 = arith.constant 0 : index
    %c0_49 = arith.constant 0 : index
    %c0_50 = arith.constant 0 : index
    %c0_51 = arith.constant 0 : index
    %94 = vector.load %arg7[%c0_48, %c0_49, %c0_50, %c0_51] : memref<1x1x64x8xf32, #tpu.memory_space<vmem>>, vector<1x1x64x8xf32>
    %95 = vector.shape_cast %94 : vector<1x1x64x8xf32> to vector<64x8xf32>
    %96 = vector.shape_cast %93 : vector<64x8xf32> to vector<1x1x64x8xf32>
    tpu.vector_store %arg7[%c0_48, %c0_49, %c0_50, %c0_51], %96 {strides = array<i32>} : memref<1x1x64x8xf32, #tpu.memory_space<vmem>>, vector<1x1x64x8xf32>,
    %97 = tpu.iota {dimensions = array<i32: 1>} : vector<1x128xi32>
    %c8_i32 = arith.constant 8 : i32
    %98 = vector.broadcast %c8_i32 : i32 to vector<1x128xi32>
    %99 = arith.cmpi slt, %97, %98 : vector<1x128xi32>
    %100 = arith.extui %99 : vector<1x128xi1> to vector<1x128xi32>
    %101 = arith.sitofp %100 : vector<1x128xi32> to vector<1x128xf32>
    %102 = vector.broadcast %101 : vector<1x128xf32> to vector<64x128xf32>
    %103 = arith.mulf %92, %102 : vector<64x128xf32>
    %104 = vector.shape_cast %103 : vector<64x128xf32> to vector<1x64x128xf32>
    %cst_52 = arith.constant dense<0.000000e+00> : vector<1xf32>
    %105 = vector.multi_reduction <add>, %104, %cst_52 [1, 2] : vector<1x64x128xf32> to vector<1xf32>
    %106 = vector.shape_cast %105 : vector<1xf32> to vector<1x1x1xf32>
    %107 = vector.extract %106[0, 0, 0] : f32 from vector<1x1x1xf32>
    %cst_53 = arith.constant 5.120000e+02 : f32
    %108 = arith.divf %107, %cst_53 : f32
    %109 = vector.broadcast %108 : f32 to vector<64x128xf32>
    %110 = arith.subf %92, %109 : vector<64x128xf32>
    %111 = arith.mulf %110, %110 : vector<64x128xf32>
    %112 = vector.broadcast %101 : vector<1x128xf32> to vector<64x128xf32>
    %113 = arith.mulf %111, %112 : vector<64x128xf32>
    %114 = vector.shape_cast %113 : vector<64x128xf32> to vector<1x64x128xf32>
    %cst_54 = arith.constant dense<0.000000e+00> : vector<1xf32>
    %115 = vector.multi_reduction <add>, %114, %cst_54 [1, 2] : vector<1x64x128xf32> to vector<1xf32>
    %116 = vector.shape_cast %115 : vector<1xf32> to vector<1x1x1xf32>
    %117 = vector.extract %116[0, 0, 0] : f32 from vector<1x1x1xf32>
    %cst_55 = arith.constant 1.000000e+00 : f32
    %118 = vector.broadcast %cst_55 : f32 to vector<1x128xf32>
    %119 = vector.broadcast %107 : f32 to vector<1x128xf32>
    %120 = arith.mulf %119, %118 : vector<1x128xf32>
    %121 = vector.broadcast %117 : f32 to vector<1x128xf32>
    %122 = arith.mulf %121, %118 : vector<1x128xf32>
    %123 = tpu.concatenate %120, %122 in 0 : vector<1x128xf32>, vector<1x128xf32> -> vector<2x128xf32>
    %c0_56 = arith.constant 0 : index
    %c0_57 = arith.constant 0 : index
    %c0_58 = arith.constant 0 : index
    %c0_59 = arith.constant 0 : index
    %124 = vector.load %arg8[%c0_56, %c0_57, %c0_58, %c0_59] : memref<1x1x2x128xf32, #tpu.memory_space<vmem>>, vector<1x1x2x128xf32>
    %125 = vector.shape_cast %124 : vector<1x1x2x128xf32> to vector<2x128xf32>
    %126 = vector.shape_cast %123 : vector<2x128xf32> to vector<1x1x2x128xf32>
    tpu.vector_store %arg8[%c0_56, %c0_57, %c0_58, %c0_59], %126 {strides = array<i32>} : memref<1x1x2x128xf32, #tpu.memory_space<vmem>>, vector<1x1x2x128xf32>,
    return
  }
  func.func @transform_0(%arg0: i32, %arg1: i32) -> (i32, i32, i32, i32, i32) {
    %c1_i32 = arith.constant 1 : i32
    %0 = arith.muli %arg1, %c1_i32 : i32
    %c0_i32 = arith.constant 0 : i32
    %1 = arith.addi %0, %c0_i32 : i32
    %c0_i32_0 = arith.constant 0 : i32
    %c0_i32_1 = arith.constant 0 : i32
    %c0_i32_2 = arith.constant 0 : i32
    %c0_i32_3 = arith.constant 0 : i32
    return %arg0, %1, %c0_i32_0, %c0_i32_1, %c0_i32_2 : i32, i32, i32, i32, i32
  }
  func.func @transform_1(%arg0: i32, %arg1: i32) -> (i32, i32, i32, i32, i32) {
    %c1_i32 = arith.constant 1 : i32
    %0 = arith.muli %arg1, %c1_i32 : i32
    %c1_i32_0 = arith.constant 1 : i32
    %1 = arith.addi %0, %c1_i32_0 : i32
    %c0_i32 = arith.constant 0 : i32
    %c0_i32_1 = arith.constant 0 : i32
    %c0_i32_2 = arith.constant 0 : i32
    %c0_i32_3 = arith.constant 0 : i32
    return %arg0, %1, %c0_i32, %c0_i32_1, %c0_i32_2 : i32, i32, i32, i32, i32
  }
  func.func @transform_2(%arg0: i32, %arg1: i32) -> (i32, i32, i32, i32, i32) {
    %c1_i32 = arith.constant 1 : i32
    %0 = arith.muli %arg1, %c1_i32 : i32
    %c2_i32 = arith.constant 2 : i32
    %1 = arith.addi %0, %c2_i32 : i32
    %c0_i32 = arith.constant 0 : i32
    %c0_i32_0 = arith.constant 0 : i32
    %c0_i32_1 = arith.constant 0 : i32
    %c0_i32_2 = arith.constant 0 : i32
    return %arg0, %1, %c0_i32, %c0_i32_0, %c0_i32_1 : i32, i32, i32, i32, i32
  }
  func.func @transform_3(%arg0: i32, %arg1: i32) -> (i32, i32) {
    %c0_i32 = arith.constant 0 : i32
    %c0_i32_0 = arith.constant 0 : i32
    %c0_i32_1 = arith.constant 0 : i32
    return %c0_i32, %c0_i32_0 : i32, i32
  }
  func.func @transform_4(%arg0: i32, %arg1: i32) -> (i32, i32) {
    %c0_i32 = arith.constant 0 : i32
    %c0_i32_0 = arith.constant 0 : i32
    %c0_i32_1 = arith.constant 0 : i32
    return %c0_i32, %c0_i32_0 : i32, i32
  }
  func.func @transform_5(%arg0: i32, %arg1: i32) -> (i32, i32, i32, i32) {
    %c0_i32 = arith.constant 0 : i32
    %c0_i32_0 = arith.constant 0 : i32
    %c0_i32_1 = arith.constant 0 : i32
    return %arg0, %arg1, %c0_i32, %c0_i32_0 : i32, i32, i32, i32
  }
  func.func @transform_6(%arg0: i32, %arg1: i32) -> (i32, i32, i32, i32) {
    %c0_i32 = arith.constant 0 : i32
    %c0_i32_0 = arith.constant 0 : i32
    %c0_i32_1 = arith.constant 0 : i32
    return %arg0, %arg1, %c0_i32, %c0_i32_0 : i32, i32, i32, i32
  }
}

module attributes {stable_mosaic.version = 11 : i64} {
  func.func @_gn_apply_kernel(%arg0: i32, %arg1: i32, %arg2: memref<1x1x64x8xf32, #tpu.memory_space<vmem>>, %arg3: memref<1x1x1x8xf32, #tpu.memory_space<vmem>>, %arg4: memref<1x1x1x8xf32, #tpu.memory_space<vmem>>, %arg5: memref<1x1x8x8x8xf32, #tpu.memory_space<vmem>>) attributes {dimension_semantics = [#tpu.dimension_semantics<parallel>, #tpu.dimension_semantics<parallel>], iteration_bounds = array<i64: 2, 8>, scalar_prefetch = 0 : i64, scratch_operands = 0 : i64, tpu.core_type = #tpu.core_type<tc>, window_params = [{transform_indices = @transform_0, window_bounds = array<i64: 1, 1, 64, 8>}, {transform_indices = @transform_1, window_bounds = array<i64: 1, 1, 1, 8>}, {transform_indices = @transform_2, window_bounds = array<i64: 1, 1, 1, 8>}, {transform_indices = @transform_3, window_bounds = array<i64: 1, 1, 8, 8, 8>}]} {
    %c0 = arith.constant 0 : index
    %c0_0 = arith.constant 0 : index
    %c0_1 = arith.constant 0 : index
    %c0_2 = arith.constant 0 : index
    %0 = vector.load %arg2[%c0, %c0_0, %c0_1, %c0_2] : memref<1x1x64x8xf32, #tpu.memory_space<vmem>>, vector<1x1x64x8xf32>
    %1 = vector.shape_cast %0 : vector<1x1x64x8xf32> to vector<64x8xf32>
    %c0_3 = arith.constant 0 : index
    %c0_4 = arith.constant 0 : index
    %c0_5 = arith.constant 0 : index
    %c0_6 = arith.constant 0 : index
    %2 = vector.load %arg3[%c0_3, %c0_4, %c0_5, %c0_6] : memref<1x1x1x8xf32, #tpu.memory_space<vmem>>, vector<1x1x1x8xf32>
    %3 = vector.shape_cast %2 : vector<1x1x1x8xf32> to vector<1x8xf32>
    %4 = vector.broadcast %3 : vector<1x8xf32> to vector<64x8xf32>
    %5 = arith.mulf %1, %4 : vector<64x8xf32>
    %c0_7 = arith.constant 0 : index
    %c0_8 = arith.constant 0 : index
    %c0_9 = arith.constant 0 : index
    %c0_10 = arith.constant 0 : index
    %6 = vector.load %arg4[%c0_7, %c0_8, %c0_9, %c0_10] : memref<1x1x1x8xf32, #tpu.memory_space<vmem>>, vector<1x1x1x8xf32>
    %7 = vector.shape_cast %6 : vector<1x1x1x8xf32> to vector<1x8xf32>
    %8 = vector.broadcast %7 : vector<1x8xf32> to vector<64x8xf32>
    %9 = arith.addf %5, %8 : vector<64x8xf32>
    %cst = arith.constant 0.000000e+00 : f32
    %10 = vector.broadcast %cst : f32 to vector<64x8xf32>
    %11 = arith.maximumf %9, %10 : vector<64x8xf32>
    %12 = vector.extract_strided_slice %11 {offsets = [0, 0], sizes = [8, 8], strides = [1, 1]} : vector<64x8xf32> to vector<8x8xf32>
    %c0_11 = arith.constant 0 : index
    %c0_12 = arith.constant 0 : index
    %c0_13 = arith.constant 0 : index
    %c0_14 = arith.constant 0 : index
    %c0_15 = arith.constant 0 : index
    %13 = vector.load %arg5[%c0_11, %c0_12, %c0_13, %c0_14, %c0_15] : memref<1x1x8x8x8xf32, #tpu.memory_space<vmem>>, vector<1x1x1x8x8xf32>
    %14 = vector.shape_cast %13 : vector<1x1x1x8x8xf32> to vector<8x8xf32>
    %15 = vector.shape_cast %12 : vector<8x8xf32> to vector<1x1x1x8x8xf32>
    tpu.vector_store %arg5[%c0_11, %c0_12, %c0_13, %c0_14, %c0_15], %15 {strides = array<i32>} : memref<1x1x8x8x8xf32, #tpu.memory_space<vmem>>, vector<1x1x1x8x8xf32>,
    %16 = vector.extract_strided_slice %11 {offsets = [8, 0], sizes = [8, 8], strides = [1, 1]} : vector<64x8xf32> to vector<8x8xf32>
    %c0_16 = arith.constant 0 : index
    %c0_17 = arith.constant 0 : index
    %c1 = arith.constant 1 : index
    %c0_18 = arith.constant 0 : index
    %c0_19 = arith.constant 0 : index
    %17 = vector.load %arg5[%c0_16, %c0_17, %c1, %c0_18, %c0_19] : memref<1x1x8x8x8xf32, #tpu.memory_space<vmem>>, vector<1x1x1x8x8xf32>
    %18 = vector.shape_cast %17 : vector<1x1x1x8x8xf32> to vector<8x8xf32>
    %19 = vector.shape_cast %16 : vector<8x8xf32> to vector<1x1x1x8x8xf32>
    tpu.vector_store %arg5[%c0_16, %c0_17, %c1, %c0_18, %c0_19], %19 {strides = array<i32>} : memref<1x1x8x8x8xf32, #tpu.memory_space<vmem>>, vector<1x1x1x8x8xf32>,
    %20 = vector.extract_strided_slice %11 {offsets = [16, 0], sizes = [8, 8], strides = [1, 1]} : vector<64x8xf32> to vector<8x8xf32>
    %c0_20 = arith.constant 0 : index
    %c0_21 = arith.constant 0 : index
    %c2 = arith.constant 2 : index
    %c0_22 = arith.constant 0 : index
    %c0_23 = arith.constant 0 : index
    %21 = vector.load %arg5[%c0_20, %c0_21, %c2, %c0_22, %c0_23] : memref<1x1x8x8x8xf32, #tpu.memory_space<vmem>>, vector<1x1x1x8x8xf32>
    %22 = vector.shape_cast %21 : vector<1x1x1x8x8xf32> to vector<8x8xf32>
    %23 = vector.shape_cast %20 : vector<8x8xf32> to vector<1x1x1x8x8xf32>
    tpu.vector_store %arg5[%c0_20, %c0_21, %c2, %c0_22, %c0_23], %23 {strides = array<i32>} : memref<1x1x8x8x8xf32, #tpu.memory_space<vmem>>, vector<1x1x1x8x8xf32>,
    %24 = vector.extract_strided_slice %11 {offsets = [24, 0], sizes = [8, 8], strides = [1, 1]} : vector<64x8xf32> to vector<8x8xf32>
    %c0_24 = arith.constant 0 : index
    %c0_25 = arith.constant 0 : index
    %c3 = arith.constant 3 : index
    %c0_26 = arith.constant 0 : index
    %c0_27 = arith.constant 0 : index
    %25 = vector.load %arg5[%c0_24, %c0_25, %c3, %c0_26, %c0_27] : memref<1x1x8x8x8xf32, #tpu.memory_space<vmem>>, vector<1x1x1x8x8xf32>
    %26 = vector.shape_cast %25 : vector<1x1x1x8x8xf32> to vector<8x8xf32>
    %27 = vector.shape_cast %24 : vector<8x8xf32> to vector<1x1x1x8x8xf32>
    tpu.vector_store %arg5[%c0_24, %c0_25, %c3, %c0_26, %c0_27], %27 {strides = array<i32>} : memref<1x1x8x8x8xf32, #tpu.memory_space<vmem>>, vector<1x1x1x8x8xf32>,
    %28 = vector.extract_strided_slice %11 {offsets = [32, 0], sizes = [8, 8], strides = [1, 1]} : vector<64x8xf32> to vector<8x8xf32>
    %c0_28 = arith.constant 0 : index
    %c0_29 = arith.constant 0 : index
    %c4 = arith.constant 4 : index
    %c0_30 = arith.constant 0 : index
    %c0_31 = arith.constant 0 : index
    %29 = vector.load %arg5[%c0_28, %c0_29, %c4, %c0_30, %c0_31] : memref<1x1x8x8x8xf32, #tpu.memory_space<vmem>>, vector<1x1x1x8x8xf32>
    %30 = vector.shape_cast %29 : vector<1x1x1x8x8xf32> to vector<8x8xf32>
    %31 = vector.shape_cast %28 : vector<8x8xf32> to vector<1x1x1x8x8xf32>
    tpu.vector_store %arg5[%c0_28, %c0_29, %c4, %c0_30, %c0_31], %31 {strides = array<i32>} : memref<1x1x8x8x8xf32, #tpu.memory_space<vmem>>, vector<1x1x1x8x8xf32>,
    %32 = vector.extract_strided_slice %11 {offsets = [40, 0], sizes = [8, 8], strides = [1, 1]} : vector<64x8xf32> to vector<8x8xf32>
    %c0_32 = arith.constant 0 : index
    %c0_33 = arith.constant 0 : index
    %c5 = arith.constant 5 : index
    %c0_34 = arith.constant 0 : index
    %c0_35 = arith.constant 0 : index
    %33 = vector.load %arg5[%c0_32, %c0_33, %c5, %c0_34, %c0_35] : memref<1x1x8x8x8xf32, #tpu.memory_space<vmem>>, vector<1x1x1x8x8xf32>
    %34 = vector.shape_cast %33 : vector<1x1x1x8x8xf32> to vector<8x8xf32>
    %35 = vector.shape_cast %32 : vector<8x8xf32> to vector<1x1x1x8x8xf32>
    tpu.vector_store %arg5[%c0_32, %c0_33, %c5, %c0_34, %c0_35], %35 {strides = array<i32>} : memref<1x1x8x8x8xf32, #tpu.memory_space<vmem>>, vector<1x1x1x8x8xf32>,
    %36 = vector.extract_strided_slice %11 {offsets = [48, 0], sizes = [8, 8], strides = [1, 1]} : vector<64x8xf32> to vector<8x8xf32>
    %c0_36 = arith.constant 0 : index
    %c0_37 = arith.constant 0 : index
    %c6 = arith.constant 6 : index
    %c0_38 = arith.constant 0 : index
    %c0_39 = arith.constant 0 : index
    %37 = vector.load %arg5[%c0_36, %c0_37, %c6, %c0_38, %c0_39] : memref<1x1x8x8x8xf32, #tpu.memory_space<vmem>>, vector<1x1x1x8x8xf32>
    %38 = vector.shape_cast %37 : vector<1x1x1x8x8xf32> to vector<8x8xf32>
    %39 = vector.shape_cast %36 : vector<8x8xf32> to vector<1x1x1x8x8xf32>
    tpu.vector_store %arg5[%c0_36, %c0_37, %c6, %c0_38, %c0_39], %39 {strides = array<i32>} : memref<1x1x8x8x8xf32, #tpu.memory_space<vmem>>, vector<1x1x1x8x8xf32>,
    %40 = vector.extract_strided_slice %11 {offsets = [56, 0], sizes = [8, 8], strides = [1, 1]} : vector<64x8xf32> to vector<8x8xf32>
    %c0_40 = arith.constant 0 : index
    %c0_41 = arith.constant 0 : index
    %c7 = arith.constant 7 : index
    %c0_42 = arith.constant 0 : index
    %c0_43 = arith.constant 0 : index
    %41 = vector.load %arg5[%c0_40, %c0_41, %c7, %c0_42, %c0_43] : memref<1x1x8x8x8xf32, #tpu.memory_space<vmem>>, vector<1x1x1x8x8xf32>
    %42 = vector.shape_cast %41 : vector<1x1x1x8x8xf32> to vector<8x8xf32>
    %43 = vector.shape_cast %40 : vector<8x8xf32> to vector<1x1x1x8x8xf32>
    tpu.vector_store %arg5[%c0_40, %c0_41, %c7, %c0_42, %c0_43], %43 {strides = array<i32>} : memref<1x1x8x8x8xf32, #tpu.memory_space<vmem>>, vector<1x1x1x8x8xf32>,
    return
  }
  func.func @transform_0(%arg0: i32, %arg1: i32) -> (i32, i32, i32, i32) {
    %c0_i32 = arith.constant 0 : i32
    %0 = arith.subi %arg1, %c0_i32 : i32
    %c0_i32_0 = arith.constant 0 : i32
    %c7_i32 = arith.constant 7 : i32
    %1 = arith.maxsi %c0_i32_0, %0 : i32
    %2 = arith.minsi %c7_i32, %1 : i32
    %c0_i32_1 = arith.constant 0 : i32
    %c0_i32_2 = arith.constant 0 : i32
    %c0_i32_3 = arith.constant 0 : i32
    return %arg0, %2, %c0_i32_1, %c0_i32_2 : i32, i32, i32, i32
  }
  func.func @transform_1(%arg0: i32, %arg1: i32) -> (i32, i32, i32, i32) {
    %c0_i32 = arith.constant 0 : i32
    %c0_i32_0 = arith.constant 0 : i32
    %c0_i32_1 = arith.constant 0 : i32
    %c0_i32_2 = arith.constant 0 : i32
    return %arg0, %c0_i32, %c0_i32_0, %c0_i32_1 : i32, i32, i32, i32
  }
  func.func @transform_2(%arg0: i32, %arg1: i32) -> (i32, i32, i32, i32) {
    %c0_i32 = arith.constant 0 : i32
    %c0_i32_0 = arith.constant 0 : i32
    %c0_i32_1 = arith.constant 0 : i32
    %c0_i32_2 = arith.constant 0 : i32
    return %arg0, %c0_i32, %c0_i32_0, %c0_i32_1 : i32, i32, i32, i32
  }
  func.func @transform_3(%arg0: i32, %arg1: i32) -> (i32, i32, i32, i32, i32) {
    %c0_i32 = arith.constant 0 : i32
    %c0_i32_0 = arith.constant 0 : i32
    %c0_i32_1 = arith.constant 0 : i32
    %c0_i32_2 = arith.constant 0 : i32
    return %arg0, %arg1, %c0_i32, %c0_i32_0, %c0_i32_1 : i32, i32, i32, i32, i32
  }
}

</mosaic_0001>

<bundles_post_ra>
// kernel: bott_conv_gn_relu3.7
= control target key start
LH: loop header
LB: loop body
LE: loop exit
PB: predicated region body
PF: predicated region fallthrough
CT: control target
= control target key end

     0   :  { %s622_s12 = smov 0   ;;  %s624_s13 = smov 0   ;;  %s779_s0 = inlined_call_operand.vmem [shape: f32[2,8,64,4], index: 0, kind: input, shape index: {}]   ;;  %s780_s1 = inlined_call_operand.vmem [shape: f32[2,1,1,4], index: 1, kind: input, shape index: {}]   ;;  %s781_s2 = inlined_call_operand.vmem [shape: f32[2,1,1,4], index: 2, kind: input, shape index: {}]   ;;  %s782_s3 = inlined_call_operand.vmem [shape: f32[2,10,10,10,4], index: 3, kind: output, shape index: {}]  }
   0x1   :  { %s626_s14 = smov 0   ;;  %s628_s15 = smov 0  }
   0x2   :  { %s630_s16 = smov 0  }
   0x3 LB: > { %s22_s17 = sadd.s32 1, %s591_s14  ;;  %s25_s18 = sadd.s32 1, %s595_s15  ;;  %s599_s16 = sphi %s630_s16, %s13_s16   ;;  %s595_s15 = sphi %s628_s15, %s787_s15   ;;  %s591_s14 = sphi %s626_s14, %s786_s14   ;;  %s587_s13 = sphi %s624_s13, %s785_s13   ;;  %s583_s12 = sphi %s622_s12, %s784_s12  }
   0x4   : > { %p23_p0 = scmp.ge.s32.totalorder %s22_s17, 10  ;;  %p489_p1 = scmp.ge.s32.totalorder %s599_s16, 1 }
   0x5   : > { %p193_p2 = scmp.lt.s32.totalorder %s599_s16, 21 }
   0x6   : > { %s789_s17 = smov (%p23_p0, %s22_s17), 0  ;;  %s791_s18 = smov (!%p23_p0, %s25_s18), %s595_s15 }
   0x7   : > { %p194_p3 = pnand %p489_p1, %p193_p2  ;;  %p27_p4 = scmp.ge.s32.totalorder %s791_s18, 2 }
   0x8   : > { %s490_s19 = sadd.s32 (!%p194_p3), 4294967295, %s583_s12  ;;  %p241_p5 = scmp.lt.s32.totalorder (!%p194_p3), %s587_s13, 1  ;;  %vm270_vm0 = vcmask (!%p194_p3), 31744   ;;  %vm272_vm1 = vcmask (!%p194_p3), 25600   ;;  %v601_v0 = vmov (!%p194_p3), 0.0  }
   0x9   : > { %s793_s18 = smov (%p27_p4, %s791_s18), 0  ;;  %197 = sbr.rel (%p194_p3) target bundleno = 41 (0x29), region = 32 }
   0xa   : > { %p237_p6 = scmp.gt.s32.totalorder (!%p194_p3), %s490_s19, 0  ;;  %p491_p7 = scmp.lt.s32.totalorder (!%p194_p3), %s490_s19, 7 }
   0xb   : > { %p263_p8 = scmp.lt.s32.totalorder (!%p194_p3), %s583_s12, 9  ;;  %p292_p10 = scmp.ge.s32.totalorder (!%p194_p3), %s583_s12, 1 }
   0xd   : > { %p686_p11 = pnand (!%p194_p3), %p292_p10, %p263_p8 }
  0x10   : > { %s795_s13 = smov (!%p241_p5, %s587_s13), 1  ;;  %s797_s19 = smov (!%p237_p6, %s490_s19), 0 }
  0x11   : > { %s497_s20 = sshll.u32 %s795_s13, 6  ;;  %s257_s23 = scalar_lea.vmem %s780_s1, %s795_s13 }
  0x12   : > { %s799_s19 = smov (!%p491_p7, %s797_s19), 7  ;;  %s260_s26 = scalar_lea.vmem %s781_s2, %s795_s13  ;;  %v500_v2 = vld [vmem:[%s257_s23] ss:$0 sm:$0xff] (!%p686_p11) }
  0x13   : > { %p243_p9 = scmp.lt.s32.totalorder %s799_s19, 7  ;;  %s519_s27 = smul.u32 200, %s795_s13  ;;  %v501_v3 = vld [vmem:[%s260_s26] ss:$0 sm:$0xff] (!%p686_p11) }
  0x14   : > { %s264_s28 = scalar_select %p263_p8, %s583_s12, 9 }
  0x15   : > { %s801_s19 = smov (!%p243_p9, %s799_s19), 7 }
  0x16   : > { %s518_s29 = smul.u32 20, %s264_s28  ;;  %s496_s30 = sshll.u32 %s801_s19, 3 }
  0x17   : > { %s247_s4 = sadd.s32 %s497_s20, %s496_s30 }
  0x18   : > { %s267_s5 = sadd.s32 %s519_s27, %s518_s29  ;;  %s498_s6 = sshll.u32 %s247_s4, 3 }
  0x19   : > { %s499_s7 = sshll.u32 %s267_s5, 3  ;;  %s675_s10 = scalar_lea.vmem %s779_s0, %s498_s6 }
  0x1a   : > { %s680_s22 = scalar_lea.vmem %s782_s3, %s499_s7  ;;  %v298_v1 = vld [vmem:[%s675_s10] sm:$0xff] (!%p686_p11)  ;;  %v299_v5 = vld [vmem:[%s675_s10 + $0x8] sm:$0xff] (!%p686_p11)  ;;  %v300_v6 = vld [vmem:[%s675_s10 + $0x10] sm:$0xff] (!%p686_p11) }
  0x1b   : > { %271 = vst.msk [vmem:[%s680_s22] sm:$0xff] %vm270_vm0, %v601_v0  ;;  %274 = vst.msk [vmem:[%s680_s22 + $0x10] sm:$0xff] %vm270_vm0, %v601_v0  ;;  %v313_v4 = vmul.f32 (!%p686_p11), %v500_v2, %v298_v1  ;;  %v301_v7 = vld [vmem:[%s675_s10 + $0x18] sm:$0xff] (!%p686_p11)  ;;  %v314_v8 = vmul.f32 (!%p686_p11), %v500_v2, %v299_v5  ;;  %v315_v9 = vmul.f32 (!%p686_p11), %v500_v2, %v300_v6  ;;  %v302_v11 = vld [vmem:[%s675_s10 + $0x20] sm:$0xff] (!%p686_p11) }
  0x1c   : > { %276 = vst.msk [vmem:[%s680_s22 + $0x20] sm:$0xff] %vm270_vm0, %v601_v0  ;;  %278 = vst.msk [vmem:[%s680_s22 + $0x30] sm:$0xff] %vm270_vm0, %v601_v0  ;;  %v316_v10 = vmul.f32 (!%p686_p11), %v500_v2, %v301_v7  ;;  %v303_v12 = vld [vmem:[%s675_s10 + $0x28] sm:$0xff] (!%p686_p11)  ;;  %v304_v13 = vld [vmem:[%s675_s10 + $0x30] sm:$0xff] (!%p686_p11)  ;;  %v317_v15 = vmul.f32 (!%p686_p11), %v500_v2, %v302_v11 }
  0x1d   : > { %280 = vst.msk [vmem:[%s680_s22 + $0x40] sm:$0xff] %vm270_vm0, %v601_v0  ;;  %282 = vst.msk [vmem:[%s680_s22 + $0x50] sm:$0xff] %vm270_vm0, %v601_v0  ;;  %v328_v14 = vadd.f32 (!%p686_p11), %v501_v3, %v313_v4  ;;  %v318_v16 = vmul.f32 (!%p686_p11), %v500_v2, %v303_v12  ;;  %v319_v17 = vmul.f32 (!%p686_p11), %v500_v2, %v304_v13  ;;  %v305_v18 = vld [vmem:[%s675_s10 + $0x38] sm:$0xff] (!%p686_p11) }
  0x1e   : > { %284 = vst.msk [vmem:[%s680_s22 + $0x60] sm:$0xff] %vm270_vm0, %v601_v0  ;;  %286 = vst.msk [vmem:[%s680_s22 + $0x70] sm:$0xff] %vm270_vm0, %v601_v0  ;;  %297 = sbr.rel (%p686_p11) target bundleno = 41 (0x29), region = 36  ;;  %v329_v19 = vadd.f32 (!%p686_p11), %v501_v3, %v314_v8  ;;  %v330_v20 = vadd.f32 (!%p686_p11), %v501_v3, %v315_v9  ;;  %v331_v21 = vadd.f32 (!%p686_p11), %v501_v3, %v316_v10 }
  0x1f   : > { %288 = vst.msk [vmem:[%s680_s22 + $0x80] sm:$0xff] %vm270_vm0, %v601_v0  ;;  %290 = vst.msk [vmem:[%s680_s22 + $0x90] sm:$0xff] %vm270_vm0, %v601_v0  ;;  %v320_v22 = vmul.f32 (!%p686_p11), %v500_v2, %v305_v18  ;;  %v336_v23 = vmax.f32 (!%p686_p11), %v328_v14, 0.0  ;;  %v332_v24 = vadd.f32 (!%p686_p11), %v501_v3, %v317_v15  ;;  %v333_v25 = vadd.f32 (!%p686_p11), %v501_v3, %v318_v16 }
  0x20   : > { %273 = vst.msk [vmem:[%s680_s22 + $0x8] sm:$0x3] %vm272_vm1, %v601_v0  ;;  %275 = vst.msk [vmem:[%s680_s22 + $0x18] sm:$0x3] %vm272_vm1, %v601_v0  ;;  %v334_v26 = vadd.f32 (!%p686_p11), %v501_v3, %v319_v17  ;;  %v337_v27 = vmax.f32 (!%p686_p11), %v329_v19, 0.0  ;;  %v338_v28 = vmax.f32 (!%p686_p11), %v330_v20, 0.0 }
  0x21   : > { %277 = vst.msk [vmem:[%s680_s22 + $0x28] sm:$0x3] %vm272_vm1, %v601_v0  ;;  %279 = vst.msk [vmem:[%s680_s22 + $0x38] sm:$0x3] %vm272_vm1, %v601_v0  ;;  %v339_v29 = vmax.f32 (!%p686_p11), %v331_v21, 0.0  ;;  %v335_v30 = vadd.f32 (!%p686_p11), %v501_v3, %v320_v22  ;;  %v340_v31 = vmax.f32 (!%p686_p11), %v332_v24, 0.0 }
  0x22   : > { %281 = vst.msk [vmem:[%s680_s22 + $0x48] sm:$0x3] %vm272_vm1, %v601_v0  ;;  %283 = vst.msk [vmem:[%s680_s22 + $0x58] sm:$0x3] %vm272_vm1, %v601_v0  ;;  %v341_v32 = vmax.f32 (!%p686_p11), %v333_v25, 0.0  ;;  %v342_v33 = vmax.f32 (!%p686_p11), %v334_v26, 0.0 }
  0x23   : > { %285 = vst.msk [vmem:[%s680_s22 + $0x68] sm:$0x3] %vm272_vm1, %v601_v0  ;;  %287 = vst.msk [vmem:[%s680_s22 + $0x78] sm:$0x3] %vm272_vm1, %v601_v0  ;;  %v343_v34 = vmax.f32 (!%p686_p11), %v335_v30, 0.0 }
  0x24   : > { %289 = vst.msk [vmem:[%s680_s22 + $0x88] sm:$0x3] %vm272_vm1, %v601_v0  ;;  %291 = vst.msk [vmem:[%s680_s22 + $0x98] sm:$0x3] %vm272_vm1, %v601_v0 }
  0x25   : > { %502 = vst.msk [vmem:[%s680_s22 + $0x11] sm:$0xff] %vm270_vm0, %v336_v23  ;;  %503 = vst.msk [vmem:[%s680_s22 + $0x21] sm:$0xff] %vm270_vm0, %v337_v27 }
  0x26   : > { %504 = vst.msk [vmem:[%s680_s22 + $0x31] sm:$0xff] %vm270_vm0, %v338_v28  ;;  %505 = vst.msk [vmem:[%s680_s22 + $0x41] sm:$0xff] %vm270_vm0, %v339_v29 }
  0x27   : > { %506 = vst.msk [vmem:[%s680_s22 + $0x51] sm:$0xff] %vm270_vm0, %v340_v31  ;;  %507 = vst.msk [vmem:[%s680_s22 + $0x61] sm:$0xff] %vm270_vm0, %v341_v32 }
  0x28   : > { %508 = vst.msk [vmem:[%s680_s22 + $0x71] sm:$0xff] %vm270_vm0, %v342_v33  ;;  %509 = vst.msk [vmem:[%s680_s22 + $0x81] sm:$0xff] %vm270_vm0, %v343_v34 }
  0x29 PF: > { %s13_s16 = sadd.s32 1, %s599_s16   ;;  %s784_s12 = smov %s591_s14 }
  0x2a   : > { %p10_p12 = scmp.ge.s32.totalorder %s13_s16, 22   ;;  %s785_s13 = smov %s595_s15 }
  0x2b   : > { %s786_s14 = smov %s789_s17  ;;  %s787_s15 = smov %s793_s18 }
  0x2c   :  { %12 = sbr.rel (!%p10_p12) target bundleno = 3 (0x3), region = 80 }

// kernel: bott_conv_gn_relu3.6
= control target key start
LH: loop header
LB: loop body
LE: loop exit
PB: predicated region body
PF: predicated region fallthrough
CT: control target
= control target key end

     0   :  { %s2235_s21 = smov 0   ;;  %s2237_s22 = smov 0   ;;  %s3369_s0 = inlined_call_operand.vmem [shape: f32[2,10,10,10,8], index: 0, kind: input, shape index: {}, may-alias: {0,1,2}]   ;;  %s3370_s1 = inlined_call_operand.vmem [shape: f32[2,10,10,10,8], index: 1, kind: input, shape index: {}, may-alias: {0,1,2}]   ;;  %s3371_s2 = inlined_call_operand.vmem [shape: f32[2,10,10,10,8], index: 2, kind: input, shape index: {}, may-alias: {0,1,2}]   ;;  %s3372_s3 = inlined_call_operand.vmem [shape: f32[216,128], index: 3, kind: input, shape index: {}]   ;;  %s3373_s4 = inlined_call_operand.vmem [shape: f32[1,128], index: 4, kind: input, shape index: {}]   ;;  %s3374_s5 = inlined_call_operand.vmem [shape: f32[2,8,64,4], index: 5, kind: output, shape index: {0}]   ;;  %s3375_s6 = inlined_call_operand.vmem [shape: f32[2,8,2,128], index: 6, kind: output, shape index: {1}]  }
   0x1   :  { %s2239_s23 = smov 0   ;;  %s2241_s24 = smov 0  }
   0x2   :  { %s2243_s25 = smov 0  }
   0x3 LB: > { %s26_s26 = sadd.s32 1, %s2173_s23  ;;  %s29_s27 = sadd.s32 1, %s2177_s24  ;;  %s2181_s25 = sphi %s2243_s25, %s17_s25   ;;  %s2177_s24 = sphi %s2241_s24, %s3445_s24   ;;  %s2173_s23 = sphi %s2239_s23, %s3444_s23   ;;  %s2169_s22 = sphi %s2237_s22, %s3443_s22   ;;  %s2165_s21 = sphi %s2235_s21, %s3442_s21  }
   0x4   : > { %p27_p0 = scmp.ge.s32.totalorder %s26_s26, 8  ;;  %p1988_p1 = scmp.ge.s32.totalorder %s2181_s25, 1 }
   0x5   : > { %p277_p2 = scmp.lt.s32.totalorder %s2181_s25, 17 }
   0x6   : > { %s3447_s26 = smov (%p27_p0, %s26_s26), 0  ;;  %s3449_s27 = smov (!%p27_p0, %s29_s27), %s2177_s24 }
   0x7   : > { %p278_p3 = pnand %p1988_p1, %p277_p2  ;;  %p31_p4 = scmp.ge.s32.totalorder %s3449_s27, 2 }
   0x8   : > { %p343_p5 = scmp.lt.s32.totalorder (!%p278_p3), %s2169_s22, 1  ;;  %p345_p6 = scmp.lt.s32.totalorder (!%p278_p3), %s2165_s21, 9  ;;  %vm411_vm0 = vcmask (!%p278_p3), 64512   ;;  %vm436_vm1 = vcmask (!%p278_p3), 1046528   ;;  %vm494_vm2 = vcmask (!%p278_p3), 1045504   ;;  %vm485_vm3 = vcmask (!%p278_p3), 130112  }
   0x9   : > { %s3451_s27 = smov (%p31_p4, %s3449_s27), 0  ;;  %281 = sbr.rel (%p278_p3) target bundleno = 1200 (0x4b0), region = 40 }
   0xa   : > { %s352_s7 = sadd.s32 (!%p278_p3), 1, %s2165_s21  ;;  %s363_s10 = sadd.s32 (!%p278_p3), 2, %s2165_s21  ;;  %vm543_vm4 = vcmask (!%p278_p3), 195712   ;;  %vm577_vm5 = vcmask (!%p278_p3), 261312   ;;  %vm614_vm6 = vcmask (!%p278_p3), 326912   ;;  %vm650_vm7 = vcmask (!%p278_p3), 392512  }
   0xb   : > { %p355_p7 = scmp.lt.s32.totalorder (!%p278_p3), %s352_s7, 9  ;;  %p2282_p8 = scmp.lt.s32.totalorder (!%p278_p3), %s363_s10, 9  ;;  %vm684_vm8 = vcmask (!%p278_p3), 458112   ;;  %vm721_vm9 = vcmask (!%p278_p3), 523712   ;;  %vm757_vm10 = vcmask (!%p278_p3), 589312   ;;  %vm3393_vm11 = vcmask (!%p278_p3), 654912  }
   0xc   : > { %s2183_s15 = smov (!%p278_p3), 24   ;;  %s2184_s17 = smov (!%p278_p3), 8   ;;  %vm3390_vm12 = vcmask (!%p278_p3), 720512   ;;  %vm940_vm13 = vcmask (!%p278_p3), 786112   ;;  %vm3391_vm14 = vcmask (!%p278_p3), 851712   ;;  %vm3388_vm15 = vcmask (!%p278_p3), 917312  }
   0xd   : > { %s2185_s19 = smov (!%p278_p3), 32   ;;  %s2187_s12 = smov (!%p278_p3), 40  }
   0xe   : > { %s3395_s14 = smov (!%p278_p3), 56   ;;  %p376_p9 = scmp.lt.s32.totalorder (!%p278_p3), %s2165_s21, 7 }
  0x10   : > { %s3453_s22 = smov (!%p343_p5, %s2169_s22), 1  ;;  %s3455_s7 = smov (!%p355_p7, %s352_s7), 9 }
  0x11   : > { %s346_s28 = scalar_select %p345_p6, %s2165_s21, 9 }
  0x12   : > { %s2272_s29 = smul.u32 200, %s3453_s22  ;;  %s3457_s10 = smov (!%p2282_p8, %s363_s10), 9 }
  0x13   : > { %s2076_s30 = smul.u32 20, %s346_s28  ;;  %s3459_s21 = smov (!%p376_p9, %s2165_s21), 7 }
  0x14   : > { %s2078_s16 = smul.u32 20, %s3455_s7  ;;  %s2192_s7 = smov 80  }
  0x15   : > { %s349_s8 = sadd.s32 %s2272_s29, %s2076_s30  ;;  %s2079_s28 = smul.u32 20, %s3457_s10 }
  0x16   : > { %s1989_s9 = sshll.u32 %s349_s8, 3  ;;  %s359_s18 = sadd.s32 %s2078_s16, %s2272_s29 }
  0x17   : > { %s2280_s13 = scalar_lea.vmem %s3369_s0, %s1989_s9  ;;  %s1990_s20 = sshll.u32 %s359_s18, 3 }
  0x18   : > { %v393_v0 = vld [vmem:[%s2280_s13 + $0x10] sm:$0xff]  ;;  %v391_v1 = vld [vmem:[%s2280_s13] sm:$0xff]  ;;  %v392_v2 = vld [vmem:[%s2280_s13 + $0x8] sm:$0x3]  ;;  %s2325_s8 = scalar_lea.vmem %s3370_s1, %s1990_s20  ;;  %s370_s9 = sadd.s32 %s2079_s28, %s2272_s29 }
  0x19   : > { %553 = vrot.lane.b32.xlu1 %v393_v0, %s2183_s15  ;;  %v437_v3 = vrot.slane %v391_v1, 1  ;;  %v438_v4 = vrot.slane %v392_v2, 1  ;;  %v394_v5 = vld [vmem:[%s2280_s13 + $0x18] sm:$0x3]  ;;  %v440_v6 = vrot.slane %v393_v0, 1  ;;  %v495_v7 = vrot.slane %v391_v1, 2 }
  0x1a   : > { %412 = vst.msk [vmem:[#allocation2] sm:$0xff] %vm411_vm0, %v391_v1  ;;  %413 = vst.msk [vmem:[#allocation2 + $0x10] sm:$0xff] %vm411_vm0, %v393_v0  ;;  %v441_v8 = vrot.slane %v394_v5, 1  ;;  %v496_v9 = vrot.slane %v392_v2, 2  ;;  %v498_v10 = vrot.slane %v393_v0, 2  ;;  %v499_v11 = vrot.slane %v394_v5, 2 }
  0x1b   : > { %v2294_v12 = vld [vmem:[%s2280_s13 + $0x20] sm:$0xff]  ;;  %v439_v13 = vsel %vm436_vm1, %v437_v3, %v438_v4  ;;  %v2308_v16 = vld [vmem:[%s2280_s13 + $0x30] sm:$0xff]  ;;  %v771_v21 = vld [vmem:[%s2325_s8 + $0x28] sm:$0x3]  ;;  %s3392_s10 = smov 16   ;;  %s1991_s11 = sshll.u32 %s370_s9, 3 }
  0x1c   : > { %v2300_v14 = vld [vmem:[%s2280_s13 + $0x40] sm:$0xff]  ;;  %414 = vst.msk [vmem:[#allocation2 + $0x20] sm:$0xff] %vm411_vm0, %v2294_v12  ;;  %461 = vrot.lane.b32.xlu0 %v439_v13, %s2184_s17  ;;  %v442_v15 = vsel %vm436_vm1, %v440_v6, %v441_v8  ;;  %v2311_v17 = vld [vmem:[%s2280_s13 + $0x50] sm:$0xff]  ;;  %v497_v18 = vsel %vm494_vm2, %v495_v7, %v496_v9  ;;  %415 = vst.msk [vmem:[#allocation2 + $0x30] sm:$0xff] %vm411_vm0, %v2308_v16  ;;  %v500_v19 = vsel %vm494_vm2, %v498_v10, %v499_v11  ;;  %s2338_s18 = scalar_lea.vmem %s3371_s2, %s1991_s11  ;;  %s2188_s29 = smov 48  }
  0x1d   : > { %416 = vst.msk [vmem:[#allocation2 + $0x40] sm:$0xff] %vm411_vm0, %v2300_v14  ;;  %590 = vrot.lane.b32.xlu1 %v442_v15, %s2185_s19  ;;  %417 = vst.msk [vmem:[#allocation2 + $0x50] sm:$0xff] %vm411_vm0, %v2311_v17  ;;  %v2328_v20 = vld [vmem:[%s2325_s8 + $0x20] sm:$0xff]  ;;  %v899_v23 = vrot.slane %v771_v21, 2  ;;  %v396_v24 = vld [vmem:[%s2280_s13 + $0x28] sm:$0x3] }
  0x1e   : > { %v898_v22 = vrot.slane %v2328_v20, 2  ;;  %v1145_v26 = vld [vmem:[%s2338_s18] sm:$0xff]  ;;  %v443_v27 = vrot.slane %v2294_v12, 1  ;;  %v444_v28 = vrot.slane %v396_v24, 1  ;;  %v1146_v31 = vld [vmem:[%s2338_s18 + $0x8] sm:$0x3] }
  0x1f   : > { %v2349_v29 = vld [vmem:[%s2280_s13 + $0x60] sm:$0xff]  ;;  %v1213_v32 = vrot.slane %v1145_v26, 1  ;;  %s3378_s20 = smov 56   ;;  %v1214_v33 = vrot.slane %v1146_v31, 1  ;;  %v1269_v34 = vrot.slane %v1145_v26, 2  ;;  %v1270_v35 = vrot.slane %v1146_v31, 2 }
  0x20   : > { %519 = vrot.lane.b32.xlu0 %v497_v18, %s3392_s10  ;;  %v2344_v25 = vsel %vm494_vm2, %v898_v22, %v899_v23  ;;  %418 = vst.msk [vmem:[#allocation2 + $0x60] sm:$0xff] %vm411_vm0, %v2349_v29  ;;  %v445_v30 = vsel %vm436_vm1, %v443_v27, %v444_v28  ;;  %v841_v36 = vrot.slane %v2328_v20, 1  ;;  %v842_v37 = vrot.slane %v771_v21, 1  ;;  %v400_v38 = vld [vmem:[%s2280_s13 + $0x48] sm:$0x3]  ;;  %v2377_v48 = vld [vmem:[%s2325_s8 + $0x30] sm:$0xff] }
  0x21   : > { %626 = vrot.lane.b32.xlu1 %v500_v19, %s2187_s12  ;;  %v773_v39 = vld [vmem:[%s2325_s8 + $0x38] sm:$0x3]  ;;  %v1215_v41 = vsel %vm436_vm1, %v1213_v32, %v1214_v33  ;;  %v501_v42 = vrot.slane %v2294_v12, 2  ;;  %v502_v43 = vrot.slane %v396_v24, 2  ;;  %v1271_v45 = vsel %vm494_vm2, %v1269_v34, %v1270_v35  ;;  %s3384_s28 = smov 64   ;;  %v766_v53 = vld [vmem:[%s2325_s8] sm:$0xff] }
  0x22   : > { %v2367_v40 = vsel %vm436_vm1, %v841_v36, %v842_v37  ;;  %v845_v44 = vrot.slane %v773_v39, 1  ;;  %v449_v46 = vrot.slane %v2300_v14, 1  ;;  %v450_v47 = vrot.slane %v400_v38, 1  ;;  %s2191_s30 = smov 72   ;;  %v1147_v56 = vld [vmem:[%s2338_s18 + $0x10] sm:$0xff]  ;;  %v2427_v9 = vld [vmem:[%s2325_s8 + $0x40] sm:$0xff] }
  0x23   : > { %1102 = vst.msk [vmem:[#allocation2 + $0x8] sm:$0xff] %vm411_vm0, %v2367_v40  ;;  %v844_v49 = vrot.slane %v2377_v48, 1  ;;  %v503_v50 = vsel %vm494_vm2, %v501_v42, %v502_v43  ;;  %v901_v54 = vrot.slane %v2377_v48, 2  ;;  %v902_v55 = vrot.slane %v773_v39, 2  ;;  %v767_v59 = vld [vmem:[%s2325_s8 + $0x8] sm:$0x3] }
  0x24   : > { %463 = vrot.lane.b32.xlu0 %v442_v15, %s2184_s17  ;;  %v2387_v52 = vsel %vm436_vm1, %v449_v46, %v450_v47  ;;  %v507_v57 = vrot.slane %v2300_v14, 2  ;;  %v508_v58 = vrot.slane %v400_v38, 2  ;;  %v835_v61 = vrot.slane %v766_v53, 1  ;;  %v1148_v0 = vld [vmem:[%s2338_s18 + $0x18] sm:$0x3]  ;;  %v2423_v8 = vld [vmem:[%s2280_s13 + $0x70] sm:$0xff] }
  0x25   : > { %521 = vrot.lane.b32.xlu1 %v500_v19, %s3392_s10  ;;  %v2384_v51 = vsel %vm436_vm1, %v844_v49, %v845_v44  ;;  %v2404_v60 = vsel %vm494_vm2, %v901_v54, %v902_v55  ;;  %v836_v63 = vrot.slane %v767_v59, 1  ;;  %v1216_v2 = vrot.slane %v1147_v56, 1  ;;  %v398_v7 = vld [vmem:[%s2280_s13 + $0x38] sm:$0x3]  ;;  %v2430_v10 = vld [vmem:[%s2325_s8 + $0x48] sm:$0x3] }
  0x26   : > { %1103 = vst.msk [vmem:[#allocation2 + $0x18] sm:$0xff] %vm411_vm0, %v2384_v51  ;;  %v2407_v62 = vsel %vm494_vm2, %v507_v57, %v508_v58  ;;  %v1217_v3 = vrot.slane %v1148_v0, 1  ;;  %v892_v5 = vrot.slane %v766_v53, 2  ;;  %v893_v6 = vrot.slane %v767_v59, 2  ;;  %419 = vst.msk [vmem:[#allocation2 + $0x70] sm:$0xff] %vm411_vm0, %v2423_v8  ;;  %s3376_s9 = smov 88  }
  0x27   : > { %v837_v1 = vsel %vm436_vm1, %v835_v61, %v836_v63  ;;  %v446_v11 = vrot.slane %v2308_v16, 1  ;;  %v847_v13 = vrot.slane %v2427_v9, 1  ;;  %v848_v15 = vrot.slane %v2430_v10, 1  ;;  %v402_v22 = vld [vmem:[%s2280_s13 + $0x58] sm:$0x3]  ;;  %v2462_v33 = vld [vmem:[%s2325_s8 + $0x10] sm:$0xff] }
  0x28   : > { %1113 = vrot.lane.b32.xlu0 %v2344_v25, %s2184_s17  ;;  %v1218_v4 = vsel %vm436_vm1, %v1216_v2, %v1217_v3  ;;  %v894_v18 = vsel %vm494_vm2, %v892_v5, %v893_v6  ;;  %v1272_v19 = vrot.slane %v1147_v56, 2  ;;  %v1273_v21 = vrot.slane %v1148_v0, 2  ;;  %v1549_v34 = vld [vmem:[%s3372_s3] sm:$0xff]  ;;  %v1550_v35 = vld [vmem:[%s3372_s3 + $0x8] sm:$0xff]  ;;  %v1551_v39 = vld [vmem:[%s3372_s3 + $0x10] sm:$0xff]  ;;  %s2197_s11 = smov 112  }
  0x29   : > { %1173 = vrot.lane.b32.xlu1 %v1145_v26, %s3392_s10  ;;  %v2442_v23 = vsel %vm436_vm1, %v847_v13, %v848_v15  ;;  %v452_v27 = vrot.slane %v2311_v17, 1  ;;  %v453_v28 = vrot.slane %v402_v22, 1  ;;  %v504_v31 = vrot.slane %v2308_v16, 2  ;;  %v2478_v38 = vld [vmem:[%s2338_s18 + $0x20] sm:$0xff]  ;;  %v779_v42 = vld [vmem:[%s2325_s8 + $0x68] sm:$0x3] }
  0x2a   : > { %1104 = vst.msk [vmem:[#allocation2 + $0x28] sm:$0xff] %vm411_vm0, %v2442_v23  ;;  %v1274_v26 = vsel %vm494_vm2, %v1272_v19, %v1273_v21  ;;  %v505_v32 = vrot.slane %v398_v7, 2  ;;  %v2010_v36 = vpack.c.bf16 %v1550_v35, %v1549_v34  ;;  %v2195_v37 = vmov 0.0|0.0   ;;  %v2496_v47 = vld [vmem:[%s2325_s8 + $0x60] sm:$0xff]  ;;  %v2499_v49 = vld [vmem:[%s2325_s8 + $0x18] sm:$0x3] }
  0x2b   : > { %2009 = vmatprep.subr.bf16.mxu0 %v2195_v37  ;;  %2048 = vmatprep.subr.bf16.mxu1 %v2195_v37  ;;  %v854_v44 = vrot.slane %v779_v42, 1  ;;  %v511_v46 = vrot.slane %v402_v22, 2  ;;  %v1554_v54 = vld [vmem:[%s3372_s3 + $0x28] sm:$0xff]  ;;  %v838_v58 = vrot.slane %v2462_v33, 1  ;;  %v839_v59 = vrot.slane %v2499_v49, 1  ;;  %v1555_v61 = vld [vmem:[%s3372_s3 + $0x30] sm:$0xff] }
  0x2c   : > { %660 = vrot.lane.b32.xlu0 %v2294_v12, %s2188_s29  ;;  %2011 = vmatpush1.bf16.msra.mxu0 %v2010_v36  ;;  %v1556_v63 = vld [vmem:[%s3372_s3 + $0x38] sm:$0xff]  ;;  %v910_v2 = vrot.slane %v2496_v47, 2  ;;  %v911_v3 = vrot.slane %v779_v42, 2  ;;  %v1557_v5 = vld [vmem:[%s3372_s3 + $0x40] sm:$0xff]  ;;  %v1558_v6 = vld [vmem:[%s3372_s3 + $0x48] sm:$0xff]  ;;  %v1219_v15 = vrot.slane %v2478_v38, 1 }
  0x2d   : > { %697 = vrot.lane.b32.xlu1 %v445_v30, %s3378_s20  ;;  %2012 = vmatprep.subr.bf16.mxu0 %v2195_v37  ;;  %v2019_v0 = vpack.c.bf16 %v1556_v63, %v1555_v61  ;;  %v1559_v19 = vld [vmem:[%s3372_s3 + $0x50] sm:$0xff]  ;;  %v1560_v21 = vld [vmem:[%s3372_s3 + $0x58] sm:$0xff]  ;;  %v895_v35 = vrot.slane %v2462_v33, 2  ;;  %s3397_s16 = smov 96  }
  0x2e   : > { %2062 = vmatpush1.bf16.msra.mxu1 %v2010_v36  ;;  %v2556_v13 = vsel %vm494_vm2, %v910_v2, %v911_v3  ;;  %v896_v36 = vrot.slane %v2499_v49, 2  ;;  %v1571_v2 = vld [vmem:[%s3372_s3 + $0xb0] sm:$0xff]  ;;  %v1572_v3 = vld [vmem:[%s3372_s3 + $0xb8] sm:$0xff] }
  0x2f   : > { %2049 = vmatprep.subr.bf16.mxu1 %v2195_v37 }
  0x30   : > { %555 = vrot.lane.b32.xlu0 %v2294_v12, %s2183_s15  ;;  %v447_v12 = vrot.slane %v398_v7, 1  ;;  %v2022_v7 = vpack.c.bf16 %v1558_v6, %v1557_v5  ;;  %v2043_v5 = vpack.c.bf16 %v1572_v3, %v1571_v2  ;;  %v2771_v3 = vld [vmem:[%s2325_s8 + $0x70] sm:$0xff] }
  0x31   : > { %592 = vrot.lane.b32.xlu1 %v445_v30, %s2185_s19 }
  0x32   : > { %v448_v24 = vsel %vm436_vm1, %v446_v11, %v447_v12  ;;  %v904_v11 = vrot.slane %v2427_v9, 2  ;;  %v905_v12 = vrot.slane %v2430_v10, 2  ;;  %v2025_v10 = vpack.c.bf16 %v1560_v21, %v1559_v19 }
  0x34   : > { %1237 = vrot.lane.b32.xlu0 %v1215_v41, %s2183_s15  ;;  %v1552_v41 = vld [vmem:[%s3372_s3 + $0x18] sm:$0xff]  ;;  %v2573_v22 = vsel %vm494_vm2, %v904_v11, %v905_v12  ;;  %v1573_v12 = vld [vmem:[%s3372_s3 + $0xc0] sm:$0xff] }
  0x35   : > { %1293 = vrot.lane.b32.xlu1 %v1271_v45, %s2185_s19  ;;  %v2013_v43 = vpack.c.bf16 %v1552_v41, %v1551_v39  ;;  %v510_v45 = vrot.slane %v2311_v17, 2  ;;  %v1565_v39 = vld [vmem:[%s3372_s3 + $0x80] sm:$0xff]  ;;  %v1566_v41 = vld [vmem:[%s3372_s3 + $0x88] sm:$0xff] }
  0x36   : > { %v2034_v42 = vpack.c.bf16 %v1566_v41, %v1565_v39 }
  0x37   : > { %2014 = vmatpush1.bf16.msra.mxu0 %v2013_v43  ;;  %2063 = vmatpush1.bf16.msra.mxu1 %v2013_v43  ;;  %v2517_v57 = vsel %vm494_vm2, %v510_v45, %v511_v46  ;;  %v1567_v43 = vld [vmem:[%s3372_s3 + $0x90] sm:$0xff]  ;;  %v2632_v45 = vld [vmem:[%s2338_s18 + $0x40] sm:$0xff]  ;;  %v1275_v46 = vrot.slane %v2478_v38, 2 }
  0x38   : > { %733 = vrot.lane.b32.xlu0 %v503_v50, %s3384_s28  ;;  %2015 = vmatprep.subr.bf16.mxu0 %v2195_v37 }
  0x39   : > { %469 = vrot.lane.b32.xlu1 %v2387_v52, %s2184_s17  ;;  %2050 = vmatprep.subr.bf16.mxu1 %v2195_v37 }
  0x3c   : > { %465 = vrot.lane.b32.xlu0 %v445_v30, %s2184_s17  ;;  %v2455_v30 = vsel %vm436_vm1, %v452_v27, %v453_v28  ;;  %v1562_v27 = vld [vmem:[%s3372_s3 + $0x68] sm:$0xff] }
  0x3d   : > { %794 = vrot.lane.b32.xlu1 %v766_v53, %s2191_s30  ;;  %v1553_v53 = vld [vmem:[%s3372_s3 + $0x20] sm:$0xff] }
  0x3e   : > { %v2016_v55 = vpack.c.bf16 %v1554_v54, %v1553_v53  ;;  %v1570_v53 = vld [vmem:[%s3372_s3 + $0xa8] sm:$0xff] }
  0x40   : > { %628 = vrot.lane.b32.xlu0 %v503_v50, %s2187_s12  ;;  %2017 = vmatpush1.bf16.msra.mxu0 %v2016_v55 }
  0x41   : > { %1326 = vrot.lane.b32.xlu1 %v1147_v56, %s2187_s12  ;;  %2018 = vmatprep.subr.bf16.mxu0 %v2195_v37 }
  0x42   : > { %2064 = vmatpush1.bf16.msra.mxu1 %v2016_v55  ;;  %v2649_v55 = vld [vmem:[%s2325_s8 + $0x50] sm:$0xff] }
  0x43   : > { %2051 = vmatprep.subr.bf16.mxu1 %v2195_v37  ;;  %v850_v61 = vrot.slane %v2649_v55, 1 }
  0x44   : > { %1115 = vrot.lane.b32.xlu0 %v2404_v60, %s2184_s17  ;;  %2020 = vmatpush1.bf16.msra.mxu0 %v2019_v0 }
  0x45   : > { %527 = vrot.lane.b32.xlu1 %v2407_v62, %s3392_s10  ;;  %2021 = vmatprep.subr.bf16.mxu0 %v2195_v37 }
  0x46   : > { %2065 = vmatpush1.bf16.msra.mxu1 %v2019_v0 }
  0x47   : > { %2052 = vmatprep.subr.bf16.mxu1 %v2195_v37 }
  0x48   : > { %523 = vrot.lane.b32.xlu0 %v503_v50, %s3392_s10  ;;  %v853_v50 = vrot.slane %v2496_v47, 1  ;;  %2023 = vmatpush1.bf16.msra.mxu0 %v2022_v7 }
  0x49   : > { %859 = vrot.lane.b32.xlu1 %v837_v1, %s2192_s7  ;;  %v2535_v1 = vsel %vm436_vm1, %v838_v58, %v839_v59  ;;  %2024 = vmatprep.subr.bf16.mxu0 %v2195_v37  ;;  %v2652_v58 = vld [vmem:[%s2325_s8 + $0x58] sm:$0x3] }
  0x4a   : > { %2066 = vmatpush1.bf16.msra.mxu1 %v2022_v7  ;;  %v851_v63 = vrot.slane %v2652_v58, 1  ;;  %v455_v7 = vrot.slane %v2349_v29, 1 }
  0x4b   : > { %2053 = vmatprep.subr.bf16.mxu1 %v2195_v37 }
  0x4c   : > { %662 = vrot.lane.b32.xlu0 %v2308_v16, %s2188_s29  ;;  %2026 = vmatpush1.bf16.msra.mxu0 %v2025_v10 }
  0x4d   : > { %1362 = vrot.lane.b32.xlu1 %v1218_v4, %s2188_s29  ;;  %2027 = vmatprep.subr.bf16.mxu0 %v2195_v37 }
  0x4e   : > { %2067 = vmatpush1.bf16.msra.mxu1 %v2025_v10 }
  0x4f   : > { %2054 = vmatprep.subr.bf16.mxu1 %v2195_v37 }
  0x50   : > { %1175 = vrot.lane.b32.xlu0 %v1147_v56, %s3392_s10  ;;  %v2514_v56 = vsel %vm436_vm1, %v853_v50, %v854_v44  ;;  %v1569_v50 = vld [vmem:[%s3372_s3 + $0xa0] sm:$0xff] }
  0x51   : > { %561 = vrot.lane.b32.xlu1 %v2311_v17, %s2183_s15  ;;  %1106 = vst.msk [vmem:[#allocation2 + $0x48] sm:$0xff] %vm411_vm0, %v2514_v56  ;;  %v2040_v54 = vpack.c.bf16 %v1570_v53, %v1569_v50 }
  0x54   : > { %557 = vrot.lane.b32.xlu0 %v2308_v16, %s2183_s15  ;;  %v2474_v16 = vsel %vm494_vm2, %v504_v31, %v505_v32  ;;  %v1563_v31 = vld [vmem:[%s3372_s3 + $0x70] sm:$0xff]  ;;  %v1564_v32 = vld [vmem:[%s3372_s3 + $0x78] sm:$0xff] }
  0x55   : > { %916 = vrot.lane.b32.xlu1 %v894_v18, %s3376_s9  ;;  %v2031_v34 = vpack.c.bf16 %v1564_v32, %v1563_v31  ;;  %v1225_v31 = vrot.slane %v2632_v45, 1  ;;  %s3386_s9 = smov 120  }
  0x58   : > { %699 = vrot.lane.b32.xlu0 %v448_v24, %s3378_s20 }
  0x59   : > { %1397 = vrot.lane.b32.xlu1 %v1274_v26, %s3378_s20  ;;  %s3380_s20 = smov 96  }
  0x5c   : > { %1239 = vrot.lane.b32.xlu0 %v1218_v4, %s2183_s15  ;;  %v2539_v4 = vld [vmem:[%s2338_s18 + $0x28] sm:$0x3] }
  0x5d   : > { %598 = vrot.lane.b32.xlu1 %v2455_v30, %s2185_s19  ;;  %v1220_v18 = vrot.slane %v2539_v4, 1  ;;  %v1276_v49 = vrot.slane %v2539_v4, 2  ;;  %v2672_v4 = vsel %vm436_vm1, %v850_v61, %v851_v63  ;;  %v781_v63 = vld [vmem:[%s2325_s8 + $0x78] sm:$0x3] }
  0x5e   : > { %1105 = vst.msk [vmem:[#allocation2 + $0x38] sm:$0xff] %vm411_vm0, %v2672_v4 }
  0x5f   : > { %v2655_v59 = vsel %vm494_vm2, %v1275_v46, %v1276_v49 }
  0x60   : > { %594 = vrot.lane.b32.xlu0 %v448_v24, %s2185_s19 }
  0x61   : > { %950 = vrot.lane.b32.xlu1 %v2462_v33, %s3380_s20  ;;  %s3382_s20 = smov 104  }
  0x64   : > { %735 = vrot.lane.b32.xlu0 %v2474_v16, %s3384_s28 }
  0x65   : > { %1430 = vrot.lane.b32.xlu1 %v2478_v38, %s3384_s28 }
  0x68   : > { %1295 = vrot.lane.b32.xlu0 %v1274_v26, %s2185_s19  ;;  %v1561_v26 = vld [vmem:[%s3372_s3 + $0x60] sm:$0xff] }
  0x69   : > { %471 = vrot.lane.b32.xlu1 %v2455_v30, %s2184_s17  ;;  %v2028_v28 = vpack.c.bf16 %v1562_v27, %v1561_v26  ;;  %v1154_v26 = vld [vmem:[%s2338_s18 + $0x48] sm:$0x3]  ;;  %v1575_v27 = vld [vmem:[%s3372_s3 + $0xd0] sm:$0xff] }
  0x6a   : > { %v1226_v32 = vrot.slane %v1154_v26, 1 }
  0x6b   : > { %2029 = vmatpush1.bf16.msra.mxu0 %v2028_v28  ;;  %2068 = vmatpush1.bf16.msra.mxu1 %v2028_v28 }
  0x6c   : > { %467 = vrot.lane.b32.xlu0 %v448_v24, %s2184_s17  ;;  %v2576_v24 = vsel %vm436_vm1, %v1219_v15, %v1220_v18  ;;  %2030 = vmatprep.subr.bf16.mxu0 %v2195_v37  ;;  %v1574_v15 = vld [vmem:[%s3372_s3 + $0xc8] sm:$0xff] }
  0x6d   : > { %634 = vrot.lane.b32.xlu1 %v2517_v57, %s2187_s12  ;;  %2055 = vmatprep.subr.bf16.mxu1 %v2195_v37  ;;  %v2046_v18 = vpack.c.bf16 %v1574_v15, %v1573_v12 }
  0x6f   : > { %2032 = vmatpush1.bf16.msra.mxu0 %v2031_v34  ;;  %2069 = vmatpush1.bf16.msra.mxu1 %v2031_v34 }
  0x70   : > { %630 = vrot.lane.b32.xlu0 %v2474_v16, %s2187_s12  ;;  %2033 = vmatprep.subr.bf16.mxu0 %v2195_v37 }
  0x71   : > { %987 = vrot.lane.b32.xlu1 %v2535_v1, %s3382_s20  ;;  %2056 = vmatprep.subr.bf16.mxu1 %v2195_v37  ;;  %s3396_s20 = smov 88  }
  0x73   : > { %2035 = vmatpush1.bf16.msra.mxu0 %v2034_v42  ;;  %2070 = vmatpush1.bf16.msra.mxu1 %v2034_v42 }
  0x74   : > { %796 = vrot.lane.b32.xlu0 %v2462_v33, %s2191_s30  ;;  %v2617_v33 = vsel %vm494_vm2, %v895_v35, %v896_v36  ;;  %2036 = vmatprep.subr.bf16.mxu0 %v2195_v37  ;;  %v2719_v35 = vsel %vm436_vm1, %v1225_v31, %v1226_v32 }
  0x75   : > { %1121 = vrot.lane.b32.xlu1 %v2556_v13, %s2184_s17  ;;  %2057 = vmatprep.subr.bf16.mxu1 %v2195_v37 }
  0x78   : > { %1117 = vrot.lane.b32.xlu0 %v2573_v22, %s2184_s17 }
  0x79   : > { %1466 = vrot.lane.b32.xlu1 %v2576_v24, %s2191_s30 }
  0x7c   : > { %1328 = vrot.lane.b32.xlu0 %v2478_v38, %s2187_s12 }
  0x7d   : > { %529 = vrot.lane.b32.xlu1 %v2517_v57, %s3392_s10 }
  0x80   : > { %525 = vrot.lane.b32.xlu0 %v2474_v16, %s3392_s10  ;;  %v1568_v16 = vld [vmem:[%s3372_s3 + $0x98] sm:$0xff] }
  0x81   : > { %668 = vrot.lane.b32.xlu1 %v2349_v29, %s2188_s29  ;;  %v2037_v44 = vpack.c.bf16 %v1568_v16, %v1567_v43  ;;  %v513_v43 = vrot.slane %v2349_v29, 2 }
  0x83   : > { %2038 = vmatpush1.bf16.msra.mxu0 %v2037_v44  ;;  %2071 = vmatpush1.bf16.msra.mxu1 %v2037_v44  ;;  %v1281_v44 = vrot.slane %v2632_v45, 2 }
  0x84   : > { %664 = vrot.lane.b32.xlu0 %v2300_v14, %s2188_s29  ;;  %2039 = vmatprep.subr.bf16.mxu0 %v2195_v37 }
  0x85   : > { %1023 = vrot.lane.b32.xlu1 %v2617_v33, %s2197_s11  ;;  %2058 = vmatprep.subr.bf16.mxu1 %v2195_v37 }
  0x87   : > { %2041 = vmatpush1.bf16.msra.mxu0 %v2040_v54  ;;  %2072 = vmatpush1.bf16.msra.mxu1 %v2040_v54 }
  0x88   : > { %861 = vrot.lane.b32.xlu0 %v2535_v1, %s2192_s7  ;;  %v2660_v1 = vld [vmem:[%s2280_s13 + $0x68] sm:$0x3]  ;;  %2042 = vmatprep.subr.bf16.mxu0 %v2195_v37 }
  0x89   : > { %1181 = vrot.lane.b32.xlu1 %v2632_v45, %s3392_s10  ;;  %2059 = vmatprep.subr.bf16.mxu1 %v2195_v37  ;;  %v456_v11 = vrot.slane %v2660_v1, 1  ;;  %v514_v16 = vrot.slane %v2660_v1, 2  ;;  %v857_v1 = vrot.slane %v781_v63, 1 }
  0x8b   : > { %v554_v0 = vpop.permute.xlu1 %553  ;;  %2044 = vmatpush1.bf16.msra.mxu0 %v2043_v5  ;;  %2073 = vmatpush1.bf16.msra.mxu1 %v2043_v5  ;;  %v2695_v21 = vsel %vm436_vm1, %v455_v7, %v456_v11  ;;  %v907_v11 = vrot.slane %v2649_v55, 2 }
  0x8c   : > { %1177 = vrot.lane.b32.xlu0 %v2478_v38, %s3392_s10  ;;  %2045 = vmatprep.subr.bf16.mxu0 %v2195_v37 }
  0x8d   : > { %1501 = vrot.lane.b32.xlu1 %v2655_v59, %s2192_s7  ;;  %2060 = vmatprep.subr.bf16.mxu1 %v2195_v37  ;;  %v2198_v37 = vmov 0.0  }
  0x8e   : > { %v462_v6 = vpop.permute.xlu0 %461 }
  0x8f   : > { %486 = vst.msk [vmem:[#allocation2] sm:$0xff] %vm485_vm3, %v462_v6  ;;  %v591_v38 = vpop.permute.xlu1 %590  ;;  %2047 = vmatpush1.bf16.msra.mxu0 %v2046_v18  ;;  %2074 = vmatpush1.bf16.msra.mxu1 %v2046_v18  ;;  %v856_v6 = vrot.slane %v2771_v3, 1 }
  0x90   : > { %1364 = vrot.lane.b32.xlu0 %v2576_v24, %s2188_s29  ;;  %1660 = vmatprep.subr.mxu0 %v2198_v37 }
  0x91   : > { %563 = vrot.lane.b32.xlu1 %v2349_v29, %s2183_s15  ;;  %2061 = vmatprep.subr.mxu1 %v2198_v37  ;;  %v2749_v29 = vsel %vm494_vm2, %v513_v43, %v514_v16  ;;  %v2843_v43 = vld [vmem:[%s2338_s18 + $0x58] sm:$0x3] }
  0x92   : > { %v520_v19 = vpop.permute.xlu0 %519 }
  0x93   : > { %544 = vst.msk [vmem:[#allocation2] sm:$0xff] %vm543_vm4, %v520_v19  ;;  %v627_v10 = vpop.permute.xlu1 %626  ;;  %1661 = vmatpush1.msra.mxu0 %v1575_v27  ;;  %2075 = vmatpush1.msra.mxu1 %v1575_v27  ;;  %v2798_v19 = vld [vmem:[%s2338_s18 + $0x38] sm:$0x3] }
  0x94   : > { %578 = vst.msk [vmem:[#allocation2] sm:$0xff] %vm577_vm5, %v554_v0  ;;  %559 = vrot.lane.b32.xlu0 %v2300_v14, %s2183_s15  ;;  %v2768_v0 = vld [vmem:[%s2338_s18 + $0x30] sm:$0xff] }
  0x95   : > { %615 = vst.msk [vmem:[#allocation2] sm:$0xff] %vm614_vm6, %v591_v38  ;;  %705 = vrot.lane.b32.xlu1 %v2695_v21, %s3395_s14  ;;  %v908_v38 = vrot.slane %v2652_v58, 2 }
  0x96   : > { %651 = vst.msk [vmem:[#allocation2] sm:$0xff] %vm650_vm7, %v627_v10  ;;  %v464_v28 = vpop.permute.xlu0 %463  ;;  %v1222_v10 = vrot.slane %v2768_v0, 1 }
  0x97   : > { %487 = vst.msk [vmem:[#allocation2 + $0x10] sm:$0xff] %vm485_vm3, %v464_v28  ;;  %v522_v14 = vpop.permute.xlu1 %521  ;;  %v2794_v18 = vsel %vm494_vm2, %v907_v11, %v908_v38 }
  0x98   : > { %545 = vst.msk [vmem:[#allocation2 + $0x10] sm:$0xff] %vm543_vm4, %v522_v14  ;;  %701 = vrot.lane.b32.xlu0 %v2387_v52, %s3395_s14  ;;  %v2827_v14 = vld [vmem:[%s2338_s18 + $0x50] sm:$0xff] }
  0x99   : > { %1057 = vrot.lane.b32.xlu1 %v2328_v20, %s3386_s9  ;;  %v1228_v16 = vrot.slane %v2827_v14, 1 }
  0x9a   : > { %v1114_v34 = vpop.permute.xlu0 %1113 }
  0x9b   : > { %1137 = vst.msk [vmem:[#allocation2 + $0x8] sm:$0xff] %vm485_vm3, %v1114_v34  ;;  %v1174_v36 = vpop.permute.xlu1 %1173 }
  0x9c   : > { %1197 = vst.msk [vmem:[#allocation2 + $0x8] sm:$0xff] %vm543_vm4, %v1174_v36  ;;  %918 = vrot.lane.b32.xlu0 %v2617_v33, %s3396_s20 }
  0x9d   : > { %1245 = vrot.lane.b32.xlu1 %v2719_v35, %s2183_s15 }
  0x9e   : > { %v661_v39 = vpop.permute.xlu0 %660 }
  0x9f   : > { %685 = vst.msk [vmem:[#allocation2] sm:$0xff] %vm684_vm8, %v661_v39  ;;  %v698_v41 = vpop.permute.xlu1 %697 }
  0xa0   : > { %722 = vst.msk [vmem:[#allocation2] sm:$0xff] %vm721_vm9, %v698_v41  ;;  %1241 = vrot.lane.b32.xlu0 %v2576_v24, %s2183_s15 }
  0xa1   : > { %596 = vrot.lane.b32.xlu1 %v2387_v52, %s2185_s19  ;;  %v1282_v52 = vrot.slane %v1154_v26, 2  ;;  %v1223_v26 = vrot.slane %v2798_v19, 1 }
  0xa2   : > { %v556_v42 = vpop.permute.xlu0 %555 }
  0xa3   : > { %579 = vst.msk [vmem:[#allocation2 + $0x10] sm:$0xff] %vm577_vm5, %v556_v42  ;;  %v593_v33 = vpop.permute.xlu1 %592  ;;  %v2752_v50 = vsel %vm494_vm2, %v1281_v44, %v1282_v52  ;;  %v2818_v31 = vsel %vm436_vm1, %v1222_v10, %v1223_v26 }
  0xa4   : > { %616 = vst.msk [vmem:[#allocation2 + $0x10] sm:$0xff] %vm614_vm6, %v593_v33  ;;  %1399 = vrot.lane.b32.xlu0 %v2655_v59, %s3395_s14 }
  0xa5   : > { %737 = vrot.lane.b32.xlu1 %v2407_v62, %s3384_s28 }
  0xa6   : > { %v1238_v24 = vpop.permute.xlu0 %1237 }
  0xa7   : > { %1261 = vst.msk [vmem:[#allocation2 + $0x8] sm:$0xff] %vm577_vm5, %v1238_v24  ;;  %v1294_v46 = vpop.permute.xlu1 %1293 }
  0xa8   : > { %1317 = vst.msk [vmem:[#allocation2 + $0x8] sm:$0xff] %vm614_vm6, %v1294_v46  ;;  %600 = vrot.lane.b32.xlu0 %v2695_v21, %s2185_s19 }
  0xa9   : > { %952 = vrot.lane.b32.xlu1 %v2328_v20, %s3397_s16 }
  0xaa   : > { %v734_v49 = vpop.permute.xlu0 %733 }
  0xab   : > { %758 = vst.msk [vmem:[#allocation2] sm:$0xff] %vm757_vm10, %v734_v49  ;;  %v470_v53 = vpop.permute.xlu1 %469  ;;  %v1278_v49 = vrot.slane %v2768_v0, 2 }
  0xac   : > { %490 = vst.msk [vmem:[#allocation2 + $0x40] sm:$0xff] %vm485_vm3, %v470_v53  ;;  %741 = vrot.lane.b32.xlu0 %v2749_v29, %s3384_s28  ;;  %v1279_v53 = vrot.slane %v2798_v19, 2  ;;  %v1285_v19 = vrot.slane %v2843_v43, 2 }
  0xad   : > { %1301 = vrot.lane.b32.xlu1 %v2752_v50, %s2185_s19 }
  0xae   : > { %v466_v54 = vpop.permute.xlu0 %465 }
  0xaf   : > { %488 = vst.msk [vmem:[#allocation2 + $0x20] sm:$0xff] %vm485_vm3, %v466_v54  ;;  %v795_v61 = vpop.permute.xlu1 %794 }
  0xb0   : > { %819 = vst.msk [vmem:[#allocation2] sm:$0xff] %vm3393_vm11, %v795_v61  ;;  %1297 = vrot.lane.b32.xlu0 %v2655_v59, %s2185_s19  ;;  %v2781_v59 = vsel %vm436_vm1, %v856_v6, %v857_v1  ;;  %v458_v61 = vrot.slane %v2423_v8, 1 }
  0xb1   : > { %473 = vrot.lane.b32.xlu1 %v2695_v21, %s2184_s17  ;;  %1107 = vst.msk [vmem:[#allocation2 + $0x58] sm:$0xff] %vm411_vm0, %v2781_v59 }
  0xb2   : > { %v629_v2 = vpop.permute.xlu0 %628 }
  0xb3   : > { %652 = vst.msk [vmem:[#allocation2 + $0x10] sm:$0xff] %vm650_vm7, %v629_v2  ;;  %v1327_v5 = vpop.permute.xlu1 %1326  ;;  %v2878_v2 = vsel %vm494_vm2, %v1278_v49, %v1279_v53 }
  0xb4   : > { %1350 = vst.msk [vmem:[#allocation2 + $0x8] sm:$0xff] %vm650_vm7, %v1327_v5  ;;  %1432 = vrot.lane.b32.xlu0 %v2768_v0, %s3384_s28  ;;  %s3398_s28 = smov 104  }
  0xb5   : > { %636 = vrot.lane.b32.xlu1 %v2749_v29, %s2187_s12 }
  0xb6   : > { %v1116_v7 = vpop.permute.xlu0 %1115 }
  0xb7   : > { %1138 = vst.msk [vmem:[#allocation2 + $0x18] sm:$0xff] %vm485_vm3, %v1116_v7  ;;  %v528_v12 = vpop.permute.xlu1 %527 }
  0xb8   : > { %548 = vst.msk [vmem:[#allocation2 + $0x40] sm:$0xff] %vm543_vm4, %v528_v12  ;;  %632 = vrot.lane.b32.xlu0 %v2407_v62, %s2187_s12  ;;  %v913_v62 = vrot.slane %v2771_v3, 2 }
  0xb9   : > { %802 = vrot.lane.b32.xlu1 %v2427_v9, %s2191_s30  ;;  %v914_v9 = vrot.slane %v781_v63, 2 }
  0xba   : > { %v524_v15 = vpop.permute.xlu0 %523 }
  0xbb   : > { %546 = vst.msk [vmem:[#allocation2 + $0x20] sm:$0xff] %vm543_vm4, %v524_v15  ;;  %v860_v58 = vpop.permute.xlu1 %859 }
  0xbc   : > { %884 = vst.msk [vmem:[#allocation2] sm:$0xff] %vm3390_vm12, %v860_v58  ;;  %798 = vrot.lane.b32.xlu0 %v2328_v20, %s2191_s30  ;;  %v2815_v20 = vsel %vm494_vm2, %v913_v62, %v914_v9  ;;  %v516_v62 = vrot.slane %v2423_v8, 2 }
  0xbd   : > { %1119 = vrot.lane.b32.xlu1 %v2794_v18, %s2184_s17 }
  0xbe   : > { %v663_v21 = vpop.permute.xlu0 %662 }
  0xbf   : > { %686 = vst.msk [vmem:[#allocation2 + $0x10] sm:$0xff] %vm684_vm8, %v663_v21  ;;  %v1363_v27 = vpop.permute.xlu1 %1362 }
  0xc0   : > { %1386 = vst.msk [vmem:[#allocation2 + $0x8] sm:$0xff] %vm684_vm8, %v1363_v27  ;;  %989 = vrot.lane.b32.xlu0 %v2367_v40, %s3398_s28 }
  0xc1   : > { %1330 = vrot.lane.b32.xlu1 %v2768_v0, %s2187_s12 }
  0xc2   : > { %v1176_v28 = vpop.permute.xlu0 %1175 }
  0xc3   : > { %1198 = vst.msk [vmem:[#allocation2 + $0x18] sm:$0xff] %vm543_vm4, %v1176_v28  ;;  %v562_v32 = vpop.permute.xlu1 %561 }
  0xc4   : > { %582 = vst.msk [vmem:[#allocation2 + $0x40] sm:$0xff] %vm577_vm5, %v562_v32  ;;  %1123 = vrot.lane.b32.xlu0 %v2815_v20, %s2184_s17 }
  0xc5   : > { %1468 = vrot.lane.b32.xlu1 %v2818_v31, %s2191_s30 }
  0xc6   : > { %v558_v34 = vpop.permute.xlu0 %557 }
  0xc7   : > { %580 = vst.msk [vmem:[#allocation2 + $0x20] sm:$0xff] %vm577_vm5, %v558_v34  ;;  %v917_v36 = vpop.permute.xlu1 %916 }
  0xc8   : > { %941 = vst.msk [vmem:[#allocation2] sm:$0xff] %vm940_vm13, %v917_v36  ;;  %1334 = vrot.lane.b32.xlu0 %v2827_v14, %s2187_s12 }
  0xc9   : > { %666 = vrot.lane.b32.xlu1 %v2311_v17, %s2188_s29 }
  0xca   : > { %v700_v39 = vpop.permute.xlu0 %699 }
  0xcb   : > { %723 = vst.msk [vmem:[#allocation2 + $0x10] sm:$0xff] %vm721_vm9, %v700_v39  ;;  %v1398_v41 = vpop.permute.xlu1 %1397  ;;  %v2941_v39 = vld [vmem:[%s2338_s18 + $0x60] sm:$0xff] }
  0xcc   : > { %1421 = vst.msk [vmem:[#allocation2 + $0x8] sm:$0xff] %vm721_vm9, %v1398_v41  ;;  %531 = vrot.lane.b32.xlu0 %v2749_v29, %s3392_s10  ;;  %v406_v29 = vld [vmem:[%s2280_s13 + $0x78] sm:$0x3] }
  0xcd   : > { %863 = vrot.lane.b32.xlu1 %v2367_v40, %s2192_s7  ;;  %v1229_v40 = vrot.slane %v2843_v43, 1  ;;  %v459_v63 = vrot.slane %v406_v29, 1  ;;  %v517_v9 = vrot.slane %v406_v29, 2 }
  0xce   : > { %v1240_v42 = vpop.permute.xlu0 %1239 }
  0xcf   : > { %1262 = vst.msk [vmem:[#allocation2 + $0x18] sm:$0xff] %vm577_vm5, %v1240_v42  ;;  %v599_v33 = vpop.permute.xlu1 %598  ;;  %v2859_v52 = vsel %vm436_vm1, %v1228_v16, %v1229_v40  ;;  %v2881_v5 = vsel %vm436_vm1, %v458_v61, %v459_v63  ;;  %v2920_v27 = vsel %vm494_vm2, %v516_v62, %v517_v9  ;;  %v2950_v42 = vld [vmem:[%s2325_s8 + $0x80] sm:$0xff]  ;;  %v1287_v9 = vrot.slane %v2941_v39, 2 }
  0xd0   : > { %619 = vst.msk [vmem:[#allocation2 + $0x40] sm:$0xff] %vm614_vm6, %v599_v33  ;;  %670 = vrot.lane.b32.xlu0 %v2423_v8, %s2188_s29  ;;  %v783_v33 = vld [vmem:[%s2325_s8 + $0x88] sm:$0x3]  ;;  %v1020_v53 = vrot.slane %v2950_v42, 2 }
  0xd1   : > { %1025 = vrot.lane.b32.xlu1 %v2344_v25, %s2197_s11  ;;  %v985_v16 = vrot.slane %v783_v33, 1 }
  0xd2   : > { %v595_v17 = vpop.permute.xlu0 %594 }
  0xd3   : > { %617 = vst.msk [vmem:[#allocation2 + $0x20] sm:$0xff] %vm614_vm6, %v595_v17  ;;  %v951_v24 = vpop.permute.xlu1 %950  ;;  %v984_v17 = vrot.slane %v2950_v42, 1 }
  0xd4   : > { %975 = vst.msk [vmem:[#allocation2] sm:$0xff] %vm3391_vm14, %v951_v24  ;;  %867 = vrot.lane.b32.xlu0 %v2442_v23, %s2192_s7 }
  0xd5   : > { %1183 = vrot.lane.b32.xlu1 %v2827_v14, %s3392_s10  ;;  %v2961_v40 = vsel %vm436_vm1, %v984_v17, %v985_v16  ;;  %v2141_v16 = vld [vmem:[%s2325_s8 + $0x40] sm:$0xff] }
  0xd6   : > { %v736_v44 = vpop.permute.xlu0 %735  ;;  %1108 = vst.msk [vmem:[#allocation2 + $0x68] sm:$0xff] %vm411_vm0, %v2961_v40 }
  0xd7   : > { %759 = vst.msk [vmem:[#allocation2 + $0x10] sm:$0xff] %vm757_vm10, %v736_v44  ;;  %v1431_v46 = vpop.permute.xlu1 %1430 }
  0xd8   : > { %1454 = vst.msk [vmem:[#allocation2 + $0x8] sm:$0xff] %vm757_vm10, %v1431_v46  ;;  %1179 = vrot.lane.b32.xlu0 %v2768_v0, %s3392_s10 }
  0xd9   : > { %1370 = vrot.lane.b32.xlu1 %v2859_v52, %s2188_s29 }
  0xda   : > { %v1296_v54 = vpop.permute.xlu0 %1295 }
  0xdb   : > { %1318 = vst.msk [vmem:[#allocation2 + $0x18] sm:$0xff] %vm614_vm6, %v1296_v54  ;;  %v472_v1 = vpop.permute.xlu1 %471  ;;  %v1021_v54 = vrot.slane %v783_v33, 2 }
  0xdc   : > { %491 = vst.msk [vmem:[#allocation2 + $0x50] sm:$0xff] %vm485_vm3, %v472_v1  ;;  %1366 = vrot.lane.b32.xlu0 %v2818_v31, %s2188_s29 }
  0xdd   : > { %565 = vrot.lane.b32.xlu1 %v2423_v8, %s2183_s15 }
  0xde   : > { %v468_v0 = vpop.permute.xlu0 %467 }
  0xdf   : > { %489 = vst.msk [vmem:[#allocation2 + $0x30] sm:$0xff] %vm485_vm3, %v468_v0  ;;  %v635_v6 = vpop.permute.xlu1 %634 }
  0xe0   : > { %655 = vst.msk [vmem:[#allocation2 + $0x40] sm:$0xff] %vm650_vm7, %v635_v6  ;;  %1503 = vrot.lane.b32.xlu0 %v2878_v2, %s2192_s7 }
  0xe1   : > { %707 = vrot.lane.b32.xlu1 %v2881_v5, %s3395_s14 }
  0xe2   : > { %v631_v7 = vpop.permute.xlu0 %630 }
  0xe3   : > { %653 = vst.msk [vmem:[#allocation2 + $0x20] sm:$0xff] %vm650_vm7, %v631_v7  ;;  %v988_v11 = vpop.permute.xlu1 %987 }
  0xe4   : > { %1012 = vst.msk [vmem:[#allocation2] sm:$0xff] %vm3388_vm15, %v988_v11  ;;  %703 = vrot.lane.b32.xlu0 %v2455_v30, %s3395_s14  ;;  %v1284_v30 = vrot.slane %v2827_v14, 2  ;;  %vm3389_vm15 = vcmask 982912  }
  0xe5   : > { %924 = vrot.lane.b32.xlu1 %v2573_v22, %s3396_s20 }
  0xe6   : > { %v797_v38 = vpop.permute.xlu0 %796  ;;  %v2917_v10 = vsel %vm494_vm2, %v1284_v30, %v1285_v19 }
  0xe7   : > { %820 = vst.msk [vmem:[#allocation2 + $0x10] sm:$0xff] %vm3393_vm11, %v797_v38  ;;  %v1122_v12 = vpop.permute.xlu1 %1121 }
  0xe8   : > { %1141 = vst.msk [vmem:[#allocation2 + $0x48] sm:$0xff] %vm485_vm3, %v1122_v12  ;;  %920 = vrot.lane.b32.xlu0 %v2344_v25, %s3396_s20 }
  0xe9   : > { %1243 = vrot.lane.b32.xlu1 %v2818_v31, %s2183_s15 }
  0xea   : > { %v1118_v15 = vpop.permute.xlu0 %1117 }
  0xeb   : > { %1139 = vst.msk [vmem:[#allocation2 + $0x28] sm:$0xff] %vm485_vm3, %v1118_v15  ;;  %v1467_v58 = vpop.permute.xlu1 %1466 }
  0xec   : > { %1490 = vst.msk [vmem:[#allocation2 + $0x8] sm:$0xff] %vm3393_vm11, %v1467_v58  ;;  %1059 = vrot.lane.b32.xlu0 %v2377_v48, %s3386_s9  ;;  %s3399_s9 = smov 64   ;;  %v3012_v58 = vld [vmem:[%s2280_s13 + $0x80] sm:$0xff] }
  0xed   : > { %1401 = vrot.lane.b32.xlu1 %v2878_v2, %s3395_s14 }
  0xee   : > { %v1329_v25 = vpop.permute.xlu0 %1328 }
  0xef   : > { %1351 = vst.msk [vmem:[#allocation2 + $0x18] sm:$0xff] %vm650_vm7, %v1329_v25  ;;  %v530_v21 = vpop.permute.xlu1 %529 }
  0xf0   : > { %549 = vst.msk [vmem:[#allocation2 + $0x50] sm:$0xff] %vm543_vm4, %v530_v21  ;;  %1247 = vrot.lane.b32.xlu0 %v2859_v52, %s2183_s15 }
  0xf1   : > { %602 = vrot.lane.b32.xlu1 %v2881_v5, %s2185_s19 }
  0xf2   : > { %v526_v26 = vpop.permute.xlu0 %525 }
  0xf3   : > { %547 = vst.msk [vmem:[#allocation2 + $0x30] sm:$0xff] %vm543_vm4, %v526_v26  ;;  %v669_v8 = vpop.permute.xlu1 %668 }
  0xf4   : > { %689 = vst.msk [vmem:[#allocation2 + $0x40] sm:$0xff] %vm684_vm8, %v669_v8  ;;  %1405 = vrot.lane.b32.xlu0 %v2917_v10, %s3395_s14 }
  0xf5   : > { %743 = vrot.lane.b32.xlu1 %v2920_v27, %s3399_s9 }
  0xf6   : > { %v665_v28 = vpop.permute.xlu0 %664 }
  0xf7   : > { %687 = vst.msk [vmem:[#allocation2 + $0x20] sm:$0xff] %vm684_vm8, %v665_v28  ;;  %v1024_v31 = vpop.permute.xlu1 %1023 }
  0xf8   : > { %1048 = vst.msk [vmem:[#allocation2] sm:$0xff] %vm3389_vm15, %v1024_v31  ;;  %739 = vrot.lane.b32.xlu0 %v2517_v57, %s3399_s9  ;;  %vm1583_vm15 = vcmask 719872  }
  0xf9   : > { %958 = vrot.lane.b32.xlu1 %v2649_v55, %s3397_s16 }
  0xfa   : > { %v862_v32 = vpop.permute.xlu0 %861 }
  0xfb   : > { %885 = vst.msk [vmem:[#allocation2 + $0x10] sm:$0xff] %vm3390_vm12, %v862_v32  ;;  %v1182_v34 = vpop.permute.xlu1 %1181 }
  0xfc   : > { %1201 = vst.msk [vmem:[#allocation2 + $0x48] sm:$0xff] %vm543_vm4, %v1182_v34  ;;  %954 = vrot.lane.b32.xlu0 %v2377_v48, %s3397_s16 }
  0xfd   : > { %1303 = vrot.lane.b32.xlu1 %v2917_v10, %s2185_s19 }
  0xfe   : > { %v1178_v36 = vpop.permute.xlu0 %1177 }
  0xff   : > { %1199 = vst.msk [vmem:[#allocation2 + $0x28] sm:$0xff] %vm543_vm4, %v1178_v36  ;;  %v1502_v57 = vpop.permute.xlu1 %1501 }
 0x100   : > { %1525 = vst.msk [vmem:[#allocation2 + $0x8] sm:$0xff] %vm3390_vm12, %v1502_v57  ;;  %1299 = vrot.lane.b32.xlu0 %v2878_v2, %s2185_s19  ;;  %vm1081_vm12 = vcmask 1048512   ;;  %v1158_v2 = vld [vmem:[%s2338_s18 + $0x68] sm:$0x3] }
 0x101   : > { %1438 = vrot.lane.b32.xlu1 %v2941_v39, %s3399_s9  ;;  %v1232_v6 = vrot.slane %v1158_v2, 1  ;;  %v1288_v21 = vrot.slane %v1158_v2, 2 }
 0x102   : > { %v1365_v41 = vpop.permute.xlu0 %1364 }
 0x103   : > { %1387 = vst.msk [vmem:[#allocation2 + $0x18] sm:$0xff] %vm684_vm8, %v1365_v41  ;;  %v564_v43 = vpop.permute.xlu1 %563  ;;  %v1289_v28 = vsel %vm494_vm2, %v1287_v9, %v1288_v21 }
 0x104   : > { %583 = vst.msk [vmem:[#allocation2 + $0x50] sm:$0xff] %vm577_vm5, %v564_v43  ;;  %1434 = vrot.lane.b32.xlu0 %v2632_v45, %s3399_s9 }
 0x105   : > { %638 = vrot.lane.b32.xlu1 %v2920_v27, %s2187_s12 }
 0x106   : > { %v560_v24 = vpop.permute.xlu0 %559 }
 0x107   : > { %581 = vst.msk [vmem:[#allocation2 + $0x30] sm:$0xff] %vm577_vm5, %v560_v24  ;;  %v706_v44 = vpop.permute.xlu1 %705  ;;  %v1534_v46 = vld [vmem:[#allocation2 + $0x8] sm:$0xff] }
 0x108   : > { %726 = vst.msk [vmem:[#allocation2 + $0x40] sm:$0xff] %vm721_vm9, %v706_v44  ;;  %475 = vrot.lane.b32.xlu0 %v2881_v5, %s2184_s17  ;;  %1998 = vmatprep.mubr.msk.f32.mxu0 %vm1583_vm15, %v1534_v46 }
 0x109   : > { %804 = vrot.lane.b32.xlu1 %v2649_v55, %s2191_s30 }
 0x10a   : > { %v702_v29 = vpop.permute.xlu0 %701 }
 0x10b   : > { %724 = vst.msk [vmem:[#allocation2 + $0x20] sm:$0xff] %vm721_vm9, %v702_v29  ;;  %v1058_v49 = vpop.permute.xlu1 %1057 }
 0x10c   : > { %1082 = vst.msk [vmem:[#allocation2] sm:$0xff] %vm1081_vm12, %v1058_v49  ;;  %800 = vrot.lane.b32.xlu0 %v2377_v48, %s2191_s30  ;;  %v2986_v48 = vsel %vm494_vm2, %v1020_v53, %v1021_v54  ;;  %v3081_v54 = vld [vmem:[%s2338_s18 + $0x70] sm:$0xff] }
 0x10d   : > { %995 = vrot.lane.b32.xlu1 %v2672_v4, %s3398_s28 }
 0x10e   : > { %v919_v61 = vpop.permute.xlu0 %918 }
 0x10f   : > { %942 = vst.msk [vmem:[#allocation2 + $0x10] sm:$0xff] %vm940_vm13, %v919_v61  ;;  %v1246_v63 = vpop.permute.xlu1 %1245  ;;  %v3084_v61 = vld [vmem:[%s2325_s8 + $0x90] sm:$0xff] }
 0x110   : > { %1265 = vst.msk [vmem:[#allocation2 + $0x48] sm:$0xff] %vm577_vm5, %v1246_v63  ;;  %991 = vrot.lane.b32.xlu0 %v2384_v51, %s3398_s28  ;;  %v785_v63 = vld [vmem:[%s2325_s8 + $0x98] sm:$0x3]  ;;  %v1091_v2 = vrot.slane %v3084_v61, 1 }
 0x111   : > { %1332 = vrot.lane.b32.xlu1 %v2632_v45, %s2187_s12  ;;  %v1231_v45 = vrot.slane %v2941_v39, 1 }
 0x112   : > { %v1242_v1 = vpop.permute.xlu0 %1241 }
 0x113   : > { %1263 = vst.msk [vmem:[#allocation2 + $0x28] sm:$0xff] %vm577_vm5, %v1242_v1  ;;  %v597_v0 = vpop.permute.xlu1 %596  ;;  %v1533_v5 = vld [vmem:[#allocation2] sm:$0xff]  ;;  %v3003_v38 = vsel %vm436_vm1, %v1231_v45, %v1232_v6 }
 0x114   : > { %618 = vst.msk [vmem:[#allocation2 + $0x30] sm:$0xff] %vm614_vm6, %v597_v0  ;;  %1125 = vrot.lane.b32.xlu0 %v2986_v48, %s2184_s17  ;;  %1673 = vmatmul.mubr.f32.vlgmr.msra.gmra.mrb[0].mxu0 %v1533_v5  ;;  %v1092_v0 = vrot.slane %v785_v63, 1  ;;  %v2142_v5 = vld [vmem:[%s2325_s8 + $0x60] sm:$0xff] }
 0x115   : > { %1470 = vrot.lane.b32.xlu1 %v2719_v35, %s2191_s30 }
 0x116   : > { %v1400_v7 = vpop.permute.xlu0 %1399  ;;  %v1093_v45 = vsel %vm436_vm1, %v1091_v2, %v1092_v0 }
 0x117   : > { %1422 = vst.msk [vmem:[#allocation2 + $0x18] sm:$0xff] %vm721_vm9, %v1400_v7  ;;  %v738_v11 = vpop.permute.xlu1 %737 }
 0x118   : > { %760 = vst.msk [vmem:[#allocation2 + $0x20] sm:$0xff] %vm757_vm10, %v738_v11  ;;  %1336 = vrot.lane.b32.xlu0 %v2941_v39, %s2187_s12 }
 0x119   : > { %533 = vrot.lane.b32.xlu1 %v2920_v27, %s3392_s10  ;;  %v408_v27 = vld [vmem:[%s2280_s13 + $0x88] sm:$0x3]  ;;  %1109 = vst.msk [vmem:[#allocation2 + $0x78] sm:$0xff] %vm411_vm0, %v1093_v45  ;;  %vm3405_vm0 = vcmask 851712  }
 0x11a   : > { %v601_v12 = vpop.permute.xlu0 %600  ;;  %v588_v31 = vrot.slane %v408_v27, 1 }
 0x11b   : > { %620 = vst.msk [vmem:[#allocation2 + $0x50] sm:$0xff] %vm614_vm6, %v601_v12  ;;  %v953_v15 = vpop.permute.xlu1 %952  ;;  %v1160_v12 = vld [vmem:[%s2338_s18 + $0x78] sm:$0x3] }
 0x11c   : > { %976 = vst.msk [vmem:[#allocation2 + $0x10] sm:$0xff] %vm3391_vm14, %v953_v15  ;;  %1474 = vrot.lane.b32.xlu0 %v3003_v38, %s2191_s30  ;;  %vm3400_vm14 = vcmask 917312   ;;  %v1110_v15 = vrot.slane %v3084_v61, 2 }
 0x11d   : > { %865 = vrot.lane.b32.xlu1 %v2384_v51, %s2192_s7 }
 0x11e   : > { %v742_v30 = vpop.permute.xlu0 %741 }
 0x11f   : > { %762 = vst.msk [vmem:[#allocation2 + $0x40] sm:$0xff] %vm757_vm10, %v742_v30  ;;  %v1302_v19 = vpop.permute.xlu1 %1301 }
 0x120   : > { %1321 = vst.msk [vmem:[#allocation2 + $0x48] sm:$0xff] %vm614_vm6, %v1302_v19  ;;  %672 = vrot.lane.b32.xlu0 %v3012_v58, %s2188_s29  ;;  %v1235_v19 = vrot.slane %v1160_v12, 1 }
 0x121   : > { %1027 = vrot.lane.b32.xlu1 %v2404_v60, %s2197_s11 }
 0x122   : > { %v1298_v25 = vpop.permute.xlu0 %1297 }
 0x123   : > { %1319 = vst.msk [vmem:[#allocation2 + $0x28] sm:$0xff] %vm614_vm6, %v1298_v25  ;;  %v474_v62 = vpop.permute.xlu1 %473 }
 0x124   : > { %492 = vst.msk [vmem:[#allocation2 + $0x60] sm:$0xff] %vm485_vm3, %v474_v62  ;;  %869 = vrot.lane.b32.xlu0 %v2672_v4, %s2192_s7  ;;  %v587_v4 = vrot.slane %v3012_v58, 1 }
 0x125   : > { %1185 = vrot.lane.b32.xlu1 %v2941_v39, %s3392_s10  ;;  %s3401_s10 = smov 120  }
 0x126   : > { %v1433_v51 = vpop.permute.xlu0 %1432  ;;  %v589_v36 = vsel %vm436_vm1, %v587_v4, %v588_v31  ;;  %v409_v4 = vld [vmem:[%s2280_s13 + $0x90] sm:$0xff] }
 0x127   : > { %1455 = vst.msk [vmem:[#allocation2 + $0x18] sm:$0xff] %vm757_vm10, %v1433_v51  ;;  %v637_v26 = vpop.permute.xlu1 %636 }
 0x128   : > { %656 = vst.msk [vmem:[#allocation2 + $0x50] sm:$0xff] %vm650_vm7, %v637_v26  ;;  %1031 = vrot.lane.b32.xlu0 %v2794_v18, %s2197_s11 }
 0x129   : > { %1372 = vrot.lane.b32.xlu1 %v3003_v38, %s2188_s29 }
 0x12a   : > { %v633_v8 = vpop.permute.xlu0 %632 }
 0x12b   : > { %654 = vst.msk [vmem:[#allocation2 + $0x30] sm:$0xff] %vm650_vm7, %v633_v8  ;;  %v803_v32 = vpop.permute.xlu1 %802 }
 0x12c   : > { %823 = vst.msk [vmem:[#allocation2 + $0x40] sm:$0xff] %vm3393_vm11, %v803_v32  ;;  %1368 = vrot.lane.b32.xlu0 %v2719_v35, %s2188_s29 }
 0x12d   : > { %1509 = vrot.lane.b32.xlu1 %v1289_v28, %s2192_s7 }
 0x12e   : > { %v799_v34 = vpop.permute.xlu0 %798 }
 0x12f   : > { %821 = vst.msk [vmem:[#allocation2 + $0x20] sm:$0xff] %vm3393_vm11, %v799_v34  ;;  %v1120_v39 = vpop.permute.xlu1 %1119  ;;  %v1291_v34 = vrot.slane %v1160_v12, 2 }
 0x130   : > { %1140 = vst.msk [vmem:[#allocation2 + $0x38] sm:$0xff] %vm485_vm3, %v1120_v39  ;;  %1505 = vrot.lane.b32.xlu0 %v2752_v50, %s2192_s7 }
 0x131   : > { %709 = vrot.lane.b32.xlu1 %v589_v36, %s3395_s14 }
 0x132   : > { %v990_v57 = vpop.permute.xlu0 %989 }
 0x133   : > { %1013 = vst.msk [vmem:[#allocation2 + $0x10] sm:$0xff] %vm3400_vm14, %v990_v57  ;;  %v1331_v35 = vpop.permute.xlu1 %1330  ;;  %vm3402_vm14 = vcmask 720512   ;;  %v410_v57 = vld [vmem:[%s2280_s13 + $0x98] sm:$0x3]  ;;  %s1992_s13 = sshll.u32 %s3459_s21, 3 }
 0x134   : > { %1352 = vst.msk [vmem:[#allocation2 + $0x28] sm:$0xff] %vm650_vm7, %v1331_v35  ;;  %567 = vrot.lane.b32.xlu0 %v3012_v58, %s2183_s15 }
 0x135   : > { %926 = vrot.lane.b32.xlu1 %v2794_v18, %s3396_s20 }
 0x136   : > { %v1124_v41 = vpop.permute.xlu0 %1123 }
 0x137   : > { %1142 = vst.msk [vmem:[#allocation2 + $0x58] sm:$0xff] %vm485_vm3, %v1124_v41  ;;  %v1469_v33 = vpop.permute.xlu1 %1468  ;;  %v694_v41 = vrot.slane %v409_v4, 1 }
 0x138   : > { %1491 = vst.msk [vmem:[#allocation2 + $0x18] sm:$0xff] %vm3393_vm11, %v1469_v33  ;;  %922 = vrot.lane.b32.xlu0 %v2404_v60, %s3396_s20  ;;  %v623_v60 = vrot.slane %v3012_v58, 2  ;;  %vm3403_vm11 = vcmask 982912   ;;  %v1111_v58 = vrot.slane %v785_v63, 2  ;;  %v695_v33 = vrot.slane %v410_v57, 1 }
 0x139   : > { %1065 = vrot.lane.b32.xlu1 %v2496_v47, %s3401_s10  ;;  %v624_v47 = vrot.slane %v408_v27, 2 }
 0x13a   : > { %v1335_v43 = vpop.permute.xlu0 %1334  ;;  %v1112_v62 = vsel %vm494_vm2, %v1110_v15, %v1111_v58 }
 0x13b   : > { %1354 = vst.msk [vmem:[#allocation2 + $0x48] sm:$0xff] %vm650_vm7, %v1335_v43  ;;  %v667_v17 = vpop.permute.xlu1 %666  ;;  %v625_v46 = vsel %vm494_vm2, %v623_v60, %v624_v47  ;;  %v731_v60 = vrot.slane %v410_v57, 2 }
 0x13c   : > { %688 = vst.msk [vmem:[#allocation2 + $0x30] sm:$0xff] %vm684_vm8, %v667_v17  ;;  %1061 = vrot.lane.b32.xlu0 %v2141_v16, %s3401_s10  ;;  %v696_v17 = vsel %vm436_vm1, %v694_v41, %v695_v33 }
 0x13d   : > { %1403 = vrot.lane.b32.xlu1 %v2752_v50, %s3395_s14 }
 0x13e   : > { %v532_v18 = vpop.permute.xlu0 %531 }
 0x13f   : > { %550 = vst.msk [vmem:[#allocation2 + $0x60] sm:$0xff] %vm543_vm4, %v532_v18  ;;  %v864_v24 = vpop.permute.xlu1 %863 }
 0x140   : > { %886 = vst.msk [vmem:[#allocation2 + $0x20] sm:$0xff] %vm3402_vm14, %v864_v24  ;;  %1249 = vrot.lane.b32.xlu0 %v3003_v38, %s2183_s15 }
 0x141   : > { %604 = vrot.lane.b32.xlu1 %v589_v36, %s2185_s19 }
 0x142   : > { %v671_v44 = vpop.permute.xlu0 %670 }
 0x143   : > { %690 = vst.msk [vmem:[#allocation2 + $0x50] sm:$0xff] %vm684_vm8, %v671_v44  ;;  %v1026_v50 = vpop.permute.xlu1 %1025 }
 0x144   : > { %1049 = vst.msk [vmem:[#allocation2 + $0x10] sm:$0xff] %vm3403_vm11, %v1026_v50  ;;  %1407 = vrot.lane.b32.xlu0 %v1289_v28, %s3395_s14  ;;  %vm3404_vm11 = vmmov %vm3402_vm14 }
 0x145   : > { %956 = vrot.lane.b32.xlu1 %v2141_v16, %s3397_s16 }
 0x146   : > { %v868_v29 = vpop.permute.xlu0 %867 }
 0x147   : > { %888 = vst.msk [vmem:[#allocation2 + $0x40] sm:$0xff] %vm3402_vm14, %v868_v29  ;;  %v1184_v49 = vpop.permute.xlu1 %1183  ;;  %vm3407_vm14 = vmmov %vm3405_vm0 }
 0x148   : > { %1202 = vst.msk [vmem:[#allocation2 + $0x58] sm:$0xff] %vm543_vm4, %v1184_v49  ;;  %745 = vrot.lane.b32.xlu0 %v625_v46, %s3399_s9  ;;  %v1162_v49 = vld [vmem:[%s2338_s18 + $0x88] sm:$0x3] }
 0x149   : > { %1305 = vrot.lane.b32.xlu1 %v1289_v28, %s2185_s19  ;;  %v1360_v63 = vrot.slane %v1162_v49, 1 }
 0x14a   : > { %v1180_v53 = vpop.permute.xlu0 %1179 }
 0x14b   : > { %1200 = vst.msk [vmem:[#allocation2 + $0x38] sm:$0xff] %vm543_vm4, %v1180_v53  ;;  %v1371_v1 = vpop.permute.xlu1 %1370 }
 0x14c   : > { %1390 = vst.msk [vmem:[#allocation2 + $0x48] sm:$0xff] %vm684_vm8, %v1371_v1  ;;  %960 = vrot.lane.b32.xlu0 %v2142_v5, %s3397_s16 }
 0x14d   : > { %1440 = vrot.lane.b32.xlu1 %v3081_v54, %s3399_s9 }
 0x14e   : > { %v1367_v6 = vpop.permute.xlu0 %1366 }
 0x14f   : > { %1388 = vst.msk [vmem:[#allocation2 + $0x28] sm:$0xff] %vm684_vm8, %v1367_v6  ;;  %v566_v7 = vpop.permute.xlu1 %565 }
 0x150   : > { %584 = vst.msk [vmem:[#allocation2 + $0x60] sm:$0xff] %vm577_vm5, %v566_v7  ;;  %1436 = vrot.lane.b32.xlu0 %v2827_v14, %s3399_s9  ;;  %v1234_v14 = vrot.slane %v3081_v54, 1  ;;  %v1395_v7 = vrot.slane %v1162_v49, 2 }
 0x151   : > { %806 = vrot.lane.b32.xlu1 %v2142_v5, %s2191_s30 }
 0x152   : > { %v1504_v11 = vpop.permute.xlu0 %1503  ;;  %v3117_v21 = vsel %vm436_vm1, %v1234_v14, %v1235_v19  ;;  %v1163_v19 = vld [vmem:[%s2338_s18 + $0x90] sm:$0xff] }
 0x153   : > { %1526 = vst.msk [vmem:[#allocation2 + $0x18] sm:$0xff] %vm3404_vm11, %v1504_v11  ;;  %v708_v38 = vpop.permute.xlu1 %707  ;;  %vm3408_vm11 = vcmask 654912  }
 0x154   : > { %727 = vst.msk [vmem:[#allocation2 + $0x50] sm:$0xff] %vm721_vm9, %v708_v38  ;;  %640 = vrot.lane.b32.xlu0 %v625_v46, %s2187_s12 }
 0x155   : > { %997 = vrot.lane.b32.xlu1 %v2514_v56, %s3398_s28 }
 0x156   : > { %v704_v30 = vpop.permute.xlu0 %703 }
 0x157   : > { %725 = vst.msk [vmem:[#allocation2 + $0x30] sm:$0xff] %vm721_vm9, %v704_v30  ;;  %v925_v25 = vpop.permute.xlu1 %924 }
 0x158   : > { %945 = vst.msk [vmem:[#allocation2 + $0x40] sm:$0xff] %vm940_vm13, %v925_v25  ;;  %993 = vrot.lane.b32.xlu0 %v2442_v23, %s3398_s28  ;;  %v1164_v25 = vld [vmem:[%s2338_s18 + $0x98] sm:$0x3] }
 0x159   : > { %1338 = vrot.lane.b32.xlu1 %v3081_v54, %s2187_s12 }
 0x15a   : > { %v921_v51 = vpop.permute.xlu0 %920  ;;  %v1536_v9 = vld [vmem:[#allocation2 + $0x18] sm:$0xff] }
 0x15b   : > { %943 = vst.msk [vmem:[#allocation2 + $0x20] sm:$0xff] %vm940_vm13, %v921_v51  ;;  %v1244_v26 = vpop.permute.xlu1 %1243  ;;  %1999 = vmatprep.mubr.msk.f32.mxu0 %vm1583_vm15, %v1536_v9  ;;  %v1463_v51 = vrot.slane %v1163_v19, 1  ;;  %v1464_v9 = vrot.slane %v1164_v25, 1 }
 0x15c   : > { %1264 = vst.msk [vmem:[#allocation2 + $0x38] sm:$0xff] %vm577_vm5, %v1244_v26  ;;  %1127 = vrot.lane.b32.xlu0 %v1112_v62, %s2184_s17  ;;  %s3406_s17 = smov 16  }
 0x15d   : > { %1476 = vrot.lane.b32.xlu1 %v3117_v21, %s2191_s30  ;;  %v1465_v26 = vsel %vm436_vm1, %v1463_v51, %v1464_v9 }
 0x15e   : > { %v1060_v23 = vpop.permute.xlu0 %1059 }
 0x15f   : > { %1083 = vst.msk [vmem:[#allocation2 + $0x10] sm:$0xff] %vm1081_vm12, %v1060_v23  ;;  %v1402_v27 = vpop.permute.xlu1 %1401  ;;  %v1499_v23 = vrot.slane %v1164_v25, 2 }
 0x160   : > { %1423 = vst.msk [vmem:[#allocation2 + $0x28] sm:$0xff] %vm721_vm9, %v1402_v27  ;;  %1472 = vrot.lane.b32.xlu0 %v2859_v52, %s2191_s30  ;;  %v1290_v52 = vrot.slane %v3081_v54, 2 }
 0x161   : > { %871 = vrot.lane.b32.xlu1 %v2514_v56, %s2192_s7 }
 0x162   : > { %v1248_v8 = vpop.permute.xlu0 %1247  ;;  %v1292_v39 = vsel %vm494_vm2, %v1290_v52, %v1291_v34 }
 0x163   : > { %1266 = vst.msk [vmem:[#allocation2 + $0x58] sm:$0xff] %vm577_vm5, %v1248_v8  ;;  %v603_v28 = vpop.permute.xlu1 %602 }
 0x164   : > { %621 = vst.msk [vmem:[#allocation2 + $0x60] sm:$0xff] %vm614_vm6, %v603_v28  ;;  %674 = vrot.lane.b32.xlu0 %v409_v4, %s2188_s29 }
 0x165   : > { %1033 = vrot.lane.b32.xlu1 %v2556_v13, %s2197_s11 }
 0x166   : > { %v1406_v31 = vpop.permute.xlu0 %1405  ;;  %v1535_v32 = vld [vmem:[#allocation2 + $0x10] sm:$0xff] }
 0x167   : > { %1425 = vst.msk [vmem:[#allocation2 + $0x48] sm:$0xff] %vm721_vm9, %v1406_v31  ;;  %v744_v56 = vpop.permute.xlu1 %743  ;;  %1678 = vmatmul.mubr.f32.gmra.mrb[2].mxu0 %v1535_v32 }
 0x168   : > { %763 = vst.msk [vmem:[#allocation2 + $0x50] sm:$0xff] %vm757_vm10, %v744_v56  ;;  %1029 = vrot.lane.b32.xlu0 %v2573_v22, %s2197_s11 }
 0x169   : > { %1374 = vrot.lane.b32.xlu1 %v3117_v21, %s2188_s29 }
 0x16a   : > { %v740_v36 = vpop.permute.xlu0 %739 }
 0x16b   : > { %761 = vst.msk [vmem:[#allocation2 + $0x30] sm:$0xff] %vm757_vm10, %v740_v36  ;;  %v959_v35 = vpop.permute.xlu1 %958 }
 0x16c   : > { %979 = vst.msk [vmem:[#allocation2 + $0x40] sm:$0xff] %vm3405_vm0, %v959_v35  ;;  %1187 = vrot.lane.b32.xlu0 %v3081_v54, %s3406_s17  ;;  %vm3409_vm0 = vmmov %vm3408_vm11 }
 0x16d   : > { %1511 = vrot.lane.b32.xlu1 %v1292_v39, %s2192_s7 }
 0x16e   : > { %v955_v22 = vpop.permute.xlu0 %954 }
 0x16f   : > { %977 = vst.msk [vmem:[#allocation2 + $0x20] sm:$0xff] %vm3407_vm14, %v955_v22  ;;  %v1304_v43 = vpop.permute.xlu1 %1303  ;;  %vm3410_vm14 = vcmask 917312  }
 0x170   : > { %1322 = vst.msk [vmem:[#allocation2 + $0x58] sm:$0xff] %vm614_vm6, %v1304_v43  ;;  %1507 = vrot.lane.b32.xlu0 %v2917_v10, %s2192_s7 }
 0x171   : > { %928 = vrot.lane.b32.xlu1 %v2556_v13, %s3396_s20  ;;  %v730_v13 = vrot.slane %v409_v4, 2 }
 0x172   : > { %v1300_v16 = vpop.permute.xlu0 %1299 }
 0x173   : > { %1320 = vst.msk [vmem:[#allocation2 + $0x38] sm:$0xff] %vm614_vm6, %v1300_v16  ;;  %v1439_v18 = vpop.permute.xlu1 %1438  ;;  %v732_v50 = vsel %vm494_vm2, %v730_v13, %v731_v60 }
 0x174   : > { %1458 = vst.msk [vmem:[#allocation2 + $0x48] sm:$0xff] %vm757_vm10, %v1439_v18  ;;  %711 = vrot.lane.b32.xlu0 %v696_v17, %s3395_s14 }
 0x175   : > { %1067 = vrot.lane.b32.xlu1 %v2771_v3, %s3401_s10 }
 0x176   : > { %v1435_v24 = vpop.permute.xlu0 %1434 }
 0x177   : > { %1456 = vst.msk [vmem:[#allocation2 + $0x28] sm:$0xff] %vm757_vm10, %v1435_v24  ;;  %v639_v10 = vpop.permute.xlu1 %638 }
 0x178   : > { %657 = vst.msk [vmem:[#allocation2 + $0x60] sm:$0xff] %vm650_vm7, %v639_v10  ;;  %1063 = vrot.lane.b32.xlu0 %v2649_v55, %s3401_s10  ;;  %v1161_v55 = vld [vmem:[%s2338_s18 + $0x80] sm:$0xff] }
 0x179   : > { %1409 = vrot.lane.b32.xlu1 %v1292_v39, %s3395_s14  ;;  %v1359_v53 = vrot.slane %v1161_v55, 1  ;;  %v1394_v45 = vrot.slane %v1161_v55, 2 }
 0x17a   : > { %v476_v47 = vpop.permute.xlu0 %475 }
 0x17b   : > { %493 = vst.msk [vmem:[#allocation2 + $0x70] sm:$0xff] %vm485_vm3, %v476_v47  ;;  %v805_v44 = vpop.permute.xlu1 %804  ;;  %v1361_v0 = vsel %vm436_vm1, %v1359_v53, %v1360_v63  ;;  %v1396_v12 = vsel %vm494_vm2, %v1394_v45, %v1395_v7  ;;  %vm3419_vm1 = vcmask 851712  }
 0x17c   : > { %824 = vst.msk [vmem:[#allocation2 + $0x50] sm:$0xff] %vm3408_vm11, %v805_v44  ;;  %1251 = vrot.lane.b32.xlu0 %v3117_v21, %s2183_s15  ;;  %vm3411_vm11 = vmmov %vm3410_vm14  ;;  %s1993_s15 = sshll.u32 %s3453_s22, 6 }
 0x17d   : > { %962 = vrot.lane.b32.xlu1 %v2771_v3, %s3397_s16 }
 0x17e   : > { %v801_v46 = vpop.permute.xlu0 %800 }
 0x17f   : > { %822 = vst.msk [vmem:[#allocation2 + $0x30] sm:$0xff] %vm3409_vm0, %v801_v46  ;;  %v996_v29 = vpop.permute.xlu1 %995 }
 0x180   : > { %1016 = vst.msk [vmem:[#allocation2 + $0x40] sm:$0xff] %vm3410_vm14, %v996_v29  ;;  %747 = vrot.lane.b32.xlu0 %v732_v50, %s3399_s9  ;;  %vm3412_vm14 = vmmov %vm3409_vm0 }
 0x181   : > { %1442 = vrot.lane.b32.xlu1 %v1161_v55, %s3399_s9 }
 0x182   : > { %v992_v54 = vpop.permute.xlu0 %991 }
 0x183   : > { %1014 = vst.msk [vmem:[#allocation2 + $0x20] sm:$0xff] %vm3411_vm11, %v992_v54  ;;  %v1333_v1 = vpop.permute.xlu1 %1332  ;;  %vm3413_vm11 = vcmask 720512  }
 0x184   : > { %1353 = vst.msk [vmem:[#allocation2 + $0x38] sm:$0xff] %vm650_vm7, %v1333_v1  ;;  %1307 = vrot.lane.b32.xlu0 %v1292_v39, %s2185_s19  ;;  %s380_s19 = sadd.s32 %s1993_s15, %s1992_s13 }
 0x185   : > { %999 = vrot.lane.b32.xlu1 %v2781_v59, %s3398_s28  ;;  %s1994_s8 = sshll.u32 %s380_s19, 3 }
 0x186   : > { %v1126_v2 = vpop.permute.xlu0 %1125 }
 0x187   : > { %1143 = vst.msk [vmem:[#allocation2 + $0x68] sm:$0xff] %vm485_vm3, %v1126_v2  ;;  %v1471_v5 = vpop.permute.xlu1 %1470 }
 0x188   : > { %1492 = vst.msk [vmem:[#allocation2 + $0x28] sm:$0xff] %vm3409_vm0, %v1471_v5  ;;  %808 = vrot.lane.b32.xlu0 %v2771_v3, %s2191_s30  ;;  %vm3414_vm0 = vcmask 982912  }
 0x189   : > { %1478 = vrot.lane.b32.xlu1 %v1361_v0, %s2191_s30 }
 0x18a   : > { %v1337_v6 = vpop.permute.xlu0 %1336 }
 0x18b   : > { %1355 = vst.msk [vmem:[#allocation2 + $0x58] sm:$0xff] %vm650_vm7, %v1337_v6  ;;  %v534_v11 = vpop.permute.xlu1 %533 }
 0x18c   : > { %551 = vst.msk [vmem:[#allocation2 + $0x70] sm:$0xff] %vm543_vm4, %v534_v11  ;;  %1340 = vrot.lane.b32.xlu0 %v1161_v55, %s2187_s12 }
 0x18d   : > { %1035 = vrot.lane.b32.xlu1 %v2815_v20, %s2197_s11 }
 0x18e   : > { %v1475_v38 = vpop.permute.xlu0 %1474 }
 0x18f   : > { %1494 = vst.msk [vmem:[#allocation2 + $0x48] sm:$0xff] %vm3412_vm14, %v1475_v38  ;;  %v866_v3 = vpop.permute.xlu1 %865  ;;  %vm3415_vm14 = vmmov %vm3413_vm11 }
 0x190   : > { %887 = vst.msk [vmem:[#allocation2 + $0x30] sm:$0xff] %vm3413_vm11, %v866_v3  ;;  %873 = vrot.lane.b32.xlu0 %v2781_v59, %s2192_s7  ;;  %vm3416_vm11 = vmmov %vm3414_vm0 }
 0x191   : > { %1513 = vrot.lane.b32.xlu1 %v1396_v12, %s2192_s7 }
 0x192   : > { %v673_v15 = vpop.permute.xlu0 %672 }
 0x193   : > { %691 = vst.msk [vmem:[#allocation2 + $0x60] sm:$0xff] %vm684_vm8, %v673_v15  ;;  %v1028_v58 = vpop.permute.xlu1 %1027 }
 0x194   : > { %1050 = vst.msk [vmem:[#allocation2 + $0x20] sm:$0xff] %vm3414_vm0, %v1028_v58  ;;  %1376 = vrot.lane.b32.xlu0 %v1361_v0, %s2188_s29  ;;  %vm3417_vm0 = vmmov %vm3415_vm14  ;;  %v3277_v0 = vld [vmem:[%s3373_s4] ss:$0 sm:$0xff] }
 0x195   : > { %1069 = vrot.lane.b32.xlu1 %v2950_v42, %s3401_s10 }
 0x196   : > { %v870_v30 = vpop.permute.xlu0 %869 }
 0x197   : > { %889 = vst.msk [vmem:[#allocation2 + $0x50] sm:$0xff] %vm3415_vm14, %v870_v30  ;;  %v1186_v14 = vpop.permute.xlu1 %1185  ;;  %vm3418_vm14 = vmmov %vm3417_vm0 }
 0x198   : > { %1203 = vst.msk [vmem:[#allocation2 + $0x68] sm:$0xff] %vm543_vm4, %v1186_v14  ;;  %930 = vrot.lane.b32.xlu0 %v2815_v20, %s3396_s20 }
 0x199   : > { %964 = vrot.lane.b32.xlu1 %v2950_v42, %s3397_s16  ;;  %v1498_v42 = vrot.slane %v1163_v19, 2 }
 0x19a   : > { %v1032_v59 = vpop.permute.xlu0 %1031 }
 0x19b   : > { %1052 = vst.msk [vmem:[#allocation2 + $0x40] sm:$0xff] %vm3416_vm11, %v1032_v59  ;;  %v1373_v62 = vpop.permute.xlu1 %1372  ;;  %v1500_v4 = vsel %vm494_vm2, %v1498_v42, %v1499_v23  ;;  %vm3420_vm2 = vmmov %vm3419_vm1  ;;  %vm3421_vm11 = vcmask 654912  }
 0x19c   : > { %1391 = vst.msk [vmem:[#allocation2 + $0x58] sm:$0xff] %vm684_vm8, %v1373_v62  ;;  %1411 = vrot.lane.b32.xlu0 %v1396_v12, %s3395_s14 }
 0x19d   : > { %1001 = vrot.lane.b32.xlu1 %v2961_v40, %s3398_s28  ;;  %s3283_s28 = scalar_lea.vmem %s3374_s5, %s1994_s8 }
 0x19e   : > { %v1369_v21 = vpop.permute.xlu0 %1368 }
 0x19f   : > { %1389 = vst.msk [vmem:[#allocation2 + $0x38] sm:$0xff] %vm684_vm8, %v1369_v21  ;;  %v1510_v20 = vpop.permute.xlu1 %1509 }
 0x1a0   : > { %1529 = vst.msk [vmem:[#allocation2 + $0x48] sm:$0xff] %vm3417_vm0, %v1510_v20  ;;  %1444 = vrot.lane.b32.xlu0 %v1163_v19, %s3399_s9  ;;  %vm3422_vm0 = vcmask 917312  }
 0x1a1   : > { %1037 = vrot.lane.b32.xlu1 %v2986_v48, %s2197_s11  ;;  %s1995_s11 = sshll.u32 %s3453_s22, 3 }
 0x1a2   : > { %v1506_v27 = vpop.permute.xlu0 %1505  ;;  %s388_s14 = sadd.s32 %s1995_s11, %s3459_s21 }
 0x1a3   : > { %1527 = vst.msk [vmem:[#allocation2 + $0x28] sm:$0xff] %vm3418_vm14, %v1506_v27  ;;  %v710_v40 = vpop.permute.xlu1 %709  ;;  %vm3423_vm14 = vmmov %vm3422_vm0  ;;  %s1996_s9 = sshll.u32 %s388_s14, 1 }
 0x1a4   : > { %728 = vst.msk [vmem:[#allocation2 + $0x60] sm:$0xff] %vm721_vm9, %v710_v40  ;;  %1480 = vrot.lane.b32.xlu0 %v1465_v26, %s2191_s30  ;;  %s390_s17 = scalar_lea.vmem %s3375_s6, %s1996_s9 }
 0x1a5   : > { %1071 = vrot.lane.b32.xlu1 %v3084_v61, %s3401_s10 }
 0x1a6   : > { %v568_v8 = vpop.permute.xlu0 %567 }
 0x1a7   : > { %585 = vst.msk [vmem:[#allocation2 + $0x70] sm:$0xff] %vm577_vm5, %v568_v8  ;;  %v927_v28 = vpop.permute.xlu1 %926  ;;  %v1542_v31 = vld [vmem:[#allocation2 + $0x48] sm:$0xff] }
 0x1a8   : > { %946 = vst.msk [vmem:[#allocation2 + $0x50] sm:$0xff] %vm940_vm13, %v927_v28  ;;  %1515 = vrot.lane.b32.xlu0 %v1500_v4, %s2192_s7  ;;  %2002 = vmatprep.mubr.msk.f32.mxu1 %vm1583_vm15, %v1542_v31 }
 0x1aa   : > { %v923_v48 = vpop.permute.xlu0 %922  ;;  %v1538_v32 = vld [vmem:[#allocation2 + $0x28] sm:$0xff] }
 0x1ab   : > { %944 = vst.msk [vmem:[#allocation2 + $0x30] sm:$0xff] %vm940_vm13, %v923_v48  ;;  %v1066_v52 = vpop.permute.xlu1 %1065  ;;  %2000 = vmatprep.mubr.msk.f32.mxu0 %vm1583_vm15, %v1538_v32 }
 0x1ac   : > { %1086 = vst.msk [vmem:[#allocation2 + $0x40] sm:$0xff] %vm1081_vm12, %v1066_v52 }
 0x1ae   : > { %v1062_v61 = vpop.permute.xlu0 %1061 }
 0x1af   : > { %1084 = vst.msk [vmem:[#allocation2 + $0x20] sm:$0xff] %vm1081_vm12, %v1062_v61  ;;  %v1404_v34 = vpop.permute.xlu1 %1403 }
 0x1b0   : > { %1424 = vst.msk [vmem:[#allocation2 + $0x38] sm:$0xff] %vm721_vm9, %v1404_v34 }
 0x1b2   : > { %v1250_v56 = vpop.permute.xlu0 %1249 }
 0x1b3   : > { %1267 = vst.msk [vmem:[#allocation2 + $0x68] sm:$0xff] %vm577_vm5, %v1250_v56  ;;  %v605_v36 = vpop.permute.xlu1 %604  ;;  %v1541_v39 = vld [vmem:[#allocation2 + $0x40] sm:$0xff] }
 0x1b4   : > { %622 = vst.msk [vmem:[#allocation2 + $0x70] sm:$0xff] %vm614_vm6, %v605_v36  ;;  %1693 = vmatmul.mubr.f32.vlgmr.msra.gmra.mrb[0].mxu1 %v1541_v39 }
 0x1b6   : > { %v1408_v57 = vpop.permute.xlu0 %1407  ;;  %v1537_v35 = vld [vmem:[#allocation2 + $0x20] sm:$0xff] }
 0x1b7   : > { %1426 = vst.msk [vmem:[#allocation2 + $0x58] sm:$0xff] %vm721_vm9, %v1408_v57  ;;  %v957_v41 = vpop.permute.xlu1 %956  ;;  %1683 = vmatmul.mubr.f32.gmra.mrb[4].mxu0 %v1537_v35 }
 0x1b8   : > { %978 = vst.msk [vmem:[#allocation2 + $0x30] sm:$0xff] %vm3419_vm1, %v957_v41  ;;  %vm3424_vm1 = vmmov %vm3421_vm11 }
 0x1ba   : > { %v746_v33 = vpop.permute.xlu0 %745 }
 0x1bb   : > { %764 = vst.msk [vmem:[#allocation2 + $0x60] sm:$0xff] %vm757_vm10, %v746_v33  ;;  %v1306_v22 = vpop.permute.xlu1 %1305 }
 0x1bc   : > { %1323 = vst.msk [vmem:[#allocation2 + $0x68] sm:$0xff] %vm614_vm6, %v1306_v22 }
 0x1be   : > { %v961_v43 = vpop.permute.xlu0 %960 }
 0x1bf   : > { %980 = vst.msk [vmem:[#allocation2 + $0x50] sm:$0xff] %vm3420_vm2, %v961_v43  ;;  %v1441_v17 = vpop.permute.xlu1 %1440  ;;  %vm3425_vm2 = vmmov %vm3424_vm1 }
 0x1c0   : > { %1459 = vst.msk [vmem:[#allocation2 + $0x58] sm:$0xff] %vm757_vm10, %v1441_v17 }
 0x1c2   : > { %v1437_v16 = vpop.permute.xlu0 %1436 }
 0x1c3   : > { %1457 = vst.msk [vmem:[#allocation2 + $0x38] sm:$0xff] %vm757_vm10, %v1437_v16  ;;  %v807_v18 = vpop.permute.xlu1 %806 }
 0x1c4   : > { %825 = vst.msk [vmem:[#allocation2 + $0x60] sm:$0xff] %vm3421_vm11, %v807_v18  ;;  %vm3426_vm11 = vcmask 720512  }
 0x1c6   : > { %v641_v24 = vpop.permute.xlu0 %640 }
 0x1c7   : > { %658 = vst.msk [vmem:[#allocation2 + $0x70] sm:$0xff] %vm650_vm7, %v641_v24  ;;  %v998_v10 = vpop.permute.xlu1 %997 }
 0x1c8   : > { %1017 = vst.msk [vmem:[#allocation2 + $0x50] sm:$0xff] %vm3422_vm0, %v998_v10  ;;  %vm3427_vm0 = vcmask 982912  }
 0x1ca   : > { %v994_v13 = vpop.permute.xlu0 %993 }
 0x1cb   : > { %1015 = vst.msk [vmem:[#allocation2 + $0x30] sm:$0xff] %vm3423_vm14, %v994_v13  ;;  %v1339_v60 = vpop.permute.xlu1 %1338  ;;  %vm3429_vm14 = vmmov %vm3426_vm11 }
 0x1cc   : > { %1356 = vst.msk [vmem:[#allocation2 + $0x68] sm:$0xff] %vm650_vm7, %v1339_v60 }
 0x1ce   : > { %v1128_v47 = vpop.permute.xlu0 %1127 }
 0x1cf   : > { %1144 = vst.msk [vmem:[#allocation2 + $0x78] sm:$0xff] %vm485_vm3, %v1128_v47  ;;  %v1477_v44 = vpop.permute.xlu1 %1476  ;;  %vm3428_vm3 = vmmov %vm3427_vm0 }
 0x1d0   : > { %1495 = vst.msk [vmem:[#allocation2 + $0x58] sm:$0xff] %vm3424_vm1, %v1477_v44  ;;  %vm3430_vm1 = vmmov %vm3426_vm11 }
 0x1d2   : > { %v1473_v50 = vpop.permute.xlu0 %1472 }
 0x1d3   : > { %1493 = vst.msk [vmem:[#allocation2 + $0x38] sm:$0xff] %vm3425_vm2, %v1473_v50  ;;  %v872_v46 = vpop.permute.xlu1 %871  ;;  %vm3431_vm2 = vcmask 851712  }
 0x1d4   : > { %890 = vst.msk [vmem:[#allocation2 + $0x60] sm:$0xff] %vm3426_vm11, %v872_v46  ;;  %vm3432_vm11 = vcmask 917312   ;;  %v1722_v46 = vlaneseq }
 0x1d6   : > { %v675_v55 = vpop.permute.xlu0 %674 }
 0x1d7   : > { %692 = vst.msk [vmem:[#allocation2 + $0x70] sm:$0xff] %vm684_vm8, %v675_v55  ;;  %v1034_v29 = vpop.permute.xlu1 %1033  ;;  %v1723_v55 = vand.u32 127, %v1722_v46 }
 0x1d8   : > { %1053 = vst.msk [vmem:[#allocation2 + $0x50] sm:$0xff] %vm3427_vm0, %v1034_v29 }
 0x1da   : > { %v1030_v49 = vpop.permute.xlu0 %1029 }
 0x1db   : > { %1051 = vst.msk [vmem:[#allocation2 + $0x30] sm:$0xff] %vm3428_vm3, %v1030_v49  ;;  %v1375_v53 = vpop.permute.xlu1 %1374 }
 0x1dc   : > { %1392 = vst.msk [vmem:[#allocation2 + $0x68] sm:$0xff] %vm684_vm8, %v1375_v53 }
 0x1de   : > { %v1188_v54 = vpop.permute.xlu0 %1187 }
 0x1df   : > { %1204 = vst.msk [vmem:[#allocation2 + $0x78] sm:$0xff] %vm543_vm4, %v1188_v54  ;;  %v1512_v63 = vpop.permute.xlu1 %1511  ;;  %vm1713_vm4 = vcmask 31744  }
 0x1e0   : > { %1530 = vst.msk [vmem:[#allocation2 + $0x58] sm:$0xff] %vm3429_vm14, %v1512_v63  ;;  %vm3435_vm14 = vmmov %vm3430_vm1 }
 0x1e2   : > { %v1508_v1 = vpop.permute.xlu0 %1507 }
 0x1e3   : > { %1528 = vst.msk [vmem:[#allocation2 + $0x38] sm:$0xff] %vm3430_vm1, %v1508_v1  ;;  %v929_v2 = vpop.permute.xlu1 %928 }
 0x1e4   : > { %947 = vst.msk [vmem:[#allocation2 + $0x60] sm:$0xff] %vm940_vm13, %v929_v2 }
 0x1e6   : > { %v712_v5 = vpop.permute.xlu0 %711 }
 0x1e7   : > { %729 = vst.msk [vmem:[#allocation2 + $0x70] sm:$0xff] %vm721_vm9, %v712_v5  ;;  %v1068_v45 = vpop.permute.xlu1 %1067  ;;  %v1674_v6 = vpop.f32.mrb[0].mxu0  ;;  %v1544_v7 = vld [vmem:[#allocation2 + $0x58] sm:$0xff] }
 0x1e8   : > { %1087 = vst.msk [vmem:[#allocation2 + $0x50] sm:$0xff] %vm1081_vm12, %v1068_v45  ;;  %v3287_v11 = vadd.f32 %v3277_v0, %v1674_v6  ;;  %v1676_v38 = vpop.f32.mrb[1].mxu0  ;;  %2003 = vmatprep.mubr.msk.f32.mxu1 %vm1583_vm15, %v1544_v7 }
 0x1ea   : > { %v1064_v12 = vpop.permute.xlu0 %1063  ;;  %1714 = vst.msk [vmem:[%s3283_s28] sm:$0xff] %vm1713_vm4, %v3287_v11  ;;  %v1540_v3 = vld [vmem:[#allocation2 + $0x38] sm:$0xff] }
 0x1eb   : > { %1085 = vst.msk [vmem:[#allocation2 + $0x30] sm:$0xff] %vm1081_vm12, %v1064_v12  ;;  %v1410_v15 = vpop.permute.xlu1 %1409  ;;  %2001 = vmatprep.mubr.msk.f32.mxu0 %vm1583_vm15, %v1540_v3 }
 0x1ec   : > { %1427 = vst.msk [vmem:[#allocation2 + $0x68] sm:$0xff] %vm721_vm9, %v1410_v15 }
 0x1ee   : > { %v1252_v58 = vpop.permute.xlu0 %1251 }
 0x1ef   : > { %1268 = vst.msk [vmem:[#allocation2 + $0x78] sm:$0xff] %vm577_vm5, %v1252_v58  ;;  %v963_v30 = vpop.permute.xlu1 %962  ;;  %v1543_v14 = vld [vmem:[#allocation2 + $0x50] sm:$0xff]  ;;  %vm3433_vm5 = vcmask 654912  }
 0x1f0   : > { %981 = vst.msk [vmem:[#allocation2 + $0x60] sm:$0xff] %vm3431_vm2, %v963_v30  ;;  %1698 = vmatmul.mubr.f32.gmra.mrb[2].mxu1 %v1543_v14  ;;  %vm3434_vm0 = vmmov %vm3433_vm5 }
 0x1f2   : > { %v748_v59 = vpop.permute.xlu0 %747  ;;  %v1539_v19 = vld [vmem:[#allocation2 + $0x30] sm:$0xff] }
 0x1f3   : > { %765 = vst.msk [vmem:[#allocation2 + $0x70] sm:$0xff] %vm757_vm10, %v748_v59  ;;  %v1443_v25 = vpop.permute.xlu1 %1442  ;;  %1688 = vmatmul.mubr.f32.gmra.mrb[6].mxu0 %v1539_v19 }
 0x1f4   : > { %1460 = vst.msk [vmem:[#allocation2 + $0x68] sm:$0xff] %vm757_vm10, %v1443_v25 }
 0x1f6   : > { %v1308_v62 = vpop.permute.xlu0 %1307 }
 0x1f7   : > { %1324 = vst.msk [vmem:[#allocation2 + $0x78] sm:$0xff] %vm614_vm6, %v1308_v62  ;;  %v1000_v51 = vpop.permute.xlu1 %999  ;;  %vm3436_vm6 = vmmov %vm3430_vm1 }
 0x1f8   : > { %1018 = vst.msk [vmem:[#allocation2 + $0x60] sm:$0xff] %vm3432_vm11, %v1000_v51  ;;  %vm3438_vm1 = vmmov %vm3432_vm11 }
 0x1fa   : > { %v809_v9 = vpop.permute.xlu0 %808 }
 0x1fb   : > { %826 = vst.msk [vmem:[#allocation2 + $0x70] sm:$0xff] %vm3433_vm5, %v809_v9  ;;  %v1479_v21 = vpop.permute.xlu1 %1478 }
 0x1fc   : > { %1496 = vst.msk [vmem:[#allocation2 + $0x68] sm:$0xff] %vm3434_vm0, %v1479_v21 }
 0x1fe   : > { %v1341_v20 = vpop.permute.xlu0 %1340 }
 0x1ff   : > { %1357 = vst.msk [vmem:[#allocation2 + $0x78] sm:$0xff] %vm650_vm7, %v1341_v20  ;;  %v1036_v42 = vpop.permute.xlu1 %1035  ;;  %vm3437_vm7 = vmmov %vm3431_vm2 }
 0x200   : > { %1054 = vst.msk [vmem:[#allocation2 + $0x60] sm:$0xff] %vm3428_vm3, %v1036_v42 }
 0x202   : > { %v874_v26 = vpop.permute.xlu0 %873 }
 0x203   : > { %891 = vst.msk [vmem:[#allocation2 + $0x70] sm:$0xff] %vm3435_vm14, %v874_v26  ;;  %v1514_v23 = vpop.permute.xlu1 %1513 }
 0x204   : > { %1531 = vst.msk [vmem:[#allocation2 + $0x68] sm:$0xff] %vm3436_vm6, %v1514_v23 }
 0x206   : > { %v1377_v27 = vpop.permute.xlu0 %1376 }
 0x207   : > { %1393 = vst.msk [vmem:[#allocation2 + $0x78] sm:$0xff] %vm684_vm8, %v1377_v27  ;;  %v1070_v40 = vpop.permute.xlu1 %1069  ;;  %vm3439_vm8 = vmmov %vm3428_vm3 }
 0x208   : > { %1088 = vst.msk [vmem:[#allocation2 + $0x60] sm:$0xff] %vm1081_vm12, %v1070_v40 }
 0x20a   : > { %v931_v4 = vpop.permute.xlu0 %930 }
 0x20b   : > { %948 = vst.msk [vmem:[#allocation2 + $0x70] sm:$0xff] %vm940_vm13, %v931_v4  ;;  %v965_v8 = vpop.permute.xlu1 %964  ;;  %v1546_v28 = vld [vmem:[#allocation2 + $0x68] sm:$0xff]  ;;  %vm3440_vm13 = vmmov %vm3434_vm0 }
 0x20c   : > { %982 = vst.msk [vmem:[#allocation2 + $0x70] sm:$0xff] %vm3437_vm7, %v965_v8  ;;  %2004 = vmatprep.mubr.msk.f32.mxu1 %vm1583_vm15, %v1546_v28 }
 0x20e   : > { %v1412_v31 = vpop.permute.xlu0 %1411 }
 0x20f   : > { %1428 = vst.msk [vmem:[#allocation2 + $0x78] sm:$0xff] %vm721_vm9, %v1412_v31  ;;  %v1545_v48 = vld [vmem:[#allocation2 + $0x60] sm:$0xff]  ;;  %v1002_v32 = vpop.permute.xlu1 %1001  ;;  %vm3441_vm9 = vmmov %vm3436_vm6 }
 0x210   : > { %1703 = vmatmul.mubr.f32.gmra.mrb[4].mxu1 %v1545_v48  ;;  %1019 = vst.msk [vmem:[#allocation2 + $0x70] sm:$0xff] %vm3438_vm1, %v1002_v32 }
 0x212   : > { %v1445_v52 = vpop.permute.xlu0 %1444 }
 0x213   : > { %1461 = vst.msk [vmem:[#allocation2 + $0x78] sm:$0xff] %vm757_vm10, %v1445_v52  ;;  %v1038_v61 = vpop.permute.xlu1 %1037  ;;  %vm1724_vm10 = vcmp.lt.s32.totalorder %v1723_v55, 4 }
 0x214   : > { %1055 = vst.msk [vmem:[#allocation2 + $0x70] sm:$0xff] %vm3439_vm8, %v1038_v61  ;;  %v2006_v54 = vsel %vm1724_vm10, 1.0, %v2198_v37 }
 0x215   : > { %v1727_v1 = vmul.f32 %v2006_v54, %v3287_v11 }
 0x216   : > { %v1481_v34 = vpop.permute.xlu0 %1480 }
 0x217   : > { %1497 = vst.msk [vmem:[#allocation2 + $0x78] sm:$0xff] %vm3440_vm13, %v1481_v34  ;;  %v1072_v56 = vpop.permute.xlu1 %1071 }
 0x218   : > { %1089 = vst.msk [vmem:[#allocation2 + $0x70] sm:$0xff] %vm1081_vm12, %v1072_v56  ;;  %vm1797_vm12 = vcmask 1040384  }
 0x21a   : > { %v1516_v36 = vpop.permute.xlu0 %1515 }
 0x21b   : > { %1532 = vst.msk [vmem:[#allocation2 + $0x78] sm:$0xff] %vm3441_vm9, %v1516_v36 }
 0x21f   : > { %v1547_v39 = vld [vmem:[#allocation2 + $0x70] sm:$0xff] }
 0x222   : > { %v1548_v57 = vld [vmem:[#allocation2 + $0x78] sm:$0xff] }
 0x223   : > { %2005 = vmatprep.mubr.msk.f32.mxu1 %vm1583_vm15, %v1548_v57 }
 0x224   : > { %1708 = vmatmul.mubr.f32.gmra.mrb[6].mxu1 %v1547_v39 }
 0x23a   : > { %v1679_v35 = vpop.f32.mrb[2].mxu0 }
 0x23b   : > { %v1680_v41 = vadd.f32 %v3277_v0, %v1679_v35  ;;  %v1681_v33 = vpop.f32.mrb[3].mxu0 }
 0x23d   : > { %1715 = vst.msk [vmem:[%s3283_s28 + $0x8] sm:$0xff] %vm1713_vm4, %v1680_v41  ;;  %v1728_v63 = vmul.f32 %v2006_v54, %v1680_v41 }
 0x23f   : > { %v1735_v5 = vadd.f32 %v1728_v63, %v1727_v1 }
 0x287   : > { %v1694_v22 = vpop.f32.mrb[0].mxu1 }
 0x288   : > { %v1695_v43 = vadd.f32 %v3277_v0, %v1694_v22  ;;  %v1696_v17 = vpop.f32.mrb[1].mxu1 }
 0x28a   : > { %v1684_v16 = vpop.f32.mrb[4].mxu0  ;;  %1718 = vst.msk [vmem:[%s3283_s28 + $0x20] sm:$0xff] %vm1713_vm4, %v1695_v43  ;;  %v1731_v38 = vmul.f32 %v2006_v54, %v1695_v43 }
 0x28b   : > { %v1685_v18 = vadd.f32 %v3277_v0, %v1684_v16  ;;  %v1686_v24 = vpop.f32.mrb[5].mxu0 }
 0x28d   : > { %1716 = vst.msk [vmem:[%s3283_s28 + $0x10] sm:$0xff] %vm1713_vm4, %v1685_v18  ;;  %v1729_v2 = vmul.f32 %v2006_v54, %v1685_v18 }
 0x28f   : > { %v1736_v6 = vadd.f32 %v1735_v5, %v1729_v2 }
 0x2c3   : > { %v1699_v10 = vpop.f32.mrb[2].mxu1 }
 0x2c4   : > { %v1700_v13 = vadd.f32 %v3277_v0, %v1699_v10  ;;  %v1701_v60 = vpop.f32.mrb[3].mxu1 }
 0x2c6   : > { %v1689_v47 = vpop.f32.mrb[6].mxu0  ;;  %1719 = vst.msk [vmem:[%s3283_s28 + $0x28] sm:$0xff] %vm1713_vm4, %v1700_v13  ;;  %v1732_v3 = vmul.f32 %v2006_v54, %v1700_v13 }
 0x2c7   : > { %v1690_v44 = vadd.f32 %v3277_v0, %v1689_v47  ;;  %v1691_v50 = vpop.f32.mrb[7].mxu0 }
 0x2c9   : > { %1717 = vst.msk [vmem:[%s3283_s28 + $0x18] sm:$0xff] %vm1713_vm4, %v1690_v44  ;;  %v1730_v45 = vmul.f32 %v2006_v54, %v1690_v44 }
 0x2cb   : > { %v1737_v7 = vadd.f32 %v1736_v6, %v1730_v45 }
 0x2cd   : > { %v1738_v12 = vadd.f32 %v1737_v7, %v1731_v38 }
 0x2cf   : > { %v1739_v30 = vadd.f32 %v1738_v12, %v1732_v3 }
 0x2e3   : > { %v1704_v29 = vpop.f32.mrb[4].mxu1 }
 0x2e4   : > { %v1705_v49 = vadd.f32 %v3277_v0, %v1704_v29  ;;  %v1706_v53 = vpop.f32.mrb[5].mxu1 }
 0x2e6   : > { %1720 = vst.msk [vmem:[%s3283_s28 + $0x30] sm:$0xff] %vm1713_vm4, %v1705_v49  ;;  %v1733_v15 = vmul.f32 %v2006_v54, %v1705_v49 }
 0x2e8   : > { %v1740_v19 = vadd.f32 %v1739_v30, %v1733_v15 }
 0x2f7   : > { %v1709_v58 = vpop.f32.mrb[6].mxu1 }
 0x2f8   : > { %v1710_v14 = vadd.f32 %v3277_v0, %v1709_v58  ;;  %v1711_v59 = vpop.f32.mrb[7].mxu1 }
 0x2fa   : > { %1721 = vst.msk [vmem:[%s3283_s28 + $0x38] sm:$0xff] %vm1713_vm4, %v1710_v14  ;;  %v1734_v37 = vmul.f32 %v2006_v54, %v1710_v14 }
 0x2fc   : > { %v1741_v25 = vadd.f32 %v1740_v19, %v1734_v37 }
 0x2fe   : > { %1742 = vadd.xlane.f32.xlu0 %v1741_v25 }
 0x38b   : > { %v1743_v62 = vpop.xlane.xlu0 %1742 }
 0x38c   : > { %v1744_v51 = vrot.slane %v1743_v62, 4 }
 0x38e   : > { %v1745_v9 = vadd.f32 %v1744_v51, %v1743_v62 }
 0x390   : > { %v1746_v21 = vrot.slane %v1745_v9, 2 }
 0x392   : > { %v1747_v20 = vadd.f32 %v1746_v21, %v1745_v9 }
 0x394   : > { %v1748_v42 = vrot.slane %v1747_v20, 1 }
 0x396   : > { %v1749_v26 = vadd.f32 %v1748_v42, %v1747_v20 }
 0x398   : > { %2080 = vpush %v1749_v26 }
 0x3c9   : > { %s3344_s30 = spop %2080 }
 0x3ca   : > { %s1753_s7 = smul.f32 0.00390625, %s3344_s30 }
 0x3cc   : > { %v1754_v0 = vstv %s1753_s7 }
 0x3cd   : > { %v1755_v23 = vsub.f32 %v3287_v11, %v1754_v0  ;;  %v1756_v27 = vsub.f32 %v1680_v41, %v1754_v0  ;;  %v1757_v40 = vsub.f32 %v1685_v18, %v1754_v0  ;;  %v1758_v4 = vsub.f32 %v1690_v44, %v1754_v0 }
 0x3ce   : > { %v1759_v31 = vsub.f32 %v1695_v43, %v1754_v0  ;;  %v1760_v32 = vsub.f32 %v1700_v13, %v1754_v0  ;;  %v1761_v56 = vsub.f32 %v1705_v49, %v1754_v0  ;;  %v1762_v35 = vsub.f32 %v1710_v14, %v1754_v0 }
 0x3cf   : > { %v1763_v8 = vmul.f32 %v1755_v23, %v1755_v23  ;;  %v1764_v28 = vmul.f32 %v1756_v27, %v1756_v27  ;;  %v1765_v48 = vmul.f32 %v1757_v40, %v1757_v40  ;;  %v1766_v52 = vmul.f32 %v1758_v4, %v1758_v4 }
 0x3d0   : > { %v1767_v36 = vmul.f32 %v1759_v31, %v1759_v31  ;;  %v1768_v33 = vmul.f32 %v1760_v32, %v1760_v32  ;;  %v1769_v11 = vmul.f32 %v1761_v56, %v1761_v56  ;;  %v1770_v18 = vmul.f32 %v1762_v35, %v1762_v35 }
 0x3d1   : > { %v1771_v61 = vmul.f32 %v2006_v54, %v1763_v8  ;;  %v1772_v34 = vmul.f32 %v2006_v54, %v1764_v28  ;;  %v1773_v39 = vmul.f32 %v2006_v54, %v1765_v48  ;;  %v1774_v22 = vmul.f32 %v2006_v54, %v1766_v52 }
 0x3d2   : > { %v1775_v41 = vmul.f32 %v2006_v54, %v1767_v36  ;;  %v1776_v24 = vmul.f32 %v2006_v54, %v1768_v33  ;;  %v1777_v10 = vmul.f32 %v2006_v54, %v1769_v11  ;;  %v1778_v60 = vmul.f32 %v2006_v54, %v1770_v18 }
 0x3d3   : > { %v1779_v57 = vadd.f32 %v1772_v34, %v1771_v61  ;;  %v1795_v54 = vstv %s3344_s30 }
 0x3d5   : > { %v1780_v17 = vadd.f32 %v1779_v57, %v1773_v39 }
 0x3d7   : > { %v1781_v16 = vadd.f32 %v1780_v17, %v1774_v22 }
 0x3d9   : > { %v1782_v43 = vadd.f32 %v1781_v16, %v1775_v41 }
 0x3db   : > { %v1783_v13 = vadd.f32 %v1782_v43, %v1776_v24 }
 0x3dd   : > { %v1784_v47 = vadd.f32 %v1783_v13, %v1777_v10 }
 0x3df   : > { %v1785_v44 = vadd.f32 %v1784_v47, %v1778_v60 }
 0x3e1   : > { %1786 = vadd.xlane.f32.xlu1 %v1785_v44 }
 0x46e   : > { %v1787_v50 = vpop.xlane.xlu1 %1786 }
 0x46f   : > { %v1788_v46 = vrot.slane %v1787_v50, 4 }
 0x471   : > { %v1789_v55 = vadd.f32 %v1788_v46, %v1787_v50 }
 0x473   : > { %v1790_v29 = vrot.slane %v1789_v55, 2 }
 0x475   : > { %v1791_v49 = vadd.f32 %v1790_v29, %v1789_v55 }
 0x477   : > { %v1792_v53 = vrot.slane %v1791_v49, 1 }
 0x479   : > { %v1793_v63 = vadd.f32 %v1792_v53, %v1791_v49 }
 0x47b   : > { %2082 = vpush %v1793_v63 }
 0x4ac   : > { %s2083_s13 = spop %2082 }
 0x4ad   : > { %v1796_v1 = vstv %s2083_s13 }
 0x4ae   : > { %v1798_v2 = vsel %vm1797_vm12, %v1795_v54, %v1796_v1 }
 0x4af   : > { %1799 = vst [vmem:[%s390_s17] sm:$0x3] %v1798_v2 }
 0x4b0 PF: > { %s17_s25 = sadd.s32 1, %s2181_s25   ;;  %s3442_s21 = smov %s2173_s23 }
 0x4b1   : > { %p14_p10 = scmp.ge.s32.totalorder %s17_s25, 18   ;;  %s3443_s22 = smov %s2177_s24 }
 0x4b2   : > { %s3444_s23 = smov %s3447_s26  ;;  %s3445_s24 = smov %s3451_s27 }
 0x4b3   :  { %16 = sbr.rel (!%p14_p10) target bundleno = 3 (0x3), region = 88 }

// kernel: bott_conv_gn_relu3.11
= control target key start
LH: loop header
LB: loop body
LE: loop exit
PB: predicated region body
PF: predicated region fallthrough
CT: control target
= control target key end

     0   :  { %s581_s12 = smov 0   ;;  %s583_s13 = smov 0   ;;  %s646_s0 = inlined_call_operand.vmem [shape: f32[2,8,64,8], index: 0, kind: input, shape index: {}]   ;;  %s647_s1 = inlined_call_operand.vmem [shape: f32[2,1,1,8], index: 1, kind: input, shape index: {}]   ;;  %s648_s2 = inlined_call_operand.vmem [shape: f32[2,1,1,8], index: 2, kind: input, shape index: {}]   ;;  %s649_s3 = inlined_call_operand.vmem [shape: f32[2,8,8,8,8], index: 3, kind: output, shape index: {}]  }
   0x1   :  { %s585_s14 = smov 0   ;;  %s587_s15 = smov 0  }
   0x2   :  { %s589_s16 = smov 0  }
   0x3 LB: > { %s22_s17 = sadd.s32 1, %s551_s14  ;;  %s25_s18 = sadd.s32 1, %s555_s15  ;;  %s559_s16 = sphi %s589_s16, %s13_s16   ;;  %s555_s15 = sphi %s587_s15, %s653_s15   ;;  %s551_s14 = sphi %s585_s14, %s652_s14   ;;  %s547_s13 = sphi %s583_s13, %s651_s13   ;;  %s543_s12 = sphi %s581_s12, %s650_s12  }
   0x4   : > { %p23_p0 = scmp.ge.s32.totalorder %s22_s17, 8  ;;  %p452_p1 = scmp.ge.s32.totalorder %s559_s16, 1 }
   0x5   : > { %p189_p2 = scmp.lt.s32.totalorder %s559_s16, 17 }
   0x6   : > { %s655_s17 = smov (%p23_p0, %s22_s17), 0  ;;  %s657_s18 = smov (!%p23_p0, %s25_s18), %s555_s15 }
   0x7   : > { %p190_p3 = pnand %p452_p1, %p189_p2  ;;  %p27_p4 = scmp.ge.s32.totalorder %s657_s18, 2 }
   0x8   : > { %p231_p5 = scmp.gt.s32.totalorder (!%p190_p3), %s543_s12, 0  ;;  %p453_p6 = scmp.lt.s32.totalorder (!%p190_p3), %s543_s12, 7  ;;  %vm309_vm0 = vcmask (!%p190_p3), 64512  }
   0x9   : > { %s659_s18 = smov (%p27_p4, %s657_s18), 0  ;;  %193 = sbr.rel (%p190_p3) target bundleno = 37 (0x25), region = 32 }
   0xa   : > { %p235_p7 = scmp.lt.s32.totalorder (!%p190_p3), %s547_s13, 1 }
  0x10   : > { %s232_s19 = scalar_select %p231_p5, %s543_s12, 0 }
  0x11   : > { %s661_s13 = smov (!%p235_p7, %s547_s13), 1  ;;  %s665_s12 = smov (!%p453_p6, %s543_s12), 7 }
  0x12   : > { %s663_s19 = smov (!%p453_p6, %s232_s19), 7  ;;  %s459_s20 = sshll.u32 %s661_s13, 6 }
  0x13   : > { %p237_p8 = scmp.lt.s32.totalorder %s663_s19, 7  ;;  %s250_s23 = scalar_lea.vmem %s647_s1, %s661_s13 }
  0x14   : > { %s461_s24 = sshll.u32 %s665_s12, 3  ;;  %s253_s28 = scalar_lea.vmem %s648_s2, %s661_s13  ;;  %v464_v0 = vld [vmem:[%s250_s23] ss:$0 sm:$0xff] }
  0x15   : > { %s667_s19 = smov (!%p237_p8, %s663_s19), 7  ;;  %s260_s4 = sadd.s32 %s461_s24, %s459_s20  ;;  %v465_v1 = vld [vmem:[%s253_s28] ss:$0 sm:$0xff] }
  0x16   : > { %s458_s25 = sshll.u32 %s667_s19, 3  ;;  %s463_s8 = sshll.u32 %s260_s4, 3 }
  0x17   : > { %s241_s29 = sadd.s32 %s459_s20, %s458_s25  ;;  %s262_s11 = scalar_lea.vmem %s649_s3, %s463_s8 }
  0x18   : > { %s460_s30 = sshll.u32 %s241_s29, 3 }
  0x19   : > { %s243_s7 = scalar_lea.vmem %s646_s0, %s460_s30 }
  0x1a   : > { %v263_v2 = vld [vmem:[%s243_s7] sm:$0xff]  ;;  %v264_v3 = vld [vmem:[%s243_s7 + $0x8] sm:$0xff]  ;;  %v265_v4 = vld [vmem:[%s243_s7 + $0x10] sm:$0xff] }
  0x1b   : > { %v278_v5 = vmul.f32 %v464_v0, %v263_v2  ;;  %v279_v6 = vmul.f32 %v464_v0, %v264_v3  ;;  %v280_v7 = vmul.f32 %v464_v0, %v265_v4  ;;  %v266_v8 = vld [vmem:[%s243_s7 + $0x18] sm:$0xff]  ;;  %v267_v9 = vld [vmem:[%s243_s7 + $0x20] sm:$0xff]  ;;  %v268_v10 = vld [vmem:[%s243_s7 + $0x28] sm:$0xff] }
  0x1c   : > { %v281_v11 = vmul.f32 %v464_v0, %v266_v8  ;;  %v282_v12 = vmul.f32 %v464_v0, %v267_v9  ;;  %v283_v13 = vmul.f32 %v464_v0, %v268_v10  ;;  %v269_v14 = vld [vmem:[%s243_s7 + $0x30] sm:$0xff]  ;;  %v270_v15 = vld [vmem:[%s243_s7 + $0x38] sm:$0xff] }
  0x1d   : > { %v293_v16 = vadd.f32 %v465_v1, %v278_v5  ;;  %v294_v17 = vadd.f32 %v465_v1, %v279_v6  ;;  %v295_v18 = vadd.f32 %v465_v1, %v280_v7  ;;  %v284_v19 = vmul.f32 %v464_v0, %v269_v14 }
  0x1e   : > { %v296_v20 = vadd.f32 %v465_v1, %v281_v11  ;;  %v297_v21 = vadd.f32 %v465_v1, %v282_v12  ;;  %v298_v22 = vadd.f32 %v465_v1, %v283_v13  ;;  %v285_v23 = vmul.f32 %v464_v0, %v270_v15 }
  0x1f   : > { %v301_v24 = vmax.f32 %v293_v16, 0.0  ;;  %v302_v25 = vmax.f32 %v294_v17, 0.0  ;;  %v303_v26 = vmax.f32 %v295_v18, 0.0  ;;  %v299_v27 = vadd.f32 %v465_v1, %v284_v19 }
  0x20   : > { %v304_v28 = vmax.f32 %v296_v20, 0.0  ;;  %v305_v29 = vmax.f32 %v297_v21, 0.0  ;;  %v306_v30 = vmax.f32 %v298_v22, 0.0  ;;  %v300_v31 = vadd.f32 %v465_v1, %v285_v23 }
  0x21   : > { %310 = vst.msk [vmem:[%s262_s11] sm:$0xff] %vm309_vm0, %v301_v24  ;;  %466 = vst.msk [vmem:[%s262_s11 + $0x8] sm:$0xff] %vm309_vm0, %v302_v25  ;;  %v307_v32 = vmax.f32 %v299_v27, 0.0 }
  0x22   : > { %467 = vst.msk [vmem:[%s262_s11 + $0x10] sm:$0xff] %vm309_vm0, %v303_v26  ;;  %468 = vst.msk [vmem:[%s262_s11 + $0x18] sm:$0xff] %vm309_vm0, %v304_v28  ;;  %v308_v33 = vmax.f32 %v300_v31, 0.0 }
  0x23   : > { %469 = vst.msk [vmem:[%s262_s11 + $0x20] sm:$0xff] %vm309_vm0, %v305_v29  ;;  %470 = vst.msk [vmem:[%s262_s11 + $0x28] sm:$0xff] %vm309_vm0, %v306_v30 }
  0x24   : > { %471 = vst.msk [vmem:[%s262_s11 + $0x30] sm:$0xff] %vm309_vm0, %v307_v32  ;;  %472 = vst.msk [vmem:[%s262_s11 + $0x38] sm:$0xff] %vm309_vm0, %v308_v33 }
  0x25 PF: > { %s13_s16 = sadd.s32 1, %s559_s16   ;;  %s650_s12 = smov %s551_s14 }
  0x26   : > { %p10_p9 = scmp.ge.s32.totalorder %s13_s16, 18   ;;  %s651_s13 = smov %s555_s15 }
  0x27   : > { %s652_s14 = smov %s655_s17  ;;  %s653_s15 = smov %s659_s18 }
  0x28   :  { %12 = sbr.rel (!%p10_p9) target bundleno = 3 (0x3), region = 75 }

// kernel: bott_conv_gn_relu3.8
= control target key start
LH: loop header
LB: loop body
LE: loop exit
PB: predicated region body
PF: predicated region fallthrough
CT: control target
= control target key end

     0   :  { %s2304_s21 = smov 0   ;;  %s2306_s22 = smov 0   ;;  %s3297_s0 = inlined_call_operand.vmem [shape: f32[2,10,10,10,4], index: 0, kind: input, shape index: {}, may-alias: {0,1,2}]   ;;  %s3298_s1 = inlined_call_operand.vmem [shape: f32[2,10,10,10,4], index: 1, kind: input, shape index: {}, may-alias: {0,1,2}]   ;;  %s3299_s2 = inlined_call_operand.vmem [shape: f32[2,10,10,10,4], index: 2, kind: input, shape index: {}, may-alias: {0,1,2}]   ;;  %s3300_s3 = inlined_call_operand.vmem [shape: f32[108,128], index: 3, kind: input, shape index: {}]   ;;  %s3301_s4 = inlined_call_operand.vmem [shape: f32[1,128], index: 4, kind: input, shape index: {}]   ;;  %s3302_s5 = inlined_call_operand.vmem [shape: f32[2,8,64,4], index: 5, kind: output, shape index: {0}]   ;;  %s3303_s6 = inlined_call_operand.vmem [shape: f32[2,8,2,128], index: 6, kind: output, shape index: {1}]  }
   0x1   :  { %s2308_s23 = smov 0   ;;  %s2310_s24 = smov 0  }
   0x2   :  { %s2312_s25 = smov 0  }
   0x3 LB: > { %s26_s26 = sadd.s32 1, %s2231_s23  ;;  %s29_s27 = sadd.s32 1, %s2235_s24  ;;  %s2239_s25 = sphi %s2312_s25, %s17_s25   ;;  %s2235_s24 = sphi %s2310_s24, %s3340_s24   ;;  %s2231_s23 = sphi %s2308_s23, %s3339_s23   ;;  %s2227_s22 = sphi %s2306_s22, %s3338_s22   ;;  %s2223_s21 = sphi %s2304_s21, %s3337_s21  }
   0x4   : > { %p27_p0 = scmp.ge.s32.totalorder %s26_s26, 8  ;;  %p1997_p1 = scmp.ge.s32.totalorder %s2239_s25, 1 }
   0x5   : > { %p277_p2 = scmp.lt.s32.totalorder %s2239_s25, 17 }
   0x6   : > { %s3342_s26 = smov (%p27_p0, %s26_s26), 0  ;;  %s3344_s27 = smov (!%p27_p0, %s29_s27), %s2235_s24 }
   0x7   : > { %p278_p3 = pnand %p1997_p1, %p277_p2  ;;  %p31_p4 = scmp.ge.s32.totalorder %s3344_s27, 2 }
   0x8   : > { %p343_p5 = scmp.lt.s32.totalorder (!%p278_p3), %s2227_s22, 1  ;;  %p345_p6 = scmp.lt.s32.totalorder (!%p278_p3), %s2223_s21, 9  ;;  %vm3312_vm0 = vcmask (!%p278_p3), 31744   ;;  %vm494_vm1 = vcmask (!%p278_p3), 1045504   ;;  %vm436_vm2 = vcmask (!%p278_p3), 1046528   ;;  %vm485_vm3 = vcmask (!%p278_p3), 64544  }
   0x9   : > { %s3346_s27 = smov (%p31_p4, %s3344_s27), 0  ;;  %281 = sbr.rel (%p278_p3) target bundleno = 1216 (0x4c0), region = 40 }
   0xa   : > { %s2241_s12 = smov (!%p278_p3), 12   ;;  %s2242_s13 = smov (!%p278_p3), 8   ;;  %vm543_vm4 = vcmask (!%p278_p3), 97344   ;;  %vm577_vm5 = vcmask (!%p278_p3), 130144   ;;  %vm614_vm6 = vcmask (!%p278_p3), 162944   ;;  %vm650_vm7 = vcmask (!%p278_p3), 195744  }
   0xb   : > { %s2243_s14 = smov (!%p278_p3), 4   ;;  %s2244_s15 = smov (!%p278_p3), 16   ;;  %vm684_vm8 = vcmask (!%p278_p3), 228544   ;;  %vm721_vm9 = vcmask (!%p278_p3), 261344   ;;  %vm757_vm10 = vcmask (!%p278_p3), 294144   ;;  %vm818_vm11 = vcmask (!%p278_p3), 326944  }
   0xc   : > { %s2245_s16 = smov (!%p278_p3), 20   ;;  %s2246_s17 = smov (!%p278_p3), 24   ;;  %vm883_vm12 = vcmask (!%p278_p3), 359744   ;;  %vm940_vm13 = vcmask (!%p278_p3), 392544   ;;  %vm974_vm14 = vcmask (!%p278_p3), 425344   ;;  %vm1011_vm15 = vcmask (!%p278_p3), 458144  }
   0xd   : > { %s352_s18 = sadd.s32 (!%p278_p3), 1, %s2223_s21  ;;  %s2247_s19 = smov (!%p278_p3), 28  }
   0xe   : > { %p355_p7 = scmp.lt.s32.totalorder (!%p278_p3), %s352_s18, 9  ;;  %s363_s9 = sadd.s32 (!%p278_p3), 2, %s2223_s21 }
   0xf   : > { %p366_p8 = scmp.lt.s32.totalorder (!%p278_p3), %s363_s9, 9  ;;  %p376_p9 = scmp.lt.s32.totalorder (!%p278_p3), %s2223_s21, 7 }
  0x10   : > { %s3348_s22 = smov (!%p343_p5, %s2227_s22), 1  ;;  %s3350_s18 = smov (!%p355_p7, %s352_s18), 9 }
  0x11   : > { %s346_s28 = scalar_select %p345_p6, %s2223_s21, 9 }
  0x12   : > { %s2341_s29 = smul.u32 200, %s3348_s22  ;;  %s3352_s9 = smov (!%p366_p8, %s363_s9), 9 }
  0x13   : > { %s2125_s30 = smul.u32 20, %s346_s28  ;;  %s2248_s28 = smov 32  }
  0x14   : > { %s2127_s20 = smul.u32 20, %s3350_s18  ;;  %s2249_s18 = smov 36  }
  0x15   : > { %s349_s7 = sadd.s32 %s2341_s29, %s2125_s30  ;;  %s3354_s21 = smov (!%p376_p9, %s2223_s21), 7 }
  0x16   : > { %s1998_s8 = sshll.u32 %s349_s7, 3  ;;  %s359_s30 = sadd.s32 %s2127_s20, %s2341_s29 }
  0x17   : > { %s2347_s11 = scalar_lea.vmem %s3297_s0, %s1998_s8  ;;  %s1999_s7 = sshll.u32 %s359_s30, 3 }
  0x18   : > { %v395_v0 = vld [vmem:[%s2347_s11 + $0x20] sm:$0xff]  ;;  %v393_v1 = vld [vmem:[%s2347_s11 + $0x10] sm:$0xff]  ;;  %v392_v3 = vld [vmem:[%s2347_s11 + $0x8] sm:$0x3]  ;;  %s2424_s10 = scalar_lea.vmem %s3298_s1, %s1999_s7  ;;  %s2250_s20 = smov 40  }
  0x19   : > { %v391_v2 = vld [vmem:[%s2347_s11] sm:$0xff]  ;;  %555 = vrot.lane.b32.xlu1 %v395_v0, %s2241_s12  ;;  %553 = vrot.lane.b32.xlu0 %v393_v1, %s2241_s12  ;;  %v394_v6 = vld [vmem:[%s2347_s11 + $0x18] sm:$0x3]  ;;  %413 = vst.msk [vmem:[#allocation2 + $0x8] sm:$0xff] %vm3312_vm0, %v393_v1  ;;  %414 = vst.msk [vmem:[#allocation2 + $0x10] sm:$0xff] %vm3312_vm0, %v395_v0  ;;  %v496_v7 = vrot.slane %v392_v3, 2 }
  0x1a   : > { %v495_v4 = vrot.slane %v391_v2, 2  ;;  %v437_v5 = vrot.slane %v391_v2, 1  ;;  %412 = vst.msk [vmem:[#allocation2] sm:$0xff] %vm3312_vm0, %v391_v2  ;;  %v438_v8 = vrot.slane %v392_v3, 1  ;;  %v498_v9 = vrot.slane %v393_v1, 2  ;;  %v397_v14 = vld [vmem:[%s2347_s11 + $0x30] sm:$0xff] }
  0x1b   : > { %v499_v10 = vrot.slane %v394_v6, 2  ;;  %v440_v11 = vrot.slane %v393_v1, 1  ;;  %v441_v12 = vrot.slane %v394_v6, 1  ;;  %v396_v13 = vld [vmem:[%s2347_s11 + $0x28] sm:$0x3]  ;;  %v2362_v15 = vld [vmem:[%s2347_s11 + $0x40] sm:$0xff] }
  0x1c   : > { %v497_v16 = vsel %vm494_vm1, %v495_v4, %v496_v7  ;;  %v439_v17 = vsel %vm436_vm2, %v437_v5, %v438_v8  ;;  %v2367_v18 = vld [vmem:[%s2347_s11 + $0x50] sm:$0xff]  ;;  %415 = vst.msk [vmem:[#allocation2 + $0x18] sm:$0xff] %vm3312_vm0, %v397_v14  ;;  %416 = vst.msk [vmem:[#allocation2 + $0x20] sm:$0xff] %vm3312_vm0, %v2362_v15  ;;  %v2375_v19 = vld [vmem:[%s2347_s11 + $0x60] sm:$0xff]  ;;  %v443_v22 = vrot.slane %v395_v0, 1  ;;  %v444_v23 = vrot.slane %v396_v13, 1 }
  0x1d   : > { %519 = vrot.lane.b32.xlu1 %v497_v16, %s2242_s13  ;;  %461 = vrot.lane.b32.xlu0 %v439_v17, %s2243_s14  ;;  %417 = vst.msk [vmem:[#allocation2 + $0x28] sm:$0xff] %vm3312_vm0, %v2367_v18  ;;  %v500_v20 = vsel %vm494_vm1, %v498_v9, %v499_v10  ;;  %v442_v21 = vsel %vm436_vm2, %v440_v11, %v441_v12  ;;  %418 = vst.msk [vmem:[#allocation2 + $0x30] sm:$0xff] %vm3312_vm0, %v2375_v19  ;;  %v2384_v24 = vld [vmem:[%s2347_s11 + $0x70] sm:$0xff]  ;;  %v398_v26 = vld [vmem:[%s2347_s11 + $0x38] sm:$0x3]  ;;  %v501_v27 = vrot.slane %v395_v0, 2 }
  0x1e   : > { %419 = vst.msk [vmem:[#allocation2 + $0x38] sm:$0xff] %vm3312_vm0, %v2384_v24  ;;  %v445_v25 = vsel %vm436_vm2, %v443_v22, %v444_v23  ;;  %v502_v28 = vrot.slane %v396_v13, 2  ;;  %v446_v29 = vrot.slane %v397_v14, 1  ;;  %v447_v30 = vrot.slane %v398_v26, 1  ;;  %v400_v36 = vld [vmem:[%s2347_s11 + $0x48] sm:$0x3] }
  0x1f   : > { %v504_v33 = vrot.slane %v397_v14, 2  ;;  %v505_v34 = vrot.slane %v398_v26, 2  ;;  %v449_v37 = vrot.slane %v2362_v15, 1  ;;  %v450_v38 = vrot.slane %v400_v36, 1  ;;  %v402_v40 = vld [vmem:[%s2347_s11 + $0x58] sm:$0x3] }
  0x20   : > { %v503_v31 = vsel %vm494_vm1, %v501_v27, %v502_v28  ;;  %v448_v32 = vsel %vm436_vm2, %v446_v29, %v447_v30  ;;  %v452_v41 = vrot.slane %v2367_v18, 1  ;;  %v453_v42 = vrot.slane %v402_v40, 1  ;;  %v766_v44 = vld [vmem:[%s2424_s10] sm:$0xff]  ;;  %v767_v48 = vld [vmem:[%s2424_s10 + $0x8] sm:$0x3]  ;;  %v768_v50 = vld [vmem:[%s2424_s10 + $0x10] sm:$0xff] }
  0x21   : > { %521 = vrot.lane.b32.xlu1 %v500_v20, %s2242_s13  ;;  %463 = vrot.lane.b32.xlu0 %v442_v21, %s2243_s14  ;;  %v506_v35 = vsel %vm494_vm1, %v504_v33, %v505_v34  ;;  %v451_v39 = vsel %vm436_vm2, %v449_v37, %v450_v38  ;;  %v507_v45 = vrot.slane %v2362_v15, 2  ;;  %v508_v46 = vrot.slane %v400_v36, 2  ;;  %v769_v56 = vld [vmem:[%s2424_s10 + $0x18] sm:$0x3]  ;;  %s2251_s30 = smov 44   ;;  %s3304_s7 = smov 48  }
  0x22   : > { %v454_v43 = vsel %vm436_vm2, %v452_v41, %v453_v42  ;;  %v835_v49 = vrot.slane %v766_v44, 1  ;;  %v510_v51 = vrot.slane %v2367_v18, 2  ;;  %v511_v52 = vrot.slane %v402_v40, 2  ;;  %v404_v1 = vld [vmem:[%s2347_s11 + $0x68] sm:$0x3]  ;;  %v2471_v6 = vld [vmem:[%s2424_s10 + $0x20] sm:$0xff] }
  0x23   : > { %v509_v47 = vsel %vm494_vm1, %v507_v45, %v508_v46  ;;  %v836_v53 = vrot.slane %v767_v48, 1  ;;  %v838_v57 = vrot.slane %v768_v50, 1  ;;  %v839_v58 = vrot.slane %v769_v56, 1  ;;  %v406_v7 = vld [vmem:[%s2347_s11 + $0x78] sm:$0x3]  ;;  %s2253_s8 = smov 52  }
  0x24   : > { %v512_v54 = vsel %vm494_vm1, %v510_v51, %v511_v52  ;;  %v892_v59 = vrot.slane %v766_v44, 2  ;;  %v893_v61 = vrot.slane %v767_v48, 2  ;;  %v895_v63 = vrot.slane %v768_v50, 2  ;;  %v773_v27 = vld [vmem:[%s2424_s10 + $0x38] sm:$0x3] }
  0x25   : > { %465 = vrot.lane.b32.xlu1 %v445_v25, %s2243_s14  ;;  %590 = vrot.lane.b32.xlu0 %v442_v21, %s2244_s15  ;;  %v837_v55 = vsel %vm436_vm2, %v835_v49, %v836_v53  ;;  %v840_v60 = vsel %vm436_vm2, %v838_v57, %v839_v58  ;;  %v455_v3 = vrot.slane %v2375_v19, 1  ;;  %v456_v4 = vrot.slane %v404_v1, 1  ;;  %v408_v49 = vld [vmem:[%s2347_s11 + $0x88] sm:$0x3]  ;;  %v2592_v57 = vld [vmem:[%s2424_s10 + $0x40] sm:$0xff] }
  0x26   : > { %v894_v62 = vsel %vm494_vm1, %v892_v59, %v893_v61  ;;  %v513_v8 = vrot.slane %v2375_v19, 2  ;;  %v514_v9 = vrot.slane %v404_v1, 2  ;;  %v458_v10 = vrot.slane %v2384_v24, 1 }
  0x27   : > { %v457_v5 = vsel %vm436_vm2, %v455_v3, %v456_v4  ;;  %v459_v11 = vrot.slane %v406_v7, 1  ;;  %v517_v21 = vrot.slane %v406_v7, 2  ;;  %v898_v28 = vrot.slane %v2471_v6, 2 }
  0x28   : > { %v2483_v12 = vsel %vm494_vm1, %v513_v8, %v514_v9  ;;  %v588_v51 = vrot.slane %v408_v49, 1  ;;  %v847_v4 = vrot.slane %v2592_v57, 1  ;;  %v2630_v9 = vld [vmem:[%s2424_s10 + $0x50] sm:$0xff]  ;;  %vm1614_vm0 = vcmask 1043456  }
  0x29   : > { %626 = vrot.lane.b32.xlu1 %v500_v20, %s2245_s16  ;;  %592 = vrot.lane.b32.xlu0 %v445_v25, %s2244_s15  ;;  %v2486_v13 = vsel %vm436_vm2, %v458_v10, %v459_v11  ;;  %v516_v20 = vrot.slane %v2384_v24, 2 }
  0x2b   : > { %v2513_v23 = vsel %vm494_vm1, %v516_v20, %v517_v21  ;;  %v904_v20 = vrot.slane %v2592_v57, 2 }
  0x2d   : > { %523 = vrot.lane.b32.xlu1 %v503_v31, %s2242_s13  ;;  %467 = vrot.lane.b32.xlu0 %v448_v32, %s2243_s14 }
  0x31   : > { %660 = vrot.lane.b32.xlu1 %v395_v0, %s2246_s17  ;;  %628 = vrot.lane.b32.xlu0 %v503_v31, %s2245_s16  ;;  %v896_v0 = vrot.slane %v769_v56, 2 }
  0x33   : > { %v897_v2 = vsel %vm494_vm1, %v895_v63, %v896_v0  ;;  %v624_v63 = vrot.slane %v408_v49, 2 }
  0x35   : > { %557 = vrot.lane.b32.xlu1 %v397_v14, %s2241_s12  ;;  %525 = vrot.lane.b32.xlu0 %v506_v35, %s2242_s13 }
  0x39   : > { %697 = vrot.lane.b32.xlu1 %v445_v25, %s2247_s19  ;;  %662 = vrot.lane.b32.xlu0 %v397_v14, %s2246_s17  ;;  %v771_v14 = vld [vmem:[%s2424_s10 + $0x28] sm:$0x3] }
  0x3a   : > { %v842_v16 = vrot.slane %v771_v14, 1  ;;  %v899_v29 = vrot.slane %v771_v14, 2 }
  0x3c   : > { %v2532_v34 = vsel %vm494_vm1, %v898_v28, %v899_v29 }
  0x3d   : > { %594 = vrot.lane.b32.xlu1 %v448_v32, %s2244_s15  ;;  %559 = vrot.lane.b32.xlu0 %v2362_v15, %s2241_s12 }
  0x41   : > { %733 = vrot.lane.b32.xlu1 %v503_v31, %s2248_s28  ;;  %699 = vrot.lane.b32.xlu0 %v448_v32, %s2247_s19  ;;  %v845_v31 = vrot.slane %v773_v27, 1 }
  0x45   : > { %596 = vrot.lane.b32.xlu1 %v451_v39, %s2244_s15  ;;  %469 = vrot.lane.b32.xlu0 %v451_v39, %s2243_s14 }
  0x49   : > { %735 = vrot.lane.b32.xlu1 %v506_v35, %s2248_s28  ;;  %630 = vrot.lane.b32.xlu0 %v506_v35, %s2245_s16 }
  0x4d   : > { %471 = vrot.lane.b32.xlu1 %v454_v43, %s2243_s14  ;;  %794 = vrot.lane.b32.xlu0 %v766_v44, %s2249_s18 }
  0x51   : > { %632 = vrot.lane.b32.xlu1 %v509_v47, %s2245_s16  ;;  %527 = vrot.lane.b32.xlu0 %v509_v47, %s2242_s13 }
  0x55   : > { %796 = vrot.lane.b32.xlu1 %v768_v50, %s2249_s18  ;;  %664 = vrot.lane.b32.xlu0 %v2362_v15, %s2246_s17  ;;  %v841_v15 = vrot.slane %v2471_v6, 1 }
  0x57   : > { %v2499_v17 = vsel %vm436_vm2, %v841_v15, %v842_v16 }
  0x59   : > { %529 = vrot.lane.b32.xlu1 %v512_v54, %s2242_s13  ;;  %859 = vrot.lane.b32.xlu0 %v837_v55, %s2250_s20 }
  0x5d   : > { %666 = vrot.lane.b32.xlu1 %v2367_v18, %s2246_s17  ;;  %561 = vrot.lane.b32.xlu0 %v2367_v18, %s2241_s12  ;;  %v2502_v18 = vld [vmem:[%s2424_s10 + $0x30] sm:$0xff] }
  0x5e   : > { %v844_v30 = vrot.slane %v2502_v18, 1  ;;  %v901_v42 = vrot.slane %v2502_v18, 2 }
  0x60   : > { %v2535_v35 = vsel %vm436_vm2, %v844_v30, %v845_v31 }
  0x61   : > { %861 = vrot.lane.b32.xlu1 %v840_v60, %s2250_s20  ;;  %701 = vrot.lane.b32.xlu0 %v451_v39, %s2247_s19  ;;  %v2550_v39 = vld [vmem:[%s2347_s11 + $0x80] sm:$0xff] }
  0x65   : > { %563 = vrot.lane.b32.xlu1 %v2375_v19, %s2241_s12  ;;  %916 = vrot.lane.b32.xlu0 %v894_v62, %s2251_s30  ;;  %v623_v62 = vrot.slane %v2550_v39, 2 }
  0x67   : > { %v2616_v3 = vsel %vm494_vm1, %v623_v62, %v624_v63  ;;  %v2737_v62 = vld [vmem:[%s2424_s10 + $0x60] sm:$0xff] }
  0x69   : > { %703 = vrot.lane.b32.xlu1 %v454_v43, %s2247_s19  ;;  %598 = vrot.lane.b32.xlu0 %v454_v43, %s2244_s15  ;;  %v902_v43 = vrot.slane %v773_v27, 2 }
  0x6b   : > { %v2566_v46 = vsel %vm494_vm1, %v901_v42, %v902_v43  ;;  %v907_v42 = vrot.slane %v2630_v9, 2 }
  0x6d   : > { %918 = vrot.lane.b32.xlu1 %v897_v2, %s2251_s30  ;;  %737 = vrot.lane.b32.xlu0 %v509_v47, %s2248_s28 }
  0x71   : > { %473 = vrot.lane.b32.xlu1 %v457_v5, %s2243_s14  ;;  %950 = vrot.lane.b32.xlu0 %v768_v50, %s3304_s7  ;;  %v587_v50 = vrot.slane %v2550_v39, 1 }
  0x75   : > { %634 = vrot.lane.b32.xlu1 %v512_v54, %s2245_s16  ;;  %600 = vrot.lane.b32.xlu0 %v457_v5, %s2244_s15 }
  0x79   : > { %798 = vrot.lane.b32.xlu1 %v2471_v6, %s2249_s18  ;;  %739 = vrot.lane.b32.xlu0 %v512_v54, %s2248_s28  ;;  %v2583_v54 = vsel %vm436_vm2, %v587_v50, %v588_v51 }
  0x7d   : > { %987 = vrot.lane.b32.xlu1 %v840_v60, %s2253_s8  ;;  %952 = vrot.lane.b32.xlu0 %v2471_v6, %s3304_s7 }
  0x81   : > { %531 = vrot.lane.b32.xlu1 %v2483_v12, %s2242_s13  ;;  %475 = vrot.lane.b32.xlu0 %v2486_v13, %s2243_s14  ;;  %s2254_s14 = smov 56  }
  0x85   : > { %668 = vrot.lane.b32.xlu1 %v2375_v19, %s2246_s17  ;;  %636 = vrot.lane.b32.xlu0 %v2483_v12, %s2245_s16 }
  0x89   : > { %863 = vrot.lane.b32.xlu1 %v2499_v17, %s2250_s20  ;;  %800 = vrot.lane.b32.xlu0 %v2502_v18, %s2249_s18 }
  0x8b   : > { %v556_v22 = vpop.permute.xlu1 %555  ;;  %v554_v19 = vpop.permute.xlu0 %553 }
  0x8d   : > { %1023 = vrot.lane.b32.xlu1 %v897_v2, %s2254_s14  ;;  %989 = vrot.lane.b32.xlu0 %v2499_v17, %s2253_s8  ;;  %v775_v2 = vld [vmem:[%s2424_s10 + $0x48] sm:$0x3] }
  0x8e   : > { %v905_v21 = vrot.slane %v775_v2, 2 }
  0x8f   : > { %v520_v25 = vpop.permute.xlu1 %519  ;;  %v462_v26 = vpop.permute.xlu0 %461 }
  0x90   : > { %486 = vst.msk [vmem:[#allocation2] sm:$0xff] %vm485_vm3, %v462_v26  ;;  %v2671_v26 = vsel %vm494_vm1, %v904_v20, %v905_v21 }
  0x91   : > { %544 = vst.msk [vmem:[#allocation2] sm:$0xff] %vm543_vm4, %v520_v25  ;;  %565 = vrot.lane.b32.xlu1 %v2384_v24, %s2241_s12  ;;  %533 = vrot.lane.b32.xlu0 %v2513_v23, %s2242_s13  ;;  %s2255_s13 = smov 60  }
  0x92   : > { %578 = vst.msk [vmem:[#allocation2] sm:$0xff] %vm577_vm5, %v554_v19 }
  0x93   : > { %v522_v32 = vpop.permute.xlu1 %521  ;;  %v464_v33 = vpop.permute.xlu0 %463 }
  0x94   : > { %487 = vst.msk [vmem:[#allocation2 + $0x8] sm:$0xff] %vm485_vm3, %v464_v33 }
  0x95   : > { %545 = vst.msk [vmem:[#allocation2 + $0x8] sm:$0xff] %vm543_vm4, %v522_v32  ;;  %705 = vrot.lane.b32.xlu1 %v457_v5, %s2247_s19  ;;  %670 = vrot.lane.b32.xlu0 %v2384_v24, %s2246_s17  ;;  %v848_v5 = vrot.slane %v775_v2, 1 }
  0x96   : > { %579 = vst.msk [vmem:[#allocation2 + $0x8] sm:$0xff] %vm577_vm5, %v556_v22  ;;  %v850_v22 = vrot.slane %v2630_v9, 1 }
  0x97   : > { %v466_v36 = vpop.permute.xlu1 %465  ;;  %v591_v37 = vpop.permute.xlu0 %590  ;;  %v2627_v8 = vsel %vm436_vm2, %v847_v4, %v848_v5 }
  0x98   : > { %488 = vst.msk [vmem:[#allocation2 + $0x10] sm:$0xff] %vm485_vm3, %v466_v36 }
  0x99   : > { %615 = vst.msk [vmem:[#allocation2] sm:$0xff] %vm614_vm6, %v591_v37  ;;  %920 = vrot.lane.b32.xlu1 %v2532_v34, %s2251_s30  ;;  %865 = vrot.lane.b32.xlu0 %v2535_v35, %s2250_s20 }
  0x9b   : > { %v627_v24 = vpop.permute.xlu1 %626  ;;  %v593_v38 = vpop.permute.xlu0 %592 }
  0x9c   : > { %651 = vst.msk [vmem:[#allocation2] sm:$0xff] %vm650_vm7, %v627_v24 }
  0x9d   : > { %616 = vst.msk [vmem:[#allocation2 + $0x8] sm:$0xff] %vm614_vm6, %v593_v38  ;;  %1057 = vrot.lane.b32.xlu1 %v2471_v6, %s2255_s13  ;;  %1025 = vrot.lane.b32.xlu0 %v2532_v34, %s2254_s14 }
  0x9f   : > { %v524_v40 = vpop.permute.xlu1 %523  ;;  %v468_v41 = vpop.permute.xlu0 %467 }
  0xa0   : > { %546 = vst.msk [vmem:[#allocation2 + $0x10] sm:$0xff] %vm543_vm4, %v524_v40 }
  0xa1   : > { %489 = vst.msk [vmem:[#allocation2 + $0x18] sm:$0xff] %vm485_vm3, %v468_v41  ;;  %602 = vrot.lane.b32.xlu1 %v2486_v13, %s2244_s15  ;;  %567 = vrot.lane.b32.xlu0 %v2550_v39, %s2241_s12  ;;  %s3306_s12 = smov 64  }
  0xa3   : > { %v661_v44 = vpop.permute.xlu1 %660  ;;  %v629_v45 = vpop.permute.xlu0 %628 }
  0xa4   : > { %685 = vst.msk [vmem:[#allocation2] sm:$0xff] %vm684_vm8, %v661_v44 }
  0xa5   : > { %652 = vst.msk [vmem:[#allocation2 + $0x8] sm:$0xff] %vm650_vm7, %v629_v45  ;;  %741 = vrot.lane.b32.xlu1 %v2483_v12, %s2248_s28  ;;  %707 = vrot.lane.b32.xlu0 %v2486_v13, %s2247_s19 }
  0xa7   : > { %v558_v47 = vpop.permute.xlu1 %557  ;;  %v526_v48 = vpop.permute.xlu0 %525 }
  0xa8   : > { %580 = vst.msk [vmem:[#allocation2 + $0x10] sm:$0xff] %vm577_vm5, %v558_v47 }
  0xa9   : > { %547 = vst.msk [vmem:[#allocation2 + $0x18] sm:$0xff] %vm543_vm4, %v526_v48  ;;  %954 = vrot.lane.b32.xlu1 %v2502_v18, %s3304_s7  ;;  %922 = vrot.lane.b32.xlu0 %v2566_v46, %s2251_s30 }
  0xab   : > { %v698_v52 = vpop.permute.xlu1 %697  ;;  %v663_v53 = vpop.permute.xlu0 %662 }
  0xac   : > { %722 = vst.msk [vmem:[#allocation2] sm:$0xff] %vm721_vm9, %v698_v52 }
  0xad   : > { %686 = vst.msk [vmem:[#allocation2 + $0x8] sm:$0xff] %vm684_vm8, %v663_v53  ;;  %1094 = vrot.lane.b32.xlu1 %v2499_v17, %s3306_s12  ;;  %1059 = vrot.lane.b32.xlu0 %v2502_v18, %s2255_s13  ;;  %v777_v17 = vld [vmem:[%s2424_s10 + $0x58] sm:$0x3]  ;;  %v2660_v18 = vld [vmem:[%s2347_s11 + $0x90] sm:$0xff] }
  0xae   : > { %v851_v19 = vrot.slane %v777_v17, 1  ;;  %v694_v36 = vrot.slane %v2660_v18, 1  ;;  %v908_v43 = vrot.slane %v777_v17, 2 }
  0xaf   : > { %v595_v55 = vpop.permute.xlu1 %594  ;;  %v560_v56 = vpop.permute.xlu0 %559 }
  0xb0   : > { %617 = vst.msk [vmem:[#allocation2 + $0x10] sm:$0xff] %vm614_vm6, %v595_v55  ;;  %v2674_v27 = vsel %vm436_vm2, %v850_v22, %v851_v19 }
  0xb1   : > { %581 = vst.msk [vmem:[#allocation2 + $0x18] sm:$0xff] %vm577_vm5, %v560_v56  ;;  %638 = vrot.lane.b32.xlu1 %v2513_v23, %s2245_s16  ;;  %604 = vrot.lane.b32.xlu0 %v2583_v54, %s2244_s15  ;;  %s2257_s15 = smov 68   ;;  %v730_v56 = vrot.slane %v2660_v18, 2 }
  0xb3   : > { %v734_v58 = vpop.permute.xlu1 %733  ;;  %v700_v59 = vpop.permute.xlu0 %699 }
  0xb4   : > { %758 = vst.msk [vmem:[#allocation2] sm:$0xff] %vm757_vm10, %v734_v58 }
  0xb5   : > { %723 = vst.msk [vmem:[#allocation2 + $0x8] sm:$0xff] %vm721_vm9, %v700_v59  ;;  %802 = vrot.lane.b32.xlu1 %v2592_v57, %s2249_s18  ;;  %743 = vrot.lane.b32.xlu0 %v2513_v23, %s2248_s28 }
  0xb7   : > { %v597_v60 = vpop.permute.xlu1 %596  ;;  %v470_v61 = vpop.permute.xlu0 %469 }
  0xb8   : > { %618 = vst.msk [vmem:[#allocation2 + $0x18] sm:$0xff] %vm614_vm6, %v597_v60 }
  0xb9   : > { %490 = vst.msk [vmem:[#allocation2 + $0x20] sm:$0xff] %vm485_vm3, %v470_v61  ;;  %991 = vrot.lane.b32.xlu1 %v2535_v35, %s2253_s8  ;;  %956 = vrot.lane.b32.xlu0 %v2592_v57, %s3304_s7  ;;  %s2128_s7 = smul.u32 20, %s3352_s9 }
  0xbb   : > { %v736_v0 = vpop.permute.xlu1 %735  ;;  %v631_v1 = vpop.permute.xlu0 %630 }
  0xbc   : > { %759 = vst.msk [vmem:[#allocation2 + $0x8] sm:$0xff] %vm757_vm10, %v736_v0 }
  0xbd   : > { %653 = vst.msk [vmem:[#allocation2 + $0x10] sm:$0xff] %vm650_vm7, %v631_v1  ;;  %1130 = vrot.lane.b32.xlu1 %v2532_v34, %s2257_s15  ;;  %1096 = vrot.lane.b32.xlu0 %v2535_v35, %s3306_s12  ;;  %s370_s12 = sadd.s32 %s2128_s7, %s2341_s29  ;;  %v410_v35 = vld [vmem:[%s2347_s11 + $0x98] sm:$0x3]  ;;  %s2259_s11 = smov 76  }
  0xbe   : > { %s2000_s9 = sshll.u32 %s370_s12, 3  ;;  %s2258_s12 = smov 72   ;;  %v695_v38 = vrot.slane %v410_v35, 1  ;;  %v731_v59 = vrot.slane %v410_v35, 2 }
  0xbf   : > { %v472_v6 = vpop.permute.xlu1 %471  ;;  %v795_v7 = vpop.permute.xlu0 %794  ;;  %s2641_s7 = scalar_lea.vmem %s3299_s2, %s2000_s9  ;;  %s3310_s9 = smov 80  }
  0xc0   : > { %491 = vst.msk [vmem:[#allocation2 + $0x28] sm:$0xff] %vm485_vm3, %v472_v6  ;;  %v2650_v14 = vld [vmem:[%s2641_s7] sm:$0xff]  ;;  %v1164_v30 = vld [vmem:[%s2641_s7 + $0x8] sm:$0x3]  ;;  %v2694_v24 = vld [vmem:[%s2641_s7 + $0x10] sm:$0xff]  ;;  %v696_v41 = vsel %vm436_vm2, %v694_v36, %v695_v38  ;;  %v732_v63 = vsel %vm494_vm1, %v730_v56, %v731_v59 }
  0xc1   : > { %819 = vst.msk [vmem:[#allocation2] sm:$0xff] %vm818_vm11, %v795_v7  ;;  %672 = vrot.lane.b32.xlu1 %v2550_v39, %s2246_s17  ;;  %640 = vrot.lane.b32.xlu0 %v2616_v3, %s2245_s16  ;;  %v1232_v31 = vrot.slane %v2650_v14, 1  ;;  %v1233_v32 = vrot.slane %v1164_v30, 1  ;;  %v1166_v49 = vld [vmem:[%s2641_s7 + $0x18] sm:$0x3]  ;;  %v1289_v50 = vrot.slane %v2650_v14, 2 }
  0xc2   : > { %v1235_v51 = vrot.slane %v2694_v24, 1  ;;  %v1290_v52 = vrot.slane %v1164_v30, 2  ;;  %v1236_v53 = vrot.slane %v1166_v49, 1  ;;  %v1292_v4 = vrot.slane %v2694_v24, 2  ;;  %v2788_v21 = vld [vmem:[%s2641_s7 + $0x20] sm:$0xff]  ;;  %s2266_s16 = smov 104  }
  0xc3   : > { %v633_v10 = vpop.permute.xlu1 %632  ;;  %v528_v11 = vpop.permute.xlu0 %527  ;;  %v1234_v37 = vsel %vm436_vm2, %v1232_v31, %v1233_v32  ;;  %v1293_v5 = vrot.slane %v1166_v49, 2  ;;  %v1168_v35 = vld [vmem:[%s2641_s7 + $0x28] sm:$0x3]  ;;  %v1238_v36 = vrot.slane %v2788_v21, 1 }
  0xc4   : > { %654 = vst.msk [vmem:[#allocation2 + $0x18] sm:$0xff] %vm650_vm7, %v633_v10  ;;  %v2729_v58 = vsel %vm436_vm2, %v1235_v51, %v1236_v53  ;;  %v853_v10 = vrot.slane %v2737_v62, 1  ;;  %v1295_v51 = vrot.slane %v2788_v21, 2 }
  0xc5   : > { %548 = vst.msk [vmem:[#allocation2 + $0x20] sm:$0xff] %vm543_vm4, %v528_v11  ;;  %867 = vrot.lane.b32.xlu1 %v2627_v8, %s2250_s20  ;;  %804 = vrot.lane.b32.xlu0 %v2630_v9, %s2249_s18 }
  0xc7   : > { %v797_v12 = vpop.permute.xlu1 %796  ;;  %v665_v13 = vpop.permute.xlu0 %664 }
  0xc8   : > { %820 = vst.msk [vmem:[#allocation2 + $0x8] sm:$0xff] %vm818_vm11, %v797_v12 }
  0xc9   : > { %687 = vst.msk [vmem:[#allocation2 + $0x10] sm:$0xff] %vm684_vm8, %v665_v13  ;;  %1027 = vrot.lane.b32.xlu1 %v2566_v46, %s2254_s14  ;;  %993 = vrot.lane.b32.xlu0 %v2627_v8, %s2253_s8 }
  0xcb   : > { %v530_v15 = vpop.permute.xlu1 %529  ;;  %v860_v16 = vpop.permute.xlu0 %859 }
  0xcc   : > { %549 = vst.msk [vmem:[#allocation2 + $0x28] sm:$0xff] %vm543_vm4, %v530_v15  ;;  %v2773_v15 = vld [vmem:[%s2424_s10 + $0x70] sm:$0xff] }
  0xcd   : > { %884 = vst.msk [vmem:[#allocation2] sm:$0xff] %vm883_vm12, %v860_v16  ;;  %1191 = vrot.lane.b32.xlu1 %v2650_v14, %s2258_s12  ;;  %1132 = vrot.lane.b32.xlu0 %v2566_v46, %s2257_s15  ;;  %v2709_v46 = vsel %vm494_vm1, %v907_v42, %v908_v43  ;;  %v913_v43 = vrot.slane %v2773_v15, 2 }
  0xcf   : > { %v667_v23 = vpop.permute.xlu1 %666  ;;  %v562_v25 = vpop.permute.xlu0 %561 }
  0xd0   : > { %688 = vst.msk [vmem:[#allocation2 + $0x18] sm:$0xff] %vm684_vm8, %v667_v23  ;;  %v781_v23 = vld [vmem:[%s2424_s10 + $0x78] sm:$0x3] }
  0xd1   : > { %582 = vst.msk [vmem:[#allocation2 + $0x20] sm:$0xff] %vm577_vm5, %v562_v25  ;;  %709 = vrot.lane.b32.xlu1 %v2583_v54, %s2247_s19  ;;  %674 = vrot.lane.b32.xlu0 %v2660_v18, %s2246_s17  ;;  %s3315_s17 = smov 48   ;;  %v910_v25 = vrot.slane %v2737_v62, 2 }
  0xd3   : > { %v862_v28 = vpop.permute.xlu1 %861  ;;  %v702_v29 = vpop.permute.xlu0 %701 }
  0xd4   : > { %885 = vst.msk [vmem:[#allocation2 + $0x8] sm:$0xff] %vm883_vm12, %v862_v28  ;;  %v857_v28 = vrot.slane %v781_v23, 1 }
  0xd5   : > { %724 = vst.msk [vmem:[#allocation2 + $0x10] sm:$0xff] %vm721_vm9, %v702_v29  ;;  %924 = vrot.lane.b32.xlu1 %v2671_v26, %s2251_s30  ;;  %869 = vrot.lane.b32.xlu0 %v2674_v27, %s2250_s20 }
  0xd7   : > { %v564_v33 = vpop.permute.xlu1 %563  ;;  %v917_v34 = vpop.permute.xlu0 %916 }
  0xd8   : > { %583 = vst.msk [vmem:[#allocation2 + $0x28] sm:$0xff] %vm577_vm5, %v564_v33 }
  0xd9   : > { %941 = vst.msk [vmem:[#allocation2] sm:$0xff] %vm940_vm13, %v917_v34  ;;  %1061 = vrot.lane.b32.xlu1 %v2592_v57, %s2255_s13  ;;  %1029 = vrot.lane.b32.xlu0 %v2671_v26, %s2254_s14  ;;  %v1291_v57 = vsel %vm494_vm1, %v1289_v50, %v1290_v52  ;;  %v1170_v50 = vld [vmem:[%s2641_s7 + $0x38] sm:$0x3]  ;;  %v1296_v52 = vrot.slane %v1168_v35, 2 }
  0xdb   : > { %v704_v39 = vpop.permute.xlu1 %703  ;;  %v599_v40 = vpop.permute.xlu0 %598 }
  0xdc   : > { %725 = vst.msk [vmem:[#allocation2 + $0x18] sm:$0xff] %vm721_vm9, %v704_v39 }
  0xdd   : > { %619 = vst.msk [vmem:[#allocation2 + $0x20] sm:$0xff] %vm614_vm6, %v599_v40  ;;  %1256 = vrot.lane.b32.xlu1 %v1234_v37, %s2259_s11  ;;  %1193 = vrot.lane.b32.xlu0 %v2694_v24, %s2258_s12  ;;  %v1239_v37 = vrot.slane %v1168_v35, 1  ;;  %v2829_v40 = vld [vmem:[%s2641_s7 + $0x30] sm:$0xff]  ;;  %v1576_v35 = vld [vmem:[%s3300_s3 + $0x40] sm:$0xff] }
  0xde   : > { %v1241_v53 = vrot.slane %v2829_v40, 1 }
  0xdf   : > { %v919_v44 = vpop.permute.xlu1 %918  ;;  %v738_v45 = vpop.permute.xlu0 %737  ;;  %v2826_v39 = vsel %vm436_vm2, %v1238_v36, %v1239_v37  ;;  %v1577_v36 = vld [vmem:[%s3300_s3 + $0x48] sm:$0xff] }
  0xe0   : > { %942 = vst.msk [vmem:[#allocation2 + $0x8] sm:$0xff] %vm940_vm13, %v919_v44  ;;  %v914_v44 = vrot.slane %v781_v23, 2  ;;  %v1572_v23 = vld [vmem:[%s3300_s3 + $0x20] sm:$0xff] }
  0xe1   : > { %760 = vst.msk [vmem:[#allocation2 + $0x10] sm:$0xff] %vm757_vm10, %v738_v45  ;;  %745 = vrot.lane.b32.xlu1 %v2616_v3, %s2248_s28  ;;  %711 = vrot.lane.b32.xlu0 %v696_v41, %s2247_s19  ;;  %s3316_s19 = smov 64  }
  0xe3   : > { %v474_v47 = vpop.permute.xlu1 %473  ;;  %v951_v48 = vpop.permute.xlu0 %950 }
  0xe4   : > { %492 = vst.msk [vmem:[#allocation2 + $0x30] sm:$0xff] %vm485_vm3, %v474_v47  ;;  %v2845_v47 = vsel %vm494_vm1, %v913_v43, %v914_v44  ;;  %v1579_v43 = vld [vmem:[%s3300_s3 + $0x58] sm:$0xff] }
  0xe5   : > { %975 = vst.msk [vmem:[#allocation2] sm:$0xff] %vm974_vm14, %v951_v48  ;;  %958 = vrot.lane.b32.xlu1 %v2630_v9, %s3315_s17  ;;  %926 = vrot.lane.b32.xlu0 %v2709_v46, %s2251_s30 }
  0xe7   : > { %v635_v54 = vpop.permute.xlu1 %634  ;;  %v601_v55 = vpop.permute.xlu0 %600 }
  0xe8   : > { %655 = vst.msk [vmem:[#allocation2 + $0x20] sm:$0xff] %vm650_vm7, %v635_v54  ;;  %v1242_v54 = vrot.slane %v1170_v50, 1 }
  0xe9   : > { %620 = vst.msk [vmem:[#allocation2 + $0x28] sm:$0xff] %vm614_vm6, %v601_v55  ;;  %1098 = vrot.lane.b32.xlu1 %v2627_v8, %s3316_s19  ;;  %1063 = vrot.lane.b32.xlu0 %v2630_v9, %s2255_s13  ;;  %v779_v8 = vld [vmem:[%s2424_s10 + $0x68] sm:$0x3]  ;;  %v2760_v9 = vsel %vm494_vm1, %v1292_v4, %v1293_v5 }
  0xea   : > { %v854_v11 = vrot.slane %v779_v8, 1 }
  0xeb   : > { %v799_v60 = vpop.permute.xlu1 %798  ;;  %v740_v61 = vpop.permute.xlu0 %739 }
  0xec   : > { %821 = vst.msk [vmem:[#allocation2 + $0x10] sm:$0xff] %vm818_vm11, %v799_v60  ;;  %v2770_v14 = vsel %vm436_vm2, %v853_v10, %v854_v11  ;;  %v1568_v10 = vld [vmem:[%s3300_s3] sm:$0xff]  ;;  %v1569_v11 = vld [vmem:[%s3300_s3 + $0x8] sm:$0xff] }
  0xed   : > { %761 = vst.msk [vmem:[#allocation2 + $0x18] sm:$0xff] %vm757_vm10, %v740_v61  ;;  %1313 = vrot.lane.b32.xlu1 %v1291_v57, %s3310_s9  ;;  %1258 = vrot.lane.b32.xlu0 %v2729_v58, %s2259_s11  ;;  %v2863_v57 = vsel %vm494_vm1, %v1295_v51, %v1296_v52  ;;  %v1581_v51 = vld [vmem:[%s3300_s3 + $0x68] sm:$0xf] }
  0xef   : > { %v988_v0 = vpop.permute.xlu1 %987  ;;  %v953_v1 = vpop.permute.xlu0 %952 }
  0xf0   : > { %1012 = vst.msk [vmem:[#allocation2] sm:$0xff] %vm1011_vm15, %v988_v0 }
  0xf1   : > { %976 = vst.msk [vmem:[#allocation2 + $0x8] sm:$0xff] %vm974_vm14, %v953_v1  ;;  %806 = vrot.lane.b32.xlu1 %v2737_v62, %s2249_s18  ;;  %747 = vrot.lane.b32.xlu0 %v732_v63, %s2248_s28  ;;  %s2261_s28 = smov 84   ;;  %v2881_v63 = vld [vmem:[%s2424_s10 + $0x80] sm:$0xff] }
  0xf2   : > { %v1020_v37 = vrot.slane %v2881_v63, 2 }
  0xf3   : > { %v532_v2 = vpop.permute.xlu1 %531  ;;  %v476_v3 = vpop.permute.xlu0 %475 }
  0xf4   : > { %550 = vst.msk [vmem:[#allocation2 + $0x30] sm:$0xff] %vm543_vm4, %v532_v2  ;;  %v1298_v2 = vrot.slane %v2829_v40, 2 }
  0xf5   : > { %493 = vst.msk [vmem:[#allocation2 + $0x38] sm:$0xff] %vm485_vm3, %v476_v3  ;;  %995 = vrot.lane.b32.xlu1 %v2674_v27, %s2253_s8  ;;  %960 = vrot.lane.b32.xlu0 %v2737_v62, %s3315_s17  ;;  %vm3314_vm3 = vcmask 490944   ;;  %v1299_v3 = vrot.slane %v1170_v50, 2  ;;  %v1580_v50 = vld [vmem:[%s3300_s3 + $0x60] sm:$0xff] }
  0xf7   : > { %v669_v6 = vpop.permute.xlu1 %668  ;;  %v637_v7 = vpop.permute.xlu0 %636 }
  0xf8   : > { %689 = vst.msk [vmem:[#allocation2 + $0x20] sm:$0xff] %vm684_vm8, %v669_v6  ;;  %v2897_v6 = vsel %vm494_vm1, %v1298_v2, %v1299_v3 }
  0xf9   : > { %656 = vst.msk [vmem:[#allocation2 + $0x28] sm:$0xff] %vm650_vm7, %v637_v7  ;;  %1134 = vrot.lane.b32.xlu1 %v2671_v26, %s2257_s15  ;;  %1100 = vrot.lane.b32.xlu0 %v2674_v27, %s3316_s19  ;;  %v911_v26 = vrot.slane %v779_v8, 2  ;;  %v856_v27 = vrot.slane %v2773_v15, 1 }
  0xfb   : > { %v864_v12 = vpop.permute.xlu1 %863  ;;  %v801_v13 = vpop.permute.xlu0 %800  ;;  %v2806_v31 = vsel %vm494_vm1, %v910_v25, %v911_v26  ;;  %v2809_v32 = vsel %vm436_vm2, %v856_v27, %v857_v28  ;;  %v1573_v25 = vld [vmem:[%s3300_s3 + $0x28] sm:$0xff]  ;;  %v2944_v26 = vld [vmem:[%s2641_s7 + $0x40] sm:$0xff] }
  0xfc   : > { %886 = vst.msk [vmem:[#allocation2 + $0x10] sm:$0xff] %vm883_vm12, %v864_v12  ;;  %v984_v12 = vrot.slane %v2881_v63, 1  ;;  %v2089_v27 = vpack.c.bf16 %v1573_v25, %v1572_v23  ;;  %v1301_v2 = vrot.slane %v2944_v26, 2 }
  0xfd   : > { %822 = vst.msk [vmem:[#allocation2 + $0x18] sm:$0xff] %vm818_vm11, %v801_v13  ;;  %1347 = vrot.lane.b32.xlu1 %v2694_v24, %s2261_s28  ;;  %1315 = vrot.lane.b32.xlu0 %v2760_v9, %s3310_s9 }
  0xff   : > { %v1024_v16 = vpop.permute.xlu1 %1023  ;;  %v990_v17 = vpop.permute.xlu0 %989 }
 0x100   : > { %1048 = vst.msk [vmem:[#allocation2] sm:$0xff] %vm3314_vm3, %v1024_v16 }
 0x101   : > { %1013 = vst.msk [vmem:[#allocation2 + $0x8] sm:$0xff] %vm1011_vm15, %v990_v17  ;;  %871 = vrot.lane.b32.xlu1 %v2770_v14, %s2250_s20  ;;  %808 = vrot.lane.b32.xlu0 %v2773_v15, %s2249_s18  ;;  %s2262_s18 = smov 88   ;;  %v1570_v17 = vld [vmem:[%s3300_s3 + $0x10] sm:$0xff] }
 0x103   : > { %v566_v18 = vpop.permute.xlu1 %565  ;;  %v534_v20 = vpop.permute.xlu0 %533 }
 0x104   : > { %584 = vst.msk [vmem:[#allocation2 + $0x30] sm:$0xff] %vm577_vm5, %v566_v18  ;;  %v1571_v18 = vld [vmem:[%s3300_s3 + $0x18] sm:$0xff] }
 0x105   : > { %551 = vst.msk [vmem:[#allocation2 + $0x38] sm:$0xff] %vm543_vm4, %v534_v20  ;;  %1031 = vrot.lane.b32.xlu1 %v2709_v46, %s2254_s14  ;;  %997 = vrot.lane.b32.xlu0 %v2770_v14, %s2253_s8  ;;  %vm1081_vm4 = vcmask 523744  }
 0x107   : > { %v706_v22 = vpop.permute.xlu1 %705  ;;  %v671_v19 = vpop.permute.xlu0 %670 }
 0x108   : > { %726 = vst.msk [vmem:[#allocation2 + $0x20] sm:$0xff] %vm721_vm9, %v706_v22 }
 0x109   : > { %690 = vst.msk [vmem:[#allocation2 + $0x28] sm:$0xff] %vm684_vm8, %v671_v19  ;;  %1195 = vrot.lane.b32.xlu1 %v2788_v21, %s2258_s12  ;;  %1136 = vrot.lane.b32.xlu0 %v2709_v46, %s2257_s15 }
 0x10b   : > { %v921_v29 = vpop.permute.xlu1 %920  ;;  %v866_v30 = vpop.permute.xlu0 %865 }
 0x10c   : > { %943 = vst.msk [vmem:[#allocation2 + $0x10] sm:$0xff] %vm940_vm13, %v921_v29 }
 0x10d   : > { %887 = vst.msk [vmem:[#allocation2 + $0x18] sm:$0xff] %vm883_vm12, %v866_v30  ;;  %1384 = vrot.lane.b32.xlu1 %v2729_v58, %s2262_s18  ;;  %1349 = vrot.lane.b32.xlu0 %v2788_v21, %s2261_s28  ;;  %v2866_v58 = vsel %vm436_vm2, %v1241_v53, %v1242_v54  ;;  %v1574_v30 = vld [vmem:[%s3300_s3 + $0x30] sm:$0xff]  ;;  %v2105_v54 = vpack.c.bf16 %v1581_v51, %v1580_v50 }
 0x10e   : > { %v3008_v53 = vld [vmem:[%s2641_s7 + $0x50] sm:$0xff] }
 0x10f   : > { %v1058_v33 = vpop.permute.xlu1 %1057  ;;  %v1026_v34 = vpop.permute.xlu0 %1025 }
 0x110   : > { %1082 = vst.msk [vmem:[#allocation2] sm:$0xff] %vm1081_vm4, %v1058_v33 }
 0x111   : > { %1049 = vst.msk [vmem:[#allocation2 + $0x8] sm:$0xff] %vm3314_vm3, %v1026_v34  ;;  %928 = vrot.lane.b32.xlu1 %v2806_v31, %s2251_s30  ;;  %873 = vrot.lane.b32.xlu0 %v2809_v32, %s2250_s20  ;;  %s3308_s20 = smov 92  }
 0x113   : > { %v603_v24 = vpop.permute.xlu1 %602  ;;  %v568_v38 = vpop.permute.xlu0 %567 }
 0x114   : > { %621 = vst.msk [vmem:[#allocation2 + $0x30] sm:$0xff] %vm614_vm6, %v603_v24 }
 0x115   : > { %585 = vst.msk [vmem:[#allocation2 + $0x38] sm:$0xff] %vm577_vm5, %v568_v38  ;;  %1065 = vrot.lane.b32.xlu1 %v2737_v62, %s2255_s13  ;;  %1033 = vrot.lane.b32.xlu0 %v2806_v31, %s2254_s14  ;;  %vm1118_vm5 = vcmask 556544   ;;  %v2097_v38 = vpack.c.bf16 %v1577_v36, %v1576_v35 }
 0x117   : > { %v742_v41 = vpop.permute.xlu1 %741  ;;  %v708_v42 = vpop.permute.xlu0 %707 }
 0x118   : > { %762 = vst.msk [vmem:[#allocation2 + $0x20] sm:$0xff] %vm757_vm10, %v742_v41  ;;  %v2973_v41 = vld [vmem:[%s2641_s7 + $0x48] sm:$0x3] }
 0x119   : > { %727 = vst.msk [vmem:[#allocation2 + $0x28] sm:$0xff] %vm721_vm9, %v708_v42  ;;  %1260 = vrot.lane.b32.xlu1 %v2826_v39, %s2259_s11  ;;  %1197 = vrot.lane.b32.xlu0 %v2829_v40, %s2258_s12  ;;  %v1578_v42 = vld [vmem:[%s3300_s3 + $0x50] sm:$0xff]  ;;  %v1302_v3 = vrot.slane %v2973_v41, 2 }
 0x11b   : > { %v955_v45 = vpop.permute.xlu1 %954  ;;  %v923_v46 = vpop.permute.xlu0 %922 }
 0x11c   : > { %977 = vst.msk [vmem:[#allocation2 + $0x10] sm:$0xff] %vm974_vm14, %v955_v45  ;;  %v1244_v45 = vrot.slane %v2944_v26, 1 }
 0x11d   : > { %944 = vst.msk [vmem:[#allocation2 + $0x18] sm:$0xff] %vm940_vm13, %v923_v46  ;;  %1420 = vrot.lane.b32.xlu1 %v2760_v9, %s3308_s20  ;;  %1386 = vrot.lane.b32.xlu0 %v2826_v39, %s2262_s18  ;;  %v2900_v9 = vld [vmem:[%s2424_s10 + $0x88] sm:$0x3]  ;;  %v1245_v46 = vrot.slane %v2973_v41, 1  ;;  %v1178_v41 = vld [vmem:[%s2641_s7 + $0x78] sm:$0x3] }
 0x11e   : > { %v985_v13 = vrot.slane %v2900_v9, 1  ;;  %v1021_v24 = vrot.slane %v2900_v9, 2 }
 0x11f   : > { %v1095_v48 = vpop.permute.xlu1 %1094  ;;  %v1060_v49 = vpop.permute.xlu0 %1059  ;;  %v3005_v52 = vsel %vm436_vm2, %v1244_v45, %v1245_v46 }
 0x120   : > { %1119 = vst.msk [vmem:[#allocation2] sm:$0xff] %vm1118_vm5, %v1095_v48  ;;  %v2929_v20 = vsel %vm436_vm2, %v984_v12, %v985_v13  ;;  %v2988_v44 = vsel %vm494_vm1, %v1020_v37, %v1021_v24  ;;  %v1304_v13 = vrot.slane %v3008_v53, 2 }
 0x121   : > { %1083 = vst.msk [vmem:[#allocation2 + $0x8] sm:$0xff] %vm1081_vm4, %v1060_v49  ;;  %962 = vrot.lane.b32.xlu1 %v2773_v15, %s3315_s17  ;;  %930 = vrot.lane.b32.xlu0 %v2845_v47, %s2251_s30  ;;  %s2264_s30 = smov 96  }
 0x123   : > { %v639_v55 = vpop.permute.xlu1 %638  ;;  %v605_v56 = vpop.permute.xlu0 %604 }
 0x124   : > { %657 = vst.msk [vmem:[#allocation2 + $0x30] sm:$0xff] %vm650_vm7, %v639_v55 }
 0x125   : > { %622 = vst.msk [vmem:[#allocation2 + $0x38] sm:$0xff] %vm614_vm6, %v605_v56  ;;  %1102 = vrot.lane.b32.xlu1 %v2770_v14, %s3316_s19  ;;  %1067 = vrot.lane.b32.xlu0 %v2773_v15, %s2255_s13  ;;  %vm1154_vm6 = vcmask 589344   ;;  %v2081_v14 = vpack.c.bf16 %v1569_v11, %v1568_v10 }
 0x127   : > { %v803_v59 = vpop.permute.xlu1 %802  ;;  %v744_v60 = vpop.permute.xlu0 %743  ;;  %2082 = vmatprep.subr.bf16.mxu0 %v2081_v14  ;;  %2111 = vmatprep.subr.bf16.mxu1 %v2081_v14 }
 0x128   : > { %823 = vst.msk [vmem:[#allocation2 + $0x20] sm:$0xff] %vm818_vm11, %v803_v59  ;;  %2084 = vmatpush3.bf16.msra.mxu0 %v2081_v14  ;;  %2118 = vmatpush3.bf16.msra.mxu1 %v2081_v14  ;;  %v1174_v59 = vld [vmem:[%s2641_s7 + $0x58] sm:$0x3] }
 0x129   : > { %763 = vst.msk [vmem:[#allocation2 + $0x28] sm:$0xff] %vm757_vm10, %v744_v60  ;;  %1317 = vrot.lane.b32.xlu1 %v2863_v57, %s3310_s9  ;;  %1262 = vrot.lane.b32.xlu0 %v2866_v58, %s2259_s11  ;;  %v784_v60 = vld [vmem:[%s2424_s10 + $0x90] sm:$0xff]  ;;  %v1305_v14 = vrot.slane %v1174_v59, 2 }
 0x12b   : > { %v992_v61 = vpop.permute.xlu1 %991  ;;  %v957_v62 = vpop.permute.xlu0 %956 }
 0x12c   : > { %1014 = vst.msk [vmem:[#allocation2 + $0x10] sm:$0xff] %vm1011_vm15, %v992_v61  ;;  %v1247_v61 = vrot.slane %v3008_v53, 1 }
 0x12d   : > { %978 = vst.msk [vmem:[#allocation2 + $0x18] sm:$0xff] %vm974_vm14, %v957_v62  ;;  %1454 = vrot.lane.b32.xlu1 %v2788_v21, %s2264_s30  ;;  %1422 = vrot.lane.b32.xlu0 %v2863_v57, %s3308_s20  ;;  %v2085_v21 = vpack.c.bf16 %v1571_v18, %v1570_v17  ;;  %v1248_v62 = vrot.slane %v1174_v59, 1  ;;  %v3055_v17 = vsel %vm494_vm1, %v1304_v13, %v1305_v14  ;;  %v1181_v13 = vld [vmem:[%s2641_s7 + $0x90] sm:$0xff]  ;;  %v1182_v14 = vld [vmem:[%s2641_s7 + $0x98] sm:$0x3] }
 0x12f   : > { %v1131_v0 = vpop.permute.xlu1 %1130  ;;  %v1097_v1 = vpop.permute.xlu0 %1096  ;;  %2086 = vmatprep.subr.bf16.mxu0 %v2085_v21  ;;  %2112 = vmatprep.subr.bf16.mxu1 %v2085_v21 }
 0x130   : > { %1155 = vst.msk [vmem:[#allocation2] sm:$0xff] %vm1154_vm6, %v1131_v0  ;;  %2088 = vmatpush3.bf16.msra.mxu0 %v2085_v21  ;;  %2119 = vmatpush3.bf16.msra.mxu1 %v2085_v21  ;;  %v1127_v21 = vrot.slane %v784_v60, 2 }
 0x131   : > { %1120 = vst.msk [vmem:[#allocation2 + $0x8] sm:$0xff] %vm1118_vm5, %v1097_v1  ;;  %999 = vrot.lane.b32.xlu1 %v2809_v32, %s2253_s8  ;;  %964 = vrot.lane.b32.xlu0 %v2881_v63, %s3315_s17  ;;  %v3031_v1 = vsel %vm436_vm2, %v1247_v61, %v1248_v62  ;;  %v1179_v61 = vld [vmem:[%s2641_s7 + $0x80] sm:$0xff]  ;;  %s2004_s17 = sshll.u32 %s3348_s22, 3 }
 0x132   : > { %2090 = vmatprep.subr.bf16.mxu0 %v2089_v27  ;;  %2113 = vmatprep.subr.bf16.mxu1 %v2089_v27 }
 0x133   : > { %v673_v4 = vpop.permute.xlu1 %672  ;;  %v641_v5 = vpop.permute.xlu0 %640 }
 0x134   : > { %691 = vst.msk [vmem:[#allocation2 + $0x30] sm:$0xff] %vm684_vm8, %v673_v4  ;;  %2092 = vmatpush3.bf16.msra.mxu0 %v2089_v27  ;;  %2120 = vmatpush3.bf16.msra.mxu1 %v2089_v27 }
 0x135   : > { %658 = vst.msk [vmem:[#allocation2 + $0x38] sm:$0xff] %vm650_vm7, %v641_v5  ;;  %1138 = vrot.lane.b32.xlu1 %v2806_v31, %s2257_s15  ;;  %1104 = vrot.lane.b32.xlu0 %v2809_v32, %s3316_s19  ;;  %vm3313_vm7 = vcmask 622144   ;;  %v1575_v31 = vld [vmem:[%s3300_s3 + $0x38] sm:$0xff] }
 0x136   : > { %v2093_v32 = vpack.c.bf16 %v1575_v31, %v1574_v30 }
 0x137   : > { %v868_v7 = vpop.permute.xlu1 %867  ;;  %v805_v8 = vpop.permute.xlu0 %804 }
 0x138   : > { %888 = vst.msk [vmem:[#allocation2 + $0x20] sm:$0xff] %vm883_vm12, %v868_v7  ;;  %2094 = vmatprep.subr.bf16.mxu0 %v2093_v32  ;;  %2114 = vmatprep.subr.bf16.mxu1 %v2093_v32  ;;  %v785_v7 = vld [vmem:[%s2424_s10 + $0x98] sm:$0x3]  ;;  %s3318_s10 = smov 80  }
 0x139   : > { %824 = vst.msk [vmem:[#allocation2 + $0x28] sm:$0xff] %vm818_vm11, %v805_v8  ;;  %1351 = vrot.lane.b32.xlu1 %v2829_v40, %s2261_s28  ;;  %1319 = vrot.lane.b32.xlu0 %v2897_v6, %s3310_s9  ;;  %s2265_s9 = smov 100   ;;  %v1303_v8 = vsel %vm494_vm1, %v1301_v2, %v1302_v3  ;;  %v1092_v9 = vrot.slane %v785_v7, 1 }
 0x13a   : > { %2096 = vmatpush3.bf16.msra.mxu0 %v2093_v32  ;;  %2121 = vmatpush3.bf16.msra.mxu1 %v2093_v32 }
 0x13b   : > { %v1028_v15 = vpop.permute.xlu1 %1027  ;;  %v994_v16 = vpop.permute.xlu0 %993  ;;  %2098 = vmatprep.subr.bf16.mxu0 %v2097_v38  ;;  %2115 = vmatprep.subr.bf16.mxu1 %v2097_v38 }
 0x13c   : > { %1050 = vst.msk [vmem:[#allocation2 + $0x10] sm:$0xff] %vm3314_vm3, %v1028_v15 }
 0x13d   : > { %1015 = vst.msk [vmem:[#allocation2 + $0x18] sm:$0xff] %vm1011_vm15, %v994_v16  ;;  %1491 = vrot.lane.b32.xlu1 %v2826_v39, %s2265_s9  ;;  %1456 = vrot.lane.b32.xlu0 %v2829_v40, %s2264_s30 }
 0x13e   : > { %2100 = vmatpush3.bf16.msra.mxu0 %v2097_v38  ;;  %2122 = vmatpush3.bf16.msra.mxu1 %v2097_v38 }
 0x13f   : > { %v1192_v22 = vpop.permute.xlu1 %1191  ;;  %v1133_v19 = vpop.permute.xlu0 %1132 }
 0x140   : > { %1216 = vst.msk [vmem:[#allocation2] sm:$0xff] %vm3313_vm7, %v1192_v22  ;;  %v1128_v22 = vrot.slane %v785_v7, 2 }
 0x141   : > { %1156 = vst.msk [vmem:[#allocation2 + $0x8] sm:$0xff] %vm1154_vm6, %v1133_v19  ;;  %1035 = vrot.lane.b32.xlu1 %v2845_v47, %s2254_s14  ;;  %1001 = vrot.lane.b32.xlu0 %v2929_v20, %s2253_s8  ;;  %s388_s8 = sadd.s32 %s2004_s17, %s3354_s21 }
 0x142   : > { %v1129_v25 = vsel %vm494_vm1, %v1127_v21, %v1128_v22  ;;  %v1525_v22 = vrot.slane %v1182_v14, 2  ;;  %s2005_s20 = sshll.u32 %s388_s8, 1 }
 0x143   : > { %v710_v28 = vpop.permute.xlu1 %709  ;;  %v675_v29 = vpop.permute.xlu0 %674 }
 0x144   : > { %728 = vst.msk [vmem:[#allocation2 + $0x30] sm:$0xff] %vm721_vm9, %v710_v28  ;;  %v1175_v28 = vld [vmem:[%s2641_s7 + $0x60] sm:$0xff] }
 0x145   : > { %692 = vst.msk [vmem:[#allocation2 + $0x38] sm:$0xff] %vm684_vm8, %v675_v29  ;;  %1199 = vrot.lane.b32.xlu1 %v2944_v26, %s2258_s12  ;;  %1140 = vrot.lane.b32.xlu0 %v2845_v47, %s2257_s15  ;;  %vm1280_vm8 = vcmask 654944   ;;  %v2101_v47 = vpack.c.bf16 %v1579_v43, %v1578_v42  ;;  %v1250_v35 = vrot.slane %v1175_v28, 1  ;;  %v1254_v43 = vrot.slane %v1178_v41, 1 }
 0x147   : > { %v925_v33 = vpop.permute.xlu1 %924  ;;  %v870_v34 = vpop.permute.xlu0 %869  ;;  %2102 = vmatprep.subr.bf16.mxu0 %v2101_v47  ;;  %2116 = vmatprep.subr.bf16.mxu1 %v2101_v47 }
 0x148   : > { %945 = vst.msk [vmem:[#allocation2 + $0x20] sm:$0xff] %vm940_vm13, %v925_v33  ;;  %2104 = vmatpush3.bf16.msra.mxu0 %v2101_v47  ;;  %2123 = vmatpush3.bf16.msra.mxu1 %v2101_v47  ;;  %v1176_v33 = vld [vmem:[%s2641_s7 + $0x68] sm:$0x3] }
 0x149   : > { %889 = vst.msk [vmem:[#allocation2 + $0x28] sm:$0xff] %vm883_vm12, %v870_v34  ;;  %1388 = vrot.lane.b32.xlu1 %v2866_v58, %s2262_s18  ;;  %1353 = vrot.lane.b32.xlu0 %v2944_v26, %s2261_s28  ;;  %v1177_v34 = vld [vmem:[%s2641_s7 + $0x70] sm:$0xff]  ;;  %v1251_v36 = vrot.slane %v1176_v33, 1  ;;  %v1308_v45 = vrot.slane %v1176_v33, 2 }
 0x14a   : > { %v1253_v42 = vrot.slane %v1177_v34, 1 }
 0x14b   : > { %v1062_v39 = vpop.permute.xlu1 %1061  ;;  %v1030_v40 = vpop.permute.xlu0 %1029  ;;  %v1252_v38 = vsel %vm436_vm2, %v1250_v35, %v1251_v36 }
 0x14c   : > { %1084 = vst.msk [vmem:[#allocation2 + $0x10] sm:$0xff] %vm1081_vm4, %v1062_v39 }
 0x14d   : > { %1051 = vst.msk [vmem:[#allocation2 + $0x18] sm:$0xff] %vm3314_vm3, %v1030_v40  ;;  %1527 = vrot.lane.b32.xlu1 %v2863_v57, %s2266_s16  ;;  %1493 = vrot.lane.b32.xlu0 %v2866_v58, %s2265_s9 }
 0x14f   : > { %v1257_v48 = vpop.permute.xlu1 %1256  ;;  %v1194_v49 = vpop.permute.xlu0 %1193 }
 0x150   : > { %1281 = vst.msk [vmem:[#allocation2] sm:$0xff] %vm1280_vm8, %v1257_v48  ;;  %v1255_v48 = vsel %vm436_vm2, %v1253_v42, %v1254_v43 }
 0x151   : > { %1217 = vst.msk [vmem:[#allocation2 + $0x8] sm:$0xff] %vm3313_vm7, %v1194_v49  ;;  %1069 = vrot.lane.b32.xlu1 %v2881_v63, %s2255_s13  ;;  %1037 = vrot.lane.b32.xlu0 %v2988_v44, %s2254_s14  ;;  %vm2267_vm7 = vmmov 1   ;;  %s3317_s14 = smov 92  }
 0x152   : > { %vm2106_vm3 = vmpackc.low %vm1614_vm0, %vm2267_vm7  ;;  %vm1337_vm0 = vcmask 687744  }
 0x153   : > { %v746_v55 = vpop.permute.xlu1 %745  ;;  %v712_v56 = vpop.permute.xlu0 %711  ;;  %2107 = vmatprep.subr.msk.bf16.mxu0 %vm2106_vm3, %v2105_v54  ;;  %2117 = vmatprep.subr.msk.bf16.mxu1 %vm2106_vm3, %v2105_v54 }
 0x154   : > { %764 = vst.msk [vmem:[#allocation2 + $0x30] sm:$0xff] %vm757_vm10, %v746_v55  ;;  %2110 = vmatpush3.bf16.msk.msra.mxu0 %vm2106_vm3, %v2105_v54  ;;  %2124 = vmatpush3.bf16.msk.msra.mxu1 %vm2106_vm3, %v2105_v54  ;;  %vm1408_vm3 = vcmask 753344  }
 0x155   : > { %729 = vst.msk [vmem:[#allocation2 + $0x38] sm:$0xff] %vm721_vm9, %v712_v56  ;;  %1264 = vrot.lane.b32.xlu1 %v3005_v52, %s2259_s11  ;;  %1201 = vrot.lane.b32.xlu0 %v3008_v53, %s2258_s12  ;;  %vm1371_vm9 = vcmask 720544  }
 0x157   : > { %v959_v57 = vpop.permute.xlu1 %958  ;;  %v927_v58 = vpop.permute.xlu0 %926 }
 0x158   : > { %979 = vst.msk [vmem:[#allocation2 + $0x20] sm:$0xff] %vm974_vm14, %v959_v57 }
 0x159   : > { %946 = vst.msk [vmem:[#allocation2 + $0x28] sm:$0xff] %vm940_vm13, %v927_v58  ;;  %1424 = vrot.lane.b32.xlu1 %v2897_v6, %s3317_s14  ;;  %1390 = vrot.lane.b32.xlu0 %v3005_v52, %s2262_s18 }
 0x15b   : > { %v1099_v63 = vpop.permute.xlu1 %1098  ;;  %v1064_v0 = vpop.permute.xlu0 %1063 }
 0x15c   : > { %1121 = vst.msk [vmem:[#allocation2 + $0x10] sm:$0xff] %vm1118_vm5, %v1099_v63 }
 0x15d   : > { %1085 = vst.msk [vmem:[#allocation2 + $0x18] sm:$0xff] %vm1081_vm4, %v1064_v0  ;;  %1071 = vrot.lane.b32.xlu1 %v784_v60, %s2255_s13  ;;  %1529 = vrot.lane.b32.xlu0 %v2897_v6, %s2266_s16  ;;  %v1091_v6 = vrot.slane %v784_v60, 1  ;;  %v1180_v0 = vld [vmem:[%s2641_s7 + $0x88] sm:$0x3]  ;;  %s2001_s13 = sshll.u32 %s3354_s21, 3 }
 0x15e   : > { %v1382_v2 = vrot.slane %v1180_v0, 1 }
 0x15f   : > { %v1314_v4 = vpop.permute.xlu1 %1313  ;;  %v1259_v5 = vpop.permute.xlu0 %1258  ;;  %v1093_v12 = vsel %vm436_vm2, %v1091_v6, %v1092_v9  ;;  %v1418_v6 = vrot.slane %v1180_v0, 2 }
 0x160   : > { %1338 = vst.msk [vmem:[#allocation2] sm:$0xff] %vm1337_vm0, %v1314_v4 }
 0x161   : > { %1282 = vst.msk [vmem:[#allocation2 + $0x8] sm:$0xff] %vm1280_vm8, %v1259_v5  ;;  %1266 = vrot.lane.b32.xlu1 %v3031_v1, %s2259_s11  ;;  %1106 = vrot.lane.b32.xlu0 %v2929_v20, %s3316_s19  ;;  %v1417_v5 = vrot.slane %v1179_v61, 2 }
 0x163   : > { %v807_v10 = vpop.permute.xlu1 %806  ;;  %v748_v11 = vpop.permute.xlu0 %747 }
 0x164   : > { %825 = vst.msk [vmem:[#allocation2 + $0x30] sm:$0xff] %vm818_vm11, %v807_v10  ;;  %v1419_v10 = vsel %vm494_vm1, %v1417_v5, %v1418_v6 }
 0x165   : > { %765 = vst.msk [vmem:[#allocation2 + $0x38] sm:$0xff] %vm757_vm10, %v748_v11  ;;  %1426 = vrot.lane.b32.xlu1 %v1303_v8, %s3317_s14  ;;  %1321 = vrot.lane.b32.xlu0 %v1303_v8, %s3318_s10  ;;  %vm3319_vm10 = vcmask 490944  }
 0x166   : > { %vm3321_vm7 = vmmov %vm3319_vm10 }
 0x167   : > { %v996_v15 = vpop.permute.xlu1 %995  ;;  %v961_v16 = vpop.permute.xlu0 %960 }
 0x168   : > { %1016 = vst.msk [vmem:[#allocation2 + $0x20] sm:$0xff] %vm1011_vm15, %v996_v15  ;;  %v1488_v15 = vrot.slane %v1181_v13, 1 }
 0x169   : > { %980 = vst.msk [vmem:[#allocation2 + $0x28] sm:$0xff] %vm974_vm14, %v961_v16  ;;  %1108 = vrot.lane.b32.xlu1 %v1093_v12, %s3316_s19  ;;  %1458 = vrot.lane.b32.xlu0 %v2944_v26, %s2264_s30  ;;  %v1489_v16 = vrot.slane %v1182_v14, 1 }
 0x16b   : > { %v1135_v18 = vpop.permute.xlu1 %1134  ;;  %v1101_v20 = vpop.permute.xlu0 %1100  ;;  %v1490_v21 = vsel %vm436_vm2, %v1488_v15, %v1489_v16 }
 0x16c   : > { %1157 = vst.msk [vmem:[#allocation2 + $0x10] sm:$0xff] %vm1154_vm6, %v1135_v18 }
 0x16d   : > { %1122 = vst.msk [vmem:[#allocation2 + $0x18] sm:$0xff] %vm1118_vm5, %v1101_v20  ;;  %1323 = vrot.lane.b32.xlu1 %v3055_v17, %s3318_s10  ;;  %1142 = vrot.lane.b32.xlu0 %v2988_v44, %s2257_s15  ;;  %v1307_v44 = vrot.slane %v1175_v28, 2  ;;  %v1524_v20 = vrot.slane %v1181_v13, 2 }
 0x16f   : > { %v1348_v19 = vpop.permute.xlu1 %1347  ;;  %v1316_v23 = vpop.permute.xlu0 %1315  ;;  %v1309_v49 = vsel %vm494_vm1, %v1307_v44, %v1308_v45 }
 0x170   : > { %1372 = vst.msk [vmem:[#allocation2] sm:$0xff] %vm1371_vm9, %v1348_v19 }
 0x171   : > { %1339 = vst.msk [vmem:[#allocation2 + $0x8] sm:$0xff] %vm1337_vm0, %v1316_v23  ;;  %1460 = vrot.lane.b32.xlu1 %v3008_v53, %s2264_s30  ;;  %1355 = vrot.lane.b32.xlu0 %v3008_v53, %s2261_s28  ;;  %v1311_v53 = vrot.slane %v1178_v41, 2 }
 0x173   : > { %v872_v26 = vpop.permute.xlu1 %871  ;;  %v809_v27 = vpop.permute.xlu0 %808 }
 0x174   : > { %890 = vst.msk [vmem:[#allocation2 + $0x30] sm:$0xff] %vm883_vm12, %v872_v26 }
 0x175   : > { %826 = vst.msk [vmem:[#allocation2 + $0x38] sm:$0xff] %vm818_vm11, %v809_v27  ;;  %1144 = vrot.lane.b32.xlu1 %v1129_v25, %s2257_s15  ;;  %1495 = vrot.lane.b32.xlu0 %v3005_v52, %s2265_s9  ;;  %vm3320_vm11 = vcmask 622144   ;;  %v1310_v52 = vrot.slane %v1177_v34, 2  ;;  %v1526_v25 = vsel %vm494_vm1, %v1524_v20, %v1525_v22  ;;  %s2002_s15 = sshll.u32 %s3348_s22, 6 }
 0x176   : > { %s380_s7 = sadd.s32 %s2002_s15, %s2001_s13 }
 0x177   : > { %v1032_v29 = vpop.permute.xlu1 %1031  ;;  %v998_v30 = vpop.permute.xlu0 %997  ;;  %v1312_v56 = vsel %vm494_vm1, %v1310_v52, %v1311_v53  ;;  %vm1551_vm1 = vcmask 884544  }
 0x178   : > { %1052 = vst.msk [vmem:[#allocation2 + $0x20] sm:$0xff] %vm3319_vm10, %v1032_v29  ;;  %vm1444_vm10 = vcmask 786144  }
 0x179   : > { %1017 = vst.msk [vmem:[#allocation2 + $0x28] sm:$0xff] %vm1011_vm15, %v998_v30  ;;  %1357 = vrot.lane.b32.xlu1 %v1175_v28, %s2261_s28  ;;  %1203 = vrot.lane.b32.xlu0 %v1175_v28, %s2258_s12 }
 0x17b   : > { %v1196_v31 = vpop.permute.xlu1 %1195  ;;  %v1137_v32 = vpop.permute.xlu0 %1136 }
 0x17c   : > { %1218 = vst.msk [vmem:[#allocation2 + $0x10] sm:$0xff] %vm3320_vm11, %v1196_v31 }
 0x17d   : > { %1158 = vst.msk [vmem:[#allocation2 + $0x18] sm:$0xff] %vm1154_vm6, %v1137_v32  ;;  %1497 = vrot.lane.b32.xlu1 %v3031_v1, %s2265_s9  ;;  %1392 = vrot.lane.b32.xlu0 %v3031_v1, %s2262_s18  ;;  %v1381_v1 = vrot.slane %v1179_v61, 1 }
 0x17f   : > { %v1385_v37 = vpop.permute.xlu1 %1384  ;;  %v1350_v24 = vpop.permute.xlu0 %1349  ;;  %v1383_v7 = vsel %vm436_vm2, %v1381_v1, %v1382_v2 }
 0x180   : > { %1409 = vst.msk [vmem:[#allocation2] sm:$0xff] %vm1408_vm3, %v1385_v37 }
 0x181   : > { %1373 = vst.msk [vmem:[#allocation2 + $0x8] sm:$0xff] %vm1371_vm9, %v1350_v24  ;;  %1205 = vrot.lane.b32.xlu1 %v1177_v34, %s2258_s12  ;;  %1531 = vrot.lane.b32.xlu0 %v1303_v8, %s2266_s16  ;;  %s2003_s12 = sshll.u32 %s380_s7, 3 }
 0x183   : > { %v929_v39 = vpop.permute.xlu1 %928  ;;  %v874_v40 = vpop.permute.xlu0 %873 }
 0x184   : > { %947 = vst.msk [vmem:[#allocation2 + $0x30] sm:$0xff] %vm940_vm13, %v929_v39 }
 0x185   : > { %891 = vst.msk [vmem:[#allocation2 + $0x38] sm:$0xff] %vm883_vm12, %v874_v40  ;;  %1394 = vrot.lane.b32.xlu1 %v1252_v38, %s2262_s18  ;;  %1268 = vrot.lane.b32.xlu0 %v1252_v38, %s2259_s11  ;;  %vm3322_vm12 = vmmov %vm3320_vm11 }
 0x186   : > { %vm3323_vm11 = vmmov %vm3321_vm7 }
 0x187   : > { %v1066_v46 = vpop.permute.xlu1 %1065  ;;  %v1034_v47 = vpop.permute.xlu0 %1033  ;;  %vm3324_vm2 = vmmov %vm3322_vm12 }
 0x188   : > { %1086 = vst.msk [vmem:[#allocation2 + $0x20] sm:$0xff] %vm1081_vm4, %v1066_v46 }
 0x189   : > { %1053 = vst.msk [vmem:[#allocation2 + $0x28] sm:$0xff] %vm3321_vm7, %v1034_v47  ;;  %1533 = vrot.lane.b32.xlu1 %v3055_v17, %s2266_s16  ;;  %1428 = vrot.lane.b32.xlu0 %v3055_v17, %s3317_s14 }
 0x18b   : > { %v1261_v50 = vpop.permute.xlu1 %1260  ;;  %v1198_v51 = vpop.permute.xlu0 %1197 }
 0x18c   : > { %1283 = vst.msk [vmem:[#allocation2 + $0x10] sm:$0xff] %vm1280_vm8, %v1261_v50 }
 0x18d   : > { %1219 = vst.msk [vmem:[#allocation2 + $0x18] sm:$0xff] %vm3322_vm12, %v1198_v51  ;;  %1270 = vrot.lane.b32.xlu0 %v1255_v48, %s2259_s11  ;;  %1325 = vrot.lane.b32.xlu1 %v1309_v49, %s3318_s10  ;;  %vm3326_vm12 = vmmov %vm3324_vm2 }
 0x18f   : > { %v1421_v54 = vpop.permute.xlu1 %1420  ;;  %v1387_v55 = vpop.permute.xlu0 %1386 }
 0x190   : > { %1445 = vst.msk [vmem:[#allocation2] sm:$0xff] %vm1444_vm10, %v1421_v54 }
 0x191   : > { %1410 = vst.msk [vmem:[#allocation2 + $0x8] sm:$0xff] %vm1408_vm3, %v1387_v55  ;;  %1430 = vrot.lane.b32.xlu0 %v1309_v49, %s3317_s14  ;;  %1462 = vrot.lane.b32.xlu1 %v1175_v28, %s2264_s30 }
 0x193   : > { %v963_v57 = vpop.permute.xlu1 %962  ;;  %v931_v58 = vpop.permute.xlu0 %930 }
 0x194   : > { %981 = vst.msk [vmem:[#allocation2 + $0x30] sm:$0xff] %vm974_vm14, %v963_v57 }
 0x195   : > { %948 = vst.msk [vmem:[#allocation2 + $0x38] sm:$0xff] %vm940_vm13, %v931_v58  ;;  %1327 = vrot.lane.b32.xlu0 %v1312_v56, %s3318_s10  ;;  %1359 = vrot.lane.b32.xlu1 %v1177_v34, %s2261_s28  ;;  %vm1478_vm13 = vcmask 818944   ;;  %s390_s10 = scalar_lea.vmem %s3303_s6, %s2005_s20 }
 0x197   : > { %v1103_v59 = vpop.permute.xlu1 %1102  ;;  %v1068_v60 = vpop.permute.xlu0 %1067 }
 0x198   : > { %1123 = vst.msk [vmem:[#allocation2 + $0x20] sm:$0xff] %vm1118_vm5, %v1103_v59 }
 0x199   : > { %1087 = vst.msk [vmem:[#allocation2 + $0x28] sm:$0xff] %vm1081_vm4, %v1068_v60  ;;  %1464 = vrot.lane.b32.xlu0 %v1177_v34, %s2264_s30  ;;  %1499 = vrot.lane.b32.xlu1 %v1252_v38, %s2265_s9 }
 0x19b   : > { %v1318_v62 = vpop.permute.xlu1 %1317  ;;  %v1263_v63 = vpop.permute.xlu0 %1262 }
 0x19c   : > { %1340 = vst.msk [vmem:[#allocation2 + $0x10] sm:$0xff] %vm1337_vm0, %v1318_v62 }
 0x19d   : > { %1284 = vst.msk [vmem:[#allocation2 + $0x18] sm:$0xff] %vm1280_vm8, %v1263_v63  ;;  %1361 = vrot.lane.b32.xlu0 %v1179_v61, %s2261_s28  ;;  %1396 = vrot.lane.b32.xlu1 %v1255_v48, %s2262_s18 }
 0x19f   : > { %v1455_v3 = vpop.permute.xlu1 %1454  ;;  %v1423_v4 = vpop.permute.xlu0 %1422 }
 0x1a0   : > { %1479 = vst.msk [vmem:[#allocation2] sm:$0xff] %vm1478_vm13, %v1455_v3 }
 0x1a1   : > { %1446 = vst.msk [vmem:[#allocation2 + $0x8] sm:$0xff] %vm1444_vm10, %v1423_v4  ;;  %1501 = vrot.lane.b32.xlu0 %v1255_v48, %s2265_s9  ;;  %1535 = vrot.lane.b32.xlu1 %v1309_v49, %s2266_s16 }
 0x1a3   : > { %v1000_v8 = vpop.permute.xlu1 %999  ;;  %v965_v9 = vpop.permute.xlu0 %964 }
 0x1a4   : > { %1018 = vst.msk [vmem:[#allocation2 + $0x30] sm:$0xff] %vm1011_vm15, %v1000_v8 }
 0x1a5   : > { %982 = vst.msk [vmem:[#allocation2 + $0x38] sm:$0xff] %vm974_vm14, %v965_v9  ;;  %1398 = vrot.lane.b32.xlu0 %v1383_v7, %s2262_s18  ;;  %1432 = vrot.lane.b32.xlu1 %v1312_v56, %s3317_s14  ;;  %vm1515_vm14 = vcmask 851744   ;;  %s3237_s18 = scalar_lea.vmem %s3302_s5, %s2003_s12 }
 0x1a7   : > { %v1139_v11 = vpop.permute.xlu1 %1138  ;;  %v1105_v12 = vpop.permute.xlu0 %1104 }
 0x1a8   : > { %1159 = vst.msk [vmem:[#allocation2 + $0x20] sm:$0xff] %vm1154_vm6, %v1139_v11 }
 0x1a9   : > { %1124 = vst.msk [vmem:[#allocation2 + $0x28] sm:$0xff] %vm1118_vm5, %v1105_v12  ;;  %1537 = vrot.lane.b32.xlu0 %v1312_v56, %s2266_s16  ;;  %1434 = vrot.lane.b32.xlu1 %v1419_v10, %s3317_s14 }
 0x1ab   : > { %v1352_v17 = vpop.permute.xlu1 %1351  ;;  %v1320_v18 = vpop.permute.xlu0 %1319 }
 0x1ac   : > { %1374 = vst.msk [vmem:[#allocation2 + $0x10] sm:$0xff] %vm1371_vm9, %v1352_v17 }
 0x1ad   : > { %1341 = vst.msk [vmem:[#allocation2 + $0x18] sm:$0xff] %vm1337_vm0, %v1320_v18  ;;  %1466 = vrot.lane.b32.xlu0 %v1179_v61, %s2264_s30  ;;  %1468 = vrot.lane.b32.xlu1 %v1181_v13, %s2264_s30 }
 0x1af   : > { %v1492_v19 = vpop.permute.xlu1 %1491  ;;  %v1457_v23 = vpop.permute.xlu0 %1456 }
 0x1b0   : > { %1516 = vst.msk [vmem:[#allocation2] sm:$0xff] %vm1515_vm14, %v1492_v19 }
 0x1b1   : > { %1480 = vst.msk [vmem:[#allocation2 + $0x8] sm:$0xff] %vm1478_vm13, %v1457_v23  ;;  %1503 = vrot.lane.b32.xlu0 %v1383_v7, %s2265_s9  ;;  %1505 = vrot.lane.b32.xlu1 %v1490_v21, %s2265_s9 }
 0x1b3   : > { %v1036_v26 = vpop.permute.xlu1 %1035  ;;  %v1002_v27 = vpop.permute.xlu0 %1001 }
 0x1b4   : > { %1054 = vst.msk [vmem:[#allocation2 + $0x30] sm:$0xff] %vm3323_vm11, %v1036_v26 }
 0x1b5   : > { %1019 = vst.msk [vmem:[#allocation2 + $0x38] sm:$0xff] %vm1011_vm15, %v1002_v27  ;;  %1539 = vrot.lane.b32.xlu0 %v1419_v10, %s2266_s16  ;;  %1541 = vrot.lane.b32.xlu1 %v1526_v25, %s2266_s16  ;;  %vm3325_vm15 = vmmov %vm3321_vm7  ;;  %vm1589_vm7 = vcmask 883712  }
 0x1b7   : > { %v1200_v28 = vpop.permute.xlu1 %1199  ;;  %v1141_v29 = vpop.permute.xlu0 %1140 }
 0x1b8   : > { %1220 = vst.msk [vmem:[#allocation2 + $0x20] sm:$0xff] %vm3324_vm2, %v1200_v28 }
 0x1b9   : > { %1160 = vst.msk [vmem:[#allocation2 + $0x28] sm:$0xff] %vm1154_vm6, %v1141_v29 }
 0x1bb   : > { %v1389_v30 = vpop.permute.xlu1 %1388  ;;  %v1354_v31 = vpop.permute.xlu0 %1353 }
 0x1bc   : > { %1411 = vst.msk [vmem:[#allocation2 + $0x10] sm:$0xff] %vm1408_vm3, %v1389_v30  ;;  %v2006_v30 = vld [vmem:[%s3301_s4] ss:$0 sm:$0xff] }
 0x1bd   : > { %1375 = vst.msk [vmem:[#allocation2 + $0x18] sm:$0xff] %vm1371_vm9, %v1354_v31 }
 0x1bf   : > { %v1528_v32 = vpop.permute.xlu1 %1527  ;;  %v1494_v33 = vpop.permute.xlu0 %1493 }
 0x1c0   : > { %1552 = vst.msk [vmem:[#allocation2] sm:$0xff] %vm1551_vm1, %v1528_v32 }
 0x1c1   : > { %1517 = vst.msk [vmem:[#allocation2 + $0x8] sm:$0xff] %vm1515_vm14, %v1494_v33 }
 0x1c3   : > { %v1070_v34 = vpop.permute.xlu1 %1069  ;;  %v1038_v35 = vpop.permute.xlu0 %1037 }
 0x1c4   : > { %1088 = vst.msk [vmem:[#allocation2 + $0x30] sm:$0xff] %vm1081_vm4, %v1070_v34 }
 0x1c5   : > { %1055 = vst.msk [vmem:[#allocation2 + $0x38] sm:$0xff] %vm3325_vm15, %v1038_v35 }
 0x1c7   : > { %v1265_v36 = vpop.permute.xlu1 %1264  ;;  %v1202_v37 = vpop.permute.xlu0 %1201  ;;  %v1560_v24 = vld [vmem:[#allocation2] sm:$0xff] }
 0x1c8   : > { %1285 = vst.msk [vmem:[#allocation2 + $0x20] sm:$0xff] %vm1280_vm8, %v1265_v36  ;;  %2069 = vmatprep.mubr.msk.f32.mxu0 %vm1589_vm7, %v1560_v24 }
 0x1c9   : > { %1221 = vst.msk [vmem:[#allocation2 + $0x28] sm:$0xff] %vm3326_vm12, %v1202_v37 }
 0x1cb   : > { %v1425_v38 = vpop.permute.xlu1 %1424  ;;  %v1391_v39 = vpop.permute.xlu0 %1390 }
 0x1cc   : > { %1447 = vst.msk [vmem:[#allocation2 + $0x10] sm:$0xff] %vm1444_vm10, %v1425_v38  ;;  %v1731_v38 = vlaneseq }
 0x1cd   : > { %1412 = vst.msk [vmem:[#allocation2 + $0x18] sm:$0xff] %vm1408_vm3, %v1391_v39 }
 0x1ce   : > { %v1732_v39 = vand.u32 127, %v1731_v38 }
 0x1cf   : > { %v1072_v40 = vpop.permute.xlu1 %1071  ;;  %v1530_v41 = vpop.permute.xlu0 %1529 }
 0x1d0   : > { %1089 = vst.msk [vmem:[#allocation2 + $0x38] sm:$0xff] %vm1081_vm4, %v1072_v40  ;;  %vm3327_vm4 = vmmov %vm3324_vm2  ;;  %v2268_v40 = vmov 0.0  }
 0x1d1   : > { %1553 = vst.msk [vmem:[#allocation2 + $0x8] sm:$0xff] %vm1551_vm1, %v1530_v41 }
 0x1d3   : > { %v1267_v42 = vpop.permute.xlu1 %1266  ;;  %v1107_v43 = vpop.permute.xlu0 %1106 }
 0x1d4   : > { %1286 = vst.msk [vmem:[#allocation2 + $0x28] sm:$0xff] %vm1280_vm8, %v1267_v42 }
 0x1d5   : > { %1125 = vst.msk [vmem:[#allocation2 + $0x30] sm:$0xff] %vm1118_vm5, %v1107_v43 }
 0x1d7   : > { %v1427_v44 = vpop.permute.xlu1 %1426  ;;  %v1322_v45 = vpop.permute.xlu0 %1321 }
 0x1d8   : > { %v1561_v46 = vld [vmem:[#allocation2 + $0x8] sm:$0xff]  ;;  %1448 = vst.msk [vmem:[#allocation2 + $0x18] sm:$0xff] %vm1444_vm10, %v1427_v44 }
 0x1d9   : > { %1342 = vst.msk [vmem:[#allocation2 + $0x20] sm:$0xff] %vm1337_vm0, %v1322_v45  ;;  %2070 = vmatmul.mubr.msk.f32.vlgmr.msra.gmra.mrb[0].mxu0 %vm1589_vm7, %v1561_v46 }
 0x1db   : > { %v1109_v47 = vpop.permute.xlu1 %1108  ;;  %v1459_v48 = vpop.permute.xlu0 %1458 }
 0x1dc   : > { %1126 = vst.msk [vmem:[#allocation2 + $0x38] sm:$0xff] %vm1118_vm5, %v1109_v47  ;;  %vm3328_vm5 = vmmov %vm3324_vm2  ;;  %vm1806_vm2 = vcmask 1040384  }
 0x1dd   : > { %1481 = vst.msk [vmem:[#allocation2 + $0x10] sm:$0xff] %vm1478_vm13, %v1459_v48 }
 0x1df   : > { %v1324_v49 = vpop.permute.xlu1 %1323  ;;  %v1143_v50 = vpop.permute.xlu0 %1142 }
 0x1e0   : > { %1343 = vst.msk [vmem:[#allocation2 + $0x28] sm:$0xff] %vm1337_vm0, %v1324_v49 }
 0x1e1   : > { %1161 = vst.msk [vmem:[#allocation2 + $0x30] sm:$0xff] %vm1154_vm6, %v1143_v50 }
 0x1e3   : > { %v1461_v51 = vpop.permute.xlu1 %1460  ;;  %v1356_v52 = vpop.permute.xlu0 %1355 }
 0x1e4   : > { %1482 = vst.msk [vmem:[#allocation2 + $0x18] sm:$0xff] %vm1478_vm13, %v1461_v51 }
 0x1e5   : > { %1376 = vst.msk [vmem:[#allocation2 + $0x20] sm:$0xff] %vm1371_vm9, %v1356_v52 }
 0x1e7   : > { %v1145_v53 = vpop.permute.xlu1 %1144  ;;  %v1496_v54 = vpop.permute.xlu0 %1495 }
 0x1e8   : > { %1162 = vst.msk [vmem:[#allocation2 + $0x38] sm:$0xff] %vm1154_vm6, %v1145_v53  ;;  %vm3329_vm6 = vcmask 31744  }
 0x1e9   : > { %1518 = vst.msk [vmem:[#allocation2 + $0x10] sm:$0xff] %vm1515_vm14, %v1496_v54 }
 0x1eb   : > { %v1358_v55 = vpop.permute.xlu1 %1357  ;;  %v1204_v56 = vpop.permute.xlu0 %1203 }
 0x1ec   : > { %1377 = vst.msk [vmem:[#allocation2 + $0x28] sm:$0xff] %vm1371_vm9, %v1358_v55 }
 0x1ed   : > { %1222 = vst.msk [vmem:[#allocation2 + $0x30] sm:$0xff] %vm3327_vm4, %v1204_v56 }
 0x1ef   : > { %v1498_v57 = vpop.permute.xlu1 %1497  ;;  %v1393_v58 = vpop.permute.xlu0 %1392 }
 0x1f0   : > { %1519 = vst.msk [vmem:[#allocation2 + $0x18] sm:$0xff] %vm1515_vm14, %v1498_v57 }
 0x1f1   : > { %1413 = vst.msk [vmem:[#allocation2 + $0x20] sm:$0xff] %vm1408_vm3, %v1393_v58 }
 0x1f3   : > { %v1206_v59 = vpop.permute.xlu1 %1205  ;;  %v1532_v60 = vpop.permute.xlu0 %1531 }
 0x1f4   : > { %1223 = vst.msk [vmem:[#allocation2 + $0x38] sm:$0xff] %vm3328_vm5, %v1206_v59 }
 0x1f5   : > { %1554 = vst.msk [vmem:[#allocation2 + $0x10] sm:$0xff] %vm1551_vm1, %v1532_v60 }
 0x1f7   : > { %v1395_v61 = vpop.permute.xlu1 %1394  ;;  %v1269_v62 = vpop.permute.xlu0 %1268 }
 0x1f8   : > { %1414 = vst.msk [vmem:[#allocation2 + $0x28] sm:$0xff] %vm1408_vm3, %v1395_v61 }
 0x1f9   : > { %1287 = vst.msk [vmem:[#allocation2 + $0x30] sm:$0xff] %vm1280_vm8, %v1269_v62 }
 0x1fb   : > { %v1534_v63 = vpop.permute.xlu1 %1533  ;;  %v1429_v0 = vpop.permute.xlu0 %1428 }
 0x1fc   : > { %v1562_v1 = vld [vmem:[#allocation2 + $0x10] sm:$0xff]  ;;  %1555 = vst.msk [vmem:[#allocation2 + $0x18] sm:$0xff] %vm1551_vm1, %v1534_v63 }
 0x1fd   : > { %1449 = vst.msk [vmem:[#allocation2 + $0x20] sm:$0xff] %vm1444_vm10, %v1429_v0  ;;  %2072 = vmatprep.mubr.msk.f32.mxu0 %vm1589_vm7, %v1562_v1 }
 0x1ff   : > { %v1271_v2 = vpop.permute.xlu0 %1270  ;;  %v1326_v3 = vpop.permute.xlu1 %1325 }
 0x200   : > { %1288 = vst.msk [vmem:[#allocation2 + $0x38] sm:$0xff] %vm1280_vm8, %v1271_v2  ;;  %vm3330_vm8 = vmmov %vm3329_vm6 }
 0x201   : > { %1344 = vst.msk [vmem:[#allocation2 + $0x30] sm:$0xff] %vm1337_vm0, %v1326_v3 }
 0x203   : > { %v1431_v4 = vpop.permute.xlu0 %1430  ;;  %v1463_v5 = vpop.permute.xlu1 %1462  ;;  %v1563_v7 = vld [vmem:[#allocation2 + $0x18] sm:$0xff] }
 0x204   : > { %1450 = vst.msk [vmem:[#allocation2 + $0x28] sm:$0xff] %vm1444_vm10, %v1431_v4  ;;  %2073 = vmatmul.mubr.msk.f32.gmra.mrb[2].mxu0 %vm1589_vm7, %v1563_v7 }
 0x205   : > { %1483 = vst.msk [vmem:[#allocation2 + $0x20] sm:$0xff] %vm1478_vm13, %v1463_v5 }
 0x207   : > { %v1328_v6 = vpop.permute.xlu0 %1327  ;;  %v1360_v8 = vpop.permute.xlu1 %1359 }
 0x208   : > { %1345 = vst.msk [vmem:[#allocation2 + $0x38] sm:$0xff] %vm1337_vm0, %v1328_v6  ;;  %vm3331_vm0 = vmmov %vm3329_vm6 }
 0x209   : > { %1378 = vst.msk [vmem:[#allocation2 + $0x30] sm:$0xff] %vm1371_vm9, %v1360_v8  ;;  %vm3336_vm11 = vmmov %vm3331_vm0 }
 0x20b   : > { %v1465_v9 = vpop.permute.xlu0 %1464  ;;  %v1500_v10 = vpop.permute.xlu1 %1499 }
 0x20c   : > { %1484 = vst.msk [vmem:[#allocation2 + $0x28] sm:$0xff] %vm1478_vm13, %v1465_v9 }
 0x20d   : > { %1520 = vst.msk [vmem:[#allocation2 + $0x20] sm:$0xff] %vm1515_vm14, %v1500_v10 }
 0x20f   : > { %v1362_v11 = vpop.permute.xlu0 %1361  ;;  %v1397_v12 = vpop.permute.xlu1 %1396 }
 0x210   : > { %1379 = vst.msk [vmem:[#allocation2 + $0x38] sm:$0xff] %vm1371_vm9, %v1362_v11  ;;  %vm3332_vm9 = vmmov %vm3331_vm0 }
 0x211   : > { %1415 = vst.msk [vmem:[#allocation2 + $0x30] sm:$0xff] %vm1408_vm3, %v1397_v12 }
 0x213   : > { %v1502_v13 = vpop.permute.xlu0 %1501  ;;  %v1536_v14 = vpop.permute.xlu1 %1535 }
 0x214   : > { %1521 = vst.msk [vmem:[#allocation2 + $0x28] sm:$0xff] %vm1515_vm14, %v1502_v13 }
 0x215   : > { %1556 = vst.msk [vmem:[#allocation2 + $0x20] sm:$0xff] %vm1551_vm1, %v1536_v14 }
 0x217   : > { %v1399_v15 = vpop.permute.xlu0 %1398  ;;  %v1433_v16 = vpop.permute.xlu1 %1432 }
 0x218   : > { %1416 = vst.msk [vmem:[#allocation2 + $0x38] sm:$0xff] %vm1408_vm3, %v1399_v15  ;;  %vm1733_vm3 = vcmp.lt.s32.totalorder %v1732_v39, 4 }
 0x219   : > { %1451 = vst.msk [vmem:[#allocation2 + $0x30] sm:$0xff] %vm1444_vm10, %v1433_v16  ;;  %v3247_v41 = vsel %vm1733_vm3, 1.0, %v2268_v40 }
 0x21b   : > { %v1538_v17 = vpop.permute.xlu0 %1537  ;;  %v1435_v18 = vpop.permute.xlu1 %1434 }
 0x21c   : > { %v1564_v20 = vld [vmem:[#allocation2 + $0x20] sm:$0xff]  ;;  %1557 = vst.msk [vmem:[#allocation2 + $0x28] sm:$0xff] %vm1551_vm1, %v1538_v17 }
 0x21d   : > { %1452 = vst.msk [vmem:[#allocation2 + $0x38] sm:$0xff] %vm1444_vm10, %v1435_v18  ;;  %2075 = vmatprep.mubr.msk.f32.mxu1 %vm1589_vm7, %v1564_v20  ;;  %vm3333_vm10 = vmmov %vm3331_vm0 }
 0x21f   : > { %v1467_v21 = vpop.permute.xlu0 %1466  ;;  %v1469_v22 = vpop.permute.xlu1 %1468 }
 0x220   : > { %1485 = vst.msk [vmem:[#allocation2 + $0x30] sm:$0xff] %vm1478_vm13, %v1467_v21  ;;  %1486 = vst.msk [vmem:[#allocation2 + $0x38] sm:$0xff] %vm1478_vm13, %v1469_v22 }
 0x221   : > { %vm3334_vm13 = vmmov %vm3331_vm0 }
 0x223   : > { %v1504_v19 = vpop.permute.xlu0 %1503  ;;  %v1506_v23 = vpop.permute.xlu1 %1505  ;;  %v1565_v25 = vld [vmem:[#allocation2 + $0x28] sm:$0xff] }
 0x224   : > { %1522 = vst.msk [vmem:[#allocation2 + $0x30] sm:$0xff] %vm1515_vm14, %v1504_v19  ;;  %1523 = vst.msk [vmem:[#allocation2 + $0x38] sm:$0xff] %vm1515_vm14, %v1506_v23  ;;  %2076 = vmatmul.mubr.msk.f32.vlgmr.msra.gmra.mrb[0].mxu1 %vm1589_vm7, %v1565_v25 }
 0x225   : > { %vm3335_vm14 = vmmov %vm3331_vm0 }
 0x227   : > { %v1540_v26 = vpop.permute.xlu0 %1539  ;;  %v1542_v27 = vpop.permute.xlu1 %1541 }
 0x228   : > { %1558 = vst.msk [vmem:[#allocation2 + $0x30] sm:$0xff] %vm1551_vm1, %v1540_v26  ;;  %1559 = vst.msk [vmem:[#allocation2 + $0x38] sm:$0xff] %vm1551_vm1, %v1542_v27 }
 0x22f   : > { %v1566_v28 = vld [vmem:[#allocation2 + $0x30] sm:$0xff]  ;;  %v1567_v29 = vld [vmem:[#allocation2 + $0x38] sm:$0xff] }
 0x230   : > { %2078 = vmatprep.mubr.msk.f32.mxu1 %vm1589_vm7, %v1566_v28 }
 0x231   : > { %2079 = vmatmul.mubr.msk.f32.gmra.mrb[2].mxu1 %vm1589_vm7, %v1567_v29 }
 0x2ac   : > { %v2071_v31 = vpop.f32.mrb[0].mxu0 }
 0x2ad   : > { %v1690_v32 = vadd.f32 %v2071_v31, %v2006_v30  ;;  %v1684_v33 = vpop.f32.mrb[1].mxu0 }
 0x2ae   : > { %v1685_v34 = vadd.f32 %v2006_v30, %v1684_v33 }
 0x2af   : > { %1724 = vst.msk [vmem:[%s3237_s18 + $0x8] sm:$0xff] %vm3329_vm6, %v1690_v32  ;;  %v1737_v43 = vmul.f32 %v3247_v41, %v1690_v32 }
 0x2b0   : > { %1723 = vst.msk [vmem:[%s3237_s18] sm:$0xff] %vm3330_vm8, %v1685_v34  ;;  %v1736_v44 = vmul.f32 %v3247_v41, %v1685_v34 }
 0x2b2   : > { %v1744_v49 = vadd.f32 %v1737_v43, %v1736_v44 }
 0x2d7   : > { %v2074_v35 = vpop.f32.mrb[2].mxu0 }
 0x2d8   : > { %v1700_v36 = vadd.f32 %v2074_v35, %v2006_v30  ;;  %v1694_v37 = vpop.f32.mrb[3].mxu0 }
 0x2d9   : > { %v1695_v24 = vadd.f32 %v2006_v30, %v1694_v37 }
 0x2da   : > { %1726 = vst.msk [vmem:[%s3237_s18 + $0x18] sm:$0xff] %vm3331_vm0, %v1700_v36  ;;  %v1739_v51 = vmul.f32 %v3247_v41, %v1700_v36 }
 0x2db   : > { %1725 = vst.msk [vmem:[%s3237_s18 + $0x10] sm:$0xff] %vm3332_vm9, %v1695_v24  ;;  %v1738_v48 = vmul.f32 %v3247_v41, %v1695_v24 }
 0x2dd   : > { %v1745_v50 = vadd.f32 %v1744_v49, %v1738_v48 }
 0x2df   : > { %v1746_v53 = vadd.f32 %v1745_v50, %v1739_v51 }
 0x2f7   : > { %v2077_v42 = vpop.f32.mrb[0].mxu1 }
 0x2f8   : > { %v1710_v45 = vadd.f32 %v2077_v42, %v2006_v30  ;;  %v1704_v46 = vpop.f32.mrb[1].mxu1 }
 0x2f9   : > { %v1705_v47 = vadd.f32 %v2006_v30, %v1704_v46 }
 0x2fa   : > { %1728 = vst.msk [vmem:[%s3237_s18 + $0x28] sm:$0xff] %vm3333_vm10, %v1710_v45  ;;  %v1741_v58 = vmul.f32 %v3247_v41, %v1710_v45 }
 0x2fb   : > { %1727 = vst.msk [vmem:[%s3237_s18 + $0x20] sm:$0xff] %vm3334_vm13, %v1705_v47  ;;  %v1740_v52 = vmul.f32 %v3247_v41, %v1705_v47 }
 0x2fd   : > { %v1747_v54 = vadd.f32 %v1746_v53, %v1740_v52 }
 0x2ff   : > { %v1748_v61 = vadd.f32 %v1747_v54, %v1741_v58 }
 0x304   : > { %v2080_v55 = vpop.f32.mrb[2].mxu1 }
 0x305   : > { %v1720_v56 = vadd.f32 %v2080_v55, %v2006_v30  ;;  %v1714_v57 = vpop.f32.mrb[3].mxu1 }
 0x306   : > { %v1715_v59 = vadd.f32 %v2006_v30, %v1714_v57 }
 0x307   : > { %1730 = vst.msk [vmem:[%s3237_s18 + $0x38] sm:$0xff] %vm3335_vm14, %v1720_v56  ;;  %v1743_v62 = vmul.f32 %v3247_v41, %v1720_v56 }
 0x308   : > { %1729 = vst.msk [vmem:[%s3237_s18 + $0x30] sm:$0xff] %vm3336_vm11, %v1715_v59  ;;  %v1742_v60 = vmul.f32 %v3247_v41, %v1715_v59 }
 0x30a   : > { %v1749_v63 = vadd.f32 %v1748_v61, %v1742_v60 }
 0x30c   : > { %v1750_v0 = vadd.f32 %v1749_v63, %v1743_v62 }
 0x30e   : > { %1751 = vadd.xlane.f32.xlu0 %v1750_v0 }
 0x39b   : > { %v1752_v1 = vpop.xlane.xlu0 %1751 }
 0x39c   : > { %v1753_v2 = vrot.slane %v1752_v1, 4 }
 0x39e   : > { %v1754_v3 = vadd.f32 %v1753_v2, %v1752_v1 }
 0x3a0   : > { %v1755_v4 = vrot.slane %v1754_v3, 2 }
 0x3a2   : > { %v1756_v5 = vadd.f32 %v1755_v4, %v1754_v3 }
 0x3a4   : > { %v1757_v7 = vrot.slane %v1756_v5, 1 }
 0x3a6   : > { %v1758_v6 = vadd.f32 %v1757_v7, %v1756_v5 }
 0x3a8   : > { %2129 = vpush %v1758_v6 }
 0x3d9   : > { %s3265_s30 = spop %2129 }
 0x3da   : > { %s1762_s16 = smul.f32 0.00390625, %s3265_s30 }
 0x3dc   : > { %v1763_v8 = vstv %s1762_s16 }
 0x3dd   : > { %v1764_v9 = vsub.f32 %v1685_v34, %v1763_v8  ;;  %v1765_v10 = vsub.f32 %v1690_v32, %v1763_v8  ;;  %v1766_v11 = vsub.f32 %v1695_v24, %v1763_v8  ;;  %v1767_v12 = vsub.f32 %v1700_v36, %v1763_v8 }
 0x3de   : > { %v1768_v15 = vsub.f32 %v1705_v47, %v1763_v8  ;;  %v1769_v17 = vsub.f32 %v1710_v45, %v1763_v8  ;;  %v1770_v22 = vsub.f32 %v1715_v59, %v1763_v8  ;;  %v1771_v26 = vsub.f32 %v1720_v56, %v1763_v8 }
 0x3df   : > { %v1772_v13 = vmul.f32 %v1764_v9, %v1764_v9  ;;  %v1773_v14 = vmul.f32 %v1765_v10, %v1765_v10  ;;  %v1774_v16 = vmul.f32 %v1766_v11, %v1766_v11  ;;  %v1775_v18 = vmul.f32 %v1767_v12, %v1767_v12 }
 0x3e0   : > { %v1776_v19 = vmul.f32 %v1768_v15, %v1768_v15  ;;  %v1777_v27 = vmul.f32 %v1769_v17, %v1769_v17  ;;  %v1778_v30 = vmul.f32 %v1770_v22, %v1770_v22  ;;  %v1779_v33 = vmul.f32 %v1771_v26, %v1771_v26 }
 0x3e1   : > { %v1780_v20 = vmul.f32 %v3247_v41, %v1772_v13  ;;  %v1781_v21 = vmul.f32 %v3247_v41, %v1773_v14  ;;  %v1782_v23 = vmul.f32 %v3247_v41, %v1774_v16  ;;  %v1783_v28 = vmul.f32 %v3247_v41, %v1775_v18 }
 0x3e2   : > { %v1784_v31 = vmul.f32 %v3247_v41, %v1776_v19  ;;  %v1785_v34 = vmul.f32 %v3247_v41, %v1777_v27  ;;  %v1786_v36 = vmul.f32 %v3247_v41, %v1778_v30  ;;  %v1787_v24 = vmul.f32 %v3247_v41, %v1779_v33 }
 0x3e3   : > { %v1788_v25 = vadd.f32 %v1781_v21, %v1780_v20  ;;  %v1804_v41 = vstv %s3265_s30 }
 0x3e5   : > { %v1789_v29 = vadd.f32 %v1788_v25, %v1782_v23 }
 0x3e7   : > { %v1790_v32 = vadd.f32 %v1789_v29, %v1783_v28 }
 0x3e9   : > { %v1791_v35 = vadd.f32 %v1790_v32, %v1784_v31 }
 0x3eb   : > { %v1792_v37 = vadd.f32 %v1791_v35, %v1785_v34 }
 0x3ed   : > { %v1793_v38 = vadd.f32 %v1792_v37, %v1786_v36 }
 0x3ef   : > { %v1794_v39 = vadd.f32 %v1793_v38, %v1787_v24 }
 0x3f1   : > { %1795 = vadd.xlane.f32.xlu1 %v1794_v39 }
 0x47e   : > { %v1796_v40 = vpop.xlane.xlu1 %1795 }
 0x47f   : > { %v1797_v42 = vrot.slane %v1796_v40, 4 }
 0x481   : > { %v1798_v43 = vadd.f32 %v1797_v42, %v1796_v40 }
 0x483   : > { %v1799_v44 = vrot.slane %v1798_v43, 2 }
 0x485   : > { %v1800_v45 = vadd.f32 %v1799_v44, %v1798_v43 }
 0x487   : > { %v1801_v46 = vrot.slane %v1800_v45, 1 }
 0x489   : > { %v1802_v47 = vadd.f32 %v1801_v46, %v1800_v45 }
 0x48b   : > { %2131 = vpush %v1802_v47 }
 0x4bc   : > { %s2132_s13 = spop %2131 }
 0x4bd   : > { %v1805_v48 = vstv %s2132_s13 }
 0x4be   : > { %v1807_v49 = vsel %vm1806_vm2, %v1804_v41, %v1805_v48 }
 0x4bf   : > { %1808 = vst [vmem:[%s390_s10] sm:$0x3] %v1807_v49 }
 0x4c0 PF: > { %s17_s25 = sadd.s32 1, %s2239_s25   ;;  %s3337_s21 = smov %s2231_s23 }
 0x4c1   : > { %p14_p10 = scmp.ge.s32.totalorder %s17_s25, 18   ;;  %s3338_s22 = smov %s2235_s24 }
 0x4c2   : > { %s3339_s23 = smov %s3342_s26  ;;  %s3340_s24 = smov %s3346_s27 }
 0x4c3   :  { %16 = sbr.rel (!%p14_p10) target bundleno = 3 (0x3), region = 88 }

// kernel: bott_conv_gn_relu3.10
= control target key start
LH: loop header
LB: loop body
LE: loop exit
PB: predicated region body
PF: predicated region fallthrough
CT: control target
= control target key end

     0   :  { %s2305_s21 = smov 0   ;;  %s2307_s22 = smov 0   ;;  %s3298_s0 = inlined_call_operand.vmem [shape: f32[2,10,10,10,4], index: 0, kind: input, shape index: {}, may-alias: {0,1,2}]   ;;  %s3299_s1 = inlined_call_operand.vmem [shape: f32[2,10,10,10,4], index: 1, kind: input, shape index: {}, may-alias: {0,1,2}]   ;;  %s3300_s2 = inlined_call_operand.vmem [shape: f32[2,10,10,10,4], index: 2, kind: input, shape index: {}, may-alias: {0,1,2}]   ;;  %s3301_s3 = inlined_call_operand.vmem [shape: f32[108,128], index: 3, kind: input, shape index: {}]   ;;  %s3302_s4 = inlined_call_operand.vmem [shape: f32[1,128], index: 4, kind: input, shape index: {}]   ;;  %s3303_s5 = inlined_call_operand.vmem [shape: f32[2,8,64,8], index: 5, kind: output, shape index: {0}]   ;;  %s3304_s6 = inlined_call_operand.vmem [shape: f32[2,8,2,128], index: 6, kind: output, shape index: {1}]  }
   0x1   :  { %s2309_s23 = smov 0   ;;  %s2311_s24 = smov 0  }
   0x2   :  { %s2313_s25 = smov 0  }
   0x3 LB: > { %s26_s26 = sadd.s32 1, %s2232_s23  ;;  %s29_s27 = sadd.s32 1, %s2236_s24  ;;  %s2240_s25 = sphi %s2313_s25, %s17_s25   ;;  %s2236_s24 = sphi %s2311_s24, %s3332_s24   ;;  %s2232_s23 = sphi %s2309_s23, %s3331_s23   ;;  %s2228_s22 = sphi %s2307_s22, %s3330_s22   ;;  %s2224_s21 = sphi %s2305_s21, %s3329_s21  }
   0x4   : > { %p27_p0 = scmp.ge.s32.totalorder %s26_s26, 8  ;;  %p1998_p1 = scmp.ge.s32.totalorder %s2240_s25, 1 }
   0x5   : > { %p277_p2 = scmp.lt.s32.totalorder %s2240_s25, 17 }
   0x6   : > { %s3334_s26 = smov (%p27_p0, %s26_s26), 0  ;;  %s3336_s27 = smov (!%p27_p0, %s29_s27), %s2236_s24 }
   0x7   : > { %p278_p3 = pnand %p1998_p1, %p277_p2  ;;  %p31_p4 = scmp.ge.s32.totalorder %s3336_s27, 2 }
   0x8   : > { %p343_p5 = scmp.lt.s32.totalorder (!%p278_p3), %s2228_s22, 1  ;;  %p345_p6 = scmp.lt.s32.totalorder (!%p278_p3), %s2224_s21, 9  ;;  %vm411_vm0 = vcmask (!%p278_p3), 31744   ;;  %vm494_vm1 = vcmask (!%p278_p3), 1045504   ;;  %vm436_vm2 = vcmask (!%p278_p3), 1046528   ;;  %vm485_vm3 = vcmask (!%p278_p3), 64544  }
   0x9   : > { %s3338_s27 = smov (%p31_p4, %s3336_s27), 0  ;;  %281 = sbr.rel (%p278_p3) target bundleno = 1216 (0x4c0), region = 40 }
   0xa   : > { %s2242_s12 = smov (!%p278_p3), 12   ;;  %s2243_s13 = smov (!%p278_p3), 8   ;;  %vm543_vm4 = vcmask (!%p278_p3), 97344   ;;  %vm577_vm5 = vcmask (!%p278_p3), 130144   ;;  %vm614_vm6 = vcmask (!%p278_p3), 162944   ;;  %vm650_vm7 = vcmask (!%p278_p3), 195744  }
   0xb   : > { %s2244_s14 = smov (!%p278_p3), 4   ;;  %s2245_s15 = smov (!%p278_p3), 16   ;;  %vm684_vm8 = vcmask (!%p278_p3), 228544   ;;  %vm721_vm9 = vcmask (!%p278_p3), 261344   ;;  %vm757_vm10 = vcmask (!%p278_p3), 294144   ;;  %vm818_vm11 = vcmask (!%p278_p3), 326944  }
   0xc   : > { %s2246_s16 = smov (!%p278_p3), 20   ;;  %s2247_s17 = smov (!%p278_p3), 24   ;;  %vm883_vm12 = vcmask (!%p278_p3), 359744   ;;  %vm940_vm13 = vcmask (!%p278_p3), 392544   ;;  %vm974_vm14 = vcmask (!%p278_p3), 425344   ;;  %vm1011_vm15 = vcmask (!%p278_p3), 458144  }
   0xd   : > { %s352_s18 = sadd.s32 (!%p278_p3), 1, %s2224_s21  ;;  %s2248_s19 = smov (!%p278_p3), 28  }
   0xe   : > { %p355_p7 = scmp.lt.s32.totalorder (!%p278_p3), %s352_s18, 9  ;;  %s363_s9 = sadd.s32 (!%p278_p3), 2, %s2224_s21 }
   0xf   : > { %p366_p8 = scmp.lt.s32.totalorder (!%p278_p3), %s363_s9, 9  ;;  %p376_p9 = scmp.lt.s32.totalorder (!%p278_p3), %s2224_s21, 7 }
  0x10   : > { %s3340_s22 = smov (!%p343_p5, %s2228_s22), 1  ;;  %s3342_s18 = smov (!%p355_p7, %s352_s18), 9 }
  0x11   : > { %s346_s28 = scalar_select %p345_p6, %s2224_s21, 9 }
  0x12   : > { %s2342_s29 = smul.u32 200, %s3340_s22  ;;  %s3344_s9 = smov (!%p366_p8, %s363_s9), 9 }
  0x13   : > { %s2126_s30 = smul.u32 20, %s346_s28  ;;  %s2249_s28 = smov 32  }
  0x14   : > { %s2128_s20 = smul.u32 20, %s3342_s18  ;;  %s2250_s18 = smov 36  }
  0x15   : > { %s349_s7 = sadd.s32 %s2342_s29, %s2126_s30  ;;  %s3346_s21 = smov (!%p376_p9, %s2224_s21), 7 }
  0x16   : > { %s1999_s8 = sshll.u32 %s349_s7, 3  ;;  %s359_s30 = sadd.s32 %s2128_s20, %s2342_s29 }
  0x17   : > { %s2348_s11 = scalar_lea.vmem %s3298_s0, %s1999_s8  ;;  %s2000_s7 = sshll.u32 %s359_s30, 3 }
  0x18   : > { %v395_v0 = vld [vmem:[%s2348_s11 + $0x20] sm:$0xff]  ;;  %v393_v1 = vld [vmem:[%s2348_s11 + $0x10] sm:$0xff]  ;;  %v392_v3 = vld [vmem:[%s2348_s11 + $0x8] sm:$0x3]  ;;  %s2425_s10 = scalar_lea.vmem %s3299_s1, %s2000_s7  ;;  %s2251_s20 = smov 40  }
  0x19   : > { %v391_v2 = vld [vmem:[%s2348_s11] sm:$0xff]  ;;  %555 = vrot.lane.b32.xlu1 %v395_v0, %s2242_s12  ;;  %553 = vrot.lane.b32.xlu0 %v393_v1, %s2242_s12  ;;  %v394_v6 = vld [vmem:[%s2348_s11 + $0x18] sm:$0x3]  ;;  %413 = vst.msk [vmem:[#allocation2 + $0x8] sm:$0xff] %vm411_vm0, %v393_v1  ;;  %414 = vst.msk [vmem:[#allocation2 + $0x10] sm:$0xff] %vm411_vm0, %v395_v0  ;;  %v496_v7 = vrot.slane %v392_v3, 2 }
  0x1a   : > { %v495_v4 = vrot.slane %v391_v2, 2  ;;  %v437_v5 = vrot.slane %v391_v2, 1  ;;  %412 = vst.msk [vmem:[#allocation2] sm:$0xff] %vm411_vm0, %v391_v2  ;;  %v438_v8 = vrot.slane %v392_v3, 1  ;;  %v498_v9 = vrot.slane %v393_v1, 2  ;;  %v397_v14 = vld [vmem:[%s2348_s11 + $0x30] sm:$0xff] }
  0x1b   : > { %v499_v10 = vrot.slane %v394_v6, 2  ;;  %v440_v11 = vrot.slane %v393_v1, 1  ;;  %v441_v12 = vrot.slane %v394_v6, 1  ;;  %v396_v13 = vld [vmem:[%s2348_s11 + $0x28] sm:$0x3]  ;;  %v2363_v15 = vld [vmem:[%s2348_s11 + $0x40] sm:$0xff] }
  0x1c   : > { %v497_v16 = vsel %vm494_vm1, %v495_v4, %v496_v7  ;;  %v439_v17 = vsel %vm436_vm2, %v437_v5, %v438_v8  ;;  %v2368_v18 = vld [vmem:[%s2348_s11 + $0x50] sm:$0xff]  ;;  %415 = vst.msk [vmem:[#allocation2 + $0x18] sm:$0xff] %vm411_vm0, %v397_v14  ;;  %416 = vst.msk [vmem:[#allocation2 + $0x20] sm:$0xff] %vm411_vm0, %v2363_v15  ;;  %v2376_v19 = vld [vmem:[%s2348_s11 + $0x60] sm:$0xff]  ;;  %v443_v22 = vrot.slane %v395_v0, 1  ;;  %v444_v23 = vrot.slane %v396_v13, 1 }
  0x1d   : > { %519 = vrot.lane.b32.xlu1 %v497_v16, %s2243_s13  ;;  %461 = vrot.lane.b32.xlu0 %v439_v17, %s2244_s14  ;;  %417 = vst.msk [vmem:[#allocation2 + $0x28] sm:$0xff] %vm411_vm0, %v2368_v18  ;;  %v500_v20 = vsel %vm494_vm1, %v498_v9, %v499_v10  ;;  %v442_v21 = vsel %vm436_vm2, %v440_v11, %v441_v12  ;;  %418 = vst.msk [vmem:[#allocation2 + $0x30] sm:$0xff] %vm411_vm0, %v2376_v19  ;;  %v2385_v24 = vld [vmem:[%s2348_s11 + $0x70] sm:$0xff]  ;;  %v398_v26 = vld [vmem:[%s2348_s11 + $0x38] sm:$0x3]  ;;  %v501_v27 = vrot.slane %v395_v0, 2 }
  0x1e   : > { %419 = vst.msk [vmem:[#allocation2 + $0x38] sm:$0xff] %vm411_vm0, %v2385_v24  ;;  %v445_v25 = vsel %vm436_vm2, %v443_v22, %v444_v23  ;;  %v502_v28 = vrot.slane %v396_v13, 2  ;;  %v446_v29 = vrot.slane %v397_v14, 1  ;;  %v447_v30 = vrot.slane %v398_v26, 1  ;;  %v400_v36 = vld [vmem:[%s2348_s11 + $0x48] sm:$0x3] }
  0x1f   : > { %v504_v33 = vrot.slane %v397_v14, 2  ;;  %v505_v34 = vrot.slane %v398_v26, 2  ;;  %v449_v37 = vrot.slane %v2363_v15, 1  ;;  %v450_v38 = vrot.slane %v400_v36, 1  ;;  %v402_v40 = vld [vmem:[%s2348_s11 + $0x58] sm:$0x3] }
  0x20   : > { %v503_v31 = vsel %vm494_vm1, %v501_v27, %v502_v28  ;;  %v448_v32 = vsel %vm436_vm2, %v446_v29, %v447_v30  ;;  %v452_v41 = vrot.slane %v2368_v18, 1  ;;  %v453_v42 = vrot.slane %v402_v40, 1  ;;  %v766_v44 = vld [vmem:[%s2425_s10] sm:$0xff]  ;;  %v767_v48 = vld [vmem:[%s2425_s10 + $0x8] sm:$0x3]  ;;  %v768_v50 = vld [vmem:[%s2425_s10 + $0x10] sm:$0xff] }
  0x21   : > { %521 = vrot.lane.b32.xlu1 %v500_v20, %s2243_s13  ;;  %463 = vrot.lane.b32.xlu0 %v442_v21, %s2244_s14  ;;  %v506_v35 = vsel %vm494_vm1, %v504_v33, %v505_v34  ;;  %v451_v39 = vsel %vm436_vm2, %v449_v37, %v450_v38  ;;  %v507_v45 = vrot.slane %v2363_v15, 2  ;;  %v508_v46 = vrot.slane %v400_v36, 2  ;;  %v769_v56 = vld [vmem:[%s2425_s10 + $0x18] sm:$0x3]  ;;  %s2252_s30 = smov 44   ;;  %s3305_s7 = smov 48  }
  0x22   : > { %v454_v43 = vsel %vm436_vm2, %v452_v41, %v453_v42  ;;  %v835_v49 = vrot.slane %v766_v44, 1  ;;  %v510_v51 = vrot.slane %v2368_v18, 2  ;;  %v511_v52 = vrot.slane %v402_v40, 2  ;;  %v404_v1 = vld [vmem:[%s2348_s11 + $0x68] sm:$0x3]  ;;  %v2472_v6 = vld [vmem:[%s2425_s10 + $0x20] sm:$0xff] }
  0x23   : > { %v509_v47 = vsel %vm494_vm1, %v507_v45, %v508_v46  ;;  %v836_v53 = vrot.slane %v767_v48, 1  ;;  %v838_v57 = vrot.slane %v768_v50, 1  ;;  %v839_v58 = vrot.slane %v769_v56, 1  ;;  %v406_v7 = vld [vmem:[%s2348_s11 + $0x78] sm:$0x3]  ;;  %s2254_s8 = smov 52  }
  0x24   : > { %v512_v54 = vsel %vm494_vm1, %v510_v51, %v511_v52  ;;  %v892_v59 = vrot.slane %v766_v44, 2  ;;  %v893_v61 = vrot.slane %v767_v48, 2  ;;  %v895_v63 = vrot.slane %v768_v50, 2  ;;  %v773_v27 = vld [vmem:[%s2425_s10 + $0x38] sm:$0x3] }
  0x25   : > { %465 = vrot.lane.b32.xlu1 %v445_v25, %s2244_s14  ;;  %590 = vrot.lane.b32.xlu0 %v442_v21, %s2245_s15  ;;  %v837_v55 = vsel %vm436_vm2, %v835_v49, %v836_v53  ;;  %v840_v60 = vsel %vm436_vm2, %v838_v57, %v839_v58  ;;  %v455_v3 = vrot.slane %v2376_v19, 1  ;;  %v456_v4 = vrot.slane %v404_v1, 1  ;;  %v408_v49 = vld [vmem:[%s2348_s11 + $0x88] sm:$0x3]  ;;  %v2593_v57 = vld [vmem:[%s2425_s10 + $0x40] sm:$0xff] }
  0x26   : > { %v894_v62 = vsel %vm494_vm1, %v892_v59, %v893_v61  ;;  %v513_v8 = vrot.slane %v2376_v19, 2  ;;  %v514_v9 = vrot.slane %v404_v1, 2  ;;  %v458_v10 = vrot.slane %v2385_v24, 1 }
  0x27   : > { %v457_v5 = vsel %vm436_vm2, %v455_v3, %v456_v4  ;;  %v459_v11 = vrot.slane %v406_v7, 1  ;;  %v517_v21 = vrot.slane %v406_v7, 2  ;;  %v898_v28 = vrot.slane %v2472_v6, 2 }
  0x28   : > { %v2484_v12 = vsel %vm494_vm1, %v513_v8, %v514_v9  ;;  %v588_v51 = vrot.slane %v408_v49, 1  ;;  %v847_v4 = vrot.slane %v2593_v57, 1  ;;  %v2631_v9 = vld [vmem:[%s2425_s10 + $0x50] sm:$0xff]  ;;  %vm3314_vm0 = vcmask 490944  }
  0x29   : > { %626 = vrot.lane.b32.xlu1 %v500_v20, %s2246_s16  ;;  %592 = vrot.lane.b32.xlu0 %v445_v25, %s2245_s15  ;;  %v2487_v13 = vsel %vm436_vm2, %v458_v10, %v459_v11  ;;  %v516_v20 = vrot.slane %v2385_v24, 2 }
  0x2b   : > { %v2514_v23 = vsel %vm494_vm1, %v516_v20, %v517_v21  ;;  %v904_v20 = vrot.slane %v2593_v57, 2 }
  0x2d   : > { %523 = vrot.lane.b32.xlu1 %v503_v31, %s2243_s13  ;;  %467 = vrot.lane.b32.xlu0 %v448_v32, %s2244_s14 }
  0x31   : > { %660 = vrot.lane.b32.xlu1 %v395_v0, %s2247_s17  ;;  %628 = vrot.lane.b32.xlu0 %v503_v31, %s2246_s16  ;;  %v896_v0 = vrot.slane %v769_v56, 2 }
  0x33   : > { %v897_v2 = vsel %vm494_vm1, %v895_v63, %v896_v0  ;;  %v624_v63 = vrot.slane %v408_v49, 2 }
  0x35   : > { %557 = vrot.lane.b32.xlu1 %v397_v14, %s2242_s12  ;;  %525 = vrot.lane.b32.xlu0 %v506_v35, %s2243_s13 }
  0x39   : > { %697 = vrot.lane.b32.xlu1 %v445_v25, %s2248_s19  ;;  %662 = vrot.lane.b32.xlu0 %v397_v14, %s2247_s17  ;;  %v771_v14 = vld [vmem:[%s2425_s10 + $0x28] sm:$0x3] }
  0x3a   : > { %v842_v16 = vrot.slane %v771_v14, 1  ;;  %v899_v29 = vrot.slane %v771_v14, 2 }
  0x3c   : > { %v2533_v34 = vsel %vm494_vm1, %v898_v28, %v899_v29 }
  0x3d   : > { %594 = vrot.lane.b32.xlu1 %v448_v32, %s2245_s15  ;;  %559 = vrot.lane.b32.xlu0 %v2363_v15, %s2242_s12 }
  0x41   : > { %733 = vrot.lane.b32.xlu1 %v503_v31, %s2249_s28  ;;  %699 = vrot.lane.b32.xlu0 %v448_v32, %s2248_s19  ;;  %v845_v31 = vrot.slane %v773_v27, 1 }
  0x45   : > { %596 = vrot.lane.b32.xlu1 %v451_v39, %s2245_s15  ;;  %469 = vrot.lane.b32.xlu0 %v451_v39, %s2244_s14 }
  0x49   : > { %735 = vrot.lane.b32.xlu1 %v506_v35, %s2249_s28  ;;  %630 = vrot.lane.b32.xlu0 %v506_v35, %s2246_s16 }
  0x4d   : > { %471 = vrot.lane.b32.xlu1 %v454_v43, %s2244_s14  ;;  %794 = vrot.lane.b32.xlu0 %v766_v44, %s2250_s18 }
  0x51   : > { %632 = vrot.lane.b32.xlu1 %v509_v47, %s2246_s16  ;;  %527 = vrot.lane.b32.xlu0 %v509_v47, %s2243_s13 }
  0x55   : > { %796 = vrot.lane.b32.xlu1 %v768_v50, %s2250_s18  ;;  %664 = vrot.lane.b32.xlu0 %v2363_v15, %s2247_s17  ;;  %v841_v15 = vrot.slane %v2472_v6, 1 }
  0x57   : > { %v2500_v17 = vsel %vm436_vm2, %v841_v15, %v842_v16 }
  0x59   : > { %529 = vrot.lane.b32.xlu1 %v512_v54, %s2243_s13  ;;  %859 = vrot.lane.b32.xlu0 %v837_v55, %s2251_s20 }
  0x5d   : > { %666 = vrot.lane.b32.xlu1 %v2368_v18, %s2247_s17  ;;  %561 = vrot.lane.b32.xlu0 %v2368_v18, %s2242_s12  ;;  %v2503_v18 = vld [vmem:[%s2425_s10 + $0x30] sm:$0xff] }
  0x5e   : > { %v844_v30 = vrot.slane %v2503_v18, 1  ;;  %v901_v42 = vrot.slane %v2503_v18, 2 }
  0x60   : > { %v2536_v35 = vsel %vm436_vm2, %v844_v30, %v845_v31 }
  0x61   : > { %861 = vrot.lane.b32.xlu1 %v840_v60, %s2251_s20  ;;  %701 = vrot.lane.b32.xlu0 %v451_v39, %s2248_s19  ;;  %v2551_v39 = vld [vmem:[%s2348_s11 + $0x80] sm:$0xff] }
  0x65   : > { %563 = vrot.lane.b32.xlu1 %v2376_v19, %s2242_s12  ;;  %916 = vrot.lane.b32.xlu0 %v894_v62, %s2252_s30  ;;  %v623_v62 = vrot.slane %v2551_v39, 2 }
  0x67   : > { %v2617_v3 = vsel %vm494_vm1, %v623_v62, %v624_v63  ;;  %v2738_v62 = vld [vmem:[%s2425_s10 + $0x60] sm:$0xff] }
  0x69   : > { %703 = vrot.lane.b32.xlu1 %v454_v43, %s2248_s19  ;;  %598 = vrot.lane.b32.xlu0 %v454_v43, %s2245_s15  ;;  %v902_v43 = vrot.slane %v773_v27, 2 }
  0x6b   : > { %v2567_v46 = vsel %vm494_vm1, %v901_v42, %v902_v43  ;;  %v907_v42 = vrot.slane %v2631_v9, 2 }
  0x6d   : > { %918 = vrot.lane.b32.xlu1 %v897_v2, %s2252_s30  ;;  %737 = vrot.lane.b32.xlu0 %v509_v47, %s2249_s28 }
  0x71   : > { %473 = vrot.lane.b32.xlu1 %v457_v5, %s2244_s14  ;;  %950 = vrot.lane.b32.xlu0 %v768_v50, %s3305_s7  ;;  %v587_v50 = vrot.slane %v2551_v39, 1 }
  0x75   : > { %634 = vrot.lane.b32.xlu1 %v512_v54, %s2246_s16  ;;  %600 = vrot.lane.b32.xlu0 %v457_v5, %s2245_s15 }
  0x79   : > { %798 = vrot.lane.b32.xlu1 %v2472_v6, %s2250_s18  ;;  %739 = vrot.lane.b32.xlu0 %v512_v54, %s2249_s28  ;;  %v2584_v54 = vsel %vm436_vm2, %v587_v50, %v588_v51 }
  0x7d   : > { %987 = vrot.lane.b32.xlu1 %v840_v60, %s2254_s8  ;;  %952 = vrot.lane.b32.xlu0 %v2472_v6, %s3305_s7 }
  0x81   : > { %531 = vrot.lane.b32.xlu1 %v2484_v12, %s2243_s13  ;;  %475 = vrot.lane.b32.xlu0 %v2487_v13, %s2244_s14  ;;  %s2255_s14 = smov 56  }
  0x85   : > { %668 = vrot.lane.b32.xlu1 %v2376_v19, %s2247_s17  ;;  %636 = vrot.lane.b32.xlu0 %v2484_v12, %s2246_s16 }
  0x89   : > { %863 = vrot.lane.b32.xlu1 %v2500_v17, %s2251_s20  ;;  %800 = vrot.lane.b32.xlu0 %v2503_v18, %s2250_s18 }
  0x8b   : > { %v556_v22 = vpop.permute.xlu1 %555  ;;  %v554_v19 = vpop.permute.xlu0 %553 }
  0x8d   : > { %1023 = vrot.lane.b32.xlu1 %v897_v2, %s2255_s14  ;;  %989 = vrot.lane.b32.xlu0 %v2500_v17, %s2254_s8  ;;  %v775_v2 = vld [vmem:[%s2425_s10 + $0x48] sm:$0x3] }
  0x8e   : > { %v905_v21 = vrot.slane %v775_v2, 2 }
  0x8f   : > { %v520_v25 = vpop.permute.xlu1 %519  ;;  %v462_v26 = vpop.permute.xlu0 %461 }
  0x90   : > { %486 = vst.msk [vmem:[#allocation2] sm:$0xff] %vm485_vm3, %v462_v26  ;;  %v2672_v26 = vsel %vm494_vm1, %v904_v20, %v905_v21 }
  0x91   : > { %544 = vst.msk [vmem:[#allocation2] sm:$0xff] %vm543_vm4, %v520_v25  ;;  %565 = vrot.lane.b32.xlu1 %v2385_v24, %s2242_s12  ;;  %533 = vrot.lane.b32.xlu0 %v2514_v23, %s2243_s13  ;;  %s2256_s13 = smov 60  }
  0x92   : > { %578 = vst.msk [vmem:[#allocation2] sm:$0xff] %vm577_vm5, %v554_v19 }
  0x93   : > { %v522_v32 = vpop.permute.xlu1 %521  ;;  %v464_v33 = vpop.permute.xlu0 %463 }
  0x94   : > { %487 = vst.msk [vmem:[#allocation2 + $0x8] sm:$0xff] %vm485_vm3, %v464_v33 }
  0x95   : > { %545 = vst.msk [vmem:[#allocation2 + $0x8] sm:$0xff] %vm543_vm4, %v522_v32  ;;  %705 = vrot.lane.b32.xlu1 %v457_v5, %s2248_s19  ;;  %670 = vrot.lane.b32.xlu0 %v2385_v24, %s2247_s17  ;;  %v848_v5 = vrot.slane %v775_v2, 1 }
  0x96   : > { %579 = vst.msk [vmem:[#allocation2 + $0x8] sm:$0xff] %vm577_vm5, %v556_v22  ;;  %v850_v22 = vrot.slane %v2631_v9, 1 }
  0x97   : > { %v466_v36 = vpop.permute.xlu1 %465  ;;  %v591_v37 = vpop.permute.xlu0 %590  ;;  %v2628_v8 = vsel %vm436_vm2, %v847_v4, %v848_v5 }
  0x98   : > { %488 = vst.msk [vmem:[#allocation2 + $0x10] sm:$0xff] %vm485_vm3, %v466_v36 }
  0x99   : > { %615 = vst.msk [vmem:[#allocation2] sm:$0xff] %vm614_vm6, %v591_v37  ;;  %920 = vrot.lane.b32.xlu1 %v2533_v34, %s2252_s30  ;;  %865 = vrot.lane.b32.xlu0 %v2536_v35, %s2251_s20 }
  0x9b   : > { %v627_v24 = vpop.permute.xlu1 %626  ;;  %v593_v38 = vpop.permute.xlu0 %592 }
  0x9c   : > { %651 = vst.msk [vmem:[#allocation2] sm:$0xff] %vm650_vm7, %v627_v24 }
  0x9d   : > { %616 = vst.msk [vmem:[#allocation2 + $0x8] sm:$0xff] %vm614_vm6, %v593_v38  ;;  %1057 = vrot.lane.b32.xlu1 %v2472_v6, %s2256_s13  ;;  %1025 = vrot.lane.b32.xlu0 %v2533_v34, %s2255_s14 }
  0x9f   : > { %v524_v40 = vpop.permute.xlu1 %523  ;;  %v468_v41 = vpop.permute.xlu0 %467 }
  0xa0   : > { %546 = vst.msk [vmem:[#allocation2 + $0x10] sm:$0xff] %vm543_vm4, %v524_v40 }
  0xa1   : > { %489 = vst.msk [vmem:[#allocation2 + $0x18] sm:$0xff] %vm485_vm3, %v468_v41  ;;  %602 = vrot.lane.b32.xlu1 %v2487_v13, %s2245_s15  ;;  %567 = vrot.lane.b32.xlu0 %v2551_v39, %s2242_s12  ;;  %s3307_s12 = smov 64  }
  0xa3   : > { %v661_v44 = vpop.permute.xlu1 %660  ;;  %v629_v45 = vpop.permute.xlu0 %628 }
  0xa4   : > { %685 = vst.msk [vmem:[#allocation2] sm:$0xff] %vm684_vm8, %v661_v44 }
  0xa5   : > { %652 = vst.msk [vmem:[#allocation2 + $0x8] sm:$0xff] %vm650_vm7, %v629_v45  ;;  %741 = vrot.lane.b32.xlu1 %v2484_v12, %s2249_s28  ;;  %707 = vrot.lane.b32.xlu0 %v2487_v13, %s2248_s19 }
  0xa7   : > { %v558_v47 = vpop.permute.xlu1 %557  ;;  %v526_v48 = vpop.permute.xlu0 %525 }
  0xa8   : > { %580 = vst.msk [vmem:[#allocation2 + $0x10] sm:$0xff] %vm577_vm5, %v558_v47 }
  0xa9   : > { %547 = vst.msk [vmem:[#allocation2 + $0x18] sm:$0xff] %vm543_vm4, %v526_v48  ;;  %954 = vrot.lane.b32.xlu1 %v2503_v18, %s3305_s7  ;;  %922 = vrot.lane.b32.xlu0 %v2567_v46, %s2252_s30 }
  0xab   : > { %v698_v52 = vpop.permute.xlu1 %697  ;;  %v663_v53 = vpop.permute.xlu0 %662 }
  0xac   : > { %722 = vst.msk [vmem:[#allocation2] sm:$0xff] %vm721_vm9, %v698_v52 }
  0xad   : > { %686 = vst.msk [vmem:[#allocation2 + $0x8] sm:$0xff] %vm684_vm8, %v663_v53  ;;  %1094 = vrot.lane.b32.xlu1 %v2500_v17, %s3307_s12  ;;  %1059 = vrot.lane.b32.xlu0 %v2503_v18, %s2256_s13  ;;  %v777_v17 = vld [vmem:[%s2425_s10 + $0x58] sm:$0x3]  ;;  %v2661_v18 = vld [vmem:[%s2348_s11 + $0x90] sm:$0xff] }
  0xae   : > { %v851_v19 = vrot.slane %v777_v17, 1  ;;  %v694_v36 = vrot.slane %v2661_v18, 1  ;;  %v908_v43 = vrot.slane %v777_v17, 2 }
  0xaf   : > { %v595_v55 = vpop.permute.xlu1 %594  ;;  %v560_v56 = vpop.permute.xlu0 %559 }
  0xb0   : > { %617 = vst.msk [vmem:[#allocation2 + $0x10] sm:$0xff] %vm614_vm6, %v595_v55  ;;  %v2675_v27 = vsel %vm436_vm2, %v850_v22, %v851_v19 }
  0xb1   : > { %581 = vst.msk [vmem:[#allocation2 + $0x18] sm:$0xff] %vm577_vm5, %v560_v56  ;;  %638 = vrot.lane.b32.xlu1 %v2514_v23, %s2246_s16  ;;  %604 = vrot.lane.b32.xlu0 %v2584_v54, %s2245_s15  ;;  %s2258_s15 = smov 68   ;;  %v730_v56 = vrot.slane %v2661_v18, 2 }
  0xb3   : > { %v734_v58 = vpop.permute.xlu1 %733  ;;  %v700_v59 = vpop.permute.xlu0 %699 }
  0xb4   : > { %758 = vst.msk [vmem:[#allocation2] sm:$0xff] %vm757_vm10, %v734_v58 }
  0xb5   : > { %723 = vst.msk [vmem:[#allocation2 + $0x8] sm:$0xff] %vm721_vm9, %v700_v59  ;;  %802 = vrot.lane.b32.xlu1 %v2593_v57, %s2250_s18  ;;  %743 = vrot.lane.b32.xlu0 %v2514_v23, %s2249_s28 }
  0xb7   : > { %v597_v60 = vpop.permute.xlu1 %596  ;;  %v470_v61 = vpop.permute.xlu0 %469 }
  0xb8   : > { %618 = vst.msk [vmem:[#allocation2 + $0x18] sm:$0xff] %vm614_vm6, %v597_v60 }
  0xb9   : > { %490 = vst.msk [vmem:[#allocation2 + $0x20] sm:$0xff] %vm485_vm3, %v470_v61  ;;  %991 = vrot.lane.b32.xlu1 %v2536_v35, %s2254_s8  ;;  %956 = vrot.lane.b32.xlu0 %v2593_v57, %s3305_s7  ;;  %s2129_s7 = smul.u32 20, %s3344_s9 }
  0xbb   : > { %v736_v0 = vpop.permute.xlu1 %735  ;;  %v631_v1 = vpop.permute.xlu0 %630 }
  0xbc   : > { %759 = vst.msk [vmem:[#allocation2 + $0x8] sm:$0xff] %vm757_vm10, %v736_v0 }
  0xbd   : > { %653 = vst.msk [vmem:[#allocation2 + $0x10] sm:$0xff] %vm650_vm7, %v631_v1  ;;  %1130 = vrot.lane.b32.xlu1 %v2533_v34, %s2258_s15  ;;  %1096 = vrot.lane.b32.xlu0 %v2536_v35, %s3307_s12  ;;  %s370_s12 = sadd.s32 %s2129_s7, %s2342_s29  ;;  %v410_v35 = vld [vmem:[%s2348_s11 + $0x98] sm:$0x3]  ;;  %s2260_s11 = smov 76  }
  0xbe   : > { %s2001_s9 = sshll.u32 %s370_s12, 3  ;;  %s2259_s12 = smov 72   ;;  %v695_v38 = vrot.slane %v410_v35, 1  ;;  %v731_v59 = vrot.slane %v410_v35, 2 }
  0xbf   : > { %v472_v6 = vpop.permute.xlu1 %471  ;;  %v795_v7 = vpop.permute.xlu0 %794  ;;  %s2642_s7 = scalar_lea.vmem %s3300_s2, %s2001_s9  ;;  %s3311_s9 = smov 80  }
  0xc0   : > { %491 = vst.msk [vmem:[#allocation2 + $0x28] sm:$0xff] %vm485_vm3, %v472_v6  ;;  %v2651_v14 = vld [vmem:[%s2642_s7] sm:$0xff]  ;;  %v1164_v30 = vld [vmem:[%s2642_s7 + $0x8] sm:$0x3]  ;;  %v2695_v24 = vld [vmem:[%s2642_s7 + $0x10] sm:$0xff]  ;;  %v696_v41 = vsel %vm436_vm2, %v694_v36, %v695_v38  ;;  %v732_v63 = vsel %vm494_vm1, %v730_v56, %v731_v59 }
  0xc1   : > { %819 = vst.msk [vmem:[#allocation2] sm:$0xff] %vm818_vm11, %v795_v7  ;;  %672 = vrot.lane.b32.xlu1 %v2551_v39, %s2247_s17  ;;  %640 = vrot.lane.b32.xlu0 %v2617_v3, %s2246_s16  ;;  %v1232_v31 = vrot.slane %v2651_v14, 1  ;;  %v1233_v32 = vrot.slane %v1164_v30, 1  ;;  %v1166_v49 = vld [vmem:[%s2642_s7 + $0x18] sm:$0x3]  ;;  %v1289_v50 = vrot.slane %v2651_v14, 2 }
  0xc2   : > { %v1235_v51 = vrot.slane %v2695_v24, 1  ;;  %v1290_v52 = vrot.slane %v1164_v30, 2  ;;  %v1236_v53 = vrot.slane %v1166_v49, 1  ;;  %v1292_v4 = vrot.slane %v2695_v24, 2  ;;  %v2789_v21 = vld [vmem:[%s2642_s7 + $0x20] sm:$0xff]  ;;  %s2267_s16 = smov 104  }
  0xc3   : > { %v633_v10 = vpop.permute.xlu1 %632  ;;  %v528_v11 = vpop.permute.xlu0 %527  ;;  %v1234_v37 = vsel %vm436_vm2, %v1232_v31, %v1233_v32  ;;  %v1293_v5 = vrot.slane %v1166_v49, 2  ;;  %v1168_v35 = vld [vmem:[%s2642_s7 + $0x28] sm:$0x3]  ;;  %v1238_v36 = vrot.slane %v2789_v21, 1 }
  0xc4   : > { %654 = vst.msk [vmem:[#allocation2 + $0x18] sm:$0xff] %vm650_vm7, %v633_v10  ;;  %v2730_v58 = vsel %vm436_vm2, %v1235_v51, %v1236_v53  ;;  %v853_v10 = vrot.slane %v2738_v62, 1  ;;  %v1295_v51 = vrot.slane %v2789_v21, 2 }
  0xc5   : > { %548 = vst.msk [vmem:[#allocation2 + $0x20] sm:$0xff] %vm543_vm4, %v528_v11  ;;  %867 = vrot.lane.b32.xlu1 %v2628_v8, %s2251_s20  ;;  %804 = vrot.lane.b32.xlu0 %v2631_v9, %s2250_s18 }
  0xc7   : > { %v797_v12 = vpop.permute.xlu1 %796  ;;  %v665_v13 = vpop.permute.xlu0 %664 }
  0xc8   : > { %820 = vst.msk [vmem:[#allocation2 + $0x8] sm:$0xff] %vm818_vm11, %v797_v12 }
  0xc9   : > { %687 = vst.msk [vmem:[#allocation2 + $0x10] sm:$0xff] %vm684_vm8, %v665_v13  ;;  %1027 = vrot.lane.b32.xlu1 %v2567_v46, %s2255_s14  ;;  %993 = vrot.lane.b32.xlu0 %v2628_v8, %s2254_s8 }
  0xcb   : > { %v530_v15 = vpop.permute.xlu1 %529  ;;  %v860_v16 = vpop.permute.xlu0 %859 }
  0xcc   : > { %549 = vst.msk [vmem:[#allocation2 + $0x28] sm:$0xff] %vm543_vm4, %v530_v15  ;;  %v2774_v15 = vld [vmem:[%s2425_s10 + $0x70] sm:$0xff] }
  0xcd   : > { %884 = vst.msk [vmem:[#allocation2] sm:$0xff] %vm883_vm12, %v860_v16  ;;  %1191 = vrot.lane.b32.xlu1 %v2651_v14, %s2259_s12  ;;  %1132 = vrot.lane.b32.xlu0 %v2567_v46, %s2258_s15  ;;  %v2710_v46 = vsel %vm494_vm1, %v907_v42, %v908_v43  ;;  %v913_v43 = vrot.slane %v2774_v15, 2 }
  0xcf   : > { %v667_v23 = vpop.permute.xlu1 %666  ;;  %v562_v25 = vpop.permute.xlu0 %561 }
  0xd0   : > { %688 = vst.msk [vmem:[#allocation2 + $0x18] sm:$0xff] %vm684_vm8, %v667_v23  ;;  %v781_v23 = vld [vmem:[%s2425_s10 + $0x78] sm:$0x3] }
  0xd1   : > { %582 = vst.msk [vmem:[#allocation2 + $0x20] sm:$0xff] %vm577_vm5, %v562_v25  ;;  %709 = vrot.lane.b32.xlu1 %v2584_v54, %s2248_s19  ;;  %674 = vrot.lane.b32.xlu0 %v2661_v18, %s2247_s17  ;;  %s3315_s17 = smov 48   ;;  %v910_v25 = vrot.slane %v2738_v62, 2 }
  0xd3   : > { %v862_v28 = vpop.permute.xlu1 %861  ;;  %v702_v29 = vpop.permute.xlu0 %701 }
  0xd4   : > { %885 = vst.msk [vmem:[#allocation2 + $0x8] sm:$0xff] %vm883_vm12, %v862_v28  ;;  %v857_v28 = vrot.slane %v781_v23, 1 }
  0xd5   : > { %724 = vst.msk [vmem:[#allocation2 + $0x10] sm:$0xff] %vm721_vm9, %v702_v29  ;;  %924 = vrot.lane.b32.xlu1 %v2672_v26, %s2252_s30  ;;  %869 = vrot.lane.b32.xlu0 %v2675_v27, %s2251_s20 }
  0xd7   : > { %v564_v33 = vpop.permute.xlu1 %563  ;;  %v917_v34 = vpop.permute.xlu0 %916 }
  0xd8   : > { %583 = vst.msk [vmem:[#allocation2 + $0x28] sm:$0xff] %vm577_vm5, %v564_v33 }
  0xd9   : > { %941 = vst.msk [vmem:[#allocation2] sm:$0xff] %vm940_vm13, %v917_v34  ;;  %1061 = vrot.lane.b32.xlu1 %v2593_v57, %s2256_s13  ;;  %1029 = vrot.lane.b32.xlu0 %v2672_v26, %s2255_s14  ;;  %v1291_v57 = vsel %vm494_vm1, %v1289_v50, %v1290_v52  ;;  %v1170_v50 = vld [vmem:[%s2642_s7 + $0x38] sm:$0x3]  ;;  %v1296_v52 = vrot.slane %v1168_v35, 2 }
  0xdb   : > { %v704_v39 = vpop.permute.xlu1 %703  ;;  %v599_v40 = vpop.permute.xlu0 %598 }
  0xdc   : > { %725 = vst.msk [vmem:[#allocation2 + $0x18] sm:$0xff] %vm721_vm9, %v704_v39 }
  0xdd   : > { %619 = vst.msk [vmem:[#allocation2 + $0x20] sm:$0xff] %vm614_vm6, %v599_v40  ;;  %1256 = vrot.lane.b32.xlu1 %v1234_v37, %s2260_s11  ;;  %1193 = vrot.lane.b32.xlu0 %v2695_v24, %s2259_s12  ;;  %v1239_v37 = vrot.slane %v1168_v35, 1  ;;  %v2830_v40 = vld [vmem:[%s2642_s7 + $0x30] sm:$0xff]  ;;  %v1576_v35 = vld [vmem:[%s3301_s3 + $0x40] sm:$0xff] }
  0xde   : > { %v1241_v53 = vrot.slane %v2830_v40, 1 }
  0xdf   : > { %v919_v44 = vpop.permute.xlu1 %918  ;;  %v738_v45 = vpop.permute.xlu0 %737  ;;  %v2827_v39 = vsel %vm436_vm2, %v1238_v36, %v1239_v37  ;;  %v1577_v36 = vld [vmem:[%s3301_s3 + $0x48] sm:$0xff] }
  0xe0   : > { %942 = vst.msk [vmem:[#allocation2 + $0x8] sm:$0xff] %vm940_vm13, %v919_v44  ;;  %v914_v44 = vrot.slane %v781_v23, 2  ;;  %v1572_v23 = vld [vmem:[%s3301_s3 + $0x20] sm:$0xff] }
  0xe1   : > { %760 = vst.msk [vmem:[#allocation2 + $0x10] sm:$0xff] %vm757_vm10, %v738_v45  ;;  %745 = vrot.lane.b32.xlu1 %v2617_v3, %s2249_s28  ;;  %711 = vrot.lane.b32.xlu0 %v696_v41, %s2248_s19  ;;  %s3316_s19 = smov 64  }
  0xe3   : > { %v474_v47 = vpop.permute.xlu1 %473  ;;  %v951_v48 = vpop.permute.xlu0 %950 }
  0xe4   : > { %492 = vst.msk [vmem:[#allocation2 + $0x30] sm:$0xff] %vm485_vm3, %v474_v47  ;;  %v2846_v47 = vsel %vm494_vm1, %v913_v43, %v914_v44  ;;  %v1579_v43 = vld [vmem:[%s3301_s3 + $0x58] sm:$0xff] }
  0xe5   : > { %975 = vst.msk [vmem:[#allocation2] sm:$0xff] %vm974_vm14, %v951_v48  ;;  %958 = vrot.lane.b32.xlu1 %v2631_v9, %s3315_s17  ;;  %926 = vrot.lane.b32.xlu0 %v2710_v46, %s2252_s30 }
  0xe7   : > { %v635_v54 = vpop.permute.xlu1 %634  ;;  %v601_v55 = vpop.permute.xlu0 %600 }
  0xe8   : > { %655 = vst.msk [vmem:[#allocation2 + $0x20] sm:$0xff] %vm650_vm7, %v635_v54  ;;  %v1242_v54 = vrot.slane %v1170_v50, 1 }
  0xe9   : > { %620 = vst.msk [vmem:[#allocation2 + $0x28] sm:$0xff] %vm614_vm6, %v601_v55  ;;  %1098 = vrot.lane.b32.xlu1 %v2628_v8, %s3316_s19  ;;  %1063 = vrot.lane.b32.xlu0 %v2631_v9, %s2256_s13  ;;  %v779_v8 = vld [vmem:[%s2425_s10 + $0x68] sm:$0x3]  ;;  %v2761_v9 = vsel %vm494_vm1, %v1292_v4, %v1293_v5 }
  0xea   : > { %v854_v11 = vrot.slane %v779_v8, 1 }
  0xeb   : > { %v799_v60 = vpop.permute.xlu1 %798  ;;  %v740_v61 = vpop.permute.xlu0 %739 }
  0xec   : > { %821 = vst.msk [vmem:[#allocation2 + $0x10] sm:$0xff] %vm818_vm11, %v799_v60  ;;  %v2771_v14 = vsel %vm436_vm2, %v853_v10, %v854_v11  ;;  %v1568_v10 = vld [vmem:[%s3301_s3] sm:$0xff]  ;;  %v1569_v11 = vld [vmem:[%s3301_s3 + $0x8] sm:$0xff] }
  0xed   : > { %761 = vst.msk [vmem:[#allocation2 + $0x18] sm:$0xff] %vm757_vm10, %v740_v61  ;;  %1313 = vrot.lane.b32.xlu1 %v1291_v57, %s3311_s9  ;;  %1258 = vrot.lane.b32.xlu0 %v2730_v58, %s2260_s11  ;;  %v2864_v57 = vsel %vm494_vm1, %v1295_v51, %v1296_v52  ;;  %v1581_v51 = vld [vmem:[%s3301_s3 + $0x68] sm:$0xf] }
  0xef   : > { %v988_v0 = vpop.permute.xlu1 %987  ;;  %v953_v1 = vpop.permute.xlu0 %952 }
  0xf0   : > { %1012 = vst.msk [vmem:[#allocation2] sm:$0xff] %vm1011_vm15, %v988_v0 }
  0xf1   : > { %976 = vst.msk [vmem:[#allocation2 + $0x8] sm:$0xff] %vm974_vm14, %v953_v1  ;;  %806 = vrot.lane.b32.xlu1 %v2738_v62, %s2250_s18  ;;  %747 = vrot.lane.b32.xlu0 %v732_v63, %s2249_s28  ;;  %s2262_s28 = smov 84   ;;  %v2882_v63 = vld [vmem:[%s2425_s10 + $0x80] sm:$0xff] }
  0xf2   : > { %v1020_v37 = vrot.slane %v2882_v63, 2 }
  0xf3   : > { %v532_v2 = vpop.permute.xlu1 %531  ;;  %v476_v3 = vpop.permute.xlu0 %475 }
  0xf4   : > { %550 = vst.msk [vmem:[#allocation2 + $0x30] sm:$0xff] %vm543_vm4, %v532_v2  ;;  %v1298_v2 = vrot.slane %v2830_v40, 2 }
  0xf5   : > { %493 = vst.msk [vmem:[#allocation2 + $0x38] sm:$0xff] %vm485_vm3, %v476_v3  ;;  %995 = vrot.lane.b32.xlu1 %v2675_v27, %s2254_s8  ;;  %960 = vrot.lane.b32.xlu0 %v2738_v62, %s3315_s17  ;;  %vm1081_vm3 = vcmask 523744   ;;  %v1299_v3 = vrot.slane %v1170_v50, 2  ;;  %v1580_v50 = vld [vmem:[%s3301_s3 + $0x60] sm:$0xff] }
  0xf7   : > { %v669_v6 = vpop.permute.xlu1 %668  ;;  %v637_v7 = vpop.permute.xlu0 %636 }
  0xf8   : > { %689 = vst.msk [vmem:[#allocation2 + $0x20] sm:$0xff] %vm684_vm8, %v669_v6  ;;  %v2898_v6 = vsel %vm494_vm1, %v1298_v2, %v1299_v3 }
  0xf9   : > { %656 = vst.msk [vmem:[#allocation2 + $0x28] sm:$0xff] %vm650_vm7, %v637_v7  ;;  %1134 = vrot.lane.b32.xlu1 %v2672_v26, %s2258_s15  ;;  %1100 = vrot.lane.b32.xlu0 %v2675_v27, %s3316_s19  ;;  %v911_v26 = vrot.slane %v779_v8, 2  ;;  %v856_v27 = vrot.slane %v2774_v15, 1 }
  0xfb   : > { %v864_v12 = vpop.permute.xlu1 %863  ;;  %v801_v13 = vpop.permute.xlu0 %800  ;;  %v2807_v31 = vsel %vm494_vm1, %v910_v25, %v911_v26  ;;  %v2810_v32 = vsel %vm436_vm2, %v856_v27, %v857_v28  ;;  %v1573_v25 = vld [vmem:[%s3301_s3 + $0x28] sm:$0xff]  ;;  %v2945_v26 = vld [vmem:[%s2642_s7 + $0x40] sm:$0xff] }
  0xfc   : > { %886 = vst.msk [vmem:[#allocation2 + $0x10] sm:$0xff] %vm883_vm12, %v864_v12  ;;  %v984_v12 = vrot.slane %v2882_v63, 1  ;;  %v2090_v27 = vpack.c.bf16 %v1573_v25, %v1572_v23  ;;  %v1301_v2 = vrot.slane %v2945_v26, 2 }
  0xfd   : > { %822 = vst.msk [vmem:[#allocation2 + $0x18] sm:$0xff] %vm818_vm11, %v801_v13  ;;  %1347 = vrot.lane.b32.xlu1 %v2695_v24, %s2262_s28  ;;  %1315 = vrot.lane.b32.xlu0 %v2761_v9, %s3311_s9 }
  0xff   : > { %v1024_v16 = vpop.permute.xlu1 %1023  ;;  %v990_v17 = vpop.permute.xlu0 %989 }
 0x100   : > { %1048 = vst.msk [vmem:[#allocation2] sm:$0xff] %vm3314_vm0, %v1024_v16 }
 0x101   : > { %1013 = vst.msk [vmem:[#allocation2 + $0x8] sm:$0xff] %vm1011_vm15, %v990_v17  ;;  %871 = vrot.lane.b32.xlu1 %v2771_v14, %s2251_s20  ;;  %808 = vrot.lane.b32.xlu0 %v2774_v15, %s2250_s18  ;;  %s2263_s18 = smov 88   ;;  %v1570_v17 = vld [vmem:[%s3301_s3 + $0x10] sm:$0xff] }
 0x103   : > { %v566_v18 = vpop.permute.xlu1 %565  ;;  %v534_v20 = vpop.permute.xlu0 %533 }
 0x104   : > { %584 = vst.msk [vmem:[#allocation2 + $0x30] sm:$0xff] %vm577_vm5, %v566_v18  ;;  %v1571_v18 = vld [vmem:[%s3301_s3 + $0x18] sm:$0xff] }
 0x105   : > { %551 = vst.msk [vmem:[#allocation2 + $0x38] sm:$0xff] %vm543_vm4, %v534_v20  ;;  %1031 = vrot.lane.b32.xlu1 %v2710_v46, %s2255_s14  ;;  %997 = vrot.lane.b32.xlu0 %v2771_v14, %s2254_s8  ;;  %vm1118_vm4 = vcmask 556544  }
 0x107   : > { %v706_v22 = vpop.permute.xlu1 %705  ;;  %v671_v19 = vpop.permute.xlu0 %670 }
 0x108   : > { %726 = vst.msk [vmem:[#allocation2 + $0x20] sm:$0xff] %vm721_vm9, %v706_v22 }
 0x109   : > { %690 = vst.msk [vmem:[#allocation2 + $0x28] sm:$0xff] %vm684_vm8, %v671_v19  ;;  %1195 = vrot.lane.b32.xlu1 %v2789_v21, %s2259_s12  ;;  %1136 = vrot.lane.b32.xlu0 %v2710_v46, %s2258_s15 }
 0x10b   : > { %v921_v29 = vpop.permute.xlu1 %920  ;;  %v866_v30 = vpop.permute.xlu0 %865 }
 0x10c   : > { %943 = vst.msk [vmem:[#allocation2 + $0x10] sm:$0xff] %vm940_vm13, %v921_v29 }
 0x10d   : > { %887 = vst.msk [vmem:[#allocation2 + $0x18] sm:$0xff] %vm883_vm12, %v866_v30  ;;  %1384 = vrot.lane.b32.xlu1 %v2730_v58, %s2263_s18  ;;  %1349 = vrot.lane.b32.xlu0 %v2789_v21, %s2262_s28  ;;  %v2867_v58 = vsel %vm436_vm2, %v1241_v53, %v1242_v54  ;;  %v1574_v30 = vld [vmem:[%s3301_s3 + $0x30] sm:$0xff]  ;;  %v2106_v54 = vpack.c.bf16 %v1581_v51, %v1580_v50 }
 0x10e   : > { %v3009_v53 = vld [vmem:[%s2642_s7 + $0x50] sm:$0xff] }
 0x10f   : > { %v1058_v33 = vpop.permute.xlu1 %1057  ;;  %v1026_v34 = vpop.permute.xlu0 %1025 }
 0x110   : > { %1082 = vst.msk [vmem:[#allocation2] sm:$0xff] %vm1081_vm3, %v1058_v33 }
 0x111   : > { %1049 = vst.msk [vmem:[#allocation2 + $0x8] sm:$0xff] %vm3314_vm0, %v1026_v34  ;;  %928 = vrot.lane.b32.xlu1 %v2807_v31, %s2252_s30  ;;  %873 = vrot.lane.b32.xlu0 %v2810_v32, %s2251_s20  ;;  %s3309_s20 = smov 92  }
 0x113   : > { %v603_v24 = vpop.permute.xlu1 %602  ;;  %v568_v38 = vpop.permute.xlu0 %567 }
 0x114   : > { %621 = vst.msk [vmem:[#allocation2 + $0x30] sm:$0xff] %vm614_vm6, %v603_v24 }
 0x115   : > { %585 = vst.msk [vmem:[#allocation2 + $0x38] sm:$0xff] %vm577_vm5, %v568_v38  ;;  %1065 = vrot.lane.b32.xlu1 %v2738_v62, %s2256_s13  ;;  %1033 = vrot.lane.b32.xlu0 %v2807_v31, %s2255_s14  ;;  %vm1154_vm5 = vcmask 589344   ;;  %v2098_v38 = vpack.c.bf16 %v1577_v36, %v1576_v35 }
 0x117   : > { %v742_v41 = vpop.permute.xlu1 %741  ;;  %v708_v42 = vpop.permute.xlu0 %707 }
 0x118   : > { %762 = vst.msk [vmem:[#allocation2 + $0x20] sm:$0xff] %vm757_vm10, %v742_v41  ;;  %v2974_v41 = vld [vmem:[%s2642_s7 + $0x48] sm:$0x3] }
 0x119   : > { %727 = vst.msk [vmem:[#allocation2 + $0x28] sm:$0xff] %vm721_vm9, %v708_v42  ;;  %1260 = vrot.lane.b32.xlu1 %v2827_v39, %s2260_s11  ;;  %1197 = vrot.lane.b32.xlu0 %v2830_v40, %s2259_s12  ;;  %v1578_v42 = vld [vmem:[%s3301_s3 + $0x50] sm:$0xff]  ;;  %v1302_v3 = vrot.slane %v2974_v41, 2 }
 0x11b   : > { %v955_v45 = vpop.permute.xlu1 %954  ;;  %v923_v46 = vpop.permute.xlu0 %922 }
 0x11c   : > { %977 = vst.msk [vmem:[#allocation2 + $0x10] sm:$0xff] %vm974_vm14, %v955_v45  ;;  %v1244_v45 = vrot.slane %v2945_v26, 1 }
 0x11d   : > { %944 = vst.msk [vmem:[#allocation2 + $0x18] sm:$0xff] %vm940_vm13, %v923_v46  ;;  %1420 = vrot.lane.b32.xlu1 %v2761_v9, %s3309_s20  ;;  %1386 = vrot.lane.b32.xlu0 %v2827_v39, %s2263_s18  ;;  %v2901_v9 = vld [vmem:[%s2425_s10 + $0x88] sm:$0x3]  ;;  %v1245_v46 = vrot.slane %v2974_v41, 1  ;;  %v1178_v41 = vld [vmem:[%s2642_s7 + $0x78] sm:$0x3] }
 0x11e   : > { %v985_v13 = vrot.slane %v2901_v9, 1  ;;  %v1021_v24 = vrot.slane %v2901_v9, 2 }
 0x11f   : > { %v1095_v48 = vpop.permute.xlu1 %1094  ;;  %v1060_v49 = vpop.permute.xlu0 %1059  ;;  %v3006_v52 = vsel %vm436_vm2, %v1244_v45, %v1245_v46 }
 0x120   : > { %1119 = vst.msk [vmem:[#allocation2] sm:$0xff] %vm1118_vm4, %v1095_v48  ;;  %v2930_v20 = vsel %vm436_vm2, %v984_v12, %v985_v13  ;;  %v2989_v44 = vsel %vm494_vm1, %v1020_v37, %v1021_v24  ;;  %v1304_v13 = vrot.slane %v3009_v53, 2 }
 0x121   : > { %1083 = vst.msk [vmem:[#allocation2 + $0x8] sm:$0xff] %vm1081_vm3, %v1060_v49  ;;  %962 = vrot.lane.b32.xlu1 %v2774_v15, %s3315_s17  ;;  %930 = vrot.lane.b32.xlu0 %v2846_v47, %s2252_s30  ;;  %s2265_s30 = smov 96  }
 0x123   : > { %v639_v55 = vpop.permute.xlu1 %638  ;;  %v605_v56 = vpop.permute.xlu0 %604 }
 0x124   : > { %657 = vst.msk [vmem:[#allocation2 + $0x30] sm:$0xff] %vm650_vm7, %v639_v55 }
 0x125   : > { %622 = vst.msk [vmem:[#allocation2 + $0x38] sm:$0xff] %vm614_vm6, %v605_v56  ;;  %1102 = vrot.lane.b32.xlu1 %v2771_v14, %s3316_s19  ;;  %1067 = vrot.lane.b32.xlu0 %v2774_v15, %s2256_s13  ;;  %v2082_v14 = vpack.c.bf16 %v1569_v11, %v1568_v10  ;;  %vm3313_vm6 = vcmask 622144  }
 0x127   : > { %v803_v59 = vpop.permute.xlu1 %802  ;;  %v744_v60 = vpop.permute.xlu0 %743  ;;  %2083 = vmatprep.subr.bf16.mxu0 %v2082_v14  ;;  %2112 = vmatprep.subr.bf16.mxu1 %v2082_v14 }
 0x128   : > { %823 = vst.msk [vmem:[#allocation2 + $0x20] sm:$0xff] %vm818_vm11, %v803_v59  ;;  %2085 = vmatpush3.bf16.msra.mxu0 %v2082_v14  ;;  %2119 = vmatpush3.bf16.msra.mxu1 %v2082_v14  ;;  %v1174_v59 = vld [vmem:[%s2642_s7 + $0x58] sm:$0x3] }
 0x129   : > { %763 = vst.msk [vmem:[#allocation2 + $0x28] sm:$0xff] %vm757_vm10, %v744_v60  ;;  %1317 = vrot.lane.b32.xlu1 %v2864_v57, %s3311_s9  ;;  %1262 = vrot.lane.b32.xlu0 %v2867_v58, %s2260_s11  ;;  %v784_v60 = vld [vmem:[%s2425_s10 + $0x90] sm:$0xff]  ;;  %v1305_v14 = vrot.slane %v1174_v59, 2 }
 0x12b   : > { %v992_v61 = vpop.permute.xlu1 %991  ;;  %v957_v62 = vpop.permute.xlu0 %956 }
 0x12c   : > { %1014 = vst.msk [vmem:[#allocation2 + $0x10] sm:$0xff] %vm1011_vm15, %v992_v61  ;;  %v1247_v61 = vrot.slane %v3009_v53, 1 }
 0x12d   : > { %978 = vst.msk [vmem:[#allocation2 + $0x18] sm:$0xff] %vm974_vm14, %v957_v62  ;;  %1454 = vrot.lane.b32.xlu1 %v2789_v21, %s2265_s30  ;;  %1422 = vrot.lane.b32.xlu0 %v2864_v57, %s3309_s20  ;;  %v2086_v21 = vpack.c.bf16 %v1571_v18, %v1570_v17  ;;  %v1248_v62 = vrot.slane %v1174_v59, 1  ;;  %v3056_v17 = vsel %vm494_vm1, %v1304_v13, %v1305_v14  ;;  %v1181_v13 = vld [vmem:[%s2642_s7 + $0x90] sm:$0xff]  ;;  %v1182_v14 = vld [vmem:[%s2642_s7 + $0x98] sm:$0x3] }
 0x12f   : > { %v1131_v0 = vpop.permute.xlu1 %1130  ;;  %v1097_v1 = vpop.permute.xlu0 %1096  ;;  %2087 = vmatprep.subr.bf16.mxu0 %v2086_v21  ;;  %2113 = vmatprep.subr.bf16.mxu1 %v2086_v21 }
 0x130   : > { %1155 = vst.msk [vmem:[#allocation2] sm:$0xff] %vm1154_vm5, %v1131_v0  ;;  %2089 = vmatpush3.bf16.msra.mxu0 %v2086_v21  ;;  %2120 = vmatpush3.bf16.msra.mxu1 %v2086_v21  ;;  %v1127_v21 = vrot.slane %v784_v60, 2 }
 0x131   : > { %1120 = vst.msk [vmem:[#allocation2 + $0x8] sm:$0xff] %vm1118_vm4, %v1097_v1  ;;  %999 = vrot.lane.b32.xlu1 %v2810_v32, %s2254_s8  ;;  %964 = vrot.lane.b32.xlu0 %v2882_v63, %s3315_s17  ;;  %v3032_v1 = vsel %vm436_vm2, %v1247_v61, %v1248_v62  ;;  %v1179_v61 = vld [vmem:[%s2642_s7 + $0x80] sm:$0xff]  ;;  %s2005_s17 = sshll.u32 %s3340_s22, 3 }
 0x132   : > { %2091 = vmatprep.subr.bf16.mxu0 %v2090_v27  ;;  %2114 = vmatprep.subr.bf16.mxu1 %v2090_v27 }
 0x133   : > { %v673_v4 = vpop.permute.xlu1 %672  ;;  %v641_v5 = vpop.permute.xlu0 %640 }
 0x134   : > { %691 = vst.msk [vmem:[#allocation2 + $0x30] sm:$0xff] %vm684_vm8, %v673_v4  ;;  %2093 = vmatpush3.bf16.msra.mxu0 %v2090_v27  ;;  %2121 = vmatpush3.bf16.msra.mxu1 %v2090_v27 }
 0x135   : > { %658 = vst.msk [vmem:[#allocation2 + $0x38] sm:$0xff] %vm650_vm7, %v641_v5  ;;  %1138 = vrot.lane.b32.xlu1 %v2807_v31, %s2258_s15  ;;  %1104 = vrot.lane.b32.xlu0 %v2810_v32, %s3316_s19  ;;  %v1575_v31 = vld [vmem:[%s3301_s3 + $0x38] sm:$0xff]  ;;  %vm1280_vm7 = vcmask 654944  }
 0x136   : > { %v2094_v32 = vpack.c.bf16 %v1575_v31, %v1574_v30 }
 0x137   : > { %v868_v7 = vpop.permute.xlu1 %867  ;;  %v805_v8 = vpop.permute.xlu0 %804 }
 0x138   : > { %888 = vst.msk [vmem:[#allocation2 + $0x20] sm:$0xff] %vm883_vm12, %v868_v7  ;;  %2095 = vmatprep.subr.bf16.mxu0 %v2094_v32  ;;  %2115 = vmatprep.subr.bf16.mxu1 %v2094_v32  ;;  %v785_v7 = vld [vmem:[%s2425_s10 + $0x98] sm:$0x3]  ;;  %s3318_s10 = smov 80  }
 0x139   : > { %824 = vst.msk [vmem:[#allocation2 + $0x28] sm:$0xff] %vm818_vm11, %v805_v8  ;;  %1351 = vrot.lane.b32.xlu1 %v2830_v40, %s2262_s28  ;;  %1319 = vrot.lane.b32.xlu0 %v2898_v6, %s3311_s9  ;;  %s2266_s9 = smov 100   ;;  %v1303_v8 = vsel %vm494_vm1, %v1301_v2, %v1302_v3  ;;  %v1092_v9 = vrot.slane %v785_v7, 1 }
 0x13a   : > { %2097 = vmatpush3.bf16.msra.mxu0 %v2094_v32  ;;  %2122 = vmatpush3.bf16.msra.mxu1 %v2094_v32 }
 0x13b   : > { %v1028_v15 = vpop.permute.xlu1 %1027  ;;  %v994_v16 = vpop.permute.xlu0 %993  ;;  %2099 = vmatprep.subr.bf16.mxu0 %v2098_v38  ;;  %2116 = vmatprep.subr.bf16.mxu1 %v2098_v38 }
 0x13c   : > { %1050 = vst.msk [vmem:[#allocation2 + $0x10] sm:$0xff] %vm3314_vm0, %v1028_v15 }
 0x13d   : > { %1015 = vst.msk [vmem:[#allocation2 + $0x18] sm:$0xff] %vm1011_vm15, %v994_v16  ;;  %1491 = vrot.lane.b32.xlu1 %v2827_v39, %s2266_s9  ;;  %1456 = vrot.lane.b32.xlu0 %v2830_v40, %s2265_s30 }
 0x13e   : > { %2101 = vmatpush3.bf16.msra.mxu0 %v2098_v38  ;;  %2123 = vmatpush3.bf16.msra.mxu1 %v2098_v38 }
 0x13f   : > { %v1192_v22 = vpop.permute.xlu1 %1191  ;;  %v1133_v19 = vpop.permute.xlu0 %1132 }
 0x140   : > { %1216 = vst.msk [vmem:[#allocation2] sm:$0xff] %vm3313_vm6, %v1192_v22  ;;  %v1128_v22 = vrot.slane %v785_v7, 2 }
 0x141   : > { %1156 = vst.msk [vmem:[#allocation2 + $0x8] sm:$0xff] %vm1154_vm5, %v1133_v19  ;;  %1035 = vrot.lane.b32.xlu1 %v2846_v47, %s2255_s14  ;;  %1001 = vrot.lane.b32.xlu0 %v2930_v20, %s2254_s8  ;;  %s388_s8 = sadd.s32 %s2005_s17, %s3346_s21 }
 0x142   : > { %v1129_v25 = vsel %vm494_vm1, %v1127_v21, %v1128_v22  ;;  %v1525_v22 = vrot.slane %v1182_v14, 2  ;;  %s2006_s20 = sshll.u32 %s388_s8, 1 }
 0x143   : > { %v710_v28 = vpop.permute.xlu1 %709  ;;  %v675_v29 = vpop.permute.xlu0 %674 }
 0x144   : > { %728 = vst.msk [vmem:[#allocation2 + $0x30] sm:$0xff] %vm721_vm9, %v710_v28  ;;  %v1175_v28 = vld [vmem:[%s2642_s7 + $0x60] sm:$0xff] }
 0x145   : > { %692 = vst.msk [vmem:[#allocation2 + $0x38] sm:$0xff] %vm684_vm8, %v675_v29  ;;  %1199 = vrot.lane.b32.xlu1 %v2945_v26, %s2259_s12  ;;  %1140 = vrot.lane.b32.xlu0 %v2846_v47, %s2258_s15  ;;  %v2102_v47 = vpack.c.bf16 %v1579_v43, %v1578_v42  ;;  %vm1614_vm8 = vcmask 1043456   ;;  %v1250_v35 = vrot.slane %v1175_v28, 1  ;;  %v1254_v43 = vrot.slane %v1178_v41, 1 }
 0x147   : > { %v925_v33 = vpop.permute.xlu1 %924  ;;  %v870_v34 = vpop.permute.xlu0 %869  ;;  %2103 = vmatprep.subr.bf16.mxu0 %v2102_v47  ;;  %2117 = vmatprep.subr.bf16.mxu1 %v2102_v47 }
 0x148   : > { %945 = vst.msk [vmem:[#allocation2 + $0x20] sm:$0xff] %vm940_vm13, %v925_v33  ;;  %2105 = vmatpush3.bf16.msra.mxu0 %v2102_v47  ;;  %2124 = vmatpush3.bf16.msra.mxu1 %v2102_v47  ;;  %v1176_v33 = vld [vmem:[%s2642_s7 + $0x68] sm:$0x3] }
 0x149   : > { %889 = vst.msk [vmem:[#allocation2 + $0x28] sm:$0xff] %vm883_vm12, %v870_v34  ;;  %1388 = vrot.lane.b32.xlu1 %v2867_v58, %s2263_s18  ;;  %1353 = vrot.lane.b32.xlu0 %v2945_v26, %s2262_s28  ;;  %v1177_v34 = vld [vmem:[%s2642_s7 + $0x70] sm:$0xff]  ;;  %v1251_v36 = vrot.slane %v1176_v33, 1  ;;  %v1308_v45 = vrot.slane %v1176_v33, 2 }
 0x14a   : > { %v1253_v42 = vrot.slane %v1177_v34, 1 }
 0x14b   : > { %v1062_v39 = vpop.permute.xlu1 %1061  ;;  %v1030_v40 = vpop.permute.xlu0 %1029  ;;  %v1252_v38 = vsel %vm436_vm2, %v1250_v35, %v1251_v36 }
 0x14c   : > { %1084 = vst.msk [vmem:[#allocation2 + $0x10] sm:$0xff] %vm1081_vm3, %v1062_v39 }
 0x14d   : > { %1051 = vst.msk [vmem:[#allocation2 + $0x18] sm:$0xff] %vm3314_vm0, %v1030_v40  ;;  %1527 = vrot.lane.b32.xlu1 %v2864_v57, %s2267_s16  ;;  %1493 = vrot.lane.b32.xlu0 %v2867_v58, %s2266_s9 }
 0x14f   : > { %v1257_v48 = vpop.permute.xlu1 %1256  ;;  %v1194_v49 = vpop.permute.xlu0 %1193 }
 0x150   : > { %1281 = vst.msk [vmem:[#allocation2] sm:$0xff] %vm1280_vm7, %v1257_v48  ;;  %v1255_v48 = vsel %vm436_vm2, %v1253_v42, %v1254_v43 }
 0x151   : > { %1217 = vst.msk [vmem:[#allocation2 + $0x8] sm:$0xff] %vm3313_vm6, %v1194_v49  ;;  %1069 = vrot.lane.b32.xlu1 %v2882_v63, %s2256_s13  ;;  %1037 = vrot.lane.b32.xlu0 %v2989_v44, %s2255_s14  ;;  %vm2268_vm6 = vmmov 1   ;;  %s3317_s14 = smov 92  }
 0x152   : > { %vm2107_vm0 = vmpackc.low %vm1614_vm8, %vm2268_vm6  ;;  %vm1408_vm6 = vcmask 753344  }
 0x153   : > { %v746_v55 = vpop.permute.xlu1 %745  ;;  %v712_v56 = vpop.permute.xlu0 %711  ;;  %2108 = vmatprep.subr.msk.bf16.mxu0 %vm2107_vm0, %v2106_v54  ;;  %2118 = vmatprep.subr.msk.bf16.mxu1 %vm2107_vm0, %v2106_v54 }
 0x154   : > { %764 = vst.msk [vmem:[#allocation2 + $0x30] sm:$0xff] %vm757_vm10, %v746_v55  ;;  %2111 = vmatpush3.bf16.msk.msra.mxu0 %vm2107_vm0, %v2106_v54  ;;  %2125 = vmatpush3.bf16.msk.msra.mxu1 %vm2107_vm0, %v2106_v54  ;;  %vm3319_vm0 = vcmask 490944  }
 0x155   : > { %729 = vst.msk [vmem:[#allocation2 + $0x38] sm:$0xff] %vm721_vm9, %v712_v56  ;;  %1264 = vrot.lane.b32.xlu1 %v3006_v52, %s2260_s11  ;;  %1201 = vrot.lane.b32.xlu0 %v3009_v53, %s2259_s12  ;;  %vm1337_vm9 = vcmask 687744   ;;  %vm3321_vm8 = vmmov %vm3319_vm0 }
 0x157   : > { %v959_v57 = vpop.permute.xlu1 %958  ;;  %v927_v58 = vpop.permute.xlu0 %926 }
 0x158   : > { %979 = vst.msk [vmem:[#allocation2 + $0x20] sm:$0xff] %vm974_vm14, %v959_v57 }
 0x159   : > { %946 = vst.msk [vmem:[#allocation2 + $0x28] sm:$0xff] %vm940_vm13, %v927_v58  ;;  %1424 = vrot.lane.b32.xlu1 %v2898_v6, %s3317_s14  ;;  %1390 = vrot.lane.b32.xlu0 %v3006_v52, %s2263_s18 }
 0x15b   : > { %v1099_v63 = vpop.permute.xlu1 %1098  ;;  %v1064_v0 = vpop.permute.xlu0 %1063 }
 0x15c   : > { %1121 = vst.msk [vmem:[#allocation2 + $0x10] sm:$0xff] %vm1118_vm4, %v1099_v63 }
 0x15d   : > { %1085 = vst.msk [vmem:[#allocation2 + $0x18] sm:$0xff] %vm1081_vm3, %v1064_v0  ;;  %1071 = vrot.lane.b32.xlu1 %v784_v60, %s2256_s13  ;;  %1529 = vrot.lane.b32.xlu0 %v2898_v6, %s2267_s16  ;;  %v1091_v6 = vrot.slane %v784_v60, 1  ;;  %v1180_v0 = vld [vmem:[%s2642_s7 + $0x88] sm:$0x3]  ;;  %s2002_s13 = sshll.u32 %s3346_s21, 3 }
 0x15e   : > { %v1382_v2 = vrot.slane %v1180_v0, 1 }
 0x15f   : > { %v1314_v4 = vpop.permute.xlu1 %1313  ;;  %v1259_v5 = vpop.permute.xlu0 %1258  ;;  %v1093_v12 = vsel %vm436_vm2, %v1091_v6, %v1092_v9  ;;  %v1418_v6 = vrot.slane %v1180_v0, 2 }
 0x160   : > { %1338 = vst.msk [vmem:[#allocation2] sm:$0xff] %vm1337_vm9, %v1314_v4 }
 0x161   : > { %1282 = vst.msk [vmem:[#allocation2 + $0x8] sm:$0xff] %vm1280_vm7, %v1259_v5  ;;  %1266 = vrot.lane.b32.xlu1 %v3032_v1, %s2260_s11  ;;  %1106 = vrot.lane.b32.xlu0 %v2930_v20, %s3316_s19  ;;  %v1417_v5 = vrot.slane %v1179_v61, 2 }
 0x163   : > { %v807_v10 = vpop.permute.xlu1 %806  ;;  %v748_v11 = vpop.permute.xlu0 %747 }
 0x164   : > { %825 = vst.msk [vmem:[#allocation2 + $0x30] sm:$0xff] %vm818_vm11, %v807_v10  ;;  %v1419_v10 = vsel %vm494_vm1, %v1417_v5, %v1418_v6 }
 0x165   : > { %765 = vst.msk [vmem:[#allocation2 + $0x38] sm:$0xff] %vm757_vm10, %v748_v11  ;;  %1426 = vrot.lane.b32.xlu1 %v1303_v8, %s3317_s14  ;;  %1321 = vrot.lane.b32.xlu0 %v1303_v8, %s3318_s10  ;;  %vm1371_vm10 = vcmask 720544  }
 0x167   : > { %v996_v15 = vpop.permute.xlu1 %995  ;;  %v961_v16 = vpop.permute.xlu0 %960 }
 0x168   : > { %1016 = vst.msk [vmem:[#allocation2 + $0x20] sm:$0xff] %vm1011_vm15, %v996_v15  ;;  %v1488_v15 = vrot.slane %v1181_v13, 1 }
 0x169   : > { %980 = vst.msk [vmem:[#allocation2 + $0x28] sm:$0xff] %vm974_vm14, %v961_v16  ;;  %1108 = vrot.lane.b32.xlu1 %v1093_v12, %s3316_s19  ;;  %1458 = vrot.lane.b32.xlu0 %v2945_v26, %s2265_s30  ;;  %v1489_v16 = vrot.slane %v1182_v14, 1 }
 0x16b   : > { %v1135_v18 = vpop.permute.xlu1 %1134  ;;  %v1101_v20 = vpop.permute.xlu0 %1100  ;;  %v1490_v21 = vsel %vm436_vm2, %v1488_v15, %v1489_v16 }
 0x16c   : > { %1157 = vst.msk [vmem:[#allocation2 + $0x10] sm:$0xff] %vm1154_vm5, %v1135_v18 }
 0x16d   : > { %1122 = vst.msk [vmem:[#allocation2 + $0x18] sm:$0xff] %vm1118_vm4, %v1101_v20  ;;  %1323 = vrot.lane.b32.xlu1 %v3056_v17, %s3318_s10  ;;  %1142 = vrot.lane.b32.xlu0 %v2989_v44, %s2258_s15  ;;  %v1307_v44 = vrot.slane %v1175_v28, 2  ;;  %v1524_v20 = vrot.slane %v1181_v13, 2 }
 0x16f   : > { %v1348_v19 = vpop.permute.xlu1 %1347  ;;  %v1316_v23 = vpop.permute.xlu0 %1315  ;;  %v1309_v49 = vsel %vm494_vm1, %v1307_v44, %v1308_v45 }
 0x170   : > { %1372 = vst.msk [vmem:[#allocation2] sm:$0xff] %vm1371_vm10, %v1348_v19 }
 0x171   : > { %1339 = vst.msk [vmem:[#allocation2 + $0x8] sm:$0xff] %vm1337_vm9, %v1316_v23  ;;  %1460 = vrot.lane.b32.xlu1 %v3009_v53, %s2265_s30  ;;  %1355 = vrot.lane.b32.xlu0 %v3009_v53, %s2262_s28  ;;  %v1311_v53 = vrot.slane %v1178_v41, 2 }
 0x173   : > { %v872_v26 = vpop.permute.xlu1 %871  ;;  %v809_v27 = vpop.permute.xlu0 %808 }
 0x174   : > { %890 = vst.msk [vmem:[#allocation2 + $0x30] sm:$0xff] %vm883_vm12, %v872_v26 }
 0x175   : > { %826 = vst.msk [vmem:[#allocation2 + $0x38] sm:$0xff] %vm818_vm11, %v809_v27  ;;  %1144 = vrot.lane.b32.xlu1 %v1129_v25, %s2258_s15  ;;  %1495 = vrot.lane.b32.xlu0 %v3006_v52, %s2266_s9  ;;  %vm3320_vm11 = vcmask 622144   ;;  %v1310_v52 = vrot.slane %v1177_v34, 2  ;;  %v1526_v25 = vsel %vm494_vm1, %v1524_v20, %v1525_v22  ;;  %s2003_s15 = sshll.u32 %s3340_s22, 6 }
 0x176   : > { %s380_s7 = sadd.s32 %s2003_s15, %s2002_s13 }
 0x177   : > { %v1032_v29 = vpop.permute.xlu1 %1031  ;;  %v998_v30 = vpop.permute.xlu0 %997  ;;  %v1312_v56 = vsel %vm494_vm1, %v1310_v52, %v1311_v53  ;;  %vm1551_vm1 = vcmask 884544  }
 0x178   : > { %1052 = vst.msk [vmem:[#allocation2 + $0x20] sm:$0xff] %vm3319_vm0, %v1032_v29  ;;  %vm1444_vm0 = vcmask 786144  }
 0x179   : > { %1017 = vst.msk [vmem:[#allocation2 + $0x28] sm:$0xff] %vm1011_vm15, %v998_v30  ;;  %1357 = vrot.lane.b32.xlu1 %v1175_v28, %s2262_s28  ;;  %1203 = vrot.lane.b32.xlu0 %v1175_v28, %s2259_s12 }
 0x17b   : > { %v1196_v31 = vpop.permute.xlu1 %1195  ;;  %v1137_v32 = vpop.permute.xlu0 %1136 }
 0x17c   : > { %1218 = vst.msk [vmem:[#allocation2 + $0x10] sm:$0xff] %vm3320_vm11, %v1196_v31 }
 0x17d   : > { %1158 = vst.msk [vmem:[#allocation2 + $0x18] sm:$0xff] %vm1154_vm5, %v1137_v32  ;;  %1497 = vrot.lane.b32.xlu1 %v3032_v1, %s2266_s9  ;;  %1392 = vrot.lane.b32.xlu0 %v3032_v1, %s2263_s18  ;;  %v1381_v1 = vrot.slane %v1179_v61, 1 }
 0x17f   : > { %v1385_v37 = vpop.permute.xlu1 %1384  ;;  %v1350_v24 = vpop.permute.xlu0 %1349  ;;  %v1383_v7 = vsel %vm436_vm2, %v1381_v1, %v1382_v2 }
 0x180   : > { %1409 = vst.msk [vmem:[#allocation2] sm:$0xff] %vm1408_vm6, %v1385_v37 }
 0x181   : > { %1373 = vst.msk [vmem:[#allocation2 + $0x8] sm:$0xff] %vm1371_vm10, %v1350_v24  ;;  %1205 = vrot.lane.b32.xlu1 %v1177_v34, %s2259_s12  ;;  %1531 = vrot.lane.b32.xlu0 %v1303_v8, %s2267_s16  ;;  %s2004_s12 = sshll.u32 %s380_s7, 3 }
 0x183   : > { %v929_v39 = vpop.permute.xlu1 %928  ;;  %v874_v40 = vpop.permute.xlu0 %873 }
 0x184   : > { %947 = vst.msk [vmem:[#allocation2 + $0x30] sm:$0xff] %vm940_vm13, %v929_v39 }
 0x185   : > { %891 = vst.msk [vmem:[#allocation2 + $0x38] sm:$0xff] %vm883_vm12, %v874_v40  ;;  %1394 = vrot.lane.b32.xlu1 %v1252_v38, %s2263_s18  ;;  %1268 = vrot.lane.b32.xlu0 %v1252_v38, %s2260_s11  ;;  %vm3322_vm12 = vmmov %vm3320_vm11 }
 0x186   : > { %vm3323_vm11 = vmmov %vm3321_vm8 }
 0x187   : > { %v1066_v46 = vpop.permute.xlu1 %1065  ;;  %v1034_v47 = vpop.permute.xlu0 %1033  ;;  %vm3324_vm2 = vmmov %vm3322_vm12 }
 0x188   : > { %1086 = vst.msk [vmem:[#allocation2 + $0x20] sm:$0xff] %vm1081_vm3, %v1066_v46 }
 0x189   : > { %1053 = vst.msk [vmem:[#allocation2 + $0x28] sm:$0xff] %vm3321_vm8, %v1034_v47  ;;  %1533 = vrot.lane.b32.xlu1 %v3056_v17, %s2267_s16  ;;  %1428 = vrot.lane.b32.xlu0 %v3056_v17, %s3317_s14 }
 0x18b   : > { %v1261_v50 = vpop.permute.xlu1 %1260  ;;  %v1198_v51 = vpop.permute.xlu0 %1197 }
 0x18c   : > { %1283 = vst.msk [vmem:[#allocation2 + $0x10] sm:$0xff] %vm1280_vm7, %v1261_v50 }
 0x18d   : > { %1219 = vst.msk [vmem:[#allocation2 + $0x18] sm:$0xff] %vm3322_vm12, %v1198_v51  ;;  %1270 = vrot.lane.b32.xlu0 %v1255_v48, %s2260_s11  ;;  %1325 = vrot.lane.b32.xlu1 %v1309_v49, %s3318_s10  ;;  %vm3326_vm12 = vmmov %vm3324_vm2 }
 0x18f   : > { %v1421_v54 = vpop.permute.xlu1 %1420  ;;  %v1387_v55 = vpop.permute.xlu0 %1386 }
 0x190   : > { %1445 = vst.msk [vmem:[#allocation2] sm:$0xff] %vm1444_vm0, %v1421_v54 }
 0x191   : > { %1410 = vst.msk [vmem:[#allocation2 + $0x8] sm:$0xff] %vm1408_vm6, %v1387_v55  ;;  %1430 = vrot.lane.b32.xlu0 %v1309_v49, %s3317_s14  ;;  %1462 = vrot.lane.b32.xlu1 %v1175_v28, %s2265_s30 }
 0x193   : > { %v963_v57 = vpop.permute.xlu1 %962  ;;  %v931_v58 = vpop.permute.xlu0 %930 }
 0x194   : > { %981 = vst.msk [vmem:[#allocation2 + $0x30] sm:$0xff] %vm974_vm14, %v963_v57 }
 0x195   : > { %948 = vst.msk [vmem:[#allocation2 + $0x38] sm:$0xff] %vm940_vm13, %v931_v58  ;;  %1327 = vrot.lane.b32.xlu0 %v1312_v56, %s3318_s10  ;;  %1359 = vrot.lane.b32.xlu1 %v1177_v34, %s2262_s28  ;;  %vm1478_vm13 = vcmask 818944   ;;  %s390_s10 = scalar_lea.vmem %s3304_s6, %s2006_s20 }
 0x197   : > { %v1103_v59 = vpop.permute.xlu1 %1102  ;;  %v1068_v60 = vpop.permute.xlu0 %1067 }
 0x198   : > { %1123 = vst.msk [vmem:[#allocation2 + $0x20] sm:$0xff] %vm1118_vm4, %v1103_v59 }
 0x199   : > { %1087 = vst.msk [vmem:[#allocation2 + $0x28] sm:$0xff] %vm1081_vm3, %v1068_v60  ;;  %1464 = vrot.lane.b32.xlu0 %v1177_v34, %s2265_s30  ;;  %1499 = vrot.lane.b32.xlu1 %v1252_v38, %s2266_s9 }
 0x19b   : > { %v1318_v62 = vpop.permute.xlu1 %1317  ;;  %v1263_v63 = vpop.permute.xlu0 %1262 }
 0x19c   : > { %1340 = vst.msk [vmem:[#allocation2 + $0x10] sm:$0xff] %vm1337_vm9, %v1318_v62 }
 0x19d   : > { %1284 = vst.msk [vmem:[#allocation2 + $0x18] sm:$0xff] %vm1280_vm7, %v1263_v63  ;;  %1361 = vrot.lane.b32.xlu0 %v1179_v61, %s2262_s28  ;;  %1396 = vrot.lane.b32.xlu1 %v1255_v48, %s2263_s18 }
 0x19f   : > { %v1455_v3 = vpop.permute.xlu1 %1454  ;;  %v1423_v4 = vpop.permute.xlu0 %1422 }
 0x1a0   : > { %1479 = vst.msk [vmem:[#allocation2] sm:$0xff] %vm1478_vm13, %v1455_v3 }
 0x1a1   : > { %1446 = vst.msk [vmem:[#allocation2 + $0x8] sm:$0xff] %vm1444_vm0, %v1423_v4  ;;  %1501 = vrot.lane.b32.xlu0 %v1255_v48, %s2266_s9  ;;  %1535 = vrot.lane.b32.xlu1 %v1309_v49, %s2267_s16 }
 0x1a3   : > { %v1000_v8 = vpop.permute.xlu1 %999  ;;  %v965_v9 = vpop.permute.xlu0 %964 }
 0x1a4   : > { %1018 = vst.msk [vmem:[#allocation2 + $0x30] sm:$0xff] %vm1011_vm15, %v1000_v8 }
 0x1a5   : > { %982 = vst.msk [vmem:[#allocation2 + $0x38] sm:$0xff] %vm974_vm14, %v965_v9  ;;  %1398 = vrot.lane.b32.xlu0 %v1383_v7, %s2263_s18  ;;  %1432 = vrot.lane.b32.xlu1 %v1312_v56, %s3317_s14  ;;  %vm1515_vm14 = vcmask 851744   ;;  %s3238_s18 = scalar_lea.vmem %s3303_s5, %s2004_s12 }
 0x1a7   : > { %v1139_v11 = vpop.permute.xlu1 %1138  ;;  %v1105_v12 = vpop.permute.xlu0 %1104 }
 0x1a8   : > { %1159 = vst.msk [vmem:[#allocation2 + $0x20] sm:$0xff] %vm1154_vm5, %v1139_v11 }
 0x1a9   : > { %1124 = vst.msk [vmem:[#allocation2 + $0x28] sm:$0xff] %vm1118_vm4, %v1105_v12  ;;  %1537 = vrot.lane.b32.xlu0 %v1312_v56, %s2267_s16  ;;  %1434 = vrot.lane.b32.xlu1 %v1419_v10, %s3317_s14 }
 0x1ab   : > { %v1352_v17 = vpop.permute.xlu1 %1351  ;;  %v1320_v18 = vpop.permute.xlu0 %1319 }
 0x1ac   : > { %1374 = vst.msk [vmem:[#allocation2 + $0x10] sm:$0xff] %vm1371_vm10, %v1352_v17 }
 0x1ad   : > { %1341 = vst.msk [vmem:[#allocation2 + $0x18] sm:$0xff] %vm1337_vm9, %v1320_v18  ;;  %1466 = vrot.lane.b32.xlu0 %v1179_v61, %s2265_s30  ;;  %1468 = vrot.lane.b32.xlu1 %v1181_v13, %s2265_s30 }
 0x1af   : > { %v1492_v19 = vpop.permute.xlu1 %1491  ;;  %v1457_v23 = vpop.permute.xlu0 %1456 }
 0x1b0   : > { %1516 = vst.msk [vmem:[#allocation2] sm:$0xff] %vm1515_vm14, %v1492_v19 }
 0x1b1   : > { %1480 = vst.msk [vmem:[#allocation2 + $0x8] sm:$0xff] %vm1478_vm13, %v1457_v23  ;;  %1503 = vrot.lane.b32.xlu0 %v1383_v7, %s2266_s9  ;;  %1505 = vrot.lane.b32.xlu1 %v1490_v21, %s2266_s9 }
 0x1b3   : > { %v1036_v26 = vpop.permute.xlu1 %1035  ;;  %v1002_v27 = vpop.permute.xlu0 %1001 }
 0x1b4   : > { %1054 = vst.msk [vmem:[#allocation2 + $0x30] sm:$0xff] %vm3323_vm11, %v1036_v26 }
 0x1b5   : > { %1019 = vst.msk [vmem:[#allocation2 + $0x38] sm:$0xff] %vm1011_vm15, %v1002_v27  ;;  %1539 = vrot.lane.b32.xlu0 %v1419_v10, %s2267_s16  ;;  %1541 = vrot.lane.b32.xlu1 %v1526_v25, %s2267_s16  ;;  %vm3325_vm15 = vmmov %vm3321_vm8  ;;  %vm1589_vm8 = vcmask 883712  }
 0x1b7   : > { %v1200_v28 = vpop.permute.xlu1 %1199  ;;  %v1141_v29 = vpop.permute.xlu0 %1140 }
 0x1b8   : > { %1220 = vst.msk [vmem:[#allocation2 + $0x20] sm:$0xff] %vm3324_vm2, %v1200_v28 }
 0x1b9   : > { %1160 = vst.msk [vmem:[#allocation2 + $0x28] sm:$0xff] %vm1154_vm5, %v1141_v29 }
 0x1bb   : > { %v1389_v30 = vpop.permute.xlu1 %1388  ;;  %v1354_v31 = vpop.permute.xlu0 %1353 }
 0x1bc   : > { %1411 = vst.msk [vmem:[#allocation2 + $0x10] sm:$0xff] %vm1408_vm6, %v1389_v30  ;;  %v2007_v30 = vld [vmem:[%s3302_s4] ss:$0 sm:$0xff] }
 0x1bd   : > { %1375 = vst.msk [vmem:[#allocation2 + $0x18] sm:$0xff] %vm1371_vm10, %v1354_v31 }
 0x1bf   : > { %v1528_v32 = vpop.permute.xlu1 %1527  ;;  %v1494_v33 = vpop.permute.xlu0 %1493 }
 0x1c0   : > { %1552 = vst.msk [vmem:[#allocation2] sm:$0xff] %vm1551_vm1, %v1528_v32 }
 0x1c1   : > { %1517 = vst.msk [vmem:[#allocation2 + $0x8] sm:$0xff] %vm1515_vm14, %v1494_v33 }
 0x1c3   : > { %v1070_v34 = vpop.permute.xlu1 %1069  ;;  %v1038_v35 = vpop.permute.xlu0 %1037 }
 0x1c4   : > { %1088 = vst.msk [vmem:[#allocation2 + $0x30] sm:$0xff] %vm1081_vm3, %v1070_v34 }
 0x1c5   : > { %1055 = vst.msk [vmem:[#allocation2 + $0x38] sm:$0xff] %vm3325_vm15, %v1038_v35 }
 0x1c7   : > { %v1265_v36 = vpop.permute.xlu1 %1264  ;;  %v1202_v37 = vpop.permute.xlu0 %1201  ;;  %v1560_v24 = vld [vmem:[#allocation2] sm:$0xff] }
 0x1c8   : > { %1285 = vst.msk [vmem:[#allocation2 + $0x20] sm:$0xff] %vm1280_vm7, %v1265_v36  ;;  %2070 = vmatprep.mubr.msk.f32.mxu0 %vm1589_vm8, %v1560_v24 }
 0x1c9   : > { %1221 = vst.msk [vmem:[#allocation2 + $0x28] sm:$0xff] %vm3326_vm12, %v1202_v37 }
 0x1cb   : > { %v1425_v38 = vpop.permute.xlu1 %1424  ;;  %v1391_v39 = vpop.permute.xlu0 %1390 }
 0x1cc   : > { %1447 = vst.msk [vmem:[#allocation2 + $0x10] sm:$0xff] %vm1444_vm0, %v1425_v38  ;;  %v1732_v38 = vlaneseq }
 0x1cd   : > { %1412 = vst.msk [vmem:[#allocation2 + $0x18] sm:$0xff] %vm1408_vm6, %v1391_v39 }
 0x1ce   : > { %v1733_v39 = vand.u32 127, %v1732_v38 }
 0x1cf   : > { %v1072_v40 = vpop.permute.xlu1 %1071  ;;  %v1530_v41 = vpop.permute.xlu0 %1529 }
 0x1d0   : > { %1089 = vst.msk [vmem:[#allocation2 + $0x38] sm:$0xff] %vm1081_vm3, %v1072_v40  ;;  %vm3327_vm3 = vmmov %vm3324_vm2  ;;  %v2269_v40 = vmov 0.0  }
 0x1d1   : > { %1553 = vst.msk [vmem:[#allocation2 + $0x8] sm:$0xff] %vm1551_vm1, %v1530_v41 }
 0x1d3   : > { %v1267_v42 = vpop.permute.xlu1 %1266  ;;  %v1107_v43 = vpop.permute.xlu0 %1106 }
 0x1d4   : > { %1286 = vst.msk [vmem:[#allocation2 + $0x28] sm:$0xff] %vm1280_vm7, %v1267_v42 }
 0x1d5   : > { %1125 = vst.msk [vmem:[#allocation2 + $0x30] sm:$0xff] %vm1118_vm4, %v1107_v43 }
 0x1d7   : > { %v1427_v44 = vpop.permute.xlu1 %1426  ;;  %v1322_v45 = vpop.permute.xlu0 %1321 }
 0x1d8   : > { %v1561_v46 = vld [vmem:[#allocation2 + $0x8] sm:$0xff]  ;;  %1448 = vst.msk [vmem:[#allocation2 + $0x18] sm:$0xff] %vm1444_vm0, %v1427_v44 }
 0x1d9   : > { %1342 = vst.msk [vmem:[#allocation2 + $0x20] sm:$0xff] %vm1337_vm9, %v1322_v45  ;;  %2071 = vmatmul.mubr.msk.f32.vlgmr.msra.gmra.mrb[0].mxu0 %vm1589_vm8, %v1561_v46 }
 0x1db   : > { %v1109_v47 = vpop.permute.xlu1 %1108  ;;  %v1459_v48 = vpop.permute.xlu0 %1458 }
 0x1dc   : > { %1126 = vst.msk [vmem:[#allocation2 + $0x38] sm:$0xff] %vm1118_vm4, %v1109_v47  ;;  %vm3328_vm4 = vmmov %vm3324_vm2 }
 0x1dd   : > { %1481 = vst.msk [vmem:[#allocation2 + $0x10] sm:$0xff] %vm1478_vm13, %v1459_v48 }
 0x1df   : > { %v1324_v49 = vpop.permute.xlu1 %1323  ;;  %v1143_v50 = vpop.permute.xlu0 %1142 }
 0x1e0   : > { %1343 = vst.msk [vmem:[#allocation2 + $0x28] sm:$0xff] %vm1337_vm9, %v1324_v49 }
 0x1e1   : > { %1161 = vst.msk [vmem:[#allocation2 + $0x30] sm:$0xff] %vm1154_vm5, %v1143_v50 }
 0x1e3   : > { %v1461_v51 = vpop.permute.xlu1 %1460  ;;  %v1356_v52 = vpop.permute.xlu0 %1355 }
 0x1e4   : > { %1482 = vst.msk [vmem:[#allocation2 + $0x18] sm:$0xff] %vm1478_vm13, %v1461_v51 }
 0x1e5   : > { %1376 = vst.msk [vmem:[#allocation2 + $0x20] sm:$0xff] %vm1371_vm10, %v1356_v52 }
 0x1e7   : > { %v1145_v53 = vpop.permute.xlu1 %1144  ;;  %v1496_v54 = vpop.permute.xlu0 %1495 }
 0x1e8   : > { %1162 = vst.msk [vmem:[#allocation2 + $0x38] sm:$0xff] %vm1154_vm5, %v1145_v53  ;;  %vm1723_vm5 = vcmask 64512  }
 0x1e9   : > { %1518 = vst.msk [vmem:[#allocation2 + $0x10] sm:$0xff] %vm1515_vm14, %v1496_v54 }
 0x1eb   : > { %v1358_v55 = vpop.permute.xlu1 %1357  ;;  %v1204_v56 = vpop.permute.xlu0 %1203 }
 0x1ec   : > { %1377 = vst.msk [vmem:[#allocation2 + $0x28] sm:$0xff] %vm1371_vm10, %v1358_v55 }
 0x1ed   : > { %1222 = vst.msk [vmem:[#allocation2 + $0x30] sm:$0xff] %vm3327_vm3, %v1204_v56 }
 0x1ef   : > { %v1498_v57 = vpop.permute.xlu1 %1497  ;;  %v1393_v58 = vpop.permute.xlu0 %1392 }
 0x1f0   : > { %1519 = vst.msk [vmem:[#allocation2 + $0x18] sm:$0xff] %vm1515_vm14, %v1498_v57 }
 0x1f1   : > { %1413 = vst.msk [vmem:[#allocation2 + $0x20] sm:$0xff] %vm1408_vm6, %v1393_v58 }
 0x1f3   : > { %v1206_v59 = vpop.permute.xlu1 %1205  ;;  %v1532_v60 = vpop.permute.xlu0 %1531 }
 0x1f4   : > { %1223 = vst.msk [vmem:[#allocation2 + $0x38] sm:$0xff] %vm3328_vm4, %v1206_v59 }
 0x1f5   : > { %1554 = vst.msk [vmem:[#allocation2 + $0x10] sm:$0xff] %vm1551_vm1, %v1532_v60 }
 0x1f7   : > { %v1395_v61 = vpop.permute.xlu1 %1394  ;;  %v1269_v62 = vpop.permute.xlu0 %1268 }
 0x1f8   : > { %1414 = vst.msk [vmem:[#allocation2 + $0x28] sm:$0xff] %vm1408_vm6, %v1395_v61 }
 0x1f9   : > { %1287 = vst.msk [vmem:[#allocation2 + $0x30] sm:$0xff] %vm1280_vm7, %v1269_v62 }
 0x1fb   : > { %v1534_v63 = vpop.permute.xlu1 %1533  ;;  %v1429_v0 = vpop.permute.xlu0 %1428 }
 0x1fc   : > { %v1562_v1 = vld [vmem:[#allocation2 + $0x10] sm:$0xff]  ;;  %1555 = vst.msk [vmem:[#allocation2 + $0x18] sm:$0xff] %vm1551_vm1, %v1534_v63 }
 0x1fd   : > { %1449 = vst.msk [vmem:[#allocation2 + $0x20] sm:$0xff] %vm1444_vm0, %v1429_v0  ;;  %2073 = vmatprep.mubr.msk.f32.mxu0 %vm1589_vm8, %v1562_v1 }
 0x1ff   : > { %v1271_v2 = vpop.permute.xlu0 %1270  ;;  %v1326_v3 = vpop.permute.xlu1 %1325 }
 0x200   : > { %1288 = vst.msk [vmem:[#allocation2 + $0x38] sm:$0xff] %vm1280_vm7, %v1271_v2  ;;  %vm1734_vm7 = vcmp.lt.s32.totalorder %v1733_v39, 8 }
 0x201   : > { %1344 = vst.msk [vmem:[#allocation2 + $0x30] sm:$0xff] %vm1337_vm9, %v1326_v3  ;;  %v3248_v41 = vsel %vm1734_vm7, 1.0, %v2269_v40 }
 0x203   : > { %v1431_v4 = vpop.permute.xlu0 %1430  ;;  %v1463_v5 = vpop.permute.xlu1 %1462  ;;  %v1563_v7 = vld [vmem:[#allocation2 + $0x18] sm:$0xff] }
 0x204   : > { %1450 = vst.msk [vmem:[#allocation2 + $0x28] sm:$0xff] %vm1444_vm0, %v1431_v4  ;;  %2074 = vmatmul.mubr.msk.f32.gmra.mrb[2].mxu0 %vm1589_vm8, %v1563_v7 }
 0x205   : > { %1483 = vst.msk [vmem:[#allocation2 + $0x20] sm:$0xff] %vm1478_vm13, %v1463_v5 }
 0x207   : > { %v1328_v6 = vpop.permute.xlu0 %1327  ;;  %v1360_v8 = vpop.permute.xlu1 %1359 }
 0x208   : > { %1345 = vst.msk [vmem:[#allocation2 + $0x38] sm:$0xff] %vm1337_vm9, %v1328_v6  ;;  %vm1807_vm9 = vcmask 1040384  }
 0x209   : > { %1378 = vst.msk [vmem:[#allocation2 + $0x30] sm:$0xff] %vm1371_vm10, %v1360_v8 }
 0x20b   : > { %v1465_v9 = vpop.permute.xlu0 %1464  ;;  %v1500_v10 = vpop.permute.xlu1 %1499 }
 0x20c   : > { %1484 = vst.msk [vmem:[#allocation2 + $0x28] sm:$0xff] %vm1478_vm13, %v1465_v9 }
 0x20d   : > { %1520 = vst.msk [vmem:[#allocation2 + $0x20] sm:$0xff] %vm1515_vm14, %v1500_v10 }
 0x20f   : > { %v1362_v11 = vpop.permute.xlu0 %1361  ;;  %v1397_v12 = vpop.permute.xlu1 %1396 }
 0x210   : > { %1379 = vst.msk [vmem:[#allocation2 + $0x38] sm:$0xff] %vm1371_vm10, %v1362_v11 }
 0x211   : > { %1415 = vst.msk [vmem:[#allocation2 + $0x30] sm:$0xff] %vm1408_vm6, %v1397_v12 }
 0x213   : > { %v1502_v13 = vpop.permute.xlu0 %1501  ;;  %v1536_v14 = vpop.permute.xlu1 %1535 }
 0x214   : > { %1521 = vst.msk [vmem:[#allocation2 + $0x28] sm:$0xff] %vm1515_vm14, %v1502_v13 }
 0x215   : > { %1556 = vst.msk [vmem:[#allocation2 + $0x20] sm:$0xff] %vm1551_vm1, %v1536_v14 }
 0x217   : > { %v1399_v15 = vpop.permute.xlu0 %1398  ;;  %v1433_v16 = vpop.permute.xlu1 %1432 }
 0x218   : > { %1416 = vst.msk [vmem:[#allocation2 + $0x38] sm:$0xff] %vm1408_vm6, %v1399_v15 }
 0x219   : > { %1451 = vst.msk [vmem:[#allocation2 + $0x30] sm:$0xff] %vm1444_vm0, %v1433_v16 }
 0x21b   : > { %v1538_v17 = vpop.permute.xlu0 %1537  ;;  %v1435_v18 = vpop.permute.xlu1 %1434 }
 0x21c   : > { %v1564_v20 = vld [vmem:[#allocation2 + $0x20] sm:$0xff]  ;;  %1557 = vst.msk [vmem:[#allocation2 + $0x28] sm:$0xff] %vm1551_vm1, %v1538_v17 }
 0x21d   : > { %1452 = vst.msk [vmem:[#allocation2 + $0x38] sm:$0xff] %vm1444_vm0, %v1435_v18  ;;  %2076 = vmatprep.mubr.msk.f32.mxu1 %vm1589_vm8, %v1564_v20 }
 0x21f   : > { %v1467_v21 = vpop.permute.xlu0 %1466  ;;  %v1469_v22 = vpop.permute.xlu1 %1468 }
 0x220   : > { %1485 = vst.msk [vmem:[#allocation2 + $0x30] sm:$0xff] %vm1478_vm13, %v1467_v21  ;;  %1486 = vst.msk [vmem:[#allocation2 + $0x38] sm:$0xff] %vm1478_vm13, %v1469_v22 }
 0x223   : > { %v1504_v19 = vpop.permute.xlu0 %1503  ;;  %v1506_v23 = vpop.permute.xlu1 %1505  ;;  %v1565_v25 = vld [vmem:[#allocation2 + $0x28] sm:$0xff] }
 0x224   : > { %1522 = vst.msk [vmem:[#allocation2 + $0x30] sm:$0xff] %vm1515_vm14, %v1504_v19  ;;  %1523 = vst.msk [vmem:[#allocation2 + $0x38] sm:$0xff] %vm1515_vm14, %v1506_v23  ;;  %2077 = vmatmul.mubr.msk.f32.vlgmr.msra.gmra.mrb[0].mxu1 %vm1589_vm8, %v1565_v25 }
 0x227   : > { %v1540_v26 = vpop.permute.xlu0 %1539  ;;  %v1542_v27 = vpop.permute.xlu1 %1541 }
 0x228   : > { %1558 = vst.msk [vmem:[#allocation2 + $0x30] sm:$0xff] %vm1551_vm1, %v1540_v26  ;;  %1559 = vst.msk [vmem:[#allocation2 + $0x38] sm:$0xff] %vm1551_vm1, %v1542_v27 }
 0x22f   : > { %v1566_v28 = vld [vmem:[#allocation2 + $0x30] sm:$0xff]  ;;  %v1567_v29 = vld [vmem:[#allocation2 + $0x38] sm:$0xff] }
 0x230   : > { %2079 = vmatprep.mubr.msk.f32.mxu1 %vm1589_vm8, %v1566_v28 }
 0x231   : > { %2080 = vmatmul.mubr.msk.f32.gmra.mrb[2].mxu1 %vm1589_vm8, %v1567_v29 }
 0x2ac   : > { %v2072_v31 = vpop.f32.mrb[0].mxu0 }
 0x2ad   : > { %v1690_v32 = vadd.f32 %v2072_v31, %v2007_v30  ;;  %v1684_v33 = vpop.f32.mrb[1].mxu0 }
 0x2ae   : > { %v1685_v34 = vadd.f32 %v2007_v30, %v1684_v33 }
 0x2af   : > { %1725 = vst.msk [vmem:[%s3238_s18 + $0x8] sm:$0xff] %vm1723_vm5, %v1690_v32  ;;  %v1738_v43 = vmul.f32 %v3248_v41, %v1690_v32 }
 0x2b0   : > { %1724 = vst.msk [vmem:[%s3238_s18] sm:$0xff] %vm1723_vm5, %v1685_v34  ;;  %v1737_v44 = vmul.f32 %v3248_v41, %v1685_v34 }
 0x2b2   : > { %v1745_v49 = vadd.f32 %v1738_v43, %v1737_v44 }
 0x2d7   : > { %v2075_v35 = vpop.f32.mrb[2].mxu0 }
 0x2d8   : > { %v1700_v36 = vadd.f32 %v2075_v35, %v2007_v30  ;;  %v1694_v37 = vpop.f32.mrb[3].mxu0 }
 0x2d9   : > { %v1695_v24 = vadd.f32 %v2007_v30, %v1694_v37 }
 0x2da   : > { %1727 = vst.msk [vmem:[%s3238_s18 + $0x18] sm:$0xff] %vm1723_vm5, %v1700_v36  ;;  %v1740_v51 = vmul.f32 %v3248_v41, %v1700_v36 }
 0x2db   : > { %1726 = vst.msk [vmem:[%s3238_s18 + $0x10] sm:$0xff] %vm1723_vm5, %v1695_v24  ;;  %v1739_v48 = vmul.f32 %v3248_v41, %v1695_v24 }
 0x2dd   : > { %v1746_v50 = vadd.f32 %v1745_v49, %v1739_v48 }
 0x2df   : > { %v1747_v53 = vadd.f32 %v1746_v50, %v1740_v51 }
 0x2f7   : > { %v2078_v42 = vpop.f32.mrb[0].mxu1 }
 0x2f8   : > { %v1710_v45 = vadd.f32 %v2078_v42, %v2007_v30  ;;  %v1704_v46 = vpop.f32.mrb[1].mxu1 }
 0x2f9   : > { %v1705_v47 = vadd.f32 %v2007_v30, %v1704_v46 }
 0x2fa   : > { %1729 = vst.msk [vmem:[%s3238_s18 + $0x28] sm:$0xff] %vm1723_vm5, %v1710_v45  ;;  %v1742_v58 = vmul.f32 %v3248_v41, %v1710_v45 }
 0x2fb   : > { %1728 = vst.msk [vmem:[%s3238_s18 + $0x20] sm:$0xff] %vm1723_vm5, %v1705_v47  ;;  %v1741_v52 = vmul.f32 %v3248_v41, %v1705_v47 }
 0x2fd   : > { %v1748_v54 = vadd.f32 %v1747_v53, %v1741_v52 }
 0x2ff   : > { %v1749_v61 = vadd.f32 %v1748_v54, %v1742_v58 }
 0x304   : > { %v2081_v55 = vpop.f32.mrb[2].mxu1 }
 0x305   : > { %v1720_v56 = vadd.f32 %v2081_v55, %v2007_v30  ;;  %v1714_v57 = vpop.f32.mrb[3].mxu1 }
 0x306   : > { %v1715_v59 = vadd.f32 %v2007_v30, %v1714_v57 }
 0x307   : > { %1731 = vst.msk [vmem:[%s3238_s18 + $0x38] sm:$0xff] %vm1723_vm5, %v1720_v56  ;;  %v1744_v62 = vmul.f32 %v3248_v41, %v1720_v56 }
 0x308   : > { %1730 = vst.msk [vmem:[%s3238_s18 + $0x30] sm:$0xff] %vm1723_vm5, %v1715_v59  ;;  %v1743_v60 = vmul.f32 %v3248_v41, %v1715_v59 }
 0x30a   : > { %v1750_v63 = vadd.f32 %v1749_v61, %v1743_v60 }
 0x30c   : > { %v1751_v0 = vadd.f32 %v1750_v63, %v1744_v62 }
 0x30e   : > { %1752 = vadd.xlane.f32.xlu0 %v1751_v0 }
 0x39b   : > { %v1753_v1 = vpop.xlane.xlu0 %1752 }
 0x39c   : > { %v1754_v2 = vrot.slane %v1753_v1, 4 }
 0x39e   : > { %v1755_v3 = vadd.f32 %v1754_v2, %v1753_v1 }
 0x3a0   : > { %v1756_v4 = vrot.slane %v1755_v3, 2 }
 0x3a2   : > { %v1757_v5 = vadd.f32 %v1756_v4, %v1755_v3 }
 0x3a4   : > { %v1758_v7 = vrot.slane %v1757_v5, 1 }
 0x3a6   : > { %v1759_v6 = vadd.f32 %v1758_v7, %v1757_v5 }
 0x3a8   : > { %2130 = vpush %v1759_v6 }
 0x3d9   : > { %s3266_s30 = spop %2130 }
 0x3da   : > { %s1763_s16 = smul.f32 0.001953125, %s3266_s30 }
 0x3dc   : > { %v1764_v8 = vstv %s1763_s16 }
 0x3dd   : > { %v1765_v9 = vsub.f32 %v1685_v34, %v1764_v8  ;;  %v1766_v10 = vsub.f32 %v1690_v32, %v1764_v8  ;;  %v1767_v11 = vsub.f32 %v1695_v24, %v1764_v8  ;;  %v1768_v12 = vsub.f32 %v1700_v36, %v1764_v8 }
 0x3de   : > { %v1769_v15 = vsub.f32 %v1705_v47, %v1764_v8  ;;  %v1770_v17 = vsub.f32 %v1710_v45, %v1764_v8  ;;  %v1771_v22 = vsub.f32 %v1715_v59, %v1764_v8  ;;  %v1772_v26 = vsub.f32 %v1720_v56, %v1764_v8 }
 0x3df   : > { %v1773_v13 = vmul.f32 %v1765_v9, %v1765_v9  ;;  %v1774_v14 = vmul.f32 %v1766_v10, %v1766_v10  ;;  %v1775_v16 = vmul.f32 %v1767_v11, %v1767_v11  ;;  %v1776_v18 = vmul.f32 %v1768_v12, %v1768_v12 }
 0x3e0   : > { %v1777_v19 = vmul.f32 %v1769_v15, %v1769_v15  ;;  %v1778_v27 = vmul.f32 %v1770_v17, %v1770_v17  ;;  %v1779_v30 = vmul.f32 %v1771_v22, %v1771_v22  ;;  %v1780_v33 = vmul.f32 %v1772_v26, %v1772_v26 }
 0x3e1   : > { %v1781_v20 = vmul.f32 %v3248_v41, %v1773_v13  ;;  %v1782_v21 = vmul.f32 %v3248_v41, %v1774_v14  ;;  %v1783_v23 = vmul.f32 %v3248_v41, %v1775_v16  ;;  %v1784_v28 = vmul.f32 %v3248_v41, %v1776_v18 }
 0x3e2   : > { %v1785_v31 = vmul.f32 %v3248_v41, %v1777_v19  ;;  %v1786_v34 = vmul.f32 %v3248_v41, %v1778_v27  ;;  %v1787_v36 = vmul.f32 %v3248_v41, %v1779_v30  ;;  %v1788_v24 = vmul.f32 %v3248_v41, %v1780_v33 }
 0x3e3   : > { %v1789_v25 = vadd.f32 %v1782_v21, %v1781_v20  ;;  %v1805_v41 = vstv %s3266_s30 }
 0x3e5   : > { %v1790_v29 = vadd.f32 %v1789_v25, %v1783_v23 }
 0x3e7   : > { %v1791_v32 = vadd.f32 %v1790_v29, %v1784_v28 }
 0x3e9   : > { %v1792_v35 = vadd.f32 %v1791_v32, %v1785_v31 }
 0x3eb   : > { %v1793_v37 = vadd.f32 %v1792_v35, %v1786_v34 }
 0x3ed   : > { %v1794_v38 = vadd.f32 %v1793_v37, %v1787_v36 }
 0x3ef   : > { %v1795_v39 = vadd.f32 %v1794_v38, %v1788_v24 }
 0x3f1   : > { %1796 = vadd.xlane.f32.xlu1 %v1795_v39 }
 0x47e   : > { %v1797_v40 = vpop.xlane.xlu1 %1796 }
 0x47f   : > { %v1798_v42 = vrot.slane %v1797_v40, 4 }
 0x481   : > { %v1799_v43 = vadd.f32 %v1798_v42, %v1797_v40 }
 0x483   : > { %v1800_v44 = vrot.slane %v1799_v43, 2 }
 0x485   : > { %v1801_v45 = vadd.f32 %v1800_v44, %v1799_v43 }
 0x487   : > { %v1802_v46 = vrot.slane %v1801_v45, 1 }
 0x489   : > { %v1803_v47 = vadd.f32 %v1802_v46, %v1801_v45 }
 0x48b   : > { %2132 = vpush %v1803_v47 }
 0x4bc   : > { %s2133_s13 = spop %2132 }
 0x4bd   : > { %v1806_v48 = vstv %s2133_s13 }
 0x4be   : > { %v1808_v49 = vsel %vm1807_vm9, %v1805_v41, %v1806_v48 }
 0x4bf   : > { %1809 = vst [vmem:[%s390_s10] sm:$0x3] %v1808_v49 }
 0x4c0 PF: > { %s17_s25 = sadd.s32 1, %s2240_s25   ;;  %s3329_s21 = smov %s2232_s23 }
 0x4c1   : > { %p14_p10 = scmp.ge.s32.totalorder %s17_s25, 18   ;;  %s3330_s22 = smov %s2236_s24 }
 0x4c2   : > { %s3331_s23 = smov %s3334_s26  ;;  %s3332_s24 = smov %s3338_s27 }
 0x4c3   :  { %16 = sbr.rel (!%p14_p10) target bundleno = 3 (0x3), region = 88 }

</bundles_post_ra>
